<compile_context>
chip_gen: v7x
topology: tpu7x:2x2x1
jax: 0.10.0
libtpu: 0.0.40
codegen_flags: <defaults>
</compile_context>

<pallas_src>
import functools

import jax
import jax.numpy as jnp
from jax import lax
from jax.experimental import pallas as pl
from jax.experimental.pallas import tpu as pltpu


# ----------------------------------------------------------------------------
# Helpers
# ----------------------------------------------------------------------------
def _reduce_channel_blocks(acc, cin, W):
    """acc: (cout, cin*W) -> (cout, W), summing the cin lane blocks."""
    if cin == 1:
        return acc
    if W % 128 == 0:
        # Slices are vreg-aligned: just pick-and-add vregs.
        red = acc[:, 0:W]
        for ci in range(1, cin):
            red = red + acc[:, ci * W:(ci + 1) * W]
        return red
    # W < 128: log-tree reduction with lane rotations (cin must be a power of two).
    assert cin & (cin - 1) == 0, "cin must be a power of two when W < 128"
    n = cin * W
    r = acc
    half = n // 2
    while half >= W:
        r = r + pltpu.roll(r, n - half, axis=1)   # r[j] += r[(j + half) % n]
        half //= 2
    return r[:, 0:W]


# ----------------------------------------------------------------------------
# Fused conv block kernel:
#   Conv2d(3x3, pad=1) + bias -> ReLU -> MaxPool2d(2) -> Dropout(id) -> BN affine
# Layouts (per grid step (n, c)):
#   x_ref      : (1, H, Cin*W)     full fused image (channels concatenated on lanes)
#   w_ref      : (9, Cout, Cin*W)  per-tap weight slabs, edge lanes pre-zeroed
#   b_ref      : (Cout, W)         conv bias, broadcast along W
#   se_ref     : (W, Wo)           0/1 even-column selection matrix
#   so_ref     : (W, Wo)           0/1 odd-column selection matrix
#   scale_ref  : (1, Cout, Wo)     folded BN scale
#   shift_ref  : (1, Cout, Wo)     folded BN shift
#   o_ref      : (1, RC, Cout, Wo) this chunk's pooled + normalized rows
#   prepool_ref: (RC, Cout, W)     VMEM scratch: ReLU'd conv rows, H-pooled only
# ----------------------------------------------------------------------------
def _conv_block_kernel(x_ref, w_ref, b_ref, se_ref, so_ref, scale_ref, shift_ref,
                       o_ref, prepool_ref, *, cin, cout, H, W, RC):
    CinW = cin * W
    Wo = W // 2
    r0 = pl.program_id(1) * RC          # first pooled row handled by this step

    def row_body(rl, carry):
        r = r0 + rl                     # global pooled row
        y0 = 2 * r - 1                  # topmost input row touched by conv rows 2r, 2r+1
        acc0 = jnp.zeros((cout, CinW), jnp.float32)   # conv row 2r
        acc1 = jnp.zeros((cout, CinW), jnp.float32)   # conv row 2r+1
        for dy in range(3):
            ya = y0 + dy                # input row feeding conv row 2r   at this dy
            yb = ya + 1                 # input row feeding conv row 2r+1 at this dy
            if dy == 0:                 # ya == -1 only possible here (r == 0)
                rowa = x_ref[0, pl.ds(jnp.maximum(ya, 0), 1), :]
                rowa = rowa * (ya >= 0).astype(jnp.float32)
            else:
                rowa = x_ref[0, pl.ds(ya, 1), :]
            if dy == 2:                 # yb == H only possible here (r == Ho-1)
                rowb = x_ref[0, pl.ds(jnp.minimum(yb, H - 1), 1), :]
                rowb = rowb * (yb <= H - 1).astype(jnp.float32)
            else:
                rowb = x_ref[0, pl.ds(yb, 1), :]
            for dx in range(3):
                # tap (dy, dx) reads input column x + dx - 1  ->  lane shift of 1 - dx.
                sh = (1 - dx) % CinW
                rva = pltpu.roll(rowa, sh, 1) if sh else rowa
                rvb = pltpu.roll(rowb, sh, 1) if sh else rowb
                wt = w_ref[dy * 3 + dx]                 # (cout, cin*W)
                acc0 = acc0 + wt * rva
                acc1 = acc1 + wt * rvb
        red0 = _reduce_channel_blocks(acc0, cin, W)     # (cout, W)
        red1 = _reduce_channel_blocks(acc1, cin, W)
        # bias + ReLU + vertical half of the 2x2 max-pool (all commute with max)
        prepool_ref[rl] = jnp.maximum(jnp.maximum(red0, red1) + b_ref[...], 0.0)
        return carry

    lax.fori_loop(0, RC, row_body, 0)

    # Horizontal half of the 2x2 max-pool: even/odd column decimation via constant
    # 0/1 selection matmuls on the (otherwise idle) MXU, then the BN affine.
    p = prepool_ref[...].reshape(RC * cout, W)
    pe = jnp.dot(p, se_ref[...], preferred_element_type=jnp.float32)
    po = jnp.dot(p, so_ref[...], preferred_element_type=jnp.float32)
    pooled = jnp.maximum(pe, po).reshape(RC, cout, Wo)
    o_ref[0] = pooled * scale_ref[...] + shift_ref[...]


def conv_block(h_fused, w, b, bn_scale, bn_shift):
    """One fused block.

    h_fused: (N, H, Cin*W) activations (channels fused on the lane axis).
    w:       (Cout, Cin, 3, 3) torch-layout conv weight.
    Returns  (N, H/2, Cout, W/2); reshape to (N, H/2, Cout*(W/2)) for the next block.
    """
    N, H, CinW = h_fused.shape
    Cout, Cin, KH, KW = w.shape
    assert KH == 3 and KW == 3 and CinW % Cin == 0
    W = CinW // Cin
    assert H % 2 == 0 and W % 2 == 0
    Ho, Wo = H // 2, W // 2
    RC = min(Ho, 32)                     # pooled rows per grid step
    assert Ho % RC == 0
    NC = Ho // RC

    # (Cout, Cin, 3, 3) -> 9 tap slabs (Cout, Cin*W); fold conv-padding / channel
    # boundary zeroing for the shifted taps (dx = 0 / dx = 2) into the weights.
    wt = jnp.transpose(w, (2, 3, 0, 1)).reshape(9, Cout, Cin)
    w_slab = jnp.broadcast_to(wt[..., None], (9, Cout, Cin, W)).reshape(9, Cout, CinW)
    lane = jnp.arange(CinW) % W
    edge0 = (lane != 0).astype(jnp.float32)        # dx = 0 reads column x-1
    edge2 = (lane != W - 1).astype(jnp.float32)    # dx = 2 reads column x+1
    dx_of_tap = jnp.tile(jnp.arange(3), 3)[:, None]          # taps are dy-major
    tap_mask = jnp.where(dx_of_tap == 0, edge0[None, :],
                         jnp.where(dx_of_tap == 2, edge2[None, :], 1.0))
    w_slab = w_slab * tap_mask[:, None, :]

    bias_b = jnp.broadcast_to(b[:, None], (Cout, W))
    scale_b = jnp.broadcast_to(bn_scale[:, None], (Cout, Wo))[None]
    shift_b = jnp.broadcast_to(bn_shift[:, None], (Cout, Wo))[None]
    cols = jnp.arange(W)[:, None]
    outc = jnp.arange(Wo)[None, :]
    s_even = (cols == 2 * outc).astype(jnp.float32)
    s_odd = (cols == 2 * outc + 1).astype(jnp.float32)

    kernel = functools.partial(_conv_block_kernel, cin=Cin, cout=Cout,
                               H=H, W=W, RC=RC)
    return pl.pallas_call(
        kernel,
        out_shape=jax.ShapeDtypeStruct((N, Ho, Cout, Wo), jnp.float32),
        grid=(N, NC),
        in_specs=[
            pl.BlockSpec((1, H, CinW), lambda n, c: (n, 0, 0)),      # full image/batch
            pl.BlockSpec((9, Cout, CinW), lambda n, c: (0, 0, 0)),   # weights (constant)
            pl.BlockSpec((Cout, W), lambda n, c: (0, 0)),
            pl.BlockSpec((W, Wo), lambda n, c: (0, 0)),
            pl.BlockSpec((W, Wo), lambda n, c: (0, 0)),
            pl.BlockSpec((1, Cout, Wo), lambda n, c: (0, 0, 0)),
            pl.BlockSpec((1, Cout, Wo), lambda n, c: (0, 0, 0)),
        ],
        out_specs=pl.BlockSpec((1, RC, Cout, Wo), lambda n, c: (n, c, 0, 0)),
        scratch_shapes=[pltpu.VMEM((RC, Cout, W), jnp.float32)],
        compiler_params=pltpu.CompilerParams(
            dimension_semantics=("parallel", "parallel")),
    )(h_fused, w_slab, bias_b, s_even, s_odd, scale_b, shift_b)


# ----------------------------------------------------------------------------
# Fused dense head: Flatten -> Linear -> ReLU -> Dropout(id) -> Linear
# ----------------------------------------------------------------------------
def _dense_kernel(x_ref, w1_ref, b1_ref, w2_ref, b2_ref, o_ref):
    h = jnp.dot(x_ref[...], w1_ref[...], preferred_element_type=jnp.float32)
    h = jnp.maximum(h + b1_ref[...], 0.0)
    y = jnp.dot(h, w2_ref[...], preferred_element_type=jnp.float32) + b2_ref[...]
    o_ref[...] = y.astype(o_ref.dtype)


def dense_head(x, w1, b1, w2, b2):
    N, F = x.shape
    D = w1.shape[1]
    C = w2.shape[1]
    return pl.pallas_call(
        _dense_kernel,
        out_shape=jax.ShapeDtypeStruct((N, C), jnp.float32),
        grid=(1,),
        in_specs=[
            pl.BlockSpec((N, F), lambda i: (0, 0)),
            pl.BlockSpec((F, D), lambda i: (0, 0)),
            pl.BlockSpec((1, D), lambda i: (0, 0)),
            pl.BlockSpec((D, C), lambda i: (0, 0)),
            pl.BlockSpec((1, C), lambda i: (0, 0)),
        ],
        out_specs=pl.BlockSpec((N, C), lambda i: (0, 0)),
    )(x, w1, b1.reshape(1, D), w2, b2.reshape(1, C))


# ----------------------------------------------------------------------------
# Forward pass
# ----------------------------------------------------------------------------
def cnn_forward(x_nchw, params):
    """x_nchw: (N, Cin, 256, 256) float32 (PyTorch NCHW). Returns (N, num_classes)."""
    N, Cin, H, W = x_nchw.shape
    # NCHW -> fused NH(C*W): each row holds all channels lane-concatenated.
    h = jnp.transpose(x_nchw, (0, 2, 1, 3)).reshape(N, H, Cin * W)
    Ho, Cout, Wo = H, Cin, W
    for (w, b, bn_scale, bn_shift) in params["conv_blocks"]:
        out = conv_block(h, w, b, bn_scale, bn_shift)        # (N, Ho, Cout, Wo)
        _, Ho, Cout, Wo = out.shape
        h = out.reshape(N, Ho, Cout * Wo)                    # free metadata reshape
    # h flattens in (H, C, W) order; torch's Flatten on NCHW is (C, H, W): fold the
    # permutation into fc1's rows instead of transposing the (tiny) activation.
    D = params["fc1_w"].shape[1]
    w1_hcw = (params["fc1_w"].reshape(Cout, Ho, Wo, D)
              .transpose(1, 0, 2, 3).reshape(Cout * Ho * Wo, D))
    return dense_head(h.reshape(N, -1), w1_hcw, params["fc1_b"],
                      params["fc2_w"], params["fc2_b"])


# ----------------------------------------------------------------------------
# Deterministic parameter construction (matches CNN.__init__ shapes, eval mode)
# ----------------------------------------------------------------------------
def make_params(key, *, in_channels, num_filters, kernel_size, pool_size,
                dense_neurons, num_classes):
    assert kernel_size == 3 and pool_size == 2
    params = {"conv_blocks": []}
    cin = in_channels
    eps = 1e-5
    for cout in num_filters:
        key, kw, kb = jax.random.split(key, 3)
        w = jax.random.normal(kw, (cout, cin, 3, 3), jnp.float32) * 0.1
        b = jax.random.normal(kb, (cout,), jnp.float32) * 0.01
        # BatchNorm2d default state: gamma=1, beta=0, running_mean=0, running_var=1
        gamma = jnp.ones((cout,), jnp.float32)
        beta = jnp.zeros((cout,), jnp.float32)
        running_mean = jnp.zeros((cout,), jnp.float32)
        running_var = jnp.ones((cout,), jnp.float32)
        scale = gamma / jnp.sqrt(running_var + eps)
        shift = beta - running_mean * scale
        params["conv_blocks"].append((w, b, scale, shift))
        cin = cout

    # Dense in-features per the module: num_filters[-1] * (256 // pool**L)**2
    side = 256 // (pool_size ** len(num_filters))
    in_features = num_filters[-1] * side * side
    key, k1, k2, k3, k4 = jax.random.split(key, 5)
    params["fc1_w"] = jax.random.normal(k1, (in_features, dense_neurons), jnp.float32) * 0.05
    params["fc1_b"] = jax.random.normal(k2, (dense_neurons,), jnp.float32) * 0.01
    params["fc2_w"] = jax.random.normal(k3, (dense_neurons, num_classes), jnp.float32) * 0.05
    params["fc2_b"] = jax.random.normal(k4, (num_classes,), jnp.float32) * 0.01
    return params


if __name__ == "__main__":
    # Small instantiation of the module: num_filters=[8]*5, dense_neurons=64.
    # Spatial size MUST be 256 (hardcoded in the module's dense in_features formula).
    NUM_CLASSES = 10
    IN_CHANNELS = 3
    NUM_FILTERS = [8, 8, 8, 8, 8]
    KERNEL_SIZE = 3
    POOL_SIZE = 2
    DENSE_NEURONS = 64
    BATCH = 2

    key = jax.random.PRNGKey(0)
    key, kx = jax.random.split(key)
    x = jax.random.normal(kx, (BATCH, IN_CHANNELS, 256, 256), jnp.float32)

    params = make_params(
        key,
        in_channels=IN_CHANNELS,
        num_filters=NUM_FILTERS,
        kernel_size=KERNEL_SIZE,
        pool_size=POOL_SIZE,
        dense_neurons=DENSE_NEURONS,
        num_classes=NUM_CLASSES,
    )

    fwd = jax.jit(lambda xi: cnn_forward(xi, params))
    logits = fwd(x)
    jax.block_until_ready(logits)

    assert logits.shape == (BATCH, NUM_CLASSES), logits.shape
    assert logits.dtype == jnp.float32
    print("KERNEL_OK")
</pallas_src>

<mosaic_0001>
module attributes {stable_mosaic.version = 11 : i64} {
  func.func @_conv_block_kernel(%arg0: i32, %arg1: i32, %arg2: memref<1x256x768xf32, #tpu.memory_space<vmem>>, %arg3: memref<9x8x768xf32, #tpu.memory_space<vmem>>, %arg4: memref<8x256xf32, #tpu.memory_space<vmem>>, %arg5: memref<256x128xf32, #tpu.memory_space<vmem>>, %arg6: memref<256x128xf32, #tpu.memory_space<vmem>>, %arg7: memref<1x8x128xf32, #tpu.memory_space<vmem>>, %arg8: memref<1x8x128xf32, #tpu.memory_space<vmem>>, %arg9: memref<1x32x8x128xf32, #tpu.memory_space<vmem>>, %arg10: memref<32x8x256xf32, #tpu.memory_space<vmem>>) attributes {dimension_semantics = [#tpu.dimension_semantics<parallel>, #tpu.dimension_semantics<parallel>], iteration_bounds = array<i64: 2, 4>, scalar_prefetch = 0 : i64, scratch_operands = 1 : i64, tpu.core_type = #tpu.core_type<tc>, window_params = [{transform_indices = @transform_0, window_bounds = array<i64: 1, 256, 768>}, {pipeline_mode = #tpu.pipeline_mode<synchronous>, transform_indices = @transform_1, window_bounds = array<i64: 9, 8, 768>}, {pipeline_mode = #tpu.pipeline_mode<synchronous>, transform_indices = @transform_2, window_bounds = array<i64: 8, 256>}, {pipeline_mode = #tpu.pipeline_mode<synchronous>, transform_indices = @transform_3, window_bounds = array<i64: 256, 128>}, {pipeline_mode = #tpu.pipeline_mode<synchronous>, transform_indices = @transform_4, window_bounds = array<i64: 256, 128>}, {pipeline_mode = #tpu.pipeline_mode<synchronous>, transform_indices = @transform_5, window_bounds = array<i64: 1, 8, 128>}, {pipeline_mode = #tpu.pipeline_mode<synchronous>, transform_indices = @transform_6, window_bounds = array<i64: 1, 8, 128>}, {transform_indices = @transform_7, window_bounds = array<i64: 1, 32, 8, 128>}]} {
    %c32_i32 = arith.constant 32 : i32
    %0 = arith.muli %arg1, %c32_i32 : i32
    %c0_i32 = arith.constant 0 : i32
    %c32_i32_0 = arith.constant 32 : i32
    %1 = arith.addi %c0_i32, %c32_i32_0 : i32
    %c1_i32 = arith.constant 1 : i32
    scf.for %arg11 = %c0_i32 to %1 step %c1_i32  : i32 {
      %19 = arith.addi %0, %arg11 : i32
      %c2_i32 = arith.constant 2 : i32
      %20 = arith.muli %c2_i32, %19 : i32
      %c1_i32_19 = arith.constant 1 : i32
      %21 = arith.subi %20, %c1_i32_19 : i32
      %cst_20 = arith.constant 0.000000e+00 : f32
      %22 = vector.broadcast %cst_20 : f32 to vector<8x768xf32>
      %cst_21 = arith.constant 0.000000e+00 : f32
      %23 = vector.broadcast %cst_21 : f32 to vector<8x768xf32>
      %c0_i32_22 = arith.constant 0 : i32
      %24 = arith.addi %21, %c0_i32_22 : i32
      %c1_i32_23 = arith.constant 1 : i32
      %25 = arith.addi %24, %c1_i32_23 : i32
      %c0_i32_24 = arith.constant 0 : i32
      %26 = arith.maxsi %24, %c0_i32_24 : i32
      %c0_25 = arith.constant 0 : index
      %27 = arith.index_cast %26 : i32 to index
      %c0_26 = arith.constant 0 : index
      %28 = vector.load %arg2[%c0_25, %27, %c0_26] : memref<1x256x768xf32, #tpu.memory_space<vmem>>, vector<1x1x768xf32>
      %29 = vector.shape_cast %28 : vector<1x1x768xf32> to vector<1x768xf32>
      %c0_i32_27 = arith.constant 0 : i32
      %30 = arith.cmpi sge, %24, %c0_i32_27 : i32
      %31 = arith.extui %30 : i1 to i32
      %32 = arith.sitofp %31 : i32 to f32
      %33 = vector.broadcast %32 : f32 to vector<1x768xf32>
      %34 = arith.mulf %29, %33 : vector<1x768xf32>
      %c0_28 = arith.constant 0 : index
      %35 = arith.index_cast %25 : i32 to index
      %c0_29 = arith.constant 0 : index
      %36 = vector.load %arg2[%c0_28, %35, %c0_29] : memref<1x256x768xf32, #tpu.memory_space<vmem>>, vector<1x1x768xf32>
      %37 = vector.shape_cast %36 : vector<1x1x768xf32> to vector<1x768xf32>
      %c1_i32_30 = arith.constant 1 : i32
      %38 = tpu.dynamic_rotate %34 by %c1_i32_30 dim 1 : vector<1x768xf32>, i32 -> vector<1x768xf32>
      %c1_i32_31 = arith.constant 1 : i32
      %39 = tpu.dynamic_rotate %37 by %c1_i32_31 dim 1 : vector<1x768xf32>, i32 -> vector<1x768xf32>
      %c0_32 = arith.constant 0 : index
      %c0_33 = arith.constant 0 : index
      %c0_34 = arith.constant 0 : index
      %40 = vector.load %arg3[%c0_32, %c0_33, %c0_34] : memref<9x8x768xf32, #tpu.memory_space<vmem>>, vector<1x8x768xf32>
      %41 = vector.shape_cast %40 : vector<1x8x768xf32> to vector<8x768xf32>
      %42 = vector.broadcast %38 : vector<1x768xf32> to vector<8x768xf32>
      %43 = arith.mulf %41, %42 : vector<8x768xf32>
      %44 = arith.addf %22, %43 : vector<8x768xf32>
      %45 = vector.broadcast %39 : vector<1x768xf32> to vector<8x768xf32>
      %46 = arith.mulf %41, %45 : vector<8x768xf32>
      %47 = arith.addf %23, %46 : vector<8x768xf32>
      %c1 = arith.constant 1 : index
      %c0_35 = arith.constant 0 : index
      %c0_36 = arith.constant 0 : index
      %48 = vector.load %arg3[%c1, %c0_35, %c0_36] : memref<9x8x768xf32, #tpu.memory_space<vmem>>, vector<1x8x768xf32>
      %49 = vector.shape_cast %48 : vector<1x8x768xf32> to vector<8x768xf32>
      %50 = vector.broadcast %34 : vector<1x768xf32> to vector<8x768xf32>
      %51 = arith.mulf %49, %50 : vector<8x768xf32>
      %52 = arith.addf %44, %51 : vector<8x768xf32>
      %53 = vector.broadcast %37 : vector<1x768xf32> to vector<8x768xf32>
      %54 = arith.mulf %49, %53 : vector<8x768xf32>
      %55 = arith.addf %47, %54 : vector<8x768xf32>
      %c767_i32 = arith.constant 767 : i32
      %56 = tpu.dynamic_rotate %34 by %c767_i32 dim 1 : vector<1x768xf32>, i32 -> vector<1x768xf32>
      %c767_i32_37 = arith.constant 767 : i32
      %57 = tpu.dynamic_rotate %37 by %c767_i32_37 dim 1 : vector<1x768xf32>, i32 -> vector<1x768xf32>
      %c2 = arith.constant 2 : index
      %c0_38 = arith.constant 0 : index
      %c0_39 = arith.constant 0 : index
      %58 = vector.load %arg3[%c2, %c0_38, %c0_39] : memref<9x8x768xf32, #tpu.memory_space<vmem>>, vector<1x8x768xf32>
      %59 = vector.shape_cast %58 : vector<1x8x768xf32> to vector<8x768xf32>
      %60 = vector.broadcast %56 : vector<1x768xf32> to vector<8x768xf32>
      %61 = arith.mulf %59, %60 : vector<8x768xf32>
      %62 = arith.addf %52, %61 : vector<8x768xf32>
      %63 = vector.broadcast %57 : vector<1x768xf32> to vector<8x768xf32>
      %64 = arith.mulf %59, %63 : vector<8x768xf32>
      %65 = arith.addf %55, %64 : vector<8x768xf32>
      %c1_i32_40 = arith.constant 1 : i32
      %66 = arith.addi %21, %c1_i32_40 : i32
      %c1_i32_41 = arith.constant 1 : i32
      %67 = arith.addi %66, %c1_i32_41 : i32
      %c0_42 = arith.constant 0 : index
      %68 = arith.index_cast %66 : i32 to index
      %c0_43 = arith.constant 0 : index
      %69 = vector.load %arg2[%c0_42, %68, %c0_43] : memref<1x256x768xf32, #tpu.memory_space<vmem>>, vector<1x1x768xf32>
      %70 = vector.shape_cast %69 : vector<1x1x768xf32> to vector<1x768xf32>
      %c0_44 = arith.constant 0 : index
      %71 = arith.index_cast %67 : i32 to index
      %c0_45 = arith.constant 0 : index
      %72 = vector.load %arg2[%c0_44, %71, %c0_45] : memref<1x256x768xf32, #tpu.memory_space<vmem>>, vector<1x1x768xf32>
      %73 = vector.shape_cast %72 : vector<1x1x768xf32> to vector<1x768xf32>
      %c1_i32_46 = arith.constant 1 : i32
      %74 = tpu.dynamic_rotate %70 by %c1_i32_46 dim 1 : vector<1x768xf32>, i32 -> vector<1x768xf32>
      %c1_i32_47 = arith.constant 1 : i32
      %75 = tpu.dynamic_rotate %73 by %c1_i32_47 dim 1 : vector<1x768xf32>, i32 -> vector<1x768xf32>
      %c3 = arith.constant 3 : index
      %c0_48 = arith.constant 0 : index
      %c0_49 = arith.constant 0 : index
      %76 = vector.load %arg3[%c3, %c0_48, %c0_49] : memref<9x8x768xf32, #tpu.memory_space<vmem>>, vector<1x8x768xf32>
      %77 = vector.shape_cast %76 : vector<1x8x768xf32> to vector<8x768xf32>
      %78 = vector.broadcast %74 : vector<1x768xf32> to vector<8x768xf32>
      %79 = arith.mulf %77, %78 : vector<8x768xf32>
      %80 = arith.addf %62, %79 : vector<8x768xf32>
      %81 = vector.broadcast %75 : vector<1x768xf32> to vector<8x768xf32>
      %82 = arith.mulf %77, %81 : vector<8x768xf32>
      %83 = arith.addf %65, %82 : vector<8x768xf32>
      %c4 = arith.constant 4 : index
      %c0_50 = arith.constant 0 : index
      %c0_51 = arith.constant 0 : index
      %84 = vector.load %arg3[%c4, %c0_50, %c0_51] : memref<9x8x768xf32, #tpu.memory_space<vmem>>, vector<1x8x768xf32>
      %85 = vector.shape_cast %84 : vector<1x8x768xf32> to vector<8x768xf32>
      %86 = vector.broadcast %70 : vector<1x768xf32> to vector<8x768xf32>
      %87 = arith.mulf %85, %86 : vector<8x768xf32>
      %88 = arith.addf %80, %87 : vector<8x768xf32>
      %89 = vector.broadcast %73 : vector<1x768xf32> to vector<8x768xf32>
      %90 = arith.mulf %85, %89 : vector<8x768xf32>
      %91 = arith.addf %83, %90 : vector<8x768xf32>
      %c767_i32_52 = arith.constant 767 : i32
      %92 = tpu.dynamic_rotate %70 by %c767_i32_52 dim 1 : vector<1x768xf32>, i32 -> vector<1x768xf32>
      %c767_i32_53 = arith.constant 767 : i32
      %93 = tpu.dynamic_rotate %73 by %c767_i32_53 dim 1 : vector<1x768xf32>, i32 -> vector<1x768xf32>
      %c5 = arith.constant 5 : index
      %c0_54 = arith.constant 0 : index
      %c0_55 = arith.constant 0 : index
      %94 = vector.load %arg3[%c5, %c0_54, %c0_55] : memref<9x8x768xf32, #tpu.memory_space<vmem>>, vector<1x8x768xf32>
      %95 = vector.shape_cast %94 : vector<1x8x768xf32> to vector<8x768xf32>
      %96 = vector.broadcast %92 : vector<1x768xf32> to vector<8x768xf32>
      %97 = arith.mulf %95, %96 : vector<8x768xf32>
      %98 = arith.addf %88, %97 : vector<8x768xf32>
      %99 = vector.broadcast %93 : vector<1x768xf32> to vector<8x768xf32>
      %100 = arith.mulf %95, %99 : vector<8x768xf32>
      %101 = arith.addf %91, %100 : vector<8x768xf32>
      %c2_i32_56 = arith.constant 2 : i32
      %102 = arith.addi %21, %c2_i32_56 : i32
      %c1_i32_57 = arith.constant 1 : i32
      %103 = arith.addi %102, %c1_i32_57 : i32
      %c0_58 = arith.constant 0 : index
      %104 = arith.index_cast %102 : i32 to index
      %c0_59 = arith.constant 0 : index
      %105 = vector.load %arg2[%c0_58, %104, %c0_59] : memref<1x256x768xf32, #tpu.memory_space<vmem>>, vector<1x1x768xf32>
      %106 = vector.shape_cast %105 : vector<1x1x768xf32> to vector<1x768xf32>
      %c255_i32 = arith.constant 255 : i32
      %107 = arith.minsi %103, %c255_i32 : i32
      %c0_60 = arith.constant 0 : index
      %108 = arith.index_cast %107 : i32 to index
      %c0_61 = arith.constant 0 : index
      %109 = vector.load %arg2[%c0_60, %108, %c0_61] : memref<1x256x768xf32, #tpu.memory_space<vmem>>, vector<1x1x768xf32>
      %110 = vector.shape_cast %109 : vector<1x1x768xf32> to vector<1x768xf32>
      %c255_i32_62 = arith.constant 255 : i32
      %111 = arith.cmpi sle, %103, %c255_i32_62 : i32
      %112 = arith.extui %111 : i1 to i32
      %113 = arith.sitofp %112 : i32 to f32
      %114 = vector.broadcast %113 : f32 to vector<1x768xf32>
      %115 = arith.mulf %110, %114 : vector<1x768xf32>
      %c1_i32_63 = arith.constant 1 : i32
      %116 = tpu.dynamic_rotate %106 by %c1_i32_63 dim 1 : vector<1x768xf32>, i32 -> vector<1x768xf32>
      %c1_i32_64 = arith.constant 1 : i32
      %117 = tpu.dynamic_rotate %115 by %c1_i32_64 dim 1 : vector<1x768xf32>, i32 -> vector<1x768xf32>
      %c6 = arith.constant 6 : index
      %c0_65 = arith.constant 0 : index
      %c0_66 = arith.constant 0 : index
      %118 = vector.load %arg3[%c6, %c0_65, %c0_66] : memref<9x8x768xf32, #tpu.memory_space<vmem>>, vector<1x8x768xf32>
      %119 = vector.shape_cast %118 : vector<1x8x768xf32> to vector<8x768xf32>
      %120 = vector.broadcast %116 : vector<1x768xf32> to vector<8x768xf32>
      %121 = arith.mulf %119, %120 : vector<8x768xf32>
      %122 = arith.addf %98, %121 : vector<8x768xf32>
      %123 = vector.broadcast %117 : vector<1x768xf32> to vector<8x768xf32>
      %124 = arith.mulf %119, %123 : vector<8x768xf32>
      %125 = arith.addf %101, %124 : vector<8x768xf32>
      %c7 = arith.constant 7 : index
      %c0_67 = arith.constant 0 : index
      %c0_68 = arith.constant 0 : index
      %126 = vector.load %arg3[%c7, %c0_67, %c0_68] : memref<9x8x768xf32, #tpu.memory_space<vmem>>, vector<1x8x768xf32>
      %127 = vector.shape_cast %126 : vector<1x8x768xf32> to vector<8x768xf32>
      %128 = vector.broadcast %106 : vector<1x768xf32> to vector<8x768xf32>
      %129 = arith.mulf %127, %128 : vector<8x768xf32>
      %130 = arith.addf %122, %129 : vector<8x768xf32>
      %131 = vector.broadcast %115 : vector<1x768xf32> to vector<8x768xf32>
      %132 = arith.mulf %127, %131 : vector<8x768xf32>
      %133 = arith.addf %125, %132 : vector<8x768xf32>
      %c767_i32_69 = arith.constant 767 : i32
      %134 = tpu.dynamic_rotate %106 by %c767_i32_69 dim 1 : vector<1x768xf32>, i32 -> vector<1x768xf32>
      %c767_i32_70 = arith.constant 767 : i32
      %135 = tpu.dynamic_rotate %115 by %c767_i32_70 dim 1 : vector<1x768xf32>, i32 -> vector<1x768xf32>
      %c8 = arith.constant 8 : index
      %c0_71 = arith.constant 0 : index
      %c0_72 = arith.constant 0 : index
      %136 = vector.load %arg3[%c8, %c0_71, %c0_72] : memref<9x8x768xf32, #tpu.memory_space<vmem>>, vector<1x8x768xf32>
      %137 = vector.shape_cast %136 : vector<1x8x768xf32> to vector<8x768xf32>
      %138 = vector.broadcast %134 : vector<1x768xf32> to vector<8x768xf32>
      %139 = arith.mulf %137, %138 : vector<8x768xf32>
      %140 = arith.addf %130, %139 : vector<8x768xf32>
      %141 = vector.broadcast %135 : vector<1x768xf32> to vector<8x768xf32>
      %142 = arith.mulf %137, %141 : vector<8x768xf32>
      %143 = arith.addf %133, %142 : vector<8x768xf32>
      %144 = vector.extract_strided_slice %140 {offsets = [0, 0], sizes = [8, 256], strides = [1, 1]} : vector<8x768xf32> to vector<8x256xf32>
      %145 = vector.extract_strided_slice %140 {offsets = [0, 256], sizes = [8, 256], strides = [1, 1]} : vector<8x768xf32> to vector<8x256xf32>
      %146 = arith.addf %144, %145 : vector<8x256xf32>
      %147 = vector.extract_strided_slice %140 {offsets = [0, 512], sizes = [8, 256], strides = [1, 1]} : vector<8x768xf32> to vector<8x256xf32>
      %148 = arith.addf %146, %147 : vector<8x256xf32>
      %149 = vector.extract_strided_slice %143 {offsets = [0, 0], sizes = [8, 256], strides = [1, 1]} : vector<8x768xf32> to vector<8x256xf32>
      %150 = vector.extract_strided_slice %143 {offsets = [0, 256], sizes = [8, 256], strides = [1, 1]} : vector<8x768xf32> to vector<8x256xf32>
      %151 = arith.addf %149, %150 : vector<8x256xf32>
      %152 = vector.extract_strided_slice %143 {offsets = [0, 512], sizes = [8, 256], strides = [1, 1]} : vector<8x768xf32> to vector<8x256xf32>
      %153 = arith.addf %151, %152 : vector<8x256xf32>
      %154 = arith.maximumf %148, %153 : vector<8x256xf32>
      %c0_73 = arith.constant 0 : index
      %c0_74 = arith.constant 0 : index
      %155 = vector.load %arg4[%c0_73, %c0_74] : memref<8x256xf32, #tpu.memory_space<vmem>>, vector<8x256xf32>
      %156 = arith.addf %154, %155 : vector<8x256xf32>
      %cst_75 = arith.constant 0.000000e+00 : f32
      %157 = vector.broadcast %cst_75 : f32 to vector<8x256xf32>
      %158 = arith.maximumf %156, %157 : vector<8x256xf32>
      %159 = arith.index_cast %arg11 : i32 to index
      %c0_76 = arith.constant 0 : index
      %c0_77 = arith.constant 0 : index
      %160 = vector.load %arg10[%159, %c0_76, %c0_77] : memref<32x8x256xf32, #tpu.memory_space<vmem>>, vector<1x8x256xf32>
      %161 = vector.shape_cast %160 : vector<1x8x256xf32> to vector<8x256xf32>
      %162 = vector.shape_cast %158 : vector<8x256xf32> to vector<1x8x256xf32>
      tpu.vector_store %arg10[%159, %c0_76, %c0_77], %162 {strides = array<i32>} : memref<32x8x256xf32, #tpu.memory_space<vmem>>, vector<1x8x256xf32>,
    }
    %c32_i32_1 = arith.constant 32 : i32
    %c0 = arith.constant 0 : index
    %c0_2 = arith.constant 0 : index
    %c0_3 = arith.constant 0 : index
    %2 = vector.load %arg10[%c0, %c0_2, %c0_3] : memref<32x8x256xf32, #tpu.memory_space<vmem>>, vector<32x8x256xf32>
    %3 = vector.shape_cast %2 : vector<32x8x256xf32> to vector<256x256xf32>
    %c0_4 = arith.constant 0 : index
    %c0_5 = arith.constant 0 : index
    %4 = vector.load %arg5[%c0_4, %c0_5] : memref<256x128xf32, #tpu.memory_space<vmem>>, vector<256x128xf32>
    %cst = arith.constant dense<0.000000e+00> : vector<256x128xf32>
    %5 = tpu.matmul %3, %4, %cst {dimension_numbers = #tpu.dot_dimension_numbers<[1], [0], [0], [1], [0, 0, 1, 1], [], []>} : vector<256x256xf32>, vector<256x128xf32>, vector<256x128xf32> -> vector<256x128xf32>
    %c0_6 = arith.constant 0 : index
    %c0_7 = arith.constant 0 : index
    %6 = vector.load %arg6[%c0_6, %c0_7] : memref<256x128xf32, #tpu.memory_space<vmem>>, vector<256x128xf32>
    %cst_8 = arith.constant dense<0.000000e+00> : vector<256x128xf32>
    %7 = tpu.matmul %3, %6, %cst_8 {dimension_numbers = #tpu.dot_dimension_numbers<[1], [0], [0], [1], [0, 0, 1, 1], [], []>} : vector<256x256xf32>, vector<256x128xf32>, vector<256x128xf32> -> vector<256x128xf32>
    %8 = arith.maximumf %5, %7 : vector<256x128xf32>
    %9 = vector.shape_cast %8 : vector<256x128xf32> to vector<32x8x128xf32>
    %c0_9 = arith.constant 0 : index
    %c0_10 = arith.constant 0 : index
    %c0_11 = arith.constant 0 : index
    %10 = vector.load %arg7[%c0_9, %c0_10, %c0_11] : memref<1x8x128xf32, #tpu.memory_space<vmem>>, vector<1x8x128xf32>
    %11 = vector.broadcast %10 : vector<1x8x128xf32> to vector<32x8x128xf32>
    %12 = arith.mulf %9, %11 : vector<32x8x128xf32>
    %c0_12 = arith.constant 0 : index
    %c0_13 = arith.constant 0 : index
    %c0_14 = arith.constant 0 : index
    %13 = vector.load %arg8[%c0_12, %c0_13, %c0_14] : memref<1x8x128xf32, #tpu.memory_space<vmem>>, vector<1x8x128xf32>
    %14 = vector.broadcast %13 : vector<1x8x128xf32> to vector<32x8x128xf32>
    %15 = arith.addf %12, %14 : vector<32x8x128xf32>
    %c0_15 = arith.constant 0 : index
    %c0_16 = arith.constant 0 : index
    %c0_17 = arith.constant 0 : index
    %c0_18 = arith.constant 0 : index
    %16 = vector.load %arg9[%c0_15, %c0_16, %c0_17, %c0_18] : memref<1x32x8x128xf32, #tpu.memory_space<vmem>>, vector<1x32x8x128xf32>
    %17 = vector.shape_cast %16 : vector<1x32x8x128xf32> to vector<32x8x128xf32>
    %18 = vector.shape_cast %15 : vector<32x8x128xf32> to vector<1x32x8x128xf32>
    tpu.vector_store %arg9[%c0_15, %c0_16, %c0_17, %c0_18], %18 {strides = array<i32>} : memref<1x32x8x128xf32, #tpu.memory_space<vmem>>, vector<1x32x8x128xf32>,
    return
  }
  func.func @transform_0(%arg0: i32, %arg1: i32) -> (i32, i32, i32) {
    %c0_i32 = arith.constant 0 : i32
    %c0_i32_0 = arith.constant 0 : i32
    %c0_i32_1 = arith.constant 0 : i32
    return %arg0, %c0_i32, %c0_i32_0 : i32, i32, i32
  }
  func.func @transform_1(%arg0: i32, %arg1: i32) -> (i32, i32, i32) {
    %c0_i32 = arith.constant 0 : i32
    %c0_i32_0 = arith.constant 0 : i32
    %c0_i32_1 = arith.constant 0 : i32
    %c0_i32_2 = arith.constant 0 : i32
    return %c0_i32, %c0_i32_0, %c0_i32_1 : i32, i32, i32
  }
  func.func @transform_2(%arg0: i32, %arg1: i32) -> (i32, i32) {
    %c0_i32 = arith.constant 0 : i32
    %c0_i32_0 = arith.constant 0 : i32
    %c0_i32_1 = arith.constant 0 : i32
    return %c0_i32, %c0_i32_0 : i32, i32
  }
  func.func @transform_3(%arg0: i32, %arg1: i32) -> (i32, i32) {
    %c0_i32 = arith.constant 0 : i32
    %c0_i32_0 = arith.constant 0 : i32
    %c0_i32_1 = arith.constant 0 : i32
    return %c0_i32, %c0_i32_0 : i32, i32
  }
  func.func @transform_4(%arg0: i32, %arg1: i32) -> (i32, i32) {
    %c0_i32 = arith.constant 0 : i32
    %c0_i32_0 = arith.constant 0 : i32
    %c0_i32_1 = arith.constant 0 : i32
    return %c0_i32, %c0_i32_0 : i32, i32
  }
  func.func @transform_5(%arg0: i32, %arg1: i32) -> (i32, i32, i32) {
    %c0_i32 = arith.constant 0 : i32
    %c0_i32_0 = arith.constant 0 : i32
    %c0_i32_1 = arith.constant 0 : i32
    %c0_i32_2 = arith.constant 0 : i32
    return %c0_i32, %c0_i32_0, %c0_i32_1 : i32, i32, i32
  }
  func.func @transform_6(%arg0: i32, %arg1: i32) -> (i32, i32, i32) {
    %c0_i32 = arith.constant 0 : i32
    %c0_i32_0 = arith.constant 0 : i32
    %c0_i32_1 = arith.constant 0 : i32
    %c0_i32_2 = arith.constant 0 : i32
    return %c0_i32, %c0_i32_0, %c0_i32_1 : i32, i32, i32
  }
  func.func @transform_7(%arg0: i32, %arg1: i32) -> (i32, i32, i32, i32) {
    %c0_i32 = arith.constant 0 : i32
    %c0_i32_0 = arith.constant 0 : i32
    %c0_i32_1 = arith.constant 0 : i32
    return %arg0, %arg1, %c0_i32, %c0_i32_0 : i32, i32, i32, i32
  }
}

module attributes {stable_mosaic.version = 11 : i64} {
  func.func @_conv_block_kernel(%arg0: i32, %arg1: i32, %arg2: memref<1x128x1024xf32, #tpu.memory_space<vmem>>, %arg3: memref<9x8x1024xf32, #tpu.memory_space<vmem>>, %arg4: memref<8x128xf32, #tpu.memory_space<vmem>>, %arg5: memref<128x64xf32, #tpu.memory_space<vmem>>, %arg6: memref<128x64xf32, #tpu.memory_space<vmem>>, %arg7: memref<1x8x64xf32, #tpu.memory_space<vmem>>, %arg8: memref<1x8x64xf32, #tpu.memory_space<vmem>>, %arg9: memref<1x32x8x64xf32, #tpu.memory_space<vmem>>, %arg10: memref<32x8x128xf32, #tpu.memory_space<vmem>>) attributes {dimension_semantics = [#tpu.dimension_semantics<parallel>, #tpu.dimension_semantics<parallel>], iteration_bounds = array<i64: 2, 2>, scalar_prefetch = 0 : i64, scratch_operands = 1 : i64, tpu.core_type = #tpu.core_type<tc>, window_params = [{transform_indices = @transform_0, window_bounds = array<i64: 1, 128, 1024>}, {pipeline_mode = #tpu.pipeline_mode<synchronous>, transform_indices = @transform_1, window_bounds = array<i64: 9, 8, 1024>}, {pipeline_mode = #tpu.pipeline_mode<synchronous>, transform_indices = @transform_2, window_bounds = array<i64: 8, 128>}, {pipeline_mode = #tpu.pipeline_mode<synchronous>, transform_indices = @transform_3, window_bounds = array<i64: 128, 64>}, {pipeline_mode = #tpu.pipeline_mode<synchronous>, transform_indices = @transform_4, window_bounds = array<i64: 128, 64>}, {pipeline_mode = #tpu.pipeline_mode<synchronous>, transform_indices = @transform_5, window_bounds = array<i64: 1, 8, 64>}, {pipeline_mode = #tpu.pipeline_mode<synchronous>, transform_indices = @transform_6, window_bounds = array<i64: 1, 8, 64>}, {transform_indices = @transform_7, window_bounds = array<i64: 1, 32, 8, 64>}]} {
    %c32_i32 = arith.constant 32 : i32
    %0 = arith.muli %arg1, %c32_i32 : i32
    %c0_i32 = arith.constant 0 : i32
    %c32_i32_0 = arith.constant 32 : i32
    %1 = arith.addi %c0_i32, %c32_i32_0 : i32
    %c1_i32 = arith.constant 1 : i32
    scf.for %arg11 = %c0_i32 to %1 step %c1_i32  : i32 {
      %19 = arith.addi %0, %arg11 : i32
      %c2_i32 = arith.constant 2 : i32
      %20 = arith.muli %c2_i32, %19 : i32
      %c1_i32_19 = arith.constant 1 : i32
      %21 = arith.subi %20, %c1_i32_19 : i32
      %cst_20 = arith.constant 0.000000e+00 : f32
      %22 = vector.broadcast %cst_20 : f32 to vector<8x1024xf32>
      %cst_21 = arith.constant 0.000000e+00 : f32
      %23 = vector.broadcast %cst_21 : f32 to vector<8x1024xf32>
      %c0_i32_22 = arith.constant 0 : i32
      %24 = arith.addi %21, %c0_i32_22 : i32
      %c1_i32_23 = arith.constant 1 : i32
      %25 = arith.addi %24, %c1_i32_23 : i32
      %c0_i32_24 = arith.constant 0 : i32
      %26 = arith.maxsi %24, %c0_i32_24 : i32
      %c0_25 = arith.constant 0 : index
      %27 = arith.index_cast %26 : i32 to index
      %c0_26 = arith.constant 0 : index
      %28 = vector.load %arg2[%c0_25, %27, %c0_26] : memref<1x128x1024xf32, #tpu.memory_space<vmem>>, vector<1x1x1024xf32>
      %29 = vector.shape_cast %28 : vector<1x1x1024xf32> to vector<1x1024xf32>
      %c0_i32_27 = arith.constant 0 : i32
      %30 = arith.cmpi sge, %24, %c0_i32_27 : i32
      %31 = arith.extui %30 : i1 to i32
      %32 = arith.sitofp %31 : i32 to f32
      %33 = vector.broadcast %32 : f32 to vector<1x1024xf32>
      %34 = arith.mulf %29, %33 : vector<1x1024xf32>
      %c0_28 = arith.constant 0 : index
      %35 = arith.index_cast %25 : i32 to index
      %c0_29 = arith.constant 0 : index
      %36 = vector.load %arg2[%c0_28, %35, %c0_29] : memref<1x128x1024xf32, #tpu.memory_space<vmem>>, vector<1x1x1024xf32>
      %37 = vector.shape_cast %36 : vector<1x1x1024xf32> to vector<1x1024xf32>
      %c1_i32_30 = arith.constant 1 : i32
      %38 = tpu.dynamic_rotate %34 by %c1_i32_30 dim 1 : vector<1x1024xf32>, i32 -> vector<1x1024xf32>
      %c1_i32_31 = arith.constant 1 : i32
      %39 = tpu.dynamic_rotate %37 by %c1_i32_31 dim 1 : vector<1x1024xf32>, i32 -> vector<1x1024xf32>
      %c0_32 = arith.constant 0 : index
      %c0_33 = arith.constant 0 : index
      %c0_34 = arith.constant 0 : index
      %40 = vector.load %arg3[%c0_32, %c0_33, %c0_34] : memref<9x8x1024xf32, #tpu.memory_space<vmem>>, vector<1x8x1024xf32>
      %41 = vector.shape_cast %40 : vector<1x8x1024xf32> to vector<8x1024xf32>
      %42 = vector.broadcast %38 : vector<1x1024xf32> to vector<8x1024xf32>
      %43 = arith.mulf %41, %42 : vector<8x1024xf32>
      %44 = arith.addf %22, %43 : vector<8x1024xf32>
      %45 = vector.broadcast %39 : vector<1x1024xf32> to vector<8x1024xf32>
      %46 = arith.mulf %41, %45 : vector<8x1024xf32>
      %47 = arith.addf %23, %46 : vector<8x1024xf32>
      %c1 = arith.constant 1 : index
      %c0_35 = arith.constant 0 : index
      %c0_36 = arith.constant 0 : index
      %48 = vector.load %arg3[%c1, %c0_35, %c0_36] : memref<9x8x1024xf32, #tpu.memory_space<vmem>>, vector<1x8x1024xf32>
      %49 = vector.shape_cast %48 : vector<1x8x1024xf32> to vector<8x1024xf32>
      %50 = vector.broadcast %34 : vector<1x1024xf32> to vector<8x1024xf32>
      %51 = arith.mulf %49, %50 : vector<8x1024xf32>
      %52 = arith.addf %44, %51 : vector<8x1024xf32>
      %53 = vector.broadcast %37 : vector<1x1024xf32> to vector<8x1024xf32>
      %54 = arith.mulf %49, %53 : vector<8x1024xf32>
      %55 = arith.addf %47, %54 : vector<8x1024xf32>
      %c1023_i32 = arith.constant 1023 : i32
      %56 = tpu.dynamic_rotate %34 by %c1023_i32 dim 1 : vector<1x1024xf32>, i32 -> vector<1x1024xf32>
      %c1023_i32_37 = arith.constant 1023 : i32
      %57 = tpu.dynamic_rotate %37 by %c1023_i32_37 dim 1 : vector<1x1024xf32>, i32 -> vector<1x1024xf32>
      %c2 = arith.constant 2 : index
      %c0_38 = arith.constant 0 : index
      %c0_39 = arith.constant 0 : index
      %58 = vector.load %arg3[%c2, %c0_38, %c0_39] : memref<9x8x1024xf32, #tpu.memory_space<vmem>>, vector<1x8x1024xf32>
      %59 = vector.shape_cast %58 : vector<1x8x1024xf32> to vector<8x1024xf32>
      %60 = vector.broadcast %56 : vector<1x1024xf32> to vector<8x1024xf32>
      %61 = arith.mulf %59, %60 : vector<8x1024xf32>
      %62 = arith.addf %52, %61 : vector<8x1024xf32>
      %63 = vector.broadcast %57 : vector<1x1024xf32> to vector<8x1024xf32>
      %64 = arith.mulf %59, %63 : vector<8x1024xf32>
      %65 = arith.addf %55, %64 : vector<8x1024xf32>
      %c1_i32_40 = arith.constant 1 : i32
      %66 = arith.addi %21, %c1_i32_40 : i32
      %c1_i32_41 = arith.constant 1 : i32
      %67 = arith.addi %66, %c1_i32_41 : i32
      %c0_42 = arith.constant 0 : index
      %68 = arith.index_cast %66 : i32 to index
      %c0_43 = arith.constant 0 : index
      %69 = vector.load %arg2[%c0_42, %68, %c0_43] : memref<1x128x1024xf32, #tpu.memory_space<vmem>>, vector<1x1x1024xf32>
      %70 = vector.shape_cast %69 : vector<1x1x1024xf32> to vector<1x1024xf32>
      %c0_44 = arith.constant 0 : index
      %71 = arith.index_cast %67 : i32 to index
      %c0_45 = arith.constant 0 : index
      %72 = vector.load %arg2[%c0_44, %71, %c0_45] : memref<1x128x1024xf32, #tpu.memory_space<vmem>>, vector<1x1x1024xf32>
      %73 = vector.shape_cast %72 : vector<1x1x1024xf32> to vector<1x1024xf32>
      %c1_i32_46 = arith.constant 1 : i32
      %74 = tpu.dynamic_rotate %70 by %c1_i32_46 dim 1 : vector<1x1024xf32>, i32 -> vector<1x1024xf32>
      %c1_i32_47 = arith.constant 1 : i32
      %75 = tpu.dynamic_rotate %73 by %c1_i32_47 dim 1 : vector<1x1024xf32>, i32 -> vector<1x1024xf32>
      %c3 = arith.constant 3 : index
      %c0_48 = arith.constant 0 : index
      %c0_49 = arith.constant 0 : index
      %76 = vector.load %arg3[%c3, %c0_48, %c0_49] : memref<9x8x1024xf32, #tpu.memory_space<vmem>>, vector<1x8x1024xf32>
      %77 = vector.shape_cast %76 : vector<1x8x1024xf32> to vector<8x1024xf32>
      %78 = vector.broadcast %74 : vector<1x1024xf32> to vector<8x1024xf32>
      %79 = arith.mulf %77, %78 : vector<8x1024xf32>
      %80 = arith.addf %62, %79 : vector<8x1024xf32>
      %81 = vector.broadcast %75 : vector<1x1024xf32> to vector<8x1024xf32>
      %82 = arith.mulf %77, %81 : vector<8x1024xf32>
      %83 = arith.addf %65, %82 : vector<8x1024xf32>
      %c4 = arith.constant 4 : index
      %c0_50 = arith.constant 0 : index
      %c0_51 = arith.constant 0 : index
      %84 = vector.load %arg3[%c4, %c0_50, %c0_51] : memref<9x8x1024xf32, #tpu.memory_space<vmem>>, vector<1x8x1024xf32>
      %85 = vector.shape_cast %84 : vector<1x8x1024xf32> to vector<8x1024xf32>
      %86 = vector.broadcast %70 : vector<1x1024xf32> to vector<8x1024xf32>
      %87 = arith.mulf %85, %86 : vector<8x1024xf32>
      %88 = arith.addf %80, %87 : vector<8x1024xf32>
      %89 = vector.broadcast %73 : vector<1x1024xf32> to vector<8x1024xf32>
      %90 = arith.mulf %85, %89 : vector<8x1024xf32>
      %91 = arith.addf %83, %90 : vector<8x1024xf32>
      %c1023_i32_52 = arith.constant 1023 : i32
      %92 = tpu.dynamic_rotate %70 by %c1023_i32_52 dim 1 : vector<1x1024xf32>, i32 -> vector<1x1024xf32>
      %c1023_i32_53 = arith.constant 1023 : i32
      %93 = tpu.dynamic_rotate %73 by %c1023_i32_53 dim 1 : vector<1x1024xf32>, i32 -> vector<1x1024xf32>
      %c5 = arith.constant 5 : index
      %c0_54 = arith.constant 0 : index
      %c0_55 = arith.constant 0 : index
      %94 = vector.load %arg3[%c5, %c0_54, %c0_55] : memref<9x8x1024xf32, #tpu.memory_space<vmem>>, vector<1x8x1024xf32>
      %95 = vector.shape_cast %94 : vector<1x8x1024xf32> to vector<8x1024xf32>
      %96 = vector.broadcast %92 : vector<1x1024xf32> to vector<8x1024xf32>
      %97 = arith.mulf %95, %96 : vector<8x1024xf32>
      %98 = arith.addf %88, %97 : vector<8x1024xf32>
      %99 = vector.broadcast %93 : vector<1x1024xf32> to vector<8x1024xf32>
      %100 = arith.mulf %95, %99 : vector<8x1024xf32>
      %101 = arith.addf %91, %100 : vector<8x1024xf32>
      %c2_i32_56 = arith.constant 2 : i32
      %102 = arith.addi %21, %c2_i32_56 : i32
      %c1_i32_57 = arith.constant 1 : i32
      %103 = arith.addi %102, %c1_i32_57 : i32
      %c0_58 = arith.constant 0 : index
      %104 = arith.index_cast %102 : i32 to index
      %c0_59 = arith.constant 0 : index
      %105 = vector.load %arg2[%c0_58, %104, %c0_59] : memref<1x128x1024xf32, #tpu.memory_space<vmem>>, vector<1x1x1024xf32>
      %106 = vector.shape_cast %105 : vector<1x1x1024xf32> to vector<1x1024xf32>
      %c127_i32 = arith.constant 127 : i32
      %107 = arith.minsi %103, %c127_i32 : i32
      %c0_60 = arith.constant 0 : index
      %108 = arith.index_cast %107 : i32 to index
      %c0_61 = arith.constant 0 : index
      %109 = vector.load %arg2[%c0_60, %108, %c0_61] : memref<1x128x1024xf32, #tpu.memory_space<vmem>>, vector<1x1x1024xf32>
      %110 = vector.shape_cast %109 : vector<1x1x1024xf32> to vector<1x1024xf32>
      %c127_i32_62 = arith.constant 127 : i32
      %111 = arith.cmpi sle, %103, %c127_i32_62 : i32
      %112 = arith.extui %111 : i1 to i32
      %113 = arith.sitofp %112 : i32 to f32
      %114 = vector.broadcast %113 : f32 to vector<1x1024xf32>
      %115 = arith.mulf %110, %114 : vector<1x1024xf32>
      %c1_i32_63 = arith.constant 1 : i32
      %116 = tpu.dynamic_rotate %106 by %c1_i32_63 dim 1 : vector<1x1024xf32>, i32 -> vector<1x1024xf32>
      %c1_i32_64 = arith.constant 1 : i32
      %117 = tpu.dynamic_rotate %115 by %c1_i32_64 dim 1 : vector<1x1024xf32>, i32 -> vector<1x1024xf32>
      %c6 = arith.constant 6 : index
      %c0_65 = arith.constant 0 : index
      %c0_66 = arith.constant 0 : index
      %118 = vector.load %arg3[%c6, %c0_65, %c0_66] : memref<9x8x1024xf32, #tpu.memory_space<vmem>>, vector<1x8x1024xf32>
      %119 = vector.shape_cast %118 : vector<1x8x1024xf32> to vector<8x1024xf32>
      %120 = vector.broadcast %116 : vector<1x1024xf32> to vector<8x1024xf32>
      %121 = arith.mulf %119, %120 : vector<8x1024xf32>
      %122 = arith.addf %98, %121 : vector<8x1024xf32>
      %123 = vector.broadcast %117 : vector<1x1024xf32> to vector<8x1024xf32>
      %124 = arith.mulf %119, %123 : vector<8x1024xf32>
      %125 = arith.addf %101, %124 : vector<8x1024xf32>
      %c7 = arith.constant 7 : index
      %c0_67 = arith.constant 0 : index
      %c0_68 = arith.constant 0 : index
      %126 = vector.load %arg3[%c7, %c0_67, %c0_68] : memref<9x8x1024xf32, #tpu.memory_space<vmem>>, vector<1x8x1024xf32>
      %127 = vector.shape_cast %126 : vector<1x8x1024xf32> to vector<8x1024xf32>
      %128 = vector.broadcast %106 : vector<1x1024xf32> to vector<8x1024xf32>
      %129 = arith.mulf %127, %128 : vector<8x1024xf32>
      %130 = arith.addf %122, %129 : vector<8x1024xf32>
      %131 = vector.broadcast %115 : vector<1x1024xf32> to vector<8x1024xf32>
      %132 = arith.mulf %127, %131 : vector<8x1024xf32>
      %133 = arith.addf %125, %132 : vector<8x1024xf32>
      %c1023_i32_69 = arith.constant 1023 : i32
      %134 = tpu.dynamic_rotate %106 by %c1023_i32_69 dim 1 : vector<1x1024xf32>, i32 -> vector<1x1024xf32>
      %c1023_i32_70 = arith.constant 1023 : i32
      %135 = tpu.dynamic_rotate %115 by %c1023_i32_70 dim 1 : vector<1x1024xf32>, i32 -> vector<1x1024xf32>
      %c8 = arith.constant 8 : index
      %c0_71 = arith.constant 0 : index
      %c0_72 = arith.constant 0 : index
      %136 = vector.load %arg3[%c8, %c0_71, %c0_72] : memref<9x8x1024xf32, #tpu.memory_space<vmem>>, vector<1x8x1024xf32>
      %137 = vector.shape_cast %136 : vector<1x8x1024xf32> to vector<8x1024xf32>
      %138 = vector.broadcast %134 : vector<1x1024xf32> to vector<8x1024xf32>
      %139 = arith.mulf %137, %138 : vector<8x1024xf32>
      %140 = arith.addf %130, %139 : vector<8x1024xf32>
      %141 = vector.broadcast %135 : vector<1x1024xf32> to vector<8x1024xf32>
      %142 = arith.mulf %137, %141 : vector<8x1024xf32>
      %143 = arith.addf %133, %142 : vector<8x1024xf32>
      %144 = vector.extract_strided_slice %140 {offsets = [0, 0], sizes = [8, 128], strides = [1, 1]} : vector<8x1024xf32> to vector<8x128xf32>
      %145 = vector.extract_strided_slice %140 {offsets = [0, 128], sizes = [8, 128], strides = [1, 1]} : vector<8x1024xf32> to vector<8x128xf32>
      %146 = arith.addf %144, %145 : vector<8x128xf32>
      %147 = vector.extract_strided_slice %140 {offsets = [0, 256], sizes = [8, 128], strides = [1, 1]} : vector<8x1024xf32> to vector<8x128xf32>
      %148 = arith.addf %146, %147 : vector<8x128xf32>
      %149 = vector.extract_strided_slice %140 {offsets = [0, 384], sizes = [8, 128], strides = [1, 1]} : vector<8x1024xf32> to vector<8x128xf32>
      %150 = arith.addf %148, %149 : vector<8x128xf32>
      %151 = vector.extract_strided_slice %140 {offsets = [0, 512], sizes = [8, 128], strides = [1, 1]} : vector<8x1024xf32> to vector<8x128xf32>
      %152 = arith.addf %150, %151 : vector<8x128xf32>
      %153 = vector.extract_strided_slice %140 {offsets = [0, 640], sizes = [8, 128], strides = [1, 1]} : vector<8x1024xf32> to vector<8x128xf32>
      %154 = arith.addf %152, %153 : vector<8x128xf32>
      %155 = vector.extract_strided_slice %140 {offsets = [0, 768], sizes = [8, 128], strides = [1, 1]} : vector<8x1024xf32> to vector<8x128xf32>
      %156 = arith.addf %154, %155 : vector<8x128xf32>
      %157 = vector.extract_strided_slice %140 {offsets = [0, 896], sizes = [8, 128], strides = [1, 1]} : vector<8x1024xf32> to vector<8x128xf32>
      %158 = arith.addf %156, %157 : vector<8x128xf32>
      %159 = vector.extract_strided_slice %143 {offsets = [0, 0], sizes = [8, 128], strides = [1, 1]} : vector<8x1024xf32> to vector<8x128xf32>
      %160 = vector.extract_strided_slice %143 {offsets = [0, 128], sizes = [8, 128], strides = [1, 1]} : vector<8x1024xf32> to vector<8x128xf32>
      %161 = arith.addf %159, %160 : vector<8x128xf32>
      %162 = vector.extract_strided_slice %143 {offsets = [0, 256], sizes = [8, 128], strides = [1, 1]} : vector<8x1024xf32> to vector<8x128xf32>
      %163 = arith.addf %161, %162 : vector<8x128xf32>
      %164 = vector.extract_strided_slice %143 {offsets = [0, 384], sizes = [8, 128], strides = [1, 1]} : vector<8x1024xf32> to vector<8x128xf32>
      %165 = arith.addf %163, %164 : vector<8x128xf32>
      %166 = vector.extract_strided_slice %143 {offsets = [0, 512], sizes = [8, 128], strides = [1, 1]} : vector<8x1024xf32> to vector<8x128xf32>
      %167 = arith.addf %165, %166 : vector<8x128xf32>
      %168 = vector.extract_strided_slice %143 {offsets = [0, 640], sizes = [8, 128], strides = [1, 1]} : vector<8x1024xf32> to vector<8x128xf32>
      %169 = arith.addf %167, %168 : vector<8x128xf32>
      %170 = vector.extract_strided_slice %143 {offsets = [0, 768], sizes = [8, 128], strides = [1, 1]} : vector<8x1024xf32> to vector<8x128xf32>
      %171 = arith.addf %169, %170 : vector<8x128xf32>
      %172 = vector.extract_strided_slice %143 {offsets = [0, 896], sizes = [8, 128], strides = [1, 1]} : vector<8x1024xf32> to vector<8x128xf32>
      %173 = arith.addf %171, %172 : vector<8x128xf32>
      %174 = arith.maximumf %158, %173 : vector<8x128xf32>
      %c0_73 = arith.constant 0 : index
      %c0_74 = arith.constant 0 : index
      %175 = vector.load %arg4[%c0_73, %c0_74] : memref<8x128xf32, #tpu.memory_space<vmem>>, vector<8x128xf32>
      %176 = arith.addf %174, %175 : vector<8x128xf32>
      %cst_75 = arith.constant 0.000000e+00 : f32
      %177 = vector.broadcast %cst_75 : f32 to vector<8x128xf32>
      %178 = arith.maximumf %176, %177 : vector<8x128xf32>
      %179 = arith.index_cast %arg11 : i32 to index
      %c0_76 = arith.constant 0 : index
      %c0_77 = arith.constant 0 : index
      %180 = vector.load %arg10[%179, %c0_76, %c0_77] : memref<32x8x128xf32, #tpu.memory_space<vmem>>, vector<1x8x128xf32>
      %181 = vector.shape_cast %180 : vector<1x8x128xf32> to vector<8x128xf32>
      %182 = vector.shape_cast %178 : vector<8x128xf32> to vector<1x8x128xf32>
      tpu.vector_store %arg10[%179, %c0_76, %c0_77], %182 {strides = array<i32>} : memref<32x8x128xf32, #tpu.memory_space<vmem>>, vector<1x8x128xf32>,
    }
    %c32_i32_1 = arith.constant 32 : i32
    %c0 = arith.constant 0 : index
    %c0_2 = arith.constant 0 : index
    %c0_3 = arith.constant 0 : index
    %2 = vector.load %arg10[%c0, %c0_2, %c0_3] : memref<32x8x128xf32, #tpu.memory_space<vmem>>, vector<32x8x128xf32>
    %3 = vector.shape_cast %2 : vector<32x8x128xf32> to vector<256x128xf32>
    %c0_4 = arith.constant 0 : index
    %c0_5 = arith.constant 0 : index
    %4 = vector.load %arg5[%c0_4, %c0_5] : memref<128x64xf32, #tpu.memory_space<vmem>>, vector<128x64xf32>
    %cst = arith.constant dense<0.000000e+00> : vector<256x64xf32>
    %5 = tpu.matmul %3, %4, %cst {dimension_numbers = #tpu.dot_dimension_numbers<[1], [0], [0], [1], [0, 0, 1, 1], [], []>} : vector<256x128xf32>, vector<128x64xf32>, vector<256x64xf32> -> vector<256x64xf32>
    %c0_6 = arith.constant 0 : index
    %c0_7 = arith.constant 0 : index
    %6 = vector.load %arg6[%c0_6, %c0_7] : memref<128x64xf32, #tpu.memory_space<vmem>>, vector<128x64xf32>
    %cst_8 = arith.constant dense<0.000000e+00> : vector<256x64xf32>
    %7 = tpu.matmul %3, %6, %cst_8 {dimension_numbers = #tpu.dot_dimension_numbers<[1], [0], [0], [1], [0, 0, 1, 1], [], []>} : vector<256x128xf32>, vector<128x64xf32>, vector<256x64xf32> -> vector<256x64xf32>
    %8 = arith.maximumf %5, %7 : vector<256x64xf32>
    %9 = vector.shape_cast %8 : vector<256x64xf32> to vector<32x8x64xf32>
    %c0_9 = arith.constant 0 : index
    %c0_10 = arith.constant 0 : index
    %c0_11 = arith.constant 0 : index
    %10 = vector.load %arg7[%c0_9, %c0_10, %c0_11] : memref<1x8x64xf32, #tpu.memory_space<vmem>>, vector<1x8x64xf32>
    %11 = vector.broadcast %10 : vector<1x8x64xf32> to vector<32x8x64xf32>
    %12 = arith.mulf %9, %11 : vector<32x8x64xf32>
    %c0_12 = arith.constant 0 : index
    %c0_13 = arith.constant 0 : index
    %c0_14 = arith.constant 0 : index
    %13 = vector.load %arg8[%c0_12, %c0_13, %c0_14] : memref<1x8x64xf32, #tpu.memory_space<vmem>>, vector<1x8x64xf32>
    %14 = vector.broadcast %13 : vector<1x8x64xf32> to vector<32x8x64xf32>
    %15 = arith.addf %12, %14 : vector<32x8x64xf32>
    %c0_15 = arith.constant 0 : index
    %c0_16 = arith.constant 0 : index
    %c0_17 = arith.constant 0 : index
    %c0_18 = arith.constant 0 : index
    %16 = vector.load %arg9[%c0_15, %c0_16, %c0_17, %c0_18] : memref<1x32x8x64xf32, #tpu.memory_space<vmem>>, vector<1x32x8x64xf32>
    %17 = vector.shape_cast %16 : vector<1x32x8x64xf32> to vector<32x8x64xf32>
    %18 = vector.shape_cast %15 : vector<32x8x64xf32> to vector<1x32x8x64xf32>
    tpu.vector_store %arg9[%c0_15, %c0_16, %c0_17, %c0_18], %18 {strides = array<i32>} : memref<1x32x8x64xf32, #tpu.memory_space<vmem>>, vector<1x32x8x64xf32>,
    return
  }
  func.func @transform_0(%arg0: i32, %arg1: i32) -> (i32, i32, i32) {
    %c0_i32 = arith.constant 0 : i32
    %c0_i32_0 = arith.constant 0 : i32
    %c0_i32_1 = arith.constant 0 : i32
    return %arg0, %c0_i32, %c0_i32_0 : i32, i32, i32
  }
  func.func @transform_1(%arg0: i32, %arg1: i32) -> (i32, i32, i32) {
    %c0_i32 = arith.constant 0 : i32
    %c0_i32_0 = arith.constant 0 : i32
    %c0_i32_1 = arith.constant 0 : i32
    %c0_i32_2 = arith.constant 0 : i32
    return %c0_i32, %c0_i32_0, %c0_i32_1 : i32, i32, i32
  }
  func.func @transform_2(%arg0: i32, %arg1: i32) -> (i32, i32) {
    %c0_i32 = arith.constant 0 : i32
    %c0_i32_0 = arith.constant 0 : i32
    %c0_i32_1 = arith.constant 0 : i32
    return %c0_i32, %c0_i32_0 : i32, i32
  }
  func.func @transform_3(%arg0: i32, %arg1: i32) -> (i32, i32) {
    %c0_i32 = arith.constant 0 : i32
    %c0_i32_0 = arith.constant 0 : i32
    %c0_i32_1 = arith.constant 0 : i32
    return %c0_i32, %c0_i32_0 : i32, i32
  }
  func.func @transform_4(%arg0: i32, %arg1: i32) -> (i32, i32) {
    %c0_i32 = arith.constant 0 : i32
    %c0_i32_0 = arith.constant 0 : i32
    %c0_i32_1 = arith.constant 0 : i32
    return %c0_i32, %c0_i32_0 : i32, i32
  }
  func.func @transform_5(%arg0: i32, %arg1: i32) -> (i32, i32, i32) {
    %c0_i32 = arith.constant 0 : i32
    %c0_i32_0 = arith.constant 0 : i32
    %c0_i32_1 = arith.constant 0 : i32
    %c0_i32_2 = arith.constant 0 : i32
    return %c0_i32, %c0_i32_0, %c0_i32_1 : i32, i32, i32
  }
  func.func @transform_6(%arg0: i32, %arg1: i32) -> (i32, i32, i32) {
    %c0_i32 = arith.constant 0 : i32
    %c0_i32_0 = arith.constant 0 : i32
    %c0_i32_1 = arith.constant 0 : i32
    %c0_i32_2 = arith.constant 0 : i32
    return %c0_i32, %c0_i32_0, %c0_i32_1 : i32, i32, i32
  }
  func.func @transform_7(%arg0: i32, %arg1: i32) -> (i32, i32, i32, i32) {
    %c0_i32 = arith.constant 0 : i32
    %c0_i32_0 = arith.constant 0 : i32
    %c0_i32_1 = arith.constant 0 : i32
    return %arg0, %arg1, %c0_i32, %c0_i32_0 : i32, i32, i32, i32
  }
}

module attributes {stable_mosaic.version = 11 : i64} {
  func.func @_conv_block_kernel(%arg0: i32, %arg1: i32, %arg2: memref<1x64x512xf32, #tpu.memory_space<vmem>>, %arg3: memref<9x8x512xf32, #tpu.memory_space<vmem>>, %arg4: memref<8x64xf32, #tpu.memory_space<vmem>>, %arg5: memref<64x32xf32, #tpu.memory_space<vmem>>, %arg6: memref<64x32xf32, #tpu.memory_space<vmem>>, %arg7: memref<1x8x32xf32, #tpu.memory_space<vmem>>, %arg8: memref<1x8x32xf32, #tpu.memory_space<vmem>>, %arg9: memref<1x32x8x32xf32, #tpu.memory_space<vmem>>, %arg10: memref<32x8x64xf32, #tpu.memory_space<vmem>>) attributes {dimension_semantics = [#tpu.dimension_semantics<parallel>, #tpu.dimension_semantics<parallel>], iteration_bounds = array<i64: 2, 1>, scalar_prefetch = 0 : i64, scratch_operands = 1 : i64, tpu.core_type = #tpu.core_type<tc>, window_params = [{transform_indices = @transform_0, window_bounds = array<i64: 1, 64, 512>}, {pipeline_mode = #tpu.pipeline_mode<synchronous>, transform_indices = @transform_1, window_bounds = array<i64: 9, 8, 512>}, {pipeline_mode = #tpu.pipeline_mode<synchronous>, transform_indices = @transform_2, window_bounds = array<i64: 8, 64>}, {pipeline_mode = #tpu.pipeline_mode<synchronous>, transform_indices = @transform_3, window_bounds = array<i64: 64, 32>}, {pipeline_mode = #tpu.pipeline_mode<synchronous>, transform_indices = @transform_4, window_bounds = array<i64: 64, 32>}, {pipeline_mode = #tpu.pipeline_mode<synchronous>, transform_indices = @transform_5, window_bounds = array<i64: 1, 8, 32>}, {pipeline_mode = #tpu.pipeline_mode<synchronous>, transform_indices = @transform_6, window_bounds = array<i64: 1, 8, 32>}, {transform_indices = @transform_7, window_bounds = array<i64: 1, 32, 8, 32>}]} {
    %c32_i32 = arith.constant 32 : i32
    %0 = arith.muli %arg1, %c32_i32 : i32
    %c0_i32 = arith.constant 0 : i32
    %c32_i32_0 = arith.constant 32 : i32
    %1 = arith.addi %c0_i32, %c32_i32_0 : i32
    %c1_i32 = arith.constant 1 : i32
    scf.for %arg11 = %c0_i32 to %1 step %c1_i32  : i32 {
      %19 = arith.addi %0, %arg11 : i32
      %c2_i32 = arith.constant 2 : i32
      %20 = arith.muli %c2_i32, %19 : i32
      %c1_i32_19 = arith.constant 1 : i32
      %21 = arith.subi %20, %c1_i32_19 : i32
      %cst_20 = arith.constant 0.000000e+00 : f32
      %22 = vector.broadcast %cst_20 : f32 to vector<8x512xf32>
      %cst_21 = arith.constant 0.000000e+00 : f32
      %23 = vector.broadcast %cst_21 : f32 to vector<8x512xf32>
      %c0_i32_22 = arith.constant 0 : i32
      %24 = arith.addi %21, %c0_i32_22 : i32
      %c1_i32_23 = arith.constant 1 : i32
      %25 = arith.addi %24, %c1_i32_23 : i32
      %c0_i32_24 = arith.constant 0 : i32
      %26 = arith.maxsi %24, %c0_i32_24 : i32
      %c0_25 = arith.constant 0 : index
      %27 = arith.index_cast %26 : i32 to index
      %c0_26 = arith.constant 0 : index
      %28 = vector.load %arg2[%c0_25, %27, %c0_26] : memref<1x64x512xf32, #tpu.memory_space<vmem>>, vector<1x1x512xf32>
      %29 = vector.shape_cast %28 : vector<1x1x512xf32> to vector<1x512xf32>
      %c0_i32_27 = arith.constant 0 : i32
      %30 = arith.cmpi sge, %24, %c0_i32_27 : i32
      %31 = arith.extui %30 : i1 to i32
      %32 = arith.sitofp %31 : i32 to f32
      %33 = vector.broadcast %32 : f32 to vector<1x512xf32>
      %34 = arith.mulf %29, %33 : vector<1x512xf32>
      %c0_28 = arith.constant 0 : index
      %35 = arith.index_cast %25 : i32 to index
      %c0_29 = arith.constant 0 : index
      %36 = vector.load %arg2[%c0_28, %35, %c0_29] : memref<1x64x512xf32, #tpu.memory_space<vmem>>, vector<1x1x512xf32>
      %37 = vector.shape_cast %36 : vector<1x1x512xf32> to vector<1x512xf32>
      %c1_i32_30 = arith.constant 1 : i32
      %38 = tpu.dynamic_rotate %34 by %c1_i32_30 dim 1 : vector<1x512xf32>, i32 -> vector<1x512xf32>
      %c1_i32_31 = arith.constant 1 : i32
      %39 = tpu.dynamic_rotate %37 by %c1_i32_31 dim 1 : vector<1x512xf32>, i32 -> vector<1x512xf32>
      %c0_32 = arith.constant 0 : index
      %c0_33 = arith.constant 0 : index
      %c0_34 = arith.constant 0 : index
      %40 = vector.load %arg3[%c0_32, %c0_33, %c0_34] : memref<9x8x512xf32, #tpu.memory_space<vmem>>, vector<1x8x512xf32>
      %41 = vector.shape_cast %40 : vector<1x8x512xf32> to vector<8x512xf32>
      %42 = vector.broadcast %38 : vector<1x512xf32> to vector<8x512xf32>
      %43 = arith.mulf %41, %42 : vector<8x512xf32>
      %44 = arith.addf %22, %43 : vector<8x512xf32>
      %45 = vector.broadcast %39 : vector<1x512xf32> to vector<8x512xf32>
      %46 = arith.mulf %41, %45 : vector<8x512xf32>
      %47 = arith.addf %23, %46 : vector<8x512xf32>
      %c1 = arith.constant 1 : index
      %c0_35 = arith.constant 0 : index
      %c0_36 = arith.constant 0 : index
      %48 = vector.load %arg3[%c1, %c0_35, %c0_36] : memref<9x8x512xf32, #tpu.memory_space<vmem>>, vector<1x8x512xf32>
      %49 = vector.shape_cast %48 : vector<1x8x512xf32> to vector<8x512xf32>
      %50 = vector.broadcast %34 : vector<1x512xf32> to vector<8x512xf32>
      %51 = arith.mulf %49, %50 : vector<8x512xf32>
      %52 = arith.addf %44, %51 : vector<8x512xf32>
      %53 = vector.broadcast %37 : vector<1x512xf32> to vector<8x512xf32>
      %54 = arith.mulf %49, %53 : vector<8x512xf32>
      %55 = arith.addf %47, %54 : vector<8x512xf32>
      %c511_i32 = arith.constant 511 : i32
      %56 = tpu.dynamic_rotate %34 by %c511_i32 dim 1 : vector<1x512xf32>, i32 -> vector<1x512xf32>
      %c511_i32_37 = arith.constant 511 : i32
      %57 = tpu.dynamic_rotate %37 by %c511_i32_37 dim 1 : vector<1x512xf32>, i32 -> vector<1x512xf32>
      %c2 = arith.constant 2 : index
      %c0_38 = arith.constant 0 : index
      %c0_39 = arith.constant 0 : index
      %58 = vector.load %arg3[%c2, %c0_38, %c0_39] : memref<9x8x512xf32, #tpu.memory_space<vmem>>, vector<1x8x512xf32>
      %59 = vector.shape_cast %58 : vector<1x8x512xf32> to vector<8x512xf32>
      %60 = vector.broadcast %56 : vector<1x512xf32> to vector<8x512xf32>
      %61 = arith.mulf %59, %60 : vector<8x512xf32>
      %62 = arith.addf %52, %61 : vector<8x512xf32>
      %63 = vector.broadcast %57 : vector<1x512xf32> to vector<8x512xf32>
      %64 = arith.mulf %59, %63 : vector<8x512xf32>
      %65 = arith.addf %55, %64 : vector<8x512xf32>
      %c1_i32_40 = arith.constant 1 : i32
      %66 = arith.addi %21, %c1_i32_40 : i32
      %c1_i32_41 = arith.constant 1 : i32
      %67 = arith.addi %66, %c1_i32_41 : i32
      %c0_42 = arith.constant 0 : index
      %68 = arith.index_cast %66 : i32 to index
      %c0_43 = arith.constant 0 : index
      %69 = vector.load %arg2[%c0_42, %68, %c0_43] : memref<1x64x512xf32, #tpu.memory_space<vmem>>, vector<1x1x512xf32>
      %70 = vector.shape_cast %69 : vector<1x1x512xf32> to vector<1x512xf32>
      %c0_44 = arith.constant 0 : index
      %71 = arith.index_cast %67 : i32 to index
      %c0_45 = arith.constant 0 : index
      %72 = vector.load %arg2[%c0_44, %71, %c0_45] : memref<1x64x512xf32, #tpu.memory_space<vmem>>, vector<1x1x512xf32>
      %73 = vector.shape_cast %72 : vector<1x1x512xf32> to vector<1x512xf32>
      %c1_i32_46 = arith.constant 1 : i32
      %74 = tpu.dynamic_rotate %70 by %c1_i32_46 dim 1 : vector<1x512xf32>, i32 -> vector<1x512xf32>
      %c1_i32_47 = arith.constant 1 : i32
      %75 = tpu.dynamic_rotate %73 by %c1_i32_47 dim 1 : vector<1x512xf32>, i32 -> vector<1x512xf32>
      %c3 = arith.constant 3 : index
      %c0_48 = arith.constant 0 : index
      %c0_49 = arith.constant 0 : index
      %76 = vector.load %arg3[%c3, %c0_48, %c0_49] : memref<9x8x512xf32, #tpu.memory_space<vmem>>, vector<1x8x512xf32>
      %77 = vector.shape_cast %76 : vector<1x8x512xf32> to vector<8x512xf32>
      %78 = vector.broadcast %74 : vector<1x512xf32> to vector<8x512xf32>
      %79 = arith.mulf %77, %78 : vector<8x512xf32>
      %80 = arith.addf %62, %79 : vector<8x512xf32>
      %81 = vector.broadcast %75 : vector<1x512xf32> to vector<8x512xf32>
      %82 = arith.mulf %77, %81 : vector<8x512xf32>
      %83 = arith.addf %65, %82 : vector<8x512xf32>
      %c4 = arith.constant 4 : index
      %c0_50 = arith.constant 0 : index
      %c0_51 = arith.constant 0 : index
      %84 = vector.load %arg3[%c4, %c0_50, %c0_51] : memref<9x8x512xf32, #tpu.memory_space<vmem>>, vector<1x8x512xf32>
      %85 = vector.shape_cast %84 : vector<1x8x512xf32> to vector<8x512xf32>
      %86 = vector.broadcast %70 : vector<1x512xf32> to vector<8x512xf32>
      %87 = arith.mulf %85, %86 : vector<8x512xf32>
      %88 = arith.addf %80, %87 : vector<8x512xf32>
      %89 = vector.broadcast %73 : vector<1x512xf32> to vector<8x512xf32>
      %90 = arith.mulf %85, %89 : vector<8x512xf32>
      %91 = arith.addf %83, %90 : vector<8x512xf32>
      %c511_i32_52 = arith.constant 511 : i32
      %92 = tpu.dynamic_rotate %70 by %c511_i32_52 dim 1 : vector<1x512xf32>, i32 -> vector<1x512xf32>
      %c511_i32_53 = arith.constant 511 : i32
      %93 = tpu.dynamic_rotate %73 by %c511_i32_53 dim 1 : vector<1x512xf32>, i32 -> vector<1x512xf32>
      %c5 = arith.constant 5 : index
      %c0_54 = arith.constant 0 : index
      %c0_55 = arith.constant 0 : index
      %94 = vector.load %arg3[%c5, %c0_54, %c0_55] : memref<9x8x512xf32, #tpu.memory_space<vmem>>, vector<1x8x512xf32>
      %95 = vector.shape_cast %94 : vector<1x8x512xf32> to vector<8x512xf32>
      %96 = vector.broadcast %92 : vector<1x512xf32> to vector<8x512xf32>
      %97 = arith.mulf %95, %96 : vector<8x512xf32>
      %98 = arith.addf %88, %97 : vector<8x512xf32>
      %99 = vector.broadcast %93 : vector<1x512xf32> to vector<8x512xf32>
      %100 = arith.mulf %95, %99 : vector<8x512xf32>
      %101 = arith.addf %91, %100 : vector<8x512xf32>
      %c2_i32_56 = arith.constant 2 : i32
      %102 = arith.addi %21, %c2_i32_56 : i32
      %c1_i32_57 = arith.constant 1 : i32
      %103 = arith.addi %102, %c1_i32_57 : i32
      %c0_58 = arith.constant 0 : index
      %104 = arith.index_cast %102 : i32 to index
      %c0_59 = arith.constant 0 : index
      %105 = vector.load %arg2[%c0_58, %104, %c0_59] : memref<1x64x512xf32, #tpu.memory_space<vmem>>, vector<1x1x512xf32>
      %106 = vector.shape_cast %105 : vector<1x1x512xf32> to vector<1x512xf32>
      %c63_i32 = arith.constant 63 : i32
      %107 = arith.minsi %103, %c63_i32 : i32
      %c0_60 = arith.constant 0 : index
      %108 = arith.index_cast %107 : i32 to index
      %c0_61 = arith.constant 0 : index
      %109 = vector.load %arg2[%c0_60, %108, %c0_61] : memref<1x64x512xf32, #tpu.memory_space<vmem>>, vector<1x1x512xf32>
      %110 = vector.shape_cast %109 : vector<1x1x512xf32> to vector<1x512xf32>
      %c63_i32_62 = arith.constant 63 : i32
      %111 = arith.cmpi sle, %103, %c63_i32_62 : i32
      %112 = arith.extui %111 : i1 to i32
      %113 = arith.sitofp %112 : i32 to f32
      %114 = vector.broadcast %113 : f32 to vector<1x512xf32>
      %115 = arith.mulf %110, %114 : vector<1x512xf32>
      %c1_i32_63 = arith.constant 1 : i32
      %116 = tpu.dynamic_rotate %106 by %c1_i32_63 dim 1 : vector<1x512xf32>, i32 -> vector<1x512xf32>
      %c1_i32_64 = arith.constant 1 : i32
      %117 = tpu.dynamic_rotate %115 by %c1_i32_64 dim 1 : vector<1x512xf32>, i32 -> vector<1x512xf32>
      %c6 = arith.constant 6 : index
      %c0_65 = arith.constant 0 : index
      %c0_66 = arith.constant 0 : index
      %118 = vector.load %arg3[%c6, %c0_65, %c0_66] : memref<9x8x512xf32, #tpu.memory_space<vmem>>, vector<1x8x512xf32>
      %119 = vector.shape_cast %118 : vector<1x8x512xf32> to vector<8x512xf32>
      %120 = vector.broadcast %116 : vector<1x512xf32> to vector<8x512xf32>
      %121 = arith.mulf %119, %120 : vector<8x512xf32>
      %122 = arith.addf %98, %121 : vector<8x512xf32>
      %123 = vector.broadcast %117 : vector<1x512xf32> to vector<8x512xf32>
      %124 = arith.mulf %119, %123 : vector<8x512xf32>
      %125 = arith.addf %101, %124 : vector<8x512xf32>
      %c7 = arith.constant 7 : index
      %c0_67 = arith.constant 0 : index
      %c0_68 = arith.constant 0 : index
      %126 = vector.load %arg3[%c7, %c0_67, %c0_68] : memref<9x8x512xf32, #tpu.memory_space<vmem>>, vector<1x8x512xf32>
      %127 = vector.shape_cast %126 : vector<1x8x512xf32> to vector<8x512xf32>
      %128 = vector.broadcast %106 : vector<1x512xf32> to vector<8x512xf32>
      %129 = arith.mulf %127, %128 : vector<8x512xf32>
      %130 = arith.addf %122, %129 : vector<8x512xf32>
      %131 = vector.broadcast %115 : vector<1x512xf32> to vector<8x512xf32>
      %132 = arith.mulf %127, %131 : vector<8x512xf32>
      %133 = arith.addf %125, %132 : vector<8x512xf32>
      %c511_i32_69 = arith.constant 511 : i32
      %134 = tpu.dynamic_rotate %106 by %c511_i32_69 dim 1 : vector<1x512xf32>, i32 -> vector<1x512xf32>
      %c511_i32_70 = arith.constant 511 : i32
      %135 = tpu.dynamic_rotate %115 by %c511_i32_70 dim 1 : vector<1x512xf32>, i32 -> vector<1x512xf32>
      %c8 = arith.constant 8 : index
      %c0_71 = arith.constant 0 : index
      %c0_72 = arith.constant 0 : index
      %136 = vector.load %arg3[%c8, %c0_71, %c0_72] : memref<9x8x512xf32, #tpu.memory_space<vmem>>, vector<1x8x512xf32>
      %137 = vector.shape_cast %136 : vector<1x8x512xf32> to vector<8x512xf32>
      %138 = vector.broadcast %134 : vector<1x512xf32> to vector<8x512xf32>
      %139 = arith.mulf %137, %138 : vector<8x512xf32>
      %140 = arith.addf %130, %139 : vector<8x512xf32>
      %141 = vector.broadcast %135 : vector<1x512xf32> to vector<8x512xf32>
      %142 = arith.mulf %137, %141 : vector<8x512xf32>
      %143 = arith.addf %133, %142 : vector<8x512xf32>
      %c256_i32 = arith.constant 256 : i32
      %144 = tpu.dynamic_rotate %140 by %c256_i32 dim 1 : vector<8x512xf32>, i32 -> vector<8x512xf32>
      %145 = arith.addf %140, %144 : vector<8x512xf32>
      %c384_i32 = arith.constant 384 : i32
      %146 = tpu.dynamic_rotate %145 by %c384_i32 dim 1 : vector<8x512xf32>, i32 -> vector<8x512xf32>
      %147 = arith.addf %145, %146 : vector<8x512xf32>
      %c448_i32 = arith.constant 448 : i32
      %148 = tpu.dynamic_rotate %147 by %c448_i32 dim 1 : vector<8x512xf32>, i32 -> vector<8x512xf32>
      %149 = arith.addf %147, %148 : vector<8x512xf32>
      %150 = vector.extract_strided_slice %149 {offsets = [0, 0], sizes = [8, 64], strides = [1, 1]} : vector<8x512xf32> to vector<8x64xf32>
      %c256_i32_73 = arith.constant 256 : i32
      %151 = tpu.dynamic_rotate %143 by %c256_i32_73 dim 1 : vector<8x512xf32>, i32 -> vector<8x512xf32>
      %152 = arith.addf %143, %151 : vector<8x512xf32>
      %c384_i32_74 = arith.constant 384 : i32
      %153 = tpu.dynamic_rotate %152 by %c384_i32_74 dim 1 : vector<8x512xf32>, i32 -> vector<8x512xf32>
      %154 = arith.addf %152, %153 : vector<8x512xf32>
      %c448_i32_75 = arith.constant 448 : i32
      %155 = tpu.dynamic_rotate %154 by %c448_i32_75 dim 1 : vector<8x512xf32>, i32 -> vector<8x512xf32>
      %156 = arith.addf %154, %155 : vector<8x512xf32>
      %157 = vector.extract_strided_slice %156 {offsets = [0, 0], sizes = [8, 64], strides = [1, 1]} : vector<8x512xf32> to vector<8x64xf32>
      %158 = arith.maximumf %150, %157 : vector<8x64xf32>
      %c0_76 = arith.constant 0 : index
      %c0_77 = arith.constant 0 : index
      %159 = vector.load %arg4[%c0_76, %c0_77] : memref<8x64xf32, #tpu.memory_space<vmem>>, vector<8x64xf32>
      %160 = arith.addf %158, %159 : vector<8x64xf32>
      %cst_78 = arith.constant 0.000000e+00 : f32
      %161 = vector.broadcast %cst_78 : f32 to vector<8x64xf32>
      %162 = arith.maximumf %160, %161 : vector<8x64xf32>
      %163 = arith.index_cast %arg11 : i32 to index
      %c0_79 = arith.constant 0 : index
      %c0_80 = arith.constant 0 : index
      %164 = vector.load %arg10[%163, %c0_79, %c0_80] : memref<32x8x64xf32, #tpu.memory_space<vmem>>, vector<1x8x64xf32>
      %165 = vector.shape_cast %164 : vector<1x8x64xf32> to vector<8x64xf32>
      %166 = vector.shape_cast %162 : vector<8x64xf32> to vector<1x8x64xf32>
      tpu.vector_store %arg10[%163, %c0_79, %c0_80], %166 {strides = array<i32>} : memref<32x8x64xf32, #tpu.memory_space<vmem>>, vector<1x8x64xf32>,
    }
    %c32_i32_1 = arith.constant 32 : i32
    %c0 = arith.constant 0 : index
    %c0_2 = arith.constant 0 : index
    %c0_3 = arith.constant 0 : index
    %2 = vector.load %arg10[%c0, %c0_2, %c0_3] : memref<32x8x64xf32, #tpu.memory_space<vmem>>, vector<32x8x64xf32>
    %3 = vector.shape_cast %2 : vector<32x8x64xf32> to vector<256x64xf32>
    %c0_4 = arith.constant 0 : index
    %c0_5 = arith.constant 0 : index
    %4 = vector.load %arg5[%c0_4, %c0_5] : memref<64x32xf32, #tpu.memory_space<vmem>>, vector<64x32xf32>
    %cst = arith.constant dense<0.000000e+00> : vector<256x32xf32>
    %5 = tpu.matmul %3, %4, %cst {dimension_numbers = #tpu.dot_dimension_numbers<[1], [0], [0], [1], [0, 0, 1, 1], [], []>} : vector<256x64xf32>, vector<64x32xf32>, vector<256x32xf32> -> vector<256x32xf32>
    %c0_6 = arith.constant 0 : index
    %c0_7 = arith.constant 0 : index
    %6 = vector.load %arg6[%c0_6, %c0_7] : memref<64x32xf32, #tpu.memory_space<vmem>>, vector<64x32xf32>
    %cst_8 = arith.constant dense<0.000000e+00> : vector<256x32xf32>
    %7 = tpu.matmul %3, %6, %cst_8 {dimension_numbers = #tpu.dot_dimension_numbers<[1], [0], [0], [1], [0, 0, 1, 1], [], []>} : vector<256x64xf32>, vector<64x32xf32>, vector<256x32xf32> -> vector<256x32xf32>
    %8 = arith.maximumf %5, %7 : vector<256x32xf32>
    %9 = vector.shape_cast %8 : vector<256x32xf32> to vector<32x8x32xf32>
    %c0_9 = arith.constant 0 : index
    %c0_10 = arith.constant 0 : index
    %c0_11 = arith.constant 0 : index
    %10 = vector.load %arg7[%c0_9, %c0_10, %c0_11] : memref<1x8x32xf32, #tpu.memory_space<vmem>>, vector<1x8x32xf32>
    %11 = vector.broadcast %10 : vector<1x8x32xf32> to vector<32x8x32xf32>
    %12 = arith.mulf %9, %11 : vector<32x8x32xf32>
    %c0_12 = arith.constant 0 : index
    %c0_13 = arith.constant 0 : index
    %c0_14 = arith.constant 0 : index
    %13 = vector.load %arg8[%c0_12, %c0_13, %c0_14] : memref<1x8x32xf32, #tpu.memory_space<vmem>>, vector<1x8x32xf32>
    %14 = vector.broadcast %13 : vector<1x8x32xf32> to vector<32x8x32xf32>
    %15 = arith.addf %12, %14 : vector<32x8x32xf32>
    %c0_15 = arith.constant 0 : index
    %c0_16 = arith.constant 0 : index
    %c0_17 = arith.constant 0 : index
    %c0_18 = arith.constant 0 : index
    %16 = vector.load %arg9[%c0_15, %c0_16, %c0_17, %c0_18] : memref<1x32x8x32xf32, #tpu.memory_space<vmem>>, vector<1x32x8x32xf32>
    %17 = vector.shape_cast %16 : vector<1x32x8x32xf32> to vector<32x8x32xf32>
    %18 = vector.shape_cast %15 : vector<32x8x32xf32> to vector<1x32x8x32xf32>
    tpu.vector_store %arg9[%c0_15, %c0_16, %c0_17, %c0_18], %18 {strides = array<i32>} : memref<1x32x8x32xf32, #tpu.memory_space<vmem>>, vector<1x32x8x32xf32>,
    return
  }
  func.func @transform_0(%arg0: i32, %arg1: i32) -> (i32, i32, i32) {
    %c0_i32 = arith.constant 0 : i32
    %c0_i32_0 = arith.constant 0 : i32
    %c0_i32_1 = arith.constant 0 : i32
    return %arg0, %c0_i32, %c0_i32_0 : i32, i32, i32
  }
  func.func @transform_1(%arg0: i32, %arg1: i32) -> (i32, i32, i32) {
    %c0_i32 = arith.constant 0 : i32
    %c0_i32_0 = arith.constant 0 : i32
    %c0_i32_1 = arith.constant 0 : i32
    %c0_i32_2 = arith.constant 0 : i32
    return %c0_i32, %c0_i32_0, %c0_i32_1 : i32, i32, i32
  }
  func.func @transform_2(%arg0: i32, %arg1: i32) -> (i32, i32) {
    %c0_i32 = arith.constant 0 : i32
    %c0_i32_0 = arith.constant 0 : i32
    %c0_i32_1 = arith.constant 0 : i32
    return %c0_i32, %c0_i32_0 : i32, i32
  }
  func.func @transform_3(%arg0: i32, %arg1: i32) -> (i32, i32) {
    %c0_i32 = arith.constant 0 : i32
    %c0_i32_0 = arith.constant 0 : i32
    %c0_i32_1 = arith.constant 0 : i32
    return %c0_i32, %c0_i32_0 : i32, i32
  }
  func.func @transform_4(%arg0: i32, %arg1: i32) -> (i32, i32) {
    %c0_i32 = arith.constant 0 : i32
    %c0_i32_0 = arith.constant 0 : i32
    %c0_i32_1 = arith.constant 0 : i32
    return %c0_i32, %c0_i32_0 : i32, i32
  }
  func.func @transform_5(%arg0: i32, %arg1: i32) -> (i32, i32, i32) {
    %c0_i32 = arith.constant 0 : i32
    %c0_i32_0 = arith.constant 0 : i32
    %c0_i32_1 = arith.constant 0 : i32
    %c0_i32_2 = arith.constant 0 : i32
    return %c0_i32, %c0_i32_0, %c0_i32_1 : i32, i32, i32
  }
  func.func @transform_6(%arg0: i32, %arg1: i32) -> (i32, i32, i32) {
    %c0_i32 = arith.constant 0 : i32
    %c0_i32_0 = arith.constant 0 : i32
    %c0_i32_1 = arith.constant 0 : i32
    %c0_i32_2 = arith.constant 0 : i32
    return %c0_i32, %c0_i32_0, %c0_i32_1 : i32, i32, i32
  }
  func.func @transform_7(%arg0: i32, %arg1: i32) -> (i32, i32, i32, i32) {
    %c0_i32 = arith.constant 0 : i32
    %c0_i32_0 = arith.constant 0 : i32
    %c0_i32_1 = arith.constant 0 : i32
    return %arg0, %arg1, %c0_i32, %c0_i32_0 : i32, i32, i32, i32
  }
}

module attributes {stable_mosaic.version = 11 : i64} {
  func.func @_conv_block_kernel(%arg0: i32, %arg1: i32, %arg2: memref<1x32x256xf32, #tpu.memory_space<vmem>>, %arg3: memref<9x8x256xf32, #tpu.memory_space<vmem>>, %arg4: memref<8x32xf32, #tpu.memory_space<vmem>>, %arg5: memref<32x16xf32, #tpu.memory_space<vmem>>, %arg6: memref<32x16xf32, #tpu.memory_space<vmem>>, %arg7: memref<1x8x16xf32, #tpu.memory_space<vmem>>, %arg8: memref<1x8x16xf32, #tpu.memory_space<vmem>>, %arg9: memref<1x16x8x16xf32, #tpu.memory_space<vmem>>, %arg10: memref<16x8x32xf32, #tpu.memory_space<vmem>>) attributes {dimension_semantics = [#tpu.dimension_semantics<parallel>, #tpu.dimension_semantics<parallel>], iteration_bounds = array<i64: 2, 1>, scalar_prefetch = 0 : i64, scratch_operands = 1 : i64, tpu.core_type = #tpu.core_type<tc>, window_params = [{transform_indices = @transform_0, window_bounds = array<i64: 1, 32, 256>}, {pipeline_mode = #tpu.pipeline_mode<synchronous>, transform_indices = @transform_1, window_bounds = array<i64: 9, 8, 256>}, {pipeline_mode = #tpu.pipeline_mode<synchronous>, transform_indices = @transform_2, window_bounds = array<i64: 8, 32>}, {pipeline_mode = #tpu.pipeline_mode<synchronous>, transform_indices = @transform_3, window_bounds = array<i64: 32, 16>}, {pipeline_mode = #tpu.pipeline_mode<synchronous>, transform_indices = @transform_4, window_bounds = array<i64: 32, 16>}, {pipeline_mode = #tpu.pipeline_mode<synchronous>, transform_indices = @transform_5, window_bounds = array<i64: 1, 8, 16>}, {pipeline_mode = #tpu.pipeline_mode<synchronous>, transform_indices = @transform_6, window_bounds = array<i64: 1, 8, 16>}, {transform_indices = @transform_7, window_bounds = array<i64: 1, 16, 8, 16>}]} {
    %c16_i32 = arith.constant 16 : i32
    %0 = arith.muli %arg1, %c16_i32 : i32
    %c0_i32 = arith.constant 0 : i32
    %c16_i32_0 = arith.constant 16 : i32
    %1 = arith.addi %c0_i32, %c16_i32_0 : i32
    %c1_i32 = arith.constant 1 : i32
    scf.for %arg11 = %c0_i32 to %1 step %c1_i32  : i32 {
      %19 = arith.addi %0, %arg11 : i32
      %c2_i32 = arith.constant 2 : i32
      %20 = arith.muli %c2_i32, %19 : i32
      %c1_i32_19 = arith.constant 1 : i32
      %21 = arith.subi %20, %c1_i32_19 : i32
      %cst_20 = arith.constant 0.000000e+00 : f32
      %22 = vector.broadcast %cst_20 : f32 to vector<8x256xf32>
      %cst_21 = arith.constant 0.000000e+00 : f32
      %23 = vector.broadcast %cst_21 : f32 to vector<8x256xf32>
      %c0_i32_22 = arith.constant 0 : i32
      %24 = arith.addi %21, %c0_i32_22 : i32
      %c1_i32_23 = arith.constant 1 : i32
      %25 = arith.addi %24, %c1_i32_23 : i32
      %c0_i32_24 = arith.constant 0 : i32
      %26 = arith.maxsi %24, %c0_i32_24 : i32
      %c0_25 = arith.constant 0 : index
      %27 = arith.index_cast %26 : i32 to index
      %c0_26 = arith.constant 0 : index
      %28 = vector.load %arg2[%c0_25, %27, %c0_26] : memref<1x32x256xf32, #tpu.memory_space<vmem>>, vector<1x1x256xf32>
      %29 = vector.shape_cast %28 : vector<1x1x256xf32> to vector<1x256xf32>
      %c0_i32_27 = arith.constant 0 : i32
      %30 = arith.cmpi sge, %24, %c0_i32_27 : i32
      %31 = arith.extui %30 : i1 to i32
      %32 = arith.sitofp %31 : i32 to f32
      %33 = vector.broadcast %32 : f32 to vector<1x256xf32>
      %34 = arith.mulf %29, %33 : vector<1x256xf32>
      %c0_28 = arith.constant 0 : index
      %35 = arith.index_cast %25 : i32 to index
      %c0_29 = arith.constant 0 : index
      %36 = vector.load %arg2[%c0_28, %35, %c0_29] : memref<1x32x256xf32, #tpu.memory_space<vmem>>, vector<1x1x256xf32>
      %37 = vector.shape_cast %36 : vector<1x1x256xf32> to vector<1x256xf32>
      %c1_i32_30 = arith.constant 1 : i32
      %38 = tpu.dynamic_rotate %34 by %c1_i32_30 dim 1 : vector<1x256xf32>, i32 -> vector<1x256xf32>
      %c1_i32_31 = arith.constant 1 : i32
      %39 = tpu.dynamic_rotate %37 by %c1_i32_31 dim 1 : vector<1x256xf32>, i32 -> vector<1x256xf32>
      %c0_32 = arith.constant 0 : index
      %c0_33 = arith.constant 0 : index
      %c0_34 = arith.constant 0 : index
      %40 = vector.load %arg3[%c0_32, %c0_33, %c0_34] : memref<9x8x256xf32, #tpu.memory_space<vmem>>, vector<1x8x256xf32>
      %41 = vector.shape_cast %40 : vector<1x8x256xf32> to vector<8x256xf32>
      %42 = vector.broadcast %38 : vector<1x256xf32> to vector<8x256xf32>
      %43 = arith.mulf %41, %42 : vector<8x256xf32>
      %44 = arith.addf %22, %43 : vector<8x256xf32>
      %45 = vector.broadcast %39 : vector<1x256xf32> to vector<8x256xf32>
      %46 = arith.mulf %41, %45 : vector<8x256xf32>
      %47 = arith.addf %23, %46 : vector<8x256xf32>
      %c1 = arith.constant 1 : index
      %c0_35 = arith.constant 0 : index
      %c0_36 = arith.constant 0 : index
      %48 = vector.load %arg3[%c1, %c0_35, %c0_36] : memref<9x8x256xf32, #tpu.memory_space<vmem>>, vector<1x8x256xf32>
      %49 = vector.shape_cast %48 : vector<1x8x256xf32> to vector<8x256xf32>
      %50 = vector.broadcast %34 : vector<1x256xf32> to vector<8x256xf32>
      %51 = arith.mulf %49, %50 : vector<8x256xf32>
      %52 = arith.addf %44, %51 : vector<8x256xf32>
      %53 = vector.broadcast %37 : vector<1x256xf32> to vector<8x256xf32>
      %54 = arith.mulf %49, %53 : vector<8x256xf32>
      %55 = arith.addf %47, %54 : vector<8x256xf32>
      %c255_i32 = arith.constant 255 : i32
      %56 = tpu.dynamic_rotate %34 by %c255_i32 dim 1 : vector<1x256xf32>, i32 -> vector<1x256xf32>
      %c255_i32_37 = arith.constant 255 : i32
      %57 = tpu.dynamic_rotate %37 by %c255_i32_37 dim 1 : vector<1x256xf32>, i32 -> vector<1x256xf32>
      %c2 = arith.constant 2 : index
      %c0_38 = arith.constant 0 : index
      %c0_39 = arith.constant 0 : index
      %58 = vector.load %arg3[%c2, %c0_38, %c0_39] : memref<9x8x256xf32, #tpu.memory_space<vmem>>, vector<1x8x256xf32>
      %59 = vector.shape_cast %58 : vector<1x8x256xf32> to vector<8x256xf32>
      %60 = vector.broadcast %56 : vector<1x256xf32> to vector<8x256xf32>
      %61 = arith.mulf %59, %60 : vector<8x256xf32>
      %62 = arith.addf %52, %61 : vector<8x256xf32>
      %63 = vector.broadcast %57 : vector<1x256xf32> to vector<8x256xf32>
      %64 = arith.mulf %59, %63 : vector<8x256xf32>
      %65 = arith.addf %55, %64 : vector<8x256xf32>
      %c1_i32_40 = arith.constant 1 : i32
      %66 = arith.addi %21, %c1_i32_40 : i32
      %c1_i32_41 = arith.constant 1 : i32
      %67 = arith.addi %66, %c1_i32_41 : i32
      %c0_42 = arith.constant 0 : index
      %68 = arith.index_cast %66 : i32 to index
      %c0_43 = arith.constant 0 : index
      %69 = vector.load %arg2[%c0_42, %68, %c0_43] : memref<1x32x256xf32, #tpu.memory_space<vmem>>, vector<1x1x256xf32>
      %70 = vector.shape_cast %69 : vector<1x1x256xf32> to vector<1x256xf32>
      %c0_44 = arith.constant 0 : index
      %71 = arith.index_cast %67 : i32 to index
      %c0_45 = arith.constant 0 : index
      %72 = vector.load %arg2[%c0_44, %71, %c0_45] : memref<1x32x256xf32, #tpu.memory_space<vmem>>, vector<1x1x256xf32>
      %73 = vector.shape_cast %72 : vector<1x1x256xf32> to vector<1x256xf32>
      %c1_i32_46 = arith.constant 1 : i32
      %74 = tpu.dynamic_rotate %70 by %c1_i32_46 dim 1 : vector<1x256xf32>, i32 -> vector<1x256xf32>
      %c1_i32_47 = arith.constant 1 : i32
      %75 = tpu.dynamic_rotate %73 by %c1_i32_47 dim 1 : vector<1x256xf32>, i32 -> vector<1x256xf32>
      %c3 = arith.constant 3 : index
      %c0_48 = arith.constant 0 : index
      %c0_49 = arith.constant 0 : index
      %76 = vector.load %arg3[%c3, %c0_48, %c0_49] : memref<9x8x256xf32, #tpu.memory_space<vmem>>, vector<1x8x256xf32>
      %77 = vector.shape_cast %76 : vector<1x8x256xf32> to vector<8x256xf32>
      %78 = vector.broadcast %74 : vector<1x256xf32> to vector<8x256xf32>
      %79 = arith.mulf %77, %78 : vector<8x256xf32>
      %80 = arith.addf %62, %79 : vector<8x256xf32>
      %81 = vector.broadcast %75 : vector<1x256xf32> to vector<8x256xf32>
      %82 = arith.mulf %77, %81 : vector<8x256xf32>
      %83 = arith.addf %65, %82 : vector<8x256xf32>
      %c4 = arith.constant 4 : index
      %c0_50 = arith.constant 0 : index
      %c0_51 = arith.constant 0 : index
      %84 = vector.load %arg3[%c4, %c0_50, %c0_51] : memref<9x8x256xf32, #tpu.memory_space<vmem>>, vector<1x8x256xf32>
      %85 = vector.shape_cast %84 : vector<1x8x256xf32> to vector<8x256xf32>
      %86 = vector.broadcast %70 : vector<1x256xf32> to vector<8x256xf32>
      %87 = arith.mulf %85, %86 : vector<8x256xf32>
      %88 = arith.addf %80, %87 : vector<8x256xf32>
      %89 = vector.broadcast %73 : vector<1x256xf32> to vector<8x256xf32>
      %90 = arith.mulf %85, %89 : vector<8x256xf32>
      %91 = arith.addf %83, %90 : vector<8x256xf32>
      %c255_i32_52 = arith.constant 255 : i32
      %92 = tpu.dynamic_rotate %70 by %c255_i32_52 dim 1 : vector<1x256xf32>, i32 -> vector<1x256xf32>
      %c255_i32_53 = arith.constant 255 : i32
      %93 = tpu.dynamic_rotate %73 by %c255_i32_53 dim 1 : vector<1x256xf32>, i32 -> vector<1x256xf32>
      %c5 = arith.constant 5 : index
      %c0_54 = arith.constant 0 : index
      %c0_55 = arith.constant 0 : index
      %94 = vector.load %arg3[%c5, %c0_54, %c0_55] : memref<9x8x256xf32, #tpu.memory_space<vmem>>, vector<1x8x256xf32>
      %95 = vector.shape_cast %94 : vector<1x8x256xf32> to vector<8x256xf32>
      %96 = vector.broadcast %92 : vector<1x256xf32> to vector<8x256xf32>
      %97 = arith.mulf %95, %96 : vector<8x256xf32>
      %98 = arith.addf %88, %97 : vector<8x256xf32>
      %99 = vector.broadcast %93 : vector<1x256xf32> to vector<8x256xf32>
      %100 = arith.mulf %95, %99 : vector<8x256xf32>
      %101 = arith.addf %91, %100 : vector<8x256xf32>
      %c2_i32_56 = arith.constant 2 : i32
      %102 = arith.addi %21, %c2_i32_56 : i32
      %c1_i32_57 = arith.constant 1 : i32
      %103 = arith.addi %102, %c1_i32_57 : i32
      %c0_58 = arith.constant 0 : index
      %104 = arith.index_cast %102 : i32 to index
      %c0_59 = arith.constant 0 : index
      %105 = vector.load %arg2[%c0_58, %104, %c0_59] : memref<1x32x256xf32, #tpu.memory_space<vmem>>, vector<1x1x256xf32>
      %106 = vector.shape_cast %105 : vector<1x1x256xf32> to vector<1x256xf32>
      %c31_i32 = arith.constant 31 : i32
      %107 = arith.minsi %103, %c31_i32 : i32
      %c0_60 = arith.constant 0 : index
      %108 = arith.index_cast %107 : i32 to index
      %c0_61 = arith.constant 0 : index
      %109 = vector.load %arg2[%c0_60, %108, %c0_61] : memref<1x32x256xf32, #tpu.memory_space<vmem>>, vector<1x1x256xf32>
      %110 = vector.shape_cast %109 : vector<1x1x256xf32> to vector<1x256xf32>
      %c31_i32_62 = arith.constant 31 : i32
      %111 = arith.cmpi sle, %103, %c31_i32_62 : i32
      %112 = arith.extui %111 : i1 to i32
      %113 = arith.sitofp %112 : i32 to f32
      %114 = vector.broadcast %113 : f32 to vector<1x256xf32>
      %115 = arith.mulf %110, %114 : vector<1x256xf32>
      %c1_i32_63 = arith.constant 1 : i32
      %116 = tpu.dynamic_rotate %106 by %c1_i32_63 dim 1 : vector<1x256xf32>, i32 -> vector<1x256xf32>
      %c1_i32_64 = arith.constant 1 : i32
      %117 = tpu.dynamic_rotate %115 by %c1_i32_64 dim 1 : vector<1x256xf32>, i32 -> vector<1x256xf32>
      %c6 = arith.constant 6 : index
      %c0_65 = arith.constant 0 : index
      %c0_66 = arith.constant 0 : index
      %118 = vector.load %arg3[%c6, %c0_65, %c0_66] : memref<9x8x256xf32, #tpu.memory_space<vmem>>, vector<1x8x256xf32>
      %119 = vector.shape_cast %118 : vector<1x8x256xf32> to vector<8x256xf32>
      %120 = vector.broadcast %116 : vector<1x256xf32> to vector<8x256xf32>
      %121 = arith.mulf %119, %120 : vector<8x256xf32>
      %122 = arith.addf %98, %121 : vector<8x256xf32>
      %123 = vector.broadcast %117 : vector<1x256xf32> to vector<8x256xf32>
      %124 = arith.mulf %119, %123 : vector<8x256xf32>
      %125 = arith.addf %101, %124 : vector<8x256xf32>
      %c7 = arith.constant 7 : index
      %c0_67 = arith.constant 0 : index
      %c0_68 = arith.constant 0 : index
      %126 = vector.load %arg3[%c7, %c0_67, %c0_68] : memref<9x8x256xf32, #tpu.memory_space<vmem>>, vector<1x8x256xf32>
      %127 = vector.shape_cast %126 : vector<1x8x256xf32> to vector<8x256xf32>
      %128 = vector.broadcast %106 : vector<1x256xf32> to vector<8x256xf32>
      %129 = arith.mulf %127, %128 : vector<8x256xf32>
      %130 = arith.addf %122, %129 : vector<8x256xf32>
      %131 = vector.broadcast %115 : vector<1x256xf32> to vector<8x256xf32>
      %132 = arith.mulf %127, %131 : vector<8x256xf32>
      %133 = arith.addf %125, %132 : vector<8x256xf32>
      %c255_i32_69 = arith.constant 255 : i32
      %134 = tpu.dynamic_rotate %106 by %c255_i32_69 dim 1 : vector<1x256xf32>, i32 -> vector<1x256xf32>
      %c255_i32_70 = arith.constant 255 : i32
      %135 = tpu.dynamic_rotate %115 by %c255_i32_70 dim 1 : vector<1x256xf32>, i32 -> vector<1x256xf32>
      %c8 = arith.constant 8 : index
      %c0_71 = arith.constant 0 : index
      %c0_72 = arith.constant 0 : index
      %136 = vector.load %arg3[%c8, %c0_71, %c0_72] : memref<9x8x256xf32, #tpu.memory_space<vmem>>, vector<1x8x256xf32>
      %137 = vector.shape_cast %136 : vector<1x8x256xf32> to vector<8x256xf32>
      %138 = vector.broadcast %134 : vector<1x256xf32> to vector<8x256xf32>
      %139 = arith.mulf %137, %138 : vector<8x256xf32>
      %140 = arith.addf %130, %139 : vector<8x256xf32>
      %141 = vector.broadcast %135 : vector<1x256xf32> to vector<8x256xf32>
      %142 = arith.mulf %137, %141 : vector<8x256xf32>
      %143 = arith.addf %133, %142 : vector<8x256xf32>
      %c128_i32 = arith.constant 128 : i32
      %144 = tpu.dynamic_rotate %140 by %c128_i32 dim 1 : vector<8x256xf32>, i32 -> vector<8x256xf32>
      %145 = arith.addf %140, %144 : vector<8x256xf32>
      %c192_i32 = arith.constant 192 : i32
      %146 = tpu.dynamic_rotate %145 by %c192_i32 dim 1 : vector<8x256xf32>, i32 -> vector<8x256xf32>
      %147 = arith.addf %145, %146 : vector<8x256xf32>
      %c224_i32 = arith.constant 224 : i32
      %148 = tpu.dynamic_rotate %147 by %c224_i32 dim 1 : vector<8x256xf32>, i32 -> vector<8x256xf32>
      %149 = arith.addf %147, %148 : vector<8x256xf32>
      %150 = vector.extract_strided_slice %149 {offsets = [0, 0], sizes = [8, 32], strides = [1, 1]} : vector<8x256xf32> to vector<8x32xf32>
      %c128_i32_73 = arith.constant 128 : i32
      %151 = tpu.dynamic_rotate %143 by %c128_i32_73 dim 1 : vector<8x256xf32>, i32 -> vector<8x256xf32>
      %152 = arith.addf %143, %151 : vector<8x256xf32>
      %c192_i32_74 = arith.constant 192 : i32
      %153 = tpu.dynamic_rotate %152 by %c192_i32_74 dim 1 : vector<8x256xf32>, i32 -> vector<8x256xf32>
      %154 = arith.addf %152, %153 : vector<8x256xf32>
      %c224_i32_75 = arith.constant 224 : i32
      %155 = tpu.dynamic_rotate %154 by %c224_i32_75 dim 1 : vector<8x256xf32>, i32 -> vector<8x256xf32>
      %156 = arith.addf %154, %155 : vector<8x256xf32>
      %157 = vector.extract_strided_slice %156 {offsets = [0, 0], sizes = [8, 32], strides = [1, 1]} : vector<8x256xf32> to vector<8x32xf32>
      %158 = arith.maximumf %150, %157 : vector<8x32xf32>
      %c0_76 = arith.constant 0 : index
      %c0_77 = arith.constant 0 : index
      %159 = vector.load %arg4[%c0_76, %c0_77] : memref<8x32xf32, #tpu.memory_space<vmem>>, vector<8x32xf32>
      %160 = arith.addf %158, %159 : vector<8x32xf32>
      %cst_78 = arith.constant 0.000000e+00 : f32
      %161 = vector.broadcast %cst_78 : f32 to vector<8x32xf32>
      %162 = arith.maximumf %160, %161 : vector<8x32xf32>
      %163 = arith.index_cast %arg11 : i32 to index
      %c0_79 = arith.constant 0 : index
      %c0_80 = arith.constant 0 : index
      %164 = vector.load %arg10[%163, %c0_79, %c0_80] : memref<16x8x32xf32, #tpu.memory_space<vmem>>, vector<1x8x32xf32>
      %165 = vector.shape_cast %164 : vector<1x8x32xf32> to vector<8x32xf32>
      %166 = vector.shape_cast %162 : vector<8x32xf32> to vector<1x8x32xf32>
      tpu.vector_store %arg10[%163, %c0_79, %c0_80], %166 {strides = array<i32>} : memref<16x8x32xf32, #tpu.memory_space<vmem>>, vector<1x8x32xf32>,
    }
    %c16_i32_1 = arith.constant 16 : i32
    %c0 = arith.constant 0 : index
    %c0_2 = arith.constant 0 : index
    %c0_3 = arith.constant 0 : index
    %2 = vector.load %arg10[%c0, %c0_2, %c0_3] : memref<16x8x32xf32, #tpu.memory_space<vmem>>, vector<16x8x32xf32>
    %3 = vector.shape_cast %2 : vector<16x8x32xf32> to vector<128x32xf32>
    %c0_4 = arith.constant 0 : index
    %c0_5 = arith.constant 0 : index
    %4 = vector.load %arg5[%c0_4, %c0_5] : memref<32x16xf32, #tpu.memory_space<vmem>>, vector<32x16xf32>
    %cst = arith.constant dense<0.000000e+00> : vector<128x16xf32>
    %5 = tpu.matmul %3, %4, %cst {dimension_numbers = #tpu.dot_dimension_numbers<[1], [0], [0], [1], [0, 0, 1, 1], [], []>} : vector<128x32xf32>, vector<32x16xf32>, vector<128x16xf32> -> vector<128x16xf32>
    %c0_6 = arith.constant 0 : index
    %c0_7 = arith.constant 0 : index
    %6 = vector.load %arg6[%c0_6, %c0_7] : memref<32x16xf32, #tpu.memory_space<vmem>>, vector<32x16xf32>
    %cst_8 = arith.constant dense<0.000000e+00> : vector<128x16xf32>
    %7 = tpu.matmul %3, %6, %cst_8 {dimension_numbers = #tpu.dot_dimension_numbers<[1], [0], [0], [1], [0, 0, 1, 1], [], []>} : vector<128x32xf32>, vector<32x16xf32>, vector<128x16xf32> -> vector<128x16xf32>
    %8 = arith.maximumf %5, %7 : vector<128x16xf32>
    %9 = vector.shape_cast %8 : vector<128x16xf32> to vector<16x8x16xf32>
    %c0_9 = arith.constant 0 : index
    %c0_10 = arith.constant 0 : index
    %c0_11 = arith.constant 0 : index
    %10 = vector.load %arg7[%c0_9, %c0_10, %c0_11] : memref<1x8x16xf32, #tpu.memory_space<vmem>>, vector<1x8x16xf32>
    %11 = vector.broadcast %10 : vector<1x8x16xf32> to vector<16x8x16xf32>
    %12 = arith.mulf %9, %11 : vector<16x8x16xf32>
    %c0_12 = arith.constant 0 : index
    %c0_13 = arith.constant 0 : index
    %c0_14 = arith.constant 0 : index
    %13 = vector.load %arg8[%c0_12, %c0_13, %c0_14] : memref<1x8x16xf32, #tpu.memory_space<vmem>>, vector<1x8x16xf32>
    %14 = vector.broadcast %13 : vector<1x8x16xf32> to vector<16x8x16xf32>
    %15 = arith.addf %12, %14 : vector<16x8x16xf32>
    %c0_15 = arith.constant 0 : index
    %c0_16 = arith.constant 0 : index
    %c0_17 = arith.constant 0 : index
    %c0_18 = arith.constant 0 : index
    %16 = vector.load %arg9[%c0_15, %c0_16, %c0_17, %c0_18] : memref<1x16x8x16xf32, #tpu.memory_space<vmem>>, vector<1x16x8x16xf32>
    %17 = vector.shape_cast %16 : vector<1x16x8x16xf32> to vector<16x8x16xf32>
    %18 = vector.shape_cast %15 : vector<16x8x16xf32> to vector<1x16x8x16xf32>
    tpu.vector_store %arg9[%c0_15, %c0_16, %c0_17, %c0_18], %18 {strides = array<i32>} : memref<1x16x8x16xf32, #tpu.memory_space<vmem>>, vector<1x16x8x16xf32>,
    return
  }
  func.func @transform_0(%arg0: i32, %arg1: i32) -> (i32, i32, i32) {
    %c0_i32 = arith.constant 0 : i32
    %c0_i32_0 = arith.constant 0 : i32
    %c0_i32_1 = arith.constant 0 : i32
    return %arg0, %c0_i32, %c0_i32_0 : i32, i32, i32
  }
  func.func @transform_1(%arg0: i32, %arg1: i32) -> (i32, i32, i32) {
    %c0_i32 = arith.constant 0 : i32
    %c0_i32_0 = arith.constant 0 : i32
    %c0_i32_1 = arith.constant 0 : i32
    %c0_i32_2 = arith.constant 0 : i32
    return %c0_i32, %c0_i32_0, %c0_i32_1 : i32, i32, i32
  }
  func.func @transform_2(%arg0: i32, %arg1: i32) -> (i32, i32) {
    %c0_i32 = arith.constant 0 : i32
    %c0_i32_0 = arith.constant 0 : i32
    %c0_i32_1 = arith.constant 0 : i32
    return %c0_i32, %c0_i32_0 : i32, i32
  }
  func.func @transform_3(%arg0: i32, %arg1: i32) -> (i32, i32) {
    %c0_i32 = arith.constant 0 : i32
    %c0_i32_0 = arith.constant 0 : i32
    %c0_i32_1 = arith.constant 0 : i32
    return %c0_i32, %c0_i32_0 : i32, i32
  }
  func.func @transform_4(%arg0: i32, %arg1: i32) -> (i32, i32) {
    %c0_i32 = arith.constant 0 : i32
    %c0_i32_0 = arith.constant 0 : i32
    %c0_i32_1 = arith.constant 0 : i32
    return %c0_i32, %c0_i32_0 : i32, i32
  }
  func.func @transform_5(%arg0: i32, %arg1: i32) -> (i32, i32, i32) {
    %c0_i32 = arith.constant 0 : i32
    %c0_i32_0 = arith.constant 0 : i32
    %c0_i32_1 = arith.constant 0 : i32
    %c0_i32_2 = arith.constant 0 : i32
    return %c0_i32, %c0_i32_0, %c0_i32_1 : i32, i32, i32
  }
  func.func @transform_6(%arg0: i32, %arg1: i32) -> (i32, i32, i32) {
    %c0_i32 = arith.constant 0 : i32
    %c0_i32_0 = arith.constant 0 : i32
    %c0_i32_1 = arith.constant 0 : i32
    %c0_i32_2 = arith.constant 0 : i32
    return %c0_i32, %c0_i32_0, %c0_i32_1 : i32, i32, i32
  }
  func.func @transform_7(%arg0: i32, %arg1: i32) -> (i32, i32, i32, i32) {
    %c0_i32 = arith.constant 0 : i32
    %c0_i32_0 = arith.constant 0 : i32
    %c0_i32_1 = arith.constant 0 : i32
    return %arg0, %arg1, %c0_i32, %c0_i32_0 : i32, i32, i32, i32
  }
}

module attributes {stable_mosaic.version = 11 : i64} {
  func.func @_dense_kernel(%arg0: i32, %arg1: memref<2x512xf32, #tpu.memory_space<vmem>>, %arg2: memref<512x64xf32, #tpu.memory_space<vmem>>, %arg3: memref<1x64xf32, #tpu.memory_space<vmem>>, %arg4: memref<64x10xf32, #tpu.memory_space<vmem>>, %arg5: memref<1x10xf32, #tpu.memory_space<vmem>>, %arg6: memref<2x10xf32, #tpu.memory_space<vmem>>) attributes {dimension_semantics = [#tpu.dimension_semantics<arbitrary>], iteration_bounds = array<i64: 1>, scalar_prefetch = 0 : i64, scratch_operands = 0 : i64, tpu.core_type = #tpu.core_type<tc>, window_params = [{pipeline_mode = #tpu.pipeline_mode<synchronous>, transform_indices = @transform_0, window_bounds = array<i64: 2, 512>}, {pipeline_mode = #tpu.pipeline_mode<synchronous>, transform_indices = @transform_1, window_bounds = array<i64: 512, 64>}, {pipeline_mode = #tpu.pipeline_mode<synchronous>, transform_indices = @transform_2, window_bounds = array<i64: 1, 64>}, {pipeline_mode = #tpu.pipeline_mode<synchronous>, transform_indices = @transform_3, window_bounds = array<i64: 64, 10>}, {pipeline_mode = #tpu.pipeline_mode<synchronous>, transform_indices = @transform_4, window_bounds = array<i64: 1, 10>}, {pipeline_mode = #tpu.pipeline_mode<synchronous>, transform_indices = @transform_5, window_bounds = array<i64: 2, 10>}]} {
    %c0 = arith.constant 0 : index
    %c0_0 = arith.constant 0 : index
    %0 = vector.load %arg1[%c0, %c0_0] : memref<2x512xf32, #tpu.memory_space<vmem>>, vector<2x512xf32>
    %c0_1 = arith.constant 0 : index
    %c0_2 = arith.constant 0 : index
    %1 = vector.load %arg2[%c0_1, %c0_2] : memref<512x64xf32, #tpu.memory_space<vmem>>, vector<512x64xf32>
    %cst = arith.constant dense<0.000000e+00> : vector<2x64xf32>
    %2 = tpu.matmul %0, %1, %cst {dimension_numbers = #tpu.dot_dimension_numbers<[1], [0], [0], [1], [0, 0, 1, 1], [], []>} : vector<2x512xf32>, vector<512x64xf32>, vector<2x64xf32> -> vector<2x64xf32>
    %c0_3 = arith.constant 0 : index
    %c0_4 = arith.constant 0 : index
    %3 = vector.load %arg3[%c0_3, %c0_4] : memref<1x64xf32, #tpu.memory_space<vmem>>, vector<1x64xf32>
    %4 = vector.broadcast %3 : vector<1x64xf32> to vector<2x64xf32>
    %5 = arith.addf %2, %4 : vector<2x64xf32>
    %cst_5 = arith.constant 0.000000e+00 : f32
    %6 = vector.broadcast %cst_5 : f32 to vector<2x64xf32>
    %7 = arith.maximumf %5, %6 : vector<2x64xf32>
    %c0_6 = arith.constant 0 : index
    %c0_7 = arith.constant 0 : index
    %8 = vector.load %arg4[%c0_6, %c0_7] : memref<64x10xf32, #tpu.memory_space<vmem>>, vector<64x10xf32>
    %cst_8 = arith.constant dense<0.000000e+00> : vector<2x10xf32>
    %9 = tpu.matmul %7, %8, %cst_8 {dimension_numbers = #tpu.dot_dimension_numbers<[1], [0], [0], [1], [0, 0, 1, 1], [], []>} : vector<2x64xf32>, vector<64x10xf32>, vector<2x10xf32> -> vector<2x10xf32>
    %c0_9 = arith.constant 0 : index
    %c0_10 = arith.constant 0 : index
    %10 = vector.load %arg5[%c0_9, %c0_10] : memref<1x10xf32, #tpu.memory_space<vmem>>, vector<1x10xf32>
    %11 = vector.broadcast %10 : vector<1x10xf32> to vector<2x10xf32>
    %12 = arith.addf %9, %11 : vector<2x10xf32>
    %c0_11 = arith.constant 0 : index
    %c0_12 = arith.constant 0 : index
    %13 = vector.load %arg6[%c0_11, %c0_12] : memref<2x10xf32, #tpu.memory_space<vmem>>, vector<2x10xf32>
    tpu.vector_store %arg6[%c0_11, %c0_12], %12 {strides = array<i32>} : memref<2x10xf32, #tpu.memory_space<vmem>>, vector<2x10xf32>,
    return
  }
  func.func @transform_0(%arg0: i32) -> (i32, i32) {
    %c0_i32 = arith.constant 0 : i32
    %c0_i32_0 = arith.constant 0 : i32
    %c0_i32_1 = arith.constant 0 : i32
    return %c0_i32, %c0_i32_0 : i32, i32
  }
  func.func @transform_1(%arg0: i32) -> (i32, i32) {
    %c0_i32 = arith.constant 0 : i32
    %c0_i32_0 = arith.constant 0 : i32
    %c0_i32_1 = arith.constant 0 : i32
    return %c0_i32, %c0_i32_0 : i32, i32
  }
  func.func @transform_2(%arg0: i32) -> (i32, i32) {
    %c0_i32 = arith.constant 0 : i32
    %c0_i32_0 = arith.constant 0 : i32
    %c0_i32_1 = arith.constant 0 : i32
    return %c0_i32, %c0_i32_0 : i32, i32
  }
  func.func @transform_3(%arg0: i32) -> (i32, i32) {
    %c0_i32 = arith.constant 0 : i32
    %c0_i32_0 = arith.constant 0 : i32
    %c0_i32_1 = arith.constant 0 : i32
    return %c0_i32, %c0_i32_0 : i32, i32
  }
  func.func @transform_4(%arg0: i32) -> (i32, i32) {
    %c0_i32 = arith.constant 0 : i32
    %c0_i32_0 = arith.constant 0 : i32
    %c0_i32_1 = arith.constant 0 : i32
    return %c0_i32, %c0_i32_0 : i32, i32
  }
  func.func @transform_5(%arg0: i32) -> (i32, i32) {
    %c0_i32 = arith.constant 0 : i32
    %c0_i32_0 = arith.constant 0 : i32
    %c0_i32_1 = arith.constant 0 : i32
    return %c0_i32, %c0_i32_0 : i32, i32
  }
}

module attributes {stable_mosaic.version = 11 : i64} {
  func.func @_conv_block_kernel(%arg0: i32, %arg1: i32, %arg2: memref<1x16x128xf32, #tpu.memory_space<vmem>>, %arg3: memref<9x8x128xf32, #tpu.memory_space<vmem>>, %arg4: memref<8x16xf32, #tpu.memory_space<vmem>>, %arg5: memref<16x8xf32, #tpu.memory_space<vmem>>, %arg6: memref<16x8xf32, #tpu.memory_space<vmem>>, %arg7: memref<1x8x8xf32, #tpu.memory_space<vmem>>, %arg8: memref<1x8x8xf32, #tpu.memory_space<vmem>>, %arg9: memref<1x8x8x8xf32, #tpu.memory_space<vmem>>, %arg10: memref<8x8x16xf32, #tpu.memory_space<vmem>>) attributes {dimension_semantics = [#tpu.dimension_semantics<parallel>, #tpu.dimension_semantics<parallel>], iteration_bounds = array<i64: 2, 1>, scalar_prefetch = 0 : i64, scratch_operands = 1 : i64, tpu.core_type = #tpu.core_type<tc>, window_params = [{transform_indices = @transform_0, window_bounds = array<i64: 1, 16, 128>}, {pipeline_mode = #tpu.pipeline_mode<synchronous>, transform_indices = @transform_1, window_bounds = array<i64: 9, 8, 128>}, {pipeline_mode = #tpu.pipeline_mode<synchronous>, transform_indices = @transform_2, window_bounds = array<i64: 8, 16>}, {pipeline_mode = #tpu.pipeline_mode<synchronous>, transform_indices = @transform_3, window_bounds = array<i64: 16, 8>}, {pipeline_mode = #tpu.pipeline_mode<synchronous>, transform_indices = @transform_4, window_bounds = array<i64: 16, 8>}, {pipeline_mode = #tpu.pipeline_mode<synchronous>, transform_indices = @transform_5, window_bounds = array<i64: 1, 8, 8>}, {pipeline_mode = #tpu.pipeline_mode<synchronous>, transform_indices = @transform_6, window_bounds = array<i64: 1, 8, 8>}, {transform_indices = @transform_7, window_bounds = array<i64: 1, 8, 8, 8>}]} {
    %c8_i32 = arith.constant 8 : i32
    %0 = arith.muli %arg1, %c8_i32 : i32
    %c0_i32 = arith.constant 0 : i32
    %c8_i32_0 = arith.constant 8 : i32
    %1 = arith.addi %c0_i32, %c8_i32_0 : i32
    %c1_i32 = arith.constant 1 : i32
    scf.for %arg11 = %c0_i32 to %1 step %c1_i32  : i32 {
      %19 = arith.addi %0, %arg11 : i32
      %c2_i32 = arith.constant 2 : i32
      %20 = arith.muli %c2_i32, %19 : i32
      %c1_i32_19 = arith.constant 1 : i32
      %21 = arith.subi %20, %c1_i32_19 : i32
      %cst_20 = arith.constant 0.000000e+00 : f32
      %22 = vector.broadcast %cst_20 : f32 to vector<8x128xf32>
      %cst_21 = arith.constant 0.000000e+00 : f32
      %23 = vector.broadcast %cst_21 : f32 to vector<8x128xf32>
      %c0_i32_22 = arith.constant 0 : i32
      %24 = arith.addi %21, %c0_i32_22 : i32
      %c1_i32_23 = arith.constant 1 : i32
      %25 = arith.addi %24, %c1_i32_23 : i32
      %c0_i32_24 = arith.constant 0 : i32
      %26 = arith.maxsi %24, %c0_i32_24 : i32
      %c0_25 = arith.constant 0 : index
      %27 = arith.index_cast %26 : i32 to index
      %c0_26 = arith.constant 0 : index
      %28 = vector.load %arg2[%c0_25, %27, %c0_26] : memref<1x16x128xf32, #tpu.memory_space<vmem>>, vector<1x1x128xf32>
      %29 = vector.shape_cast %28 : vector<1x1x128xf32> to vector<1x128xf32>
      %c0_i32_27 = arith.constant 0 : i32
      %30 = arith.cmpi sge, %24, %c0_i32_27 : i32
      %31 = arith.extui %30 : i1 to i32
      %32 = arith.sitofp %31 : i32 to f32
      %33 = vector.broadcast %32 : f32 to vector<1x128xf32>
      %34 = arith.mulf %29, %33 : vector<1x128xf32>
      %c0_28 = arith.constant 0 : index
      %35 = arith.index_cast %25 : i32 to index
      %c0_29 = arith.constant 0 : index
      %36 = vector.load %arg2[%c0_28, %35, %c0_29] : memref<1x16x128xf32, #tpu.memory_space<vmem>>, vector<1x1x128xf32>
      %37 = vector.shape_cast %36 : vector<1x1x128xf32> to vector<1x128xf32>
      %c1_i32_30 = arith.constant 1 : i32
      %38 = tpu.dynamic_rotate %34 by %c1_i32_30 dim 1 : vector<1x128xf32>, i32 -> vector<1x128xf32>
      %c1_i32_31 = arith.constant 1 : i32
      %39 = tpu.dynamic_rotate %37 by %c1_i32_31 dim 1 : vector<1x128xf32>, i32 -> vector<1x128xf32>
      %c0_32 = arith.constant 0 : index
      %c0_33 = arith.constant 0 : index
      %c0_34 = arith.constant 0 : index
      %40 = vector.load %arg3[%c0_32, %c0_33, %c0_34] : memref<9x8x128xf32, #tpu.memory_space<vmem>>, vector<1x8x128xf32>
      %41 = vector.shape_cast %40 : vector<1x8x128xf32> to vector<8x128xf32>
      %42 = vector.broadcast %38 : vector<1x128xf32> to vector<8x128xf32>
      %43 = arith.mulf %41, %42 : vector<8x128xf32>
      %44 = arith.addf %22, %43 : vector<8x128xf32>
      %45 = vector.broadcast %39 : vector<1x128xf32> to vector<8x128xf32>
      %46 = arith.mulf %41, %45 : vector<8x128xf32>
      %47 = arith.addf %23, %46 : vector<8x128xf32>
      %c1 = arith.constant 1 : index
      %c0_35 = arith.constant 0 : index
      %c0_36 = arith.constant 0 : index
      %48 = vector.load %arg3[%c1, %c0_35, %c0_36] : memref<9x8x128xf32, #tpu.memory_space<vmem>>, vector<1x8x128xf32>
      %49 = vector.shape_cast %48 : vector<1x8x128xf32> to vector<8x128xf32>
      %50 = vector.broadcast %34 : vector<1x128xf32> to vector<8x128xf32>
      %51 = arith.mulf %49, %50 : vector<8x128xf32>
      %52 = arith.addf %44, %51 : vector<8x128xf32>
      %53 = vector.broadcast %37 : vector<1x128xf32> to vector<8x128xf32>
      %54 = arith.mulf %49, %53 : vector<8x128xf32>
      %55 = arith.addf %47, %54 : vector<8x128xf32>
      %c127_i32 = arith.constant 127 : i32
      %56 = tpu.dynamic_rotate %34 by %c127_i32 dim 1 : vector<1x128xf32>, i32 -> vector<1x128xf32>
      %c127_i32_37 = arith.constant 127 : i32
      %57 = tpu.dynamic_rotate %37 by %c127_i32_37 dim 1 : vector<1x128xf32>, i32 -> vector<1x128xf32>
      %c2 = arith.constant 2 : index
      %c0_38 = arith.constant 0 : index
      %c0_39 = arith.constant 0 : index
      %58 = vector.load %arg3[%c2, %c0_38, %c0_39] : memref<9x8x128xf32, #tpu.memory_space<vmem>>, vector<1x8x128xf32>
      %59 = vector.shape_cast %58 : vector<1x8x128xf32> to vector<8x128xf32>
      %60 = vector.broadcast %56 : vector<1x128xf32> to vector<8x128xf32>
      %61 = arith.mulf %59, %60 : vector<8x128xf32>
      %62 = arith.addf %52, %61 : vector<8x128xf32>
      %63 = vector.broadcast %57 : vector<1x128xf32> to vector<8x128xf32>
      %64 = arith.mulf %59, %63 : vector<8x128xf32>
      %65 = arith.addf %55, %64 : vector<8x128xf32>
      %c1_i32_40 = arith.constant 1 : i32
      %66 = arith.addi %21, %c1_i32_40 : i32
      %c1_i32_41 = arith.constant 1 : i32
      %67 = arith.addi %66, %c1_i32_41 : i32
      %c0_42 = arith.constant 0 : index
      %68 = arith.index_cast %66 : i32 to index
      %c0_43 = arith.constant 0 : index
      %69 = vector.load %arg2[%c0_42, %68, %c0_43] : memref<1x16x128xf32, #tpu.memory_space<vmem>>, vector<1x1x128xf32>
      %70 = vector.shape_cast %69 : vector<1x1x128xf32> to vector<1x128xf32>
      %c0_44 = arith.constant 0 : index
      %71 = arith.index_cast %67 : i32 to index
      %c0_45 = arith.constant 0 : index
      %72 = vector.load %arg2[%c0_44, %71, %c0_45] : memref<1x16x128xf32, #tpu.memory_space<vmem>>, vector<1x1x128xf32>
      %73 = vector.shape_cast %72 : vector<1x1x128xf32> to vector<1x128xf32>
      %c1_i32_46 = arith.constant 1 : i32
      %74 = tpu.dynamic_rotate %70 by %c1_i32_46 dim 1 : vector<1x128xf32>, i32 -> vector<1x128xf32>
      %c1_i32_47 = arith.constant 1 : i32
      %75 = tpu.dynamic_rotate %73 by %c1_i32_47 dim 1 : vector<1x128xf32>, i32 -> vector<1x128xf32>
      %c3 = arith.constant 3 : index
      %c0_48 = arith.constant 0 : index
      %c0_49 = arith.constant 0 : index
      %76 = vector.load %arg3[%c3, %c0_48, %c0_49] : memref<9x8x128xf32, #tpu.memory_space<vmem>>, vector<1x8x128xf32>
      %77 = vector.shape_cast %76 : vector<1x8x128xf32> to vector<8x128xf32>
      %78 = vector.broadcast %74 : vector<1x128xf32> to vector<8x128xf32>
      %79 = arith.mulf %77, %78 : vector<8x128xf32>
      %80 = arith.addf %62, %79 : vector<8x128xf32>
      %81 = vector.broadcast %75 : vector<1x128xf32> to vector<8x128xf32>
      %82 = arith.mulf %77, %81 : vector<8x128xf32>
      %83 = arith.addf %65, %82 : vector<8x128xf32>
      %c4 = arith.constant 4 : index
      %c0_50 = arith.constant 0 : index
      %c0_51 = arith.constant 0 : index
      %84 = vector.load %arg3[%c4, %c0_50, %c0_51] : memref<9x8x128xf32, #tpu.memory_space<vmem>>, vector<1x8x128xf32>
      %85 = vector.shape_cast %84 : vector<1x8x128xf32> to vector<8x128xf32>
      %86 = vector.broadcast %70 : vector<1x128xf32> to vector<8x128xf32>
      %87 = arith.mulf %85, %86 : vector<8x128xf32>
      %88 = arith.addf %80, %87 : vector<8x128xf32>
      %89 = vector.broadcast %73 : vector<1x128xf32> to vector<8x128xf32>
      %90 = arith.mulf %85, %89 : vector<8x128xf32>
      %91 = arith.addf %83, %90 : vector<8x128xf32>
      %c127_i32_52 = arith.constant 127 : i32
      %92 = tpu.dynamic_rotate %70 by %c127_i32_52 dim 1 : vector<1x128xf32>, i32 -> vector<1x128xf32>
      %c127_i32_53 = arith.constant 127 : i32
      %93 = tpu.dynamic_rotate %73 by %c127_i32_53 dim 1 : vector<1x128xf32>, i32 -> vector<1x128xf32>
      %c5 = arith.constant 5 : index
      %c0_54 = arith.constant 0 : index
      %c0_55 = arith.constant 0 : index
      %94 = vector.load %arg3[%c5, %c0_54, %c0_55] : memref<9x8x128xf32, #tpu.memory_space<vmem>>, vector<1x8x128xf32>
      %95 = vector.shape_cast %94 : vector<1x8x128xf32> to vector<8x128xf32>
      %96 = vector.broadcast %92 : vector<1x128xf32> to vector<8x128xf32>
      %97 = arith.mulf %95, %96 : vector<8x128xf32>
      %98 = arith.addf %88, %97 : vector<8x128xf32>
      %99 = vector.broadcast %93 : vector<1x128xf32> to vector<8x128xf32>
      %100 = arith.mulf %95, %99 : vector<8x128xf32>
      %101 = arith.addf %91, %100 : vector<8x128xf32>
      %c2_i32_56 = arith.constant 2 : i32
      %102 = arith.addi %21, %c2_i32_56 : i32
      %c1_i32_57 = arith.constant 1 : i32
      %103 = arith.addi %102, %c1_i32_57 : i32
      %c0_58 = arith.constant 0 : index
      %104 = arith.index_cast %102 : i32 to index
      %c0_59 = arith.constant 0 : index
      %105 = vector.load %arg2[%c0_58, %104, %c0_59] : memref<1x16x128xf32, #tpu.memory_space<vmem>>, vector<1x1x128xf32>
      %106 = vector.shape_cast %105 : vector<1x1x128xf32> to vector<1x128xf32>
      %c15_i32 = arith.constant 15 : i32
      %107 = arith.minsi %103, %c15_i32 : i32
      %c0_60 = arith.constant 0 : index
      %108 = arith.index_cast %107 : i32 to index
      %c0_61 = arith.constant 0 : index
      %109 = vector.load %arg2[%c0_60, %108, %c0_61] : memref<1x16x128xf32, #tpu.memory_space<vmem>>, vector<1x1x128xf32>
      %110 = vector.shape_cast %109 : vector<1x1x128xf32> to vector<1x128xf32>
      %c15_i32_62 = arith.constant 15 : i32
      %111 = arith.cmpi sle, %103, %c15_i32_62 : i32
      %112 = arith.extui %111 : i1 to i32
      %113 = arith.sitofp %112 : i32 to f32
      %114 = vector.broadcast %113 : f32 to vector<1x128xf32>
      %115 = arith.mulf %110, %114 : vector<1x128xf32>
      %c1_i32_63 = arith.constant 1 : i32
      %116 = tpu.dynamic_rotate %106 by %c1_i32_63 dim 1 : vector<1x128xf32>, i32 -> vector<1x128xf32>
      %c1_i32_64 = arith.constant 1 : i32
      %117 = tpu.dynamic_rotate %115 by %c1_i32_64 dim 1 : vector<1x128xf32>, i32 -> vector<1x128xf32>
      %c6 = arith.constant 6 : index
      %c0_65 = arith.constant 0 : index
      %c0_66 = arith.constant 0 : index
      %118 = vector.load %arg3[%c6, %c0_65, %c0_66] : memref<9x8x128xf32, #tpu.memory_space<vmem>>, vector<1x8x128xf32>
      %119 = vector.shape_cast %118 : vector<1x8x128xf32> to vector<8x128xf32>
      %120 = vector.broadcast %116 : vector<1x128xf32> to vector<8x128xf32>
      %121 = arith.mulf %119, %120 : vector<8x128xf32>
      %122 = arith.addf %98, %121 : vector<8x128xf32>
      %123 = vector.broadcast %117 : vector<1x128xf32> to vector<8x128xf32>
      %124 = arith.mulf %119, %123 : vector<8x128xf32>
      %125 = arith.addf %101, %124 : vector<8x128xf32>
      %c7 = arith.constant 7 : index
      %c0_67 = arith.constant 0 : index
      %c0_68 = arith.constant 0 : index
      %126 = vector.load %arg3[%c7, %c0_67, %c0_68] : memref<9x8x128xf32, #tpu.memory_space<vmem>>, vector<1x8x128xf32>
      %127 = vector.shape_cast %126 : vector<1x8x128xf32> to vector<8x128xf32>
      %128 = vector.broadcast %106 : vector<1x128xf32> to vector<8x128xf32>
      %129 = arith.mulf %127, %128 : vector<8x128xf32>
      %130 = arith.addf %122, %129 : vector<8x128xf32>
      %131 = vector.broadcast %115 : vector<1x128xf32> to vector<8x128xf32>
      %132 = arith.mulf %127, %131 : vector<8x128xf32>
      %133 = arith.addf %125, %132 : vector<8x128xf32>
      %c127_i32_69 = arith.constant 127 : i32
      %134 = tpu.dynamic_rotate %106 by %c127_i32_69 dim 1 : vector<1x128xf32>, i32 -> vector<1x128xf32>
      %c127_i32_70 = arith.constant 127 : i32
      %135 = tpu.dynamic_rotate %115 by %c127_i32_70 dim 1 : vector<1x128xf32>, i32 -> vector<1x128xf32>
      %c8 = arith.constant 8 : index
      %c0_71 = arith.constant 0 : index
      %c0_72 = arith.constant 0 : index
      %136 = vector.load %arg3[%c8, %c0_71, %c0_72] : memref<9x8x128xf32, #tpu.memory_space<vmem>>, vector<1x8x128xf32>
      %137 = vector.shape_cast %136 : vector<1x8x128xf32> to vector<8x128xf32>
      %138 = vector.broadcast %134 : vector<1x128xf32> to vector<8x128xf32>
      %139 = arith.mulf %137, %138 : vector<8x128xf32>
      %140 = arith.addf %130, %139 : vector<8x128xf32>
      %141 = vector.broadcast %135 : vector<1x128xf32> to vector<8x128xf32>
      %142 = arith.mulf %137, %141 : vector<8x128xf32>
      %143 = arith.addf %133, %142 : vector<8x128xf32>
      %c64_i32 = arith.constant 64 : i32
      %144 = tpu.dynamic_rotate %140 by %c64_i32 dim 1 : vector<8x128xf32>, i32 -> vector<8x128xf32>
      %145 = arith.addf %140, %144 : vector<8x128xf32>
      %c96_i32 = arith.constant 96 : i32
      %146 = tpu.dynamic_rotate %145 by %c96_i32 dim 1 : vector<8x128xf32>, i32 -> vector<8x128xf32>
      %147 = arith.addf %145, %146 : vector<8x128xf32>
      %c112_i32 = arith.constant 112 : i32
      %148 = tpu.dynamic_rotate %147 by %c112_i32 dim 1 : vector<8x128xf32>, i32 -> vector<8x128xf32>
      %149 = arith.addf %147, %148 : vector<8x128xf32>
      %150 = vector.extract_strided_slice %149 {offsets = [0, 0], sizes = [8, 16], strides = [1, 1]} : vector<8x128xf32> to vector<8x16xf32>
      %c64_i32_73 = arith.constant 64 : i32
      %151 = tpu.dynamic_rotate %143 by %c64_i32_73 dim 1 : vector<8x128xf32>, i32 -> vector<8x128xf32>
      %152 = arith.addf %143, %151 : vector<8x128xf32>
      %c96_i32_74 = arith.constant 96 : i32
      %153 = tpu.dynamic_rotate %152 by %c96_i32_74 dim 1 : vector<8x128xf32>, i32 -> vector<8x128xf32>
      %154 = arith.addf %152, %153 : vector<8x128xf32>
      %c112_i32_75 = arith.constant 112 : i32
      %155 = tpu.dynamic_rotate %154 by %c112_i32_75 dim 1 : vector<8x128xf32>, i32 -> vector<8x128xf32>
      %156 = arith.addf %154, %155 : vector<8x128xf32>
      %157 = vector.extract_strided_slice %156 {offsets = [0, 0], sizes = [8, 16], strides = [1, 1]} : vector<8x128xf32> to vector<8x16xf32>
      %158 = arith.maximumf %150, %157 : vector<8x16xf32>
      %c0_76 = arith.constant 0 : index
      %c0_77 = arith.constant 0 : index
      %159 = vector.load %arg4[%c0_76, %c0_77] : memref<8x16xf32, #tpu.memory_space<vmem>>, vector<8x16xf32>
      %160 = arith.addf %158, %159 : vector<8x16xf32>
      %cst_78 = arith.constant 0.000000e+00 : f32
      %161 = vector.broadcast %cst_78 : f32 to vector<8x16xf32>
      %162 = arith.maximumf %160, %161 : vector<8x16xf32>
      %163 = arith.index_cast %arg11 : i32 to index
      %c0_79 = arith.constant 0 : index
      %c0_80 = arith.constant 0 : index
      %164 = vector.load %arg10[%163, %c0_79, %c0_80] : memref<8x8x16xf32, #tpu.memory_space<vmem>>, vector<1x8x16xf32>
      %165 = vector.shape_cast %164 : vector<1x8x16xf32> to vector<8x16xf32>
      %166 = vector.shape_cast %162 : vector<8x16xf32> to vector<1x8x16xf32>
      tpu.vector_store %arg10[%163, %c0_79, %c0_80], %166 {strides = array<i32>} : memref<8x8x16xf32, #tpu.memory_space<vmem>>, vector<1x8x16xf32>,
    }
    %c8_i32_1 = arith.constant 8 : i32
    %c0 = arith.constant 0 : index
    %c0_2 = arith.constant 0 : index
    %c0_3 = arith.constant 0 : index
    %2 = vector.load %arg10[%c0, %c0_2, %c0_3] : memref<8x8x16xf32, #tpu.memory_space<vmem>>, vector<8x8x16xf32>
    %3 = vector.shape_cast %2 : vector<8x8x16xf32> to vector<64x16xf32>
    %c0_4 = arith.constant 0 : index
    %c0_5 = arith.constant 0 : index
    %4 = vector.load %arg5[%c0_4, %c0_5] : memref<16x8xf32, #tpu.memory_space<vmem>>, vector<16x8xf32>
    %cst = arith.constant dense<0.000000e+00> : vector<64x8xf32>
    %5 = tpu.matmul %3, %4, %cst {dimension_numbers = #tpu.dot_dimension_numbers<[1], [0], [0], [1], [0, 0, 1, 1], [], []>} : vector<64x16xf32>, vector<16x8xf32>, vector<64x8xf32> -> vector<64x8xf32>
    %c0_6 = arith.constant 0 : index
    %c0_7 = arith.constant 0 : index
    %6 = vector.load %arg6[%c0_6, %c0_7] : memref<16x8xf32, #tpu.memory_space<vmem>>, vector<16x8xf32>
    %cst_8 = arith.constant dense<0.000000e+00> : vector<64x8xf32>
    %7 = tpu.matmul %3, %6, %cst_8 {dimension_numbers = #tpu.dot_dimension_numbers<[1], [0], [0], [1], [0, 0, 1, 1], [], []>} : vector<64x16xf32>, vector<16x8xf32>, vector<64x8xf32> -> vector<64x8xf32>
    %8 = arith.maximumf %5, %7 : vector<64x8xf32>
    %9 = vector.shape_cast %8 : vector<64x8xf32> to vector<8x8x8xf32>
    %c0_9 = arith.constant 0 : index
    %c0_10 = arith.constant 0 : index
    %c0_11 = arith.constant 0 : index
    %10 = vector.load %arg7[%c0_9, %c0_10, %c0_11] : memref<1x8x8xf32, #tpu.memory_space<vmem>>, vector<1x8x8xf32>
    %11 = vector.broadcast %10 : vector<1x8x8xf32> to vector<8x8x8xf32>
    %12 = arith.mulf %9, %11 : vector<8x8x8xf32>
    %c0_12 = arith.constant 0 : index
    %c0_13 = arith.constant 0 : index
    %c0_14 = arith.constant 0 : index
    %13 = vector.load %arg8[%c0_12, %c0_13, %c0_14] : memref<1x8x8xf32, #tpu.memory_space<vmem>>, vector<1x8x8xf32>
    %14 = vector.broadcast %13 : vector<1x8x8xf32> to vector<8x8x8xf32>
    %15 = arith.addf %12, %14 : vector<8x8x8xf32>
    %c0_15 = arith.constant 0 : index
    %c0_16 = arith.constant 0 : index
    %c0_17 = arith.constant 0 : index
    %c0_18 = arith.constant 0 : index
    %16 = vector.load %arg9[%c0_15, %c0_16, %c0_17, %c0_18] : memref<1x8x8x8xf32, #tpu.memory_space<vmem>>, vector<1x8x8x8xf32>
    %17 = vector.shape_cast %16 : vector<1x8x8x8xf32> to vector<8x8x8xf32>
    %18 = vector.shape_cast %15 : vector<8x8x8xf32> to vector<1x8x8x8xf32>
    tpu.vector_store %arg9[%c0_15, %c0_16, %c0_17, %c0_18], %18 {strides = array<i32>} : memref<1x8x8x8xf32, #tpu.memory_space<vmem>>, vector<1x8x8x8xf32>,
    return
  }
  func.func @transform_0(%arg0: i32, %arg1: i32) -> (i32, i32, i32) {
    %c0_i32 = arith.constant 0 : i32
    %c0_i32_0 = arith.constant 0 : i32
    %c0_i32_1 = arith.constant 0 : i32
    return %arg0, %c0_i32, %c0_i32_0 : i32, i32, i32
  }
  func.func @transform_1(%arg0: i32, %arg1: i32) -> (i32, i32, i32) {
    %c0_i32 = arith.constant 0 : i32
    %c0_i32_0 = arith.constant 0 : i32
    %c0_i32_1 = arith.constant 0 : i32
    %c0_i32_2 = arith.constant 0 : i32
    return %c0_i32, %c0_i32_0, %c0_i32_1 : i32, i32, i32
  }
  func.func @transform_2(%arg0: i32, %arg1: i32) -> (i32, i32) {
    %c0_i32 = arith.constant 0 : i32
    %c0_i32_0 = arith.constant 0 : i32
    %c0_i32_1 = arith.constant 0 : i32
    return %c0_i32, %c0_i32_0 : i32, i32
  }
  func.func @transform_3(%arg0: i32, %arg1: i32) -> (i32, i32) {
    %c0_i32 = arith.constant 0 : i32
    %c0_i32_0 = arith.constant 0 : i32
    %c0_i32_1 = arith.constant 0 : i32
    return %c0_i32, %c0_i32_0 : i32, i32
  }
  func.func @transform_4(%arg0: i32, %arg1: i32) -> (i32, i32) {
    %c0_i32 = arith.constant 0 : i32
    %c0_i32_0 = arith.constant 0 : i32
    %c0_i32_1 = arith.constant 0 : i32
    return %c0_i32, %c0_i32_0 : i32, i32
  }
  func.func @transform_5(%arg0: i32, %arg1: i32) -> (i32, i32, i32) {
    %c0_i32 = arith.constant 0 : i32
    %c0_i32_0 = arith.constant 0 : i32
    %c0_i32_1 = arith.constant 0 : i32
    %c0_i32_2 = arith.constant 0 : i32
    return %c0_i32, %c0_i32_0, %c0_i32_1 : i32, i32, i32
  }
  func.func @transform_6(%arg0: i32, %arg1: i32) -> (i32, i32, i32) {
    %c0_i32 = arith.constant 0 : i32
    %c0_i32_0 = arith.constant 0 : i32
    %c0_i32_1 = arith.constant 0 : i32
    %c0_i32_2 = arith.constant 0 : i32
    return %c0_i32, %c0_i32_0, %c0_i32_1 : i32, i32, i32
  }
  func.func @transform_7(%arg0: i32, %arg1: i32) -> (i32, i32, i32, i32) {
    %c0_i32 = arith.constant 0 : i32
    %c0_i32_0 = arith.constant 0 : i32
    %c0_i32_1 = arith.constant 0 : i32
    return %arg0, %arg1, %c0_i32, %c0_i32_0 : i32, i32, i32, i32
  }
}

</mosaic_0001>

<bundles_post_ra>
// kernel: _lambda_.6
= control target key start
LH: loop header
LB: loop body
LE: loop exit
PB: predicated region body
PF: predicated region fallthrough
CT: control target
= control target key end

     0   :  { %s2254_s24 = smov 0   ;;  %s2256_s25 = smov 0   ;;  %s3473_s0 = inlined_call_operand.vmem [shape: f32[2,256,768], index: 0, kind: input, shape index: {}]   ;;  %s3474_s1 = inlined_call_operand.vmem [shape: f32[9,8,768], index: 1, kind: input, shape index: {}]   ;;  %s3475_s2 = inlined_call_operand.vmem [shape: f32[8,256], index: 2, kind: input, shape index: {}]   ;;  %s3476_s3 = inlined_call_operand.vmem [shape: f32[256,128], index: 3, kind: input, shape index: {}]   ;;  %s3477_s4 = inlined_call_operand.vmem [shape: f32[256,128], index: 4, kind: input, shape index: {}]   ;;  %s3478_s5 = inlined_call_operand.vmem [shape: f32[1,8,128], index: 5, kind: input, shape index: {}]   ;;  %s3479_s6 = inlined_call_operand.vmem [shape: f32[1,8,128], index: 6, kind: input, shape index: {}]   ;;  %s3480_s7 = inlined_call_operand.vmem [shape: f32[2,128,8,128], index: 7, kind: output, shape index: {}]  }
   0x1   :  { %s2258_s26 = smov 0   ;;  %s2260_s27 = smov 0  }
   0x2   :  { %s2262_s28 = smov 0  }
   0x3 LB: > { %s26_s29 = sadd.s32 1, %s2197_s26  ;;  %s29_s30 = sadd.s32 1, %s2201_s27  ;;  %s2205_s28 = sphi %s2262_s28, %s17_s28   ;;  %s2201_s27 = sphi %s2260_s27, %s3525_s27   ;;  %s2197_s26 = sphi %s2258_s26, %s3524_s26   ;;  %s2193_s25 = sphi %s2256_s25, %s3523_s25   ;;  %s2189_s24 = sphi %s2254_s24, %s3522_s24  }
   0x4   : > { %p27_p0 = scmp.ge.s32.totalorder %s26_s29, 4  ;;  %p1950_p1 = scmp.ge.s32.totalorder %s2205_s28, 1 }
   0x5   : > { %p251_p2 = scmp.lt.s32.totalorder %s2205_s28, 9 }
   0x6   : > { %s3527_s29 = smov (%p27_p0, %s26_s29), 0  ;;  %s3529_s30 = smov (!%p27_p0, %s29_s30), %s2201_s27 }
   0x7   : > { %p252_p3 = pnand %p1950_p1, %p251_p2  ;;  %p31_p4 = scmp.ge.s32.totalorder %s3529_s30, 2 }
   0x8   : > { %p287_p5 = scmp.lt.s32.totalorder (!%p252_p3), %s2193_s25, 1  ;;  %s2284_s8 = sshll.u32 (!%p252_p3), %s2189_s24, 5 }
   0x9   : > { %s3531_s30 = smov (%p31_p4, %s3529_s30), 0  ;;  %255 = sbr.rel (%p252_p3) target bundleno = 662 (0x296), region = 48 }
   0xa   : > { %p295_p6 = scmp.lt.s32.totalorder (!%p252_p3), %s2284_s8, 127  ;;  %s2298_s20 = smov (!%p252_p3), 0  }
  0x10   : > { %s3533_s25 = smov (!%p287_p5, %s2193_s25), 1 }
  0x11   : > { %s296_s9 = scalar_select %p295_p6, %s2284_s8, 127 }
  0x12   : > { %s2111_s10 = smul.u32 1536, %s3533_s25  ;;  %s1953_s11 = sshll.u32 %s3533_s25, 7 }
  0x13   : > { %s298_s12 = sadd.s32 %s1953_s11, %s296_s9 }
  0x14   : > { %s2291_s15 = scalar_lea.vmem %s3473_s0, %s2111_s10  ;;  %s1954_s16 = sshll.u32 %s298_s12, 3 }
  0x15   : > { %s2296_s19 = scalar_lea.vmem %s3480_s7, %s1954_s16 }
  0x16 LB: >> { %v342_v0 = vlaneseq  ;;  %s309_s21 = sadd.s32 %s2209_s20, %s2284_s8  ;;  %s2211_s18 = smov 1   ;;  %v1961_v49 = vld [vmem:[%s3474_s1 + $0x38] sm:$0xff]  ;;  %v443_v52 = vld [vmem:[%s3474_s1 + $0x8] sm:$0xff]  ;;  %v1962_v54 = vld [vmem:[%s3474_s1 + $0x40] sm:$0xff]  ;;  %s2209_s20 = sphi %s2298_s20, %s308_s20  }
  0x17   : >> { %s2305_s22 = sshll.u32 %s309_s21, 1  ;;  %v1963_v57 = vld [vmem:[%s3474_s1 + $0x48] sm:$0xff]  ;;  %v444_v61 = vld [vmem:[%s3474_s1 + $0x10] sm:$0xff]  ;;  %v2526_v62 = vld [vmem:[%s3474_s1 + $0x18] sm:$0xff] }
  0x18   : >> { %s330_s23 = sshra.s32 %s2305_s22, 3  ;;  %s333_s24 = sand.u32 7, %s2305_s22  ;;  %v343_v1 = vshrl.u32 %v342_v0, 7  ;;  %v2498_v48 = vand.u32 127, %v342_v0 }
  0x19   : >> { %s1959_s25 = smul.u32 48, %s330_s23  ;;  %s1957_s9 = sadd.s32 4294967295, %s2305_s22 }
  0x1a   : >> { %p312_p7 = scmp.gt.s32.totalorder %s1957_s9, 0  ;;  %p325_p8 = scmp.ge.s32.totalorder %s1957_s9, 0  ;;  %v2312_v2 = vsub.s32 0, %v343_v1  ;;  %v2314_v3 = vsub.s32 1, %v343_v1  ;;  %v2316_v7 = vsub.s32 3, %v343_v1  ;;  %v2318_v8 = vsub.s32 2, %v343_v1 }
  0x1b   : >> { %s336_s10 = sadd.s32 %s1959_s25, %s333_s24  ;;  %v2336_v13 = vsub.s32 5, %v343_v1  ;;  %s887_s24 = sadd.s32 2, %s2305_s22  ;;  %v2347_v19 = vsub.s32 4, %v343_v1  ;;  %vm386_vm0 = vcmp.lt.s32.totalorder %v2498_v48, 1  ;;  %vm563_vm1 = vcmp.lt.s32.totalorder %v2498_v48, 127 }
  0x1c   : >> { %s337_s11 = scalar_lea.vmem %s2291_s15, %s336_s10  ;;  %s3535_s9 = smov (!%p312_p7, %s1957_s9), 0 }
  0x1d   : >> { %v338_v4 = vld [vmem:[%s337_s11] ss:$8 sm:$0xf]  ;;  %s326_s12 = scalar_select %p325_p8, 1, 0 }
  0x1e   : >> { %v339_v5 = vld [vmem:[%s337_s11] ss:$8 sm:$0x30]  ;;  %s314_s13 = sshra.s32 %s3535_s9, 3  ;;  %s317_s14 = sand.u32 7, %s3535_s9 }
  0x1f   : >> { %v340_v6 = vor.u32 %v339_v5, %v338_v4  ;;  %s1958_s16 = smul.u32 48, %s314_s13  ;;  %s327_s17 = scvt.s32.f32 %s326_s12 }
  0x20   : >> { %p888_p9 = scmp.lt.s32.totalorder %s887_s24, 255  ;;  %p901_p10 = scmp.le.s32.totalorder %s887_s24, 255 }
  0x21   : >> { %v2321_v9 = vrot.slane %v340_v6, %v2314_v3  ;;  %v2324_v10 = vrot.slane %v340_v6, %v2312_v2  ;;  %v2331_v11 = vrot.slane %v340_v6, %v2316_v7  ;;  %v2334_v12 = vrot.slane %v340_v6, %v2318_v8  ;;  %s320_s21 = sadd.s32 %s1958_s16, %s317_s14  ;;  %s667_s16 = sadd.s32 1, %s2305_s22 }
  0x22   : >> { %s321_s23 = scalar_lea.vmem %s2291_s15, %s320_s21  ;;  %v328_v16 = vstv %s327_s17  ;;  %v2345_v17 = vrot.slane %v340_v6, %v2336_v13  ;;  %s3537_s24 = smov (!%p888_p9, %s887_s24), 255  ;;  %v2355_v22 = vrot.slane %v340_v6, %v2347_v19 }
  0x23   : >> { %426 = vrot.lane.b32.xlu0 %v2321_v9, %s2211_s18  ;;  %424 = vrot.lane.b32.xlu1 %v2324_v10, %s2211_s18  ;;  %v322_v14 = vld [vmem:[%s321_s23] ss:$8 sm:$0xf]  ;;  %s902_s25 = scalar_select %p901_p10, 1, 0  ;;  %v540_v55 = vmul.f32 %v1961_v49, %v2321_v9  ;;  %v541_v63 = vmul.f32 %v1962_v54, %v2334_v12  ;;  %v542_v4 = vmul.f32 %v1963_v57, %v2331_v11 }
  0x24   : >> { %v323_v15 = vld [vmem:[%s321_s23] ss:$8 sm:$0x30]  ;;  %s890_s9 = sshra.s32 %s3537_s24, 3  ;;  %s893_s10 = sand.u32 7, %s3537_s24 }
  0x25   : >> { %v324_v18 = vor.u32 %v323_v15, %v322_v14  ;;  %s1991_s11 = smul.u32 48, %s890_s9  ;;  %s903_s12 = scvt.s32.f32 %s902_s25  ;;  %v442_v15 = vld [vmem:[%s3474_s1] sm:$0xff] }
  0x26   : >> { %s2212_s17 = smov 127   ;;  %s668_s21 = sshra.s32 %s667_s16, 3 }
  0x27   : >> { %430 = vrot.lane.b32.xlu0 %v2331_v11, %s2211_s18  ;;  %428 = vrot.lane.b32.xlu1 %v2334_v12, %s2211_s18  ;;  %v329_v20 = vmul.f32 %v328_v16, %v324_v18  ;;  %s896_s13 = sadd.s32 %s1991_s11, %s893_s10  ;;  %v904_v28 = vstv %s903_s12  ;;  %s1972_s23 = smul.u32 48, %s668_s21  ;;  %v1964_v18 = vld [vmem:[%s3474_s1 + $0x50] sm:$0xff] }
  0x28   : >> { %s897_s14 = scalar_lea.vmem %s2291_s15, %s896_s13  ;;  %s671_s24 = sand.u32 7, %s667_s16 }
  0x29   : >> { %v2352_v21 = vrot.slane %v329_v20, %v2312_v2  ;;  %v2360_v23 = vrot.slane %v329_v20, %v2314_v3  ;;  %v2365_v24 = vrot.slane %v329_v20, %v2318_v8  ;;  %v2371_v25 = vrot.slane %v329_v20, %v2336_v13  ;;  %v898_v26 = vld [vmem:[%s897_s14] ss:$8 sm:$0xf]  ;;  %s674_s22 = sadd.s32 %s1972_s23, %s671_s24 }
  0x2a   : >> { %v899_v27 = vld [vmem:[%s897_s14] ss:$8 sm:$0x30]  ;;  %v2376_v30 = vrot.slane %v329_v20, %v2316_v7  ;;  %v2381_v32 = vrot.slane %v329_v20, %v2347_v19  ;;  %s675_s25 = scalar_lea.vmem %s2291_s15, %s674_s22 }
  0x2b   : >> { %434 = vrot.lane.b32.xlu1 %v2345_v17, %s2211_s18  ;;  %372 = vrot.lane.b32.xlu0 %v2352_v21, %s2211_s18  ;;  %v900_v29 = vor.u32 %v899_v27, %v898_v26  ;;  %v676_v38 = vld [vmem:[%s675_s25] ss:$8 sm:$0xf] }
  0x2c   : >> { %v677_v39 = vld [vmem:[%s675_s25] ss:$8 sm:$0x30] }
  0x2d   : >> { %v905_v31 = vmul.f32 %v904_v28, %v900_v29  ;;  %v678_v40 = vor.u32 %v677_v39, %v676_v38  ;;  %v1965_v29 = vld [vmem:[%s3474_s1 + $0x58] sm:$0xff]  ;;  %v446_v39 = vld [vmem:[%s3474_s1 + $0x20] sm:$0xff] }
  0x2f   : >> { %432 = vrot.lane.b32.xlu1 %v2355_v22, %s2211_s18  ;;  %374 = vrot.lane.b32.xlu0 %v2360_v23, %s2211_s18  ;;  %v2384_v33 = vrot.slane %v905_v31, %v2314_v3  ;;  %v2387_v34 = vrot.slane %v905_v31, %v2316_v7  ;;  %v2390_v35 = vrot.slane %v905_v31, %v2318_v8 }
  0x30   : >> { %v2395_v36 = vrot.slane %v905_v31, %v2347_v19  ;;  %v2398_v37 = vrot.slane %v905_v31, %v2336_v13  ;;  %v2427_v41 = vrot.slane %v678_v40, %v2314_v3  ;;  %v2432_v42 = vrot.slane %v678_v40, %v2312_v2 }
  0x31   : >> { %3494 = vst [vmem:[#allocation3_spill] sm:$0xff] %v2384_v33  ;;  %3495 = vst [vmem:[#allocation4_spill] sm:$0xff] %v2387_v34  ;;  %v2437_v43 = vrot.slane %v678_v40, %v2316_v7  ;;  %v2442_v44 = vrot.slane %v678_v40, %v2318_v8  ;;  %v2447_v45 = vrot.slane %v678_v40, %v2347_v19  ;;  %v1960_v7 = vld [vmem:[%s3474_s1 + $0x30] sm:$0xff] }
  0x32   : >> { %3496 = vst [vmem:[#allocation5_spill] sm:$0xff] %v2390_v35  ;;  %3497 = vst [vmem:[#allocation6_spill] sm:$0xff] %v2395_v36  ;;  %v2452_v46 = vrot.slane %v678_v40, %v2336_v13  ;;  %v2471_v47 = vrot.slane %v905_v31, %v2312_v2  ;;  %v539_v27 = vmul.f32 %v1960_v7, %v2324_v10  ;;  %v447_v40 = vld [vmem:[%s3474_s1 + $0x28] sm:$0xff] }
  0x33   : >> { %376 = vrot.lane.b32.xlu1 %v2365_v24, %s2211_s18  ;;  %382 = vrot.lane.b32.xlu0 %v2371_v25, %s2211_s18  ;;  %3498 = vst [vmem:[#allocation7_spill] sm:$0xff] %v2398_v37 }
  0x34   : >> { %3499 = vst [vmem:[#allocation8_spill] sm:$0xff] %v2471_v47 }
  0x37   : >> { %378 = vrot.lane.b32.xlu1 %v2376_v30, %s2211_s18  ;;  %380 = vrot.lane.b32.xlu0 %v2381_v32, %s2211_s18 }
  0x3b   : >> { %553 = vrot.lane.b32.xlu1 %v2360_v23, %s2212_s17  ;;  %551 = vrot.lane.b32.xlu0 %v2352_v21, %s2212_s17 }
  0x3f   : >> { %557 = vrot.lane.b32.xlu1 %v2376_v30, %s2212_s17  ;;  %555 = vrot.lane.b32.xlu0 %v2365_v24, %s2212_s17 }
  0x43   : >> { %570 = vrot.lane.b32.xlu1 %v2324_v10, %s2212_s17  ;;  %559 = vrot.lane.b32.xlu0 %v2381_v32, %s2212_s17 }
  0x47   : >> { %574 = vrot.lane.b32.xlu1 %v2334_v12, %s2212_s17  ;;  %572 = vrot.lane.b32.xlu0 %v2321_v9, %s2212_s17 }
  0x4b   : >> { %578 = vrot.lane.b32.xlu1 %v2355_v22, %s2212_s17  ;;  %576 = vrot.lane.b32.xlu0 %v2331_v11, %s2212_s17 }
  0x4f   : >> { %580 = vrot.lane.b32.xlu1 %v2345_v17, %s2212_s17  ;;  %561 = vrot.lane.b32.xlu0 %v2371_v25, %s2212_s17 }
  0x53   : >> { %712 = vrot.lane.b32.xlu1 %v2427_v41, %s2211_s18  ;;  %710 = vrot.lane.b32.xlu0 %v2432_v42, %s2211_s18 }
  0x57   : >> { %716 = vrot.lane.b32.xlu1 %v2437_v43, %s2211_s18  ;;  %714 = vrot.lane.b32.xlu0 %v2442_v44, %s2211_s18 }
  0x5b   : >> { %718 = vrot.lane.b32.xlu1 %v2447_v45, %s2211_s18  ;;  %720 = vrot.lane.b32.xlu0 %v2452_v46, %s2211_s18 }
  0x5f   : >> { %816 = vrot.lane.b32.xlu1 %v2427_v41, %s2212_s17  ;;  %814 = vrot.lane.b32.xlu0 %v2432_v42, %s2212_s17 }
  0x63   : >> { %820 = vrot.lane.b32.xlu1 %v2437_v43, %s2212_s17  ;;  %818 = vrot.lane.b32.xlu0 %v2442_v44, %s2212_s17 }
  0x67   : >> { %824 = vrot.lane.b32.xlu1 %v2452_v46, %s2212_s17  ;;  %822 = vrot.lane.b32.xlu0 %v2447_v45, %s2212_s17 }
  0x6b   : >> { %939 = vrot.lane.b32.xlu1 %v2384_v33, %s2211_s18  ;;  %937 = vrot.lane.b32.xlu0 %v2471_v47, %s2211_s18 }
  0x6f   : >> { %943 = vrot.lane.b32.xlu1 %v2387_v34, %s2211_s18  ;;  %941 = vrot.lane.b32.xlu0 %v2390_v35, %s2211_s18 }
  0x73   : >> { %945 = vrot.lane.b32.xlu1 %v2395_v36, %s2211_s18  ;;  %947 = vrot.lane.b32.xlu0 %v2398_v37, %s2211_s18  ;;  %s2014_s18 = sshll.u32 %s2209_s20, 4  ;;  %s308_s20 = sadd.s32 1, %s2209_s20  }
  0x74   : >> { %s1132_s9 = scalar_lea.vmem [#allocation2], %s2014_s18  ;;  %p305_p11 = scmp.ge.s32.totalorder %s308_s20, 32  }
  0x77   : >> { %1043 = vrot.lane.b32.xlu1 %v2384_v33, %s2212_s17  ;;  %1041 = vrot.lane.b32.xlu0 %v2471_v47, %s2212_s17 }
  0x7b   : >> { %1047 = vrot.lane.b32.xlu1 %v2387_v34, %s2212_s17  ;;  %1045 = vrot.lane.b32.xlu0 %v2390_v35, %s2212_s17 }
  0x7f   : >> { %1051 = vrot.lane.b32.xlu1 %v2398_v37, %s2212_s17  ;;  %1049 = vrot.lane.b32.xlu0 %v2395_v36, %s2212_s17 }
  0x95   : >> { %v427_v50 = vpop.permute.xlu0 %426  ;;  %v425_v51 = vpop.permute.xlu1 %424 }
  0x96   : >> { %v440_v53 = vsel %vm386_vm0, %v425_v51, %v427_v50 }
  0x97   : >> { %v2514_v56 = vrot.slane %v440_v53, %v2312_v2 }
  0x99   : >> { %v509_v58 = vmul.f32 %v2514_v56, %v443_v52  ;;  %v431_v59 = vpop.permute.xlu0 %430  ;;  %v429_v60 = vpop.permute.xlu1 %428 }
  0x9a   : >> { %v438_v0 = vsel %vm386_vm0, %v429_v60, %v431_v59  ;;  %v439_v1 = vsel %vm386_vm0, %v427_v50, %v429_v60  ;;  %v543_v50 = vmul.f32 %v1964_v18, %v2355_v22 }
  0x9b   : >> { %v2533_v3 = vadd.f32 %v540_v55, %v509_v58  ;;  %v2537_v5 = vrot.slane %v439_v1, %v2312_v2  ;;  %v2540_v6 = vrot.slane %v438_v0, %v2312_v2  ;;  %v544_v58 = vmul.f32 %v1965_v29, %v2345_v17 }
  0x9d   : >> { %v510_v8 = vmul.f32 %v2537_v5, %v444_v61  ;;  %v511_v13 = vmul.f32 %v2540_v6, %v2526_v62  ;;  %v435_v14 = vpop.permute.xlu1 %434  ;;  %v373_v28 = vpop.permute.xlu0 %372 }
  0x9e   : >> { %v441_v16 = vsel %vm386_vm0, %v435_v14, %v425_v51 }
  0x9f   : >> { %v2556_v19 = vadd.f32 %v541_v63, %v510_v8  ;;  %v2558_v20 = vadd.f32 %v542_v4, %v511_v13  ;;  %v2561_v26 = vrot.slane %v441_v16, %v2312_v2 }
  0xa1   : >> { %v508_v31 = vmul.f32 %v2561_v26, %v442_v15  ;;  %v433_v38 = vpop.permute.xlu1 %432  ;;  %v375_v0 = vpop.permute.xlu0 %374 }
  0xa2   : >> { %v436_v51 = vsel %vm386_vm0, %v433_v38, %v435_v14  ;;  %v437_v53 = vsel %vm386_vm0, %v431_v59, %v433_v38  ;;  %v391_v1 = vsel %vm386_vm0, %v373_v28, %v375_v0  ;;  %v528_v59 = vmul.f32 %v1961_v49, %v2360_v23 }
  0xa3   : >> { %v2579_v55 = vadd.f32 %v539_v27, %v508_v31  ;;  %v2583_v60 = vrot.slane %v437_v53, %v2312_v2  ;;  %v2586_v63 = vrot.slane %v436_v51, %v2312_v2  ;;  %v455_v14 = vrot.slane %v391_v1, %v2312_v2 }
  0xa4   : >> { %v529_v27 = vmul.f32 %v1962_v54, %v2365_v24  ;;  %v527_v23 = vmul.f32 %v1960_v7, %v2352_v21  ;;  %v531_v21 = vmul.f32 %v1964_v18, %v2381_v32  ;;  %v2625_v32 = vld [vmem:[%s3474_s1 + $0x60] sm:$0xff] }
  0xa5   : >> { %v512_v4 = vmul.f32 %v2583_v60, %v446_v39  ;;  %v513_v8 = vmul.f32 %v2586_v63, %v447_v40  ;;  %v377_v13 = vpop.permute.xlu1 %376  ;;  %v383_v53 = vpop.permute.xlu0 %382  ;;  %v473_v36 = vmul.f32 %v455_v14, %v443_v52 }
  0xa6   : >> { %v390_v16 = vsel %vm386_vm0, %v375_v0, %v377_v13  ;;  %v392_v34 = vsel %vm386_vm0, %v383_v53, %v373_v28  ;;  %v532_v28 = vmul.f32 %v1965_v29, %v2371_v25 }
  0xa7   : >> { %v2597_v31 = vadd.f32 %v543_v50, %v512_v4  ;;  %v2599_v38 = vadd.f32 %v544_v58, %v513_v8  ;;  %v459_v51 = vrot.slane %v390_v16, %v2312_v2  ;;  %v451_v1 = vrot.slane %v392_v34, %v2312_v2 }
  0xa8   : >> { %v534_v24 = vadd.f32 %v528_v59, %v473_v36  ;;  %v530_v50 = vmul.f32 %v1963_v57, %v2376_v30 }
  0xa9   : >> { %v474_v49 = vmul.f32 %v459_v51, %v444_v61  ;;  %v379_v37 = vpop.permute.xlu1 %378  ;;  %v472_v0 = vmul.f32 %v451_v1, %v442_v15  ;;  %v381_v4 = vpop.permute.xlu0 %380  ;;  %v1967_v51 = vld [vmem:[%s3474_s1 + $0x68] sm:$0xff] }
  0xaa   : >> { %v389_v54 = vsel %vm386_vm0, %v377_v13, %v379_v37  ;;  %v387_v34 = vsel %vm386_vm0, %v381_v4, %v383_v53  ;;  %v388_v36 = vsel %vm386_vm0, %v379_v37, %v381_v4  ;;  %v2652_v53 = vld [vmem:[%s3474_s1 + $0x70] sm:$0xff] }
  0xab   : >> { %v535_v58 = vadd.f32 %v529_v27, %v474_v49  ;;  %v463_v52 = vrot.slane %v389_v54, %v2312_v2  ;;  %v533_v61 = vadd.f32 %v527_v23, %v472_v0  ;;  %v467_v30 = vrot.slane %v388_v36, %v2312_v2  ;;  %v2663_v54 = vld [vmem:[%s3474_s1 + $0x98] sm:$0xff] }
  0xac   : >> { %v471_v57 = vrot.slane %v387_v34, %v2312_v2  ;;  %v2684_v34 = vld [vmem:[%s3474_s1 + $0x158] sm:$0xff] }
  0xad   : >> { %v475_v7 = vmul.f32 %v463_v52, %v2526_v62  ;;  %v554_v15 = vpop.permute.xlu1 %553  ;;  %v476_v13 = vmul.f32 %v467_v30, %v446_v39  ;;  %v2620_v25 = vpop.permute.xlu0 %551  ;;  %v2638_v39 = vld [vmem:[%s3474_s1 + $0xc0] sm:$0xff]  ;;  %3500 = vst [vmem:[#allocation9_spill] sm:$0xff] %v2684_v34  ;;  %v2692_v30 = vld [vmem:[%s3474_s1 + $0xd0] sm:$0xff] }
  0xae   : >> { %v477_v59 = vmul.f32 %v471_v57, %v447_v40  ;;  %v568_v37 = vsel %vm563_vm1, %v2620_v25, %v554_v15  ;;  %v2643_v40 = vld [vmem:[%s3474_s1 + $0x90] sm:$0xff]  ;;  %v790_v1 = vmul.f32 %v2638_v39, %v2324_v10  ;;  %v2679_v10 = vld [vmem:[%s3474_s1 + $0xc8] sm:$0xff] }
  0xaf   : >> { %v536_v8 = vadd.f32 %v530_v50, %v475_v7  ;;  %v2630_v62 = vadd.f32 %v531_v21, %v476_v13  ;;  %v598_v29 = vrot.slane %v568_v37, %v2312_v2  ;;  %v2668_v50 = vld [vmem:[%s3474_s1 + $0xa0] sm:$0xff]  ;;  %v735_v0 = vmul.f32 %v2643_v40, %v2561_v26  ;;  %v2697_v57 = vld [vmem:[%s3474_s1 + $0x150] sm:$0xff] }
  0xb0   : >> { %v2632_v18 = vadd.f32 %v532_v28, %v477_v59  ;;  %3501 = vst [vmem:[#allocation10_spill] sm:$0xff] %v2697_v57  ;;  %v737_v13 = vmul.f32 %v2668_v50, %v2537_v5  ;;  %v2706_v59 = vld [vmem:[%s3474_s1 + $0x78] sm:$0xff] }
  0xb1   : >> { %v558_v14 = vpop.permute.xlu1 %557  ;;  %v619_v16 = vmul.f32 %v2625_v32, %v598_v29  ;;  %v556_v27 = vpop.permute.xlu0 %555  ;;  %v791_v29 = vmul.f32 %v2679_v10, %v2321_v9  ;;  %v792_v9 = vmul.f32 %v2692_v30, %v2334_v12 }
  0xb2   : >> { %v566_v23 = vsel %vm563_vm1, %v556_v27, %v558_v14  ;;  %v567_v49 = vsel %vm563_vm1, %v554_v15, %v556_v27  ;;  %v736_v15 = vmul.f32 %v2663_v54, %v2514_v56 }
  0xb3   : >> { %v625_v52 = vadd.f32 %v619_v16, %v533_v61  ;;  %v602_v4 = vrot.slane %v567_v49, %v2312_v2  ;;  %v606_v28 = vrot.slane %v566_v23, %v2312_v2  ;;  %v2716_v16 = vld [vmem:[%s3474_s1 + $0xa8] sm:$0xff] }
  0xb5   : >> { %v2674_v21 = vpop.permute.xlu1 %570  ;;  %v741_v36 = vadd.f32 %v735_v0, %v625_v52  ;;  %v620_v7 = vmul.f32 %v1967_v51, %v602_v4  ;;  %v621_v26 = vmul.f32 %v2652_v53, %v606_v28  ;;  %v2687_v61 = vpop.permute.xlu0 %559  ;;  %v2722_v0 = vld [vmem:[%s3474_s1 + $0xd8] sm:$0xff]  ;;  %v2747_v52 = vld [vmem:[%s3474_s1 + $0x170] sm:$0xff] }
  0xb6   : >> { %v565_v37 = vsel %vm563_vm1, %v558_v14, %v2687_v61  ;;  %v2726_v14 = vmul.f32 %v2684_v34, %v2427_v41  ;;  %3504 = vst [vmem:[#allocation13_spill] sm:$0xff] %v2747_v52 }
  0xb7   : >> { %v626_v56 = vadd.f32 %v620_v7, %v534_v24  ;;  %v627_v27 = vadd.f32 %v621_v26, %v535_v58  ;;  %v610_v5 = vrot.slane %v565_v37, %v2312_v2  ;;  %v796_v49 = vadd.f32 %v790_v1, %v741_v36  ;;  %v2737_v58 = vld [vmem:[%s3474_s1 + $0x168] sm:$0xff]  ;;  %v2742_v1 = vld [vmem:[%s3474_s1 + $0x160] sm:$0xff]  ;;  %v2755_v26 = vld [vmem:[%s3474_s1 + $0xf0] sm:$0xff] }
  0xb8   : >> { %v2732_v24 = vmul.f32 %v2697_v57, %v2432_v42  ;;  %3502 = vst [vmem:[#allocation11_spill] sm:$0xff] %v2737_v58  ;;  %3503 = vst [vmem:[#allocation12_spill] sm:$0xff] %v2742_v1  ;;  %v738_v7 = vmul.f32 %v2716_v16, %v2540_v6  ;;  %v2782_v47 = vmul.f32 %v2742_v1, %v2442_v44 }
  0xb9   : >> { %v575_v23 = vpop.permute.xlu1 %574  ;;  %v742_v12 = vadd.f32 %v736_v15, %v626_v56  ;;  %v743_v4 = vadd.f32 %v737_v13, %v627_v27  ;;  %v622_v28 = vmul.f32 %v2706_v59, %v610_v5  ;;  %v573_v36 = vpop.permute.xlu0 %572  ;;  %v793_v15 = vmul.f32 %v2722_v0, %v2331_v11  ;;  %v2767_v13 = vld [vmem:[%s3474_s1 + $0x178] sm:$0xff] }
  0xba   : >> { %v585_v37 = vsel %vm563_vm1, %v573_v36, %v575_v23  ;;  %v586_v35 = vsel %vm563_vm1, %v2674_v21, %v573_v36  ;;  %3505 = vst [vmem:[#allocation14_spill] sm:$0xff] %v2767_v13  ;;  %v2772_v27 = vld [vmem:[%s3474_s1 + $0xf8] sm:$0xff]  ;;  %v2778_v11 = vmul.f32 %v2737_v58, %v2437_v43  ;;  %v2792_v58 = vmul.f32 %v2767_v13, %v2452_v46 }
  0xbb   : >> { %v628_v6 = vadd.f32 %v622_v28, %v536_v8  ;;  %v797_v56 = vadd.f32 %v791_v29, %v742_v12  ;;  %v634_v5 = vrot.slane %v586_v35, %v2312_v2  ;;  %v638_v57 = vrot.slane %v585_v37, %v2312_v2 }
  0xbc   : >> { %v2786_v8 = vmul.f32 %v2747_v52, %v2447_v45  ;;  %v798_v29 = vadd.f32 %v792_v9, %v743_v4 }
  0xbd   : >> { %v579_v36 = vpop.permute.xlu1 %578  ;;  %v744_v12 = vadd.f32 %v738_v7, %v628_v6  ;;  %v655_v28 = vmul.f32 %v2625_v32, %v634_v5  ;;  %v656_v35 = vmul.f32 %v1967_v51, %v638_v57  ;;  %v839_v37 = vmul.f32 %v2755_v26, %v634_v5  ;;  %v577_v34 = vpop.permute.xlu0 %576  ;;  %v1983_v32 = vld [vmem:[%s3474_s1 + $0xe0] sm:$0xff]  ;;  %v1984_v51 = vld [vmem:[%s3474_s1 + $0xe8] sm:$0xff] }
  0xbe   : >> { %3506 = vst [vmem:[#allocation15_spill] sm:$0xff] %v2786_v8  ;;  %v840_v33 = vmul.f32 %v2772_v27, %v638_v57  ;;  %v583_v1 = vsel %vm563_vm1, %v577_v34, %v579_v36  ;;  %v584_v52 = vsel %vm563_vm1, %v575_v23, %v577_v34  ;;  %v2816_v34 = vld [vmem:[%s3474_s1 + $0x100] sm:$0xff]  ;;  %v2821_v23 = vld [vmem:[%s3474_s1 + $0x108] sm:$0xff] }
  0xbf   : >> { %v2806_v9 = vadd.f32 %v655_v28, %v2579_v55  ;;  %v2809_v4 = vadd.f32 %v656_v35, %v2533_v3  ;;  %v2811_v57 = vadd.f32 %v839_v37, %v796_v49  ;;  %v799_v7 = vadd.f32 %v793_v15, %v744_v12  ;;  %3507 = vst [vmem:[#allocation16_spill] sm:$0xff] %v2821_v23  ;;  %v1970_v49 = vld [vmem:[%s3474_s1 + $0x80] sm:$0xff] }
  0xc0   : >> { %v846_v5 = vadd.f32 %v840_v33, %v797_v56  ;;  %v642_v55 = vrot.slane %v584_v52, %v2312_v2  ;;  %v646_v3 = vrot.slane %v583_v1, %v2312_v2  ;;  %v2835_v33 = vmul.f32 %v1983_v32, %v2355_v22 }
  0xc1   : >> { %v581_v6 = vpop.permute.xlu1 %580  ;;  %v562_v35 = vpop.permute.xlu0 %561  ;;  %v2838_v52 = vmul.f32 %v1984_v51, %v2345_v17 }
  0xc2   : >> { %v582_v15 = vsel %vm563_vm1, %v579_v36, %v581_v6  ;;  %v587_v12 = vsel %vm563_vm1, %v581_v6, %v2674_v21  ;;  %v657_v1 = vmul.f32 %v2652_v53, %v642_v55  ;;  %v658_v56 = vmul.f32 %v2706_v59, %v646_v3  ;;  %v1971_v21 = vld [vmem:[%s3474_s1 + $0x88] sm:$0xff] }
  0xc3   : >> { %v650_v28 = vrot.slane %v582_v15, %v2312_v2  ;;  %v841_v37 = vmul.f32 %v2816_v34, %v642_v55  ;;  %v842_v36 = vmul.f32 %v2821_v23, %v646_v3  ;;  %v654_v6 = vrot.slane %v587_v12, %v2312_v2  ;;  %v1977_v12 = vld [vmem:[%s3474_s1 + $0xb0] sm:$0xff] }
  0xc4   : >> { %v564_v17 = vsel %vm563_vm1, %v2687_v61, %v562_v35  ;;  %v2853_v53 = vmul.f32 %v2679_v10, %v2427_v41  ;;  %v663_v59 = vadd.f32 %v657_v1, %v2556_v19  ;;  %v664_v55 = vadd.f32 %v658_v56, %v2558_v20  ;;  %v2873_v20 = vld [vmem:[%s3474_s1 + $0xb8] sm:$0xff]  ;;  %v2878_v10 = vld [vmem:[%s3474_s1 + $0x110] sm:$0xff] }
  0xc5   : >> { %v659_v15 = vmul.f32 %v1970_v49, %v650_v28  ;;  %v713_v22 = vpop.permute.xlu1 %712  ;;  %v847_v3 = vadd.f32 %v841_v37, %v798_v29  ;;  %v848_v13 = vadd.f32 %v842_v36, %v799_v7  ;;  %v660_v23 = vmul.f32 %v1971_v21, %v654_v6  ;;  %v711_v41 = vpop.permute.xlu0 %710 }
  0xc6   : >> { %v569_v61 = vsel %vm563_vm1, %v562_v35, %v2620_v25  ;;  %v2868_v19 = vmul.f32 %v2692_v30, %v2442_v44  ;;  %v2885_v25 = vld [vmem:[%s3474_s1 + $0x128] sm:$0xff]  ;;  %v726_v44 = vsel %vm386_vm0, %v711_v41, %v713_v22  ;;  %v2891_v30 = vmul.f32 %v2722_v0, %v2437_v43  ;;  %v2913_v0 = vld [vmem:[%s3474_s1 + $0x118] sm:$0xff] }
  0xc7   : >> { %v2861_v8 = vadd.f32 %v659_v15, %v2597_v31  ;;  %v614_v31 = vrot.slane %v564_v17, %v2312_v2  ;;  %v618_v29 = vrot.slane %v569_v61, %v2312_v2  ;;  %v2894_v7 = vadd.f32 %v660_v23, %v2599_v38 }
  0xc8   : >> { %v754_v35 = vrot.slane %v726_v44, %v2312_v2  ;;  %v2899_v56 = vmul.f32 %v2638_v39, %v2432_v42  ;;  %v2902_v37 = vmul.f32 %v1984_v51, %v2452_v46  ;;  %v739_v36 = vmul.f32 %v1977_v12, %v2583_v60 }
  0xc9   : >> { %v717_v1 = vpop.permute.xlu1 %716  ;;  %v623_v15 = vmul.f32 %v1970_v49, %v614_v31  ;;  %v624_v17 = vmul.f32 %v1971_v21, %v618_v29  ;;  %v2906_v43 = vmul.f32 %v1983_v32, %v2447_v45  ;;  %v740_v38 = vmul.f32 %v2873_v20, %v2586_v63  ;;  %v715_v60 = vpop.permute.xlu0 %714  ;;  %v2923_v63 = vld [vmem:[%s3474_s1 + $0x130] sm:$0xff]  ;;  %v2928_v32 = vld [vmem:[%s3474_s1 + $0x138] sm:$0xff] }
  0xca   : >> { %v843_v42 = vmul.f32 %v2878_v10, %v650_v28  ;;  %v772_v46 = vmul.f32 %v2663_v54, %v754_v35  ;;  %v963_v39 = vmul.f32 %v2885_v25, %v754_v35  ;;  %v724_v54 = vsel %vm386_vm0, %v715_v60, %v717_v1 }
  0xcb   : >> { %v629_v51 = vadd.f32 %v623_v15, %v2630_v62  ;;  %v630_v45 = vadd.f32 %v624_v17, %v2632_v18  ;;  %v725_v23 = vsel %vm386_vm0, %v713_v22, %v715_v60  ;;  %v762_v28 = vrot.slane %v724_v54, %v2312_v2 }
  0xcc   : >> { %v778_v62 = vadd.f32 %v772_v46, %v2809_v4  ;;  %v969_v49 = vadd.f32 %v963_v39, %v846_v5  ;;  %v758_v18 = vrot.slane %v725_v23, %v2312_v2  ;;  %v844_v61 = vmul.f32 %v2913_v0, %v654_v6  ;;  %v2947_v5 = vld [vmem:[%s3474_s1 + $0x140] sm:$0xff] }
  0xcd   : >> { %v719_v21 = vpop.permute.xlu1 %718  ;;  %v745_v31 = vadd.f32 %v739_v36, %v629_v51  ;;  %v746_v29 = vadd.f32 %v740_v38, %v630_v45  ;;  %v774_v15 = vmul.f32 %v2716_v16, %v762_v28  ;;  %v965_v4 = vmul.f32 %v2928_v32, %v762_v28  ;;  %v721_v17 = vpop.permute.xlu0 %720 }
  0xce   : >> { %v723_v44 = vsel %vm386_vm0, %v717_v1, %v719_v21  ;;  %v773_v35 = vmul.f32 %v2668_v50, %v758_v18  ;;  %v964_v22 = vmul.f32 %v2923_v63, %v758_v18  ;;  %v722_v50 = vsel %vm386_vm0, %v719_v21, %v721_v17  ;;  %v2958_v18 = vld [vmem:[%s3474_s1 + $0x148] sm:$0xff]  ;;  %v2975_v21 = vld [vmem:[%s3474_s1 + $0x180] sm:$0xff] }
  0xcf   : >> { %v766_v6 = vrot.slane %v723_v44, %v2312_v2  ;;  %v800_v36 = vadd.f32 %v2835_v33, %v745_v31  ;;  %v801_v1 = vadd.f32 %v2838_v52, %v746_v29  ;;  %v780_v38 = vadd.f32 %v774_v15, %v664_v55  ;;  %v2963_v33 = vld [vmem:[%s3474_s1 + $0x120] sm:$0xff] }
  0xd0   : >> { %v779_v16 = vadd.f32 %v773_v35, %v663_v59  ;;  %v970_v46 = vadd.f32 %v964_v22, %v847_v3  ;;  %v971_v39 = vadd.f32 %v965_v4, %v848_v13  ;;  %v727_v52 = vsel %vm386_vm0, %v721_v17, %v711_v41 }
  0xd1   : >> { %v817_v60 = vpop.permute.xlu1 %816  ;;  %v775_v51 = vmul.f32 %v1977_v12, %v766_v6  ;;  %v849_v45 = vadd.f32 %v843_v42, %v800_v36  ;;  %v966_v54 = vmul.f32 %v2947_v5, %v766_v6  ;;  %v850_v23 = vadd.f32 %v844_v61, %v801_v1  ;;  %v815_v59 = vpop.permute.xlu0 %814 }
  0xd2   : >> { %v770_v13 = vrot.slane %v722_v50, %v2312_v2  ;;  %v809_v55 = vadd.f32 %v2853_v53, %v778_v62  ;;  %v810_v3 = vadd.f32 %v2868_v19, %v779_v16  ;;  %v750_v28 = vrot.slane %v727_v52, %v2312_v2 }
  0xd3   : >> { %v781_v12 = vadd.f32 %v775_v51, %v2861_v8  ;;  %v972_v42 = vadd.f32 %v966_v54, %v849_v45  ;;  %v830_v41 = vsel %vm563_vm1, %v815_v59, %v817_v60  ;;  %v1024_v8 = vadd.f32 %v2726_v14, %v969_v49 }
  0xd4   : >> { %v776_v61 = vmul.f32 %v2873_v20, %v770_v13  ;;  %v967_v31 = vmul.f32 %v2958_v18, %v770_v13  ;;  %v854_v53 = vrot.slane %v830_v41, %v2312_v2  ;;  %v771_v62 = vmul.f32 %v2643_v40, %v750_v28  ;;  %v2995_v40 = vld [vmem:[%s3474_s1 + $0x188] sm:$0xff] }
  0xd5   : >> { %v821_v19 = vpop.permute.xlu1 %820  ;;  %v962_v29 = vmul.f32 %v2963_v33, %v750_v28  ;;  %v1025_v44 = vadd.f32 %v2782_v47, %v970_v46  ;;  %v811_v35 = vadd.f32 %v2891_v30, %v780_v38  ;;  %v819_v17 = vpop.permute.xlu0 %818  ;;  %v3000_v47 = vld [vmem:[%s3474_s1 + $0x190] sm:$0xff]  ;;  %v812_v38 = vadd.f32 %v2906_v43, %v781_v12  ;;  %v3508_v28 = vld [vmem:[#allocation15_spill] sm:$0xff] }
  0xd6   : >> { %v782_v15 = vadd.f32 %v776_v61, %v2894_v7  ;;  %v973_v22 = vadd.f32 %v967_v31, %v850_v23  ;;  %v875_v20 = vmul.f32 %v2755_v26, %v854_v53  ;;  %v1066_v4 = vmul.f32 %v2975_v21, %v854_v53  ;;  %v3034_v61 = vld [vmem:[%s3474_s1 + $0x1a0] sm:$0xff] }
  0xd7   : >> { %v777_v6 = vadd.f32 %v771_v62, %v2806_v9  ;;  %v968_v14 = vadd.f32 %v962_v29, %v2811_v57  ;;  %v828_v26 = vsel %vm563_vm1, %v819_v17, %v821_v19  ;;  %v829_v30 = vsel %vm563_vm1, %v817_v60, %v819_v17  ;;  %v3510_v17 = vld [vmem:[#allocation3_spill] sm:$0xff] }
  0xd8   : >> { %v858_v9 = vrot.slane %v829_v30, %v2312_v2  ;;  %v862_v57 = vrot.slane %v828_v26, %v2312_v2  ;;  %v813_v49 = vadd.f32 %v2902_v37, %v782_v15  ;;  %v1028_v36 = vadd.f32 %v2792_v58, %v973_v22  ;;  %v3022_v58 = vld [vmem:[%s3474_s1 + $0x1a8] sm:$0xff] }
  0xd9   : >> { %v825_v7 = vpop.permute.xlu1 %824  ;;  %v808_v1 = vadd.f32 %v2899_v56, %v777_v6  ;;  %v1023_v50 = vadd.f32 %v2732_v24, %v968_v14  ;;  %v823_v56 = vpop.permute.xlu0 %822  ;;  %v1026_v43 = vadd.f32 %v2778_v11, %v971_v39  ;;  %v1027_v41 = vadd.f32 %v3508_v28, %v972_v42  ;;  %v3041_v39 = vld [vmem:[%s3474_s1 + $0x198] sm:$0xff]  ;;  %v3511_v6 = vld [vmem:[#allocation9_spill] sm:$0xff] }
  0xda   : >> { %v831_v16 = vsel %vm563_vm1, %v825_v7, %v815_v59  ;;  %v876_v46 = vmul.f32 %v2772_v27, %v858_v9  ;;  %v877_v60 = vmul.f32 %v2816_v34, %v862_v57  ;;  %v1067_v51 = vmul.f32 %v2995_v40, %v858_v9  ;;  %v3513_v28 = vld [vmem:[#allocation10_spill] sm:$0xff] }
  0xdb   : >> { %v1068_v45 = vmul.f32 %v3000_v47, %v862_v57  ;;  %v3024_v24 = vadd.f32 %v875_v20, %v808_v1  ;;  %v1072_v37 = vadd.f32 %v1066_v4, %v1023_v50  ;;  %v874_v54 = vrot.slane %v831_v16, %v2312_v2  ;;  %v3509_v20 = vld [vmem:[#allocation16_spill] sm:$0xff] }
  0xdc   : >> { %v882_v27 = vadd.f32 %v876_v46, %v809_v55  ;;  %v883_v23 = vadd.f32 %v877_v60, %v810_v3  ;;  %v1073_v34 = vadd.f32 %v1067_v51, %v1024_v8  ;;  %v826_v31 = vsel %vm563_vm1, %v823_v56, %v825_v7 }
  0xdd   : >> { %v1074_v52 = vadd.f32 %v1068_v45, %v1025_v44  ;;  %v940_v13 = vpop.permute.xlu1 %939  ;;  %v880_v59 = vmul.f32 %v2913_v0, %v874_v54  ;;  %v1071_v12 = vmul.f32 %v3022_v58, %v874_v54  ;;  %v827_v0 = vsel %vm563_vm1, %v821_v19, %v823_v56  ;;  %v938_v3 = vpop.permute.xlu0 %937 }
  0xde   : >> { %v870_v55 = vrot.slane %v826_v31, %v2312_v2  ;;  %v866_v8 = vrot.slane %v827_v0, %v2312_v2  ;;  %v953_v62 = vsel %vm386_vm0, %v938_v3, %v940_v13  ;;  %v1030_v14 = vmul.f32 %v3511_v6, %v3510_v17 }
  0xdf   : >> { %v1114_v11 = vadd.f32 %v1074_v52, %v1072_v37  ;;  %v886_v42 = vadd.f32 %v880_v59, %v813_v49  ;;  %v1077_v53 = vadd.f32 %v1071_v12, %v1028_v36  ;;  %v981_v15 = vrot.slane %v953_v62, %v2312_v2  ;;  %v3512_v12 = vld [vmem:[#allocation8_spill] sm:$0xff]  ;;  %v3514_v62 = vld [vmem:[#allocation5_spill] sm:$0xff] }
  0xe0   : >> { %v879_v29 = vmul.f32 %v2878_v10, %v870_v55  ;;  %v1070_v44 = vmul.f32 %v3034_v61, %v870_v55  ;;  %v878_v4 = vmul.f32 %v3509_v20, %v866_v8  ;;  %v1069_v19 = vmul.f32 %v3041_v39, %v866_v8 }
  0xe1   : >> { %v944_v22 = vpop.permute.xlu1 %943  ;;  %v999_v9 = vmul.f32 %v2885_v25, %v981_v15  ;;  %v942_v57 = vpop.permute.xlu0 %941 }
  0xe2   : >> { %v885_v26 = vadd.f32 %v879_v29, %v812_v38  ;;  %v1076_v30 = vadd.f32 %v1070_v44, %v1027_v41  ;;  %v884_v7 = vadd.f32 %v878_v4, %v811_v35  ;;  %v1075_v49 = vadd.f32 %v1069_v19, %v1026_v43  ;;  %v3515_v29 = vld [vmem:[#allocation12_spill] sm:$0xff]  ;;  %v3517_v4 = vld [vmem:[#allocation14_spill] sm:$0xff] }
  0xe3   : >> { %v951_v10 = vsel %vm386_vm0, %v942_v57, %v944_v22  ;;  %v952_v36 = vsel %vm386_vm0, %v940_v13, %v942_v57  ;;  %v1005_v50 = vadd.f32 %v999_v9, %v882_v27  ;;  %v1029_v41 = vmul.f32 %v3513_v28, %v3512_v12 }
  0xe4   : >> { %v3061_v1 = vadd.f32 %v1114_v11, %v1076_v30  ;;  %v985_v16 = vrot.slane %v952_v36, %v2312_v2  ;;  %v989_v46 = vrot.slane %v951_v10, %v2312_v2  ;;  %v1115_v60 = vadd.f32 %v1075_v49, %v1073_v34  ;;  %v3519_v30 = vld [vmem:[#allocation11_spill] sm:$0xff] }
  0xe5   : >> { %v946_v38 = vpop.permute.xlu1 %945  ;;  %v948_v56 = vpop.permute.xlu0 %947  ;;  %v1036_v37 = vadd.f32 %v1030_v14, %v1005_v50  ;;  %v1031_v44 = vmul.f32 %v3515_v29, %v3514_v62  ;;  %v3520_v50 = vld [vmem:[#allocation6_spill] sm:$0xff] }
  0xe6   : >> { %v950_v25 = vsel %vm386_vm0, %v944_v22, %v946_v38  ;;  %v1000_v35 = vmul.f32 %v2923_v63, %v985_v16  ;;  %v1001_v51 = vmul.f32 %v2928_v32, %v989_v46  ;;  %v3070_v54 = vadd.f32 %v1115_v60, %v1077_v53  ;;  %v3521_v16 = vld [vmem:[#allocation13_spill] sm:$0xff]  ;;  %v1459_v62 = vld [vmem:[%s3477_s4 + $0x18] sm:$0xff] (%p305_p11) }
  0xe7   : >> { %v993_v45 = vrot.slane %v950_v25, %v2312_v2  ;;  %v949_v43 = vsel %vm386_vm0, %v946_v38, %v948_v56  ;;  %v954_v27 = vsel %vm386_vm0, %v948_v56, %v938_v3  ;;  %v1033_v46 = vmul.f32 %v3521_v16, %v3520_v50  ;;  %v1467_v50 = vld [vmem:[%s3477_s4 + $0x58] sm:$0xff] (%p305_p11) }
  0xe8   : >> { %v1006_v34 = vadd.f32 %v1000_v35, %v883_v23  ;;  %v1007_v52 = vadd.f32 %v1001_v51, %v884_v7  ;;  %v977_v63 = vrot.slane %v954_v27, %v2312_v2  ;;  %v997_v32 = vrot.slane %v949_v43, %v2312_v2 }
  0xe9   : >> { %v1002_v13 = vmul.f32 %v2947_v5, %v993_v45  ;;  %v1044_v59 = vpop.permute.xlu1 %1043  ;;  %v1042_v0 = vpop.permute.xlu0 %1041 }
  0xea   : >> { %v998_v11 = vmul.f32 %v2963_v33, %v977_v63  ;;  %v1003_v55 = vmul.f32 %v2958_v18, %v997_v32  ;;  %v1057_v23 = vsel %vm563_vm1, %v1042_v0, %v1044_v59  ;;  %v3516_v33 = vld [vmem:[#allocation7_spill] sm:$0xff]  ;;  %v1037_v57 = vadd.f32 %v1031_v44, %v1006_v34 }
  0xeb   : >> { %v1008_v31 = vadd.f32 %v1002_v13, %v885_v26  ;;  %v1081_v5 = vrot.slane %v1057_v23, %v2312_v2  ;;  %v1034_v19 = vmul.f32 %v3517_v4, %v3516_v33  ;;  %v3518_v26 = vld [vmem:[#allocation4_spill] sm:$0xff] }
  0xec   : >> { %v1004_v3 = vadd.f32 %v998_v11, %v3024_v24  ;;  %v1009_v8 = vadd.f32 %v1003_v55, %v886_v42  ;;  %v1032_v9 = vmul.f32 %v3519_v30, %v3518_v26  ;;  %v1199_v11 = vld [vmem:[%s3476_s3] sm:$0xff] (%p305_p11)  ;;  %v1457_v23 = vld [vmem:[%s3477_s4 + $0x8] sm:$0xff] (%p305_p11) }
  0xed   : >> { %v1048_v53 = vpop.permute.xlu1 %1047  ;;  %v1102_v22 = vmul.f32 %v2975_v21, %v1081_v5  ;;  %v1046_v20 = vpop.permute.xlu0 %1045  ;;  %v1039_v13 = vadd.f32 %v1033_v46, %v1008_v31  ;;  %v1202_v5 = vld [vmem:[%s3476_s3 + $0x18] sm:$0xff] (%p305_p11)  ;;  %v1461_v33 = vld [vmem:[%s3477_s4 + $0x28] sm:$0xff] (%p305_p11)  ;;  %v1207_v26 = vld [vmem:[%s3476_s3 + $0x40] sm:$0xff] (%p305_p11) }
  0xee   : >> { %v1035_v15 = vadd.f32 %v1029_v41, %v1004_v3  ;;  %v1055_v18 = vsel %vm563_vm1, %v1046_v20, %v1048_v53  ;;  %v1056_v24 = vsel %vm563_vm1, %v1044_v59, %v1046_v20  ;;  %v1040_v38 = vadd.f32 %v1034_v19, %v1009_v8  ;;  %v1201_v3 = vld [vmem:[%s3476_s3 + $0x10] sm:$0xff] (%p305_p11)  ;;  %v1460_v20 = vld [vmem:[%s3477_s4 + $0x20] sm:$0xff] (%p305_p11)  ;;  %v1208_v30 = vld [vmem:[%s3476_s3 + $0x48] sm:$0xff] (%p305_p11) }
  0xef   : >> { %v1085_v6 = vrot.slane %v1056_v24, %v2312_v2  ;;  %v1089_v42 = vrot.slane %v1055_v18, %v2312_v2  ;;  %v1038_v27 = vadd.f32 %v1032_v9, %v1007_v52  ;;  %v1458_v8 = vld [vmem:[%s3477_s4 + $0x10] sm:$0xff] (%p305_p11)  ;;  %v2019_v29 = vpack.c.bf16 (%p305_p11), %v1202_v5, %v1201_v3  ;;  %v1206_v24 = vld [vmem:[%s3476_s3 + $0x38] sm:$0xff] (%p305_p11)  ;;  %v1464_v9 = vld [vmem:[%s3477_s4 + $0x40] sm:$0xff] (%p305_p11) }
  0xf0   : >> { %v1108_v17 = vadd.f32 %v1102_v22, %v1035_v15  ;;  %v2067_v44 = vpack.c.bf16 (%p305_p11), %v1459_v62, %v1458_v8  ;;  %v1203_v15 = vld [vmem:[%s3476_s3 + $0x20] sm:$0xff] (%p305_p11)  ;;  %v1204_v22 = vld [vmem:[%s3476_s3 + $0x28] sm:$0xff] (%p305_p11)  ;;  %v2070_v19 = vpack.c.bf16 (%p305_p11), %v1461_v33, %v1460_v20  ;;  %v1205_v18 = vld [vmem:[%s3476_s3 + $0x30] sm:$0xff] (%p305_p11) }
  0xf1   : >> { %v1052_v14 = vpop.permute.xlu1 %1051  ;;  %v1103_v7 = vmul.f32 %v2995_v40, %v1085_v6  ;;  %v1104_v49 = vmul.f32 %v3000_v47, %v1089_v42  ;;  %v1050_v36 = vpop.permute.xlu0 %1049  ;;  %v2022_v4 = vpack.c.bf16 (%p305_p11), %v1204_v22, %v1203_v15  ;;  %v1463_v6 = vld [vmem:[%s3477_s4 + $0x38] sm:$0xff] (%p305_p11)  ;;  %v2025_v42 = vpack.c.bf16 (%p305_p11), %v1206_v24, %v1205_v18  ;;  %v1478_v5 = vld [vmem:[%s3477_s4 + $0xb0] sm:$0xff] (%p305_p11)  ;;  %v1480_v15 = vld [vmem:[%s3477_s4 + $0xc0] sm:$0xff] (%p305_p11) }
  0xf2   : >> { %v1058_v21 = vsel %vm563_vm1, %v1052_v14, %v1042_v0  ;;  %v1053_v60 = vsel %vm563_vm1, %v1050_v36, %v1052_v14  ;;  %v1054_v25 = vsel %vm563_vm1, %v1048_v53, %v1050_v36  ;;  %v2213_v0 = vmov (%p305_p11), 0.0|0.0   ;;  %v1466_v36 = vld [vmem:[%s3477_s4 + $0x50] sm:$0xff] (%p305_p11)  ;;  %v1222_v3 = vld [vmem:[%s3476_s3 + $0xb8] sm:$0xff] (%p305_p11)  ;;  %v1481_v22 = vld [vmem:[%s3477_s4 + $0xc8] sm:$0xff] (%p305_p11) }
  0xf3   : >> { %v1101_v10 = vrot.slane %v1058_v21, %v2312_v2  ;;  %v1109_v35 = vadd.f32 %v1103_v7, %v1036_v37  ;;  %v1110_v51 = vadd.f32 %v1104_v49, %v1037_v57  ;;  %v1093_v40 = vrot.slane %v1054_v25, %v2312_v2  ;;  %2015 = vmatprep.subr.bf16.mxu0 (%p305_p11), %v2213_v0  ;;  %v1465_v21 = vld [vmem:[%s3477_s4 + $0x48] sm:$0xff] (%p305_p11)  ;;  %v1209_v49 = vld [vmem:[%s3476_s3 + $0x50] sm:$0xff] (%p305_p11)  ;;  %v1468_v25 = vld [vmem:[%s3477_s4 + $0x60] sm:$0xff] (%p305_p11) }
  0xf4   : >> { %v1097_v47 = vrot.slane %v1053_v60, %v2312_v2  ;;  %v1125_v2 = vld [vmem:[%s3475_s2 + $0x8] sm:$0xff]  ;;  %2063 = vmatprep.subr.bf16.mxu1 (%p305_p11), %v2213_v0  ;;  %v2028_v57 = vpack.c.bf16 (%p305_p11), %v1208_v30, %v1207_v26  ;;  %v2076_v7 = vpack.c.bf16 (%p305_p11), %v1465_v21, %v1464_v9  ;;  %v2079_v46 = vpack.c.bf16 (%p305_p11), %v1467_v50, %v1466_v36  ;;  %v1482_v18 = vld [vmem:[%s3477_s4 + $0xd0] sm:$0xff] (%p305_p11)  ;;  %v1483_v24 = vld [vmem:[%s3477_s4 + $0xd8] sm:$0xff] (%p305_p11) }
  0xf5   : >> { %v1107_v45 = vmul.f32 %v3022_v58, %v1101_v10  ;;  %v1118_v56 = vadd.f32 %v1110_v51, %v1108_v17  ;;  %v1105_v34 = vmul.f32 %v3041_v39, %v1093_v40  ;;  %v1124_v58 = vld [vmem:[%s3475_s2] sm:$0xff]  ;;  %v1462_v17 = vld [vmem:[%s3477_s4 + $0x30] sm:$0xff] (%p305_p11)  ;;  %v1210_v10 = vld [vmem:[%s3476_s3 + $0x58] sm:$0xff] (%p305_p11)  ;;  %v2100_v33 = vpack.c.bf16 (%p305_p11), %v1481_v22, %v1480_v15 }
  0xf6   : >> { %v1106_v63 = vmul.f32 %v3034_v61, %v1097_v47  ;;  %v2073_v14 = vpack.c.bf16 (%p305_p11), %v1463_v6, %v1462_v17  ;;  %v2031_v16 = vpack.c.bf16 (%p305_p11), %v1210_v10, %v1209_v49  ;;  %v1212_v60 = vld [vmem:[%s3476_s3 + $0x68] sm:$0xff] (%p305_p11)  ;;  %v1213_v47 = vld [vmem:[%s3476_s3 + $0x70] sm:$0xff] (%p305_p11)  ;;  %v2103_v6 = vpack.c.bf16 (%p305_p11), %v1483_v24, %v1482_v18  ;;  %v1484_v26 = vld [vmem:[%s3477_s4 + $0xe0] sm:$0xff] (%p305_p11) }
  0xf7   : >> { %v1113_v43 = vadd.f32 %v1107_v45, %v1040_v38  ;;  %v1111_v59 = vadd.f32 %v1105_v34, %v1038_v27  ;;  %v1211_v38 = vld [vmem:[%s3476_s3 + $0x60] sm:$0xff] (%p305_p11)  ;;  %v1471_v27 = vld [vmem:[%s3477_s4 + $0x78] sm:$0xff] (%p305_p11)  ;;  %v1485_v30 = vld [vmem:[%s3477_s4 + $0xe8] sm:$0xff] (%p305_p11) }
  0xf8   : >> { %v1112_v48 = vadd.f32 %v1106_v63, %v1039_v13  ;;  %v2034_v45 = vpack.c.bf16 (%p305_p11), %v1212_v60, %v1211_v38  ;;  %v1215_v63 = vld [vmem:[%s3476_s3 + $0x80] sm:$0xff] (%p305_p11)  ;;  %v2106_v21 = vpack.c.bf16 (%p305_p11), %v1485_v30, %v1484_v26  ;;  %v1486_v49 = vld [vmem:[%s3477_s4 + $0xf0] sm:$0xff] (%p305_p11)  ;;  %v1487_v10 = vld [vmem:[%s3477_s4 + $0xf8] sm:$0xff] (%p305_p11) }
  0xf9   : >> { %v1119_v32 = vadd.f32 %v1111_v59, %v1109_v35  ;;  %v1469_v35 = vld [vmem:[%s3477_s4 + $0x68] sm:$0xff] (%p305_p11)  ;;  %v2109_v50 = vpack.c.bf16 (%p305_p11), %v1487_v10, %v1486_v49 }
  0xfa   : >> { %v1120_v37 = vadd.f32 %v1118_v56, %v1112_v48  ;;  %v2082_v40 = vpack.c.bf16 (%p305_p11), %v1469_v35, %v1468_v25  ;;  %v1214_v56 = vld [vmem:[%s3476_s3 + $0x78] sm:$0xff] (%p305_p11)  ;;  %v1216_v59 = vld [vmem:[%s3476_s3 + $0x88] sm:$0xff] (%p305_p11)  ;;  %v1472_v48 = vld [vmem:[%s3477_s4 + $0x80] sm:$0xff] (%p305_p11) }
  0xfb   : >> { %v1121_v12 = vadd.f32 %v1119_v32, %v1113_v43  ;;  %v1470_v43 = vld [vmem:[%s3477_s4 + $0x70] sm:$0xff] (%p305_p11)  ;;  %v2037_v34 = vpack.c.bf16 (%p305_p11), %v1214_v56, %v1213_v47  ;;  %v1473_v32 = vld [vmem:[%s3477_s4 + $0x88] sm:$0xff] (%p305_p11) }
  0xfc   : >> { %v1122_v52 = vmax.f32 %v3061_v1, %v1120_v37  ;;  %v1200_v1 = vld [vmem:[%s3476_s3 + $0x8] sm:$0xff] (%p305_p11)  ;;  %v2085_v13 = vpack.c.bf16 (%p305_p11), %v1471_v27, %v1470_v43  ;;  %v2040_v37 = vpack.c.bf16 (%p305_p11), %v1216_v59, %v1215_v63 }
  0xfd   : >> { %v1123_v39 = vmax.f32 %v3070_v54, %v1121_v12  ;;  %307 = sbr.rel (!%p305_p11) target bundleno = 22 (0x16), region = 98  ;;  %v1456_v54 = vld [vmem:[%s3477_s4] sm:$0xff] (%p305_p11)  ;;  %v2016_v55 = vpack.c.bf16 (%p305_p11), %v1200_v1, %v1199_v11  ;;  %v1217_v12 = vld [vmem:[%s3476_s3 + $0x90] sm:$0xff] (%p305_p11)  ;;  %v1477_v1 = vld [vmem:[%s3477_s4 + $0xa8] sm:$0xff] (%p305_p11) }
  0xfe   : >> { %v1126_v28 = vadd.f32 %v1124_v58, %v1122_v52  ;;  %v2064_v53 = vpack.c.bf16 (%p305_p11), %v1457_v23, %v1456_v54  ;;  %v2088_v58 = vpack.c.bf16 (%p305_p11), %v1473_v32, %v1472_v48  ;;  %v1474_v52 = vld [vmem:[%s3477_s4 + $0x90] sm:$0xff] (%p305_p11)  ;;  %v1476_v11 = vld [vmem:[%s3477_s4 + $0xa0] sm:$0xff] (%p305_p11) }
  0xff   : >> { %v1127_v61 = vadd.f32 %v1125_v2, %v1123_v39  ;;  %2017 = vmatpush1.bf16.msra.mxu0 (%p305_p11), %v2016_v55  ;;  %v1218_v2 = vld [vmem:[%s3476_s3 + $0x98] sm:$0xff] (%p305_p11)  ;;  %v2094_v55 = vpack.c.bf16 (%p305_p11), %v1477_v1, %v1476_v11  ;;  %v1221_v23 = vld [vmem:[%s3476_s3 + $0xb0] sm:$0xff] (%p305_p11) }
 0x100   : >> { %v1128_v41 = vmax.f32 %v1126_v28, 0.0  ;;  %2065 = vmatpush1.bf16.msra.mxu1 (%p305_p11), %v2064_v53  ;;  %2018 = vmatprep.subr.bf16.mxu0 (%p305_p11), %v2213_v0  ;;  %v1475_v39 = vld [vmem:[%s3477_s4 + $0x98] sm:$0xff] (%p305_p11)  ;;  %v2043_v28 = vpack.c.bf16 (%p305_p11), %v1218_v2, %v1217_v12  ;;  %v2049_v8 = vpack.c.bf16 (%p305_p11), %v1222_v3, %v1221_v23 }
 0x101   : >> { %v1129_v31 = vmax.f32 %v1127_v61, 0.0  ;;  %2066 = vmatprep.subr.bf16.mxu1 (%p305_p11), %v2213_v0  ;;  %v2091_v61 = vpack.c.bf16 (%p305_p11), %v1475_v39, %v1474_v52  ;;  %v1479_v53 = vld [vmem:[%s3477_s4 + $0xb8] sm:$0xff] (%p305_p11) }
 0x102   : >> { %1133 = vst [vmem:[%s1132_s9] sm:$0xff] %v1128_v41  ;;  %v1219_v41 = vld [vmem:[%s3476_s3 + $0xa0] sm:$0xff] (%p305_p11)  ;;  %v2097_v62 = vpack.c.bf16 (%p305_p11), %v1479_v53, %v1478_v5 }
 0x103   : >> { %1134 = vst [vmem:[%s1132_s9 + $0x8] sm:$0xff] %v1129_v31  ;;  %2020 = vmatpush1.bf16.msra.mxu0 (%p305_p11), %v2019_v29  ;;  %v1220_v31 = vld [vmem:[%s3476_s3 + $0xa8] sm:$0xff] (%p305_p11)  ;;  %v1223_v29 = vld [vmem:[%s3476_s3 + $0xc0] sm:$0xff] (%p305_p11) }
 0x104   : > { %2068 = vmatpush1.bf16.msra.mxu1 %v2067_v44  ;;  %2021 = vmatprep.subr.bf16.mxu0 %v2213_v0  ;;  %v2046_v54 = vpack.c.bf16 %v1220_v31, %v1219_v41  ;;  %v1224_v44 = vld [vmem:[%s3476_s3 + $0xc8] sm:$0xff] }
 0x105   : > { %2069 = vmatprep.subr.bf16.mxu1 %v2213_v0  ;;  %v2052_v20 = vpack.c.bf16 %v1224_v44, %v1223_v29 }
 0x107   : > { %2023 = vmatpush1.bf16.msra.mxu0 %v2022_v4  ;;  %v1225_v4 = vld [vmem:[%s3476_s3 + $0xd0] sm:$0xff] }
 0x108   : > { %2071 = vmatpush1.bf16.msra.mxu1 %v2070_v19  ;;  %2024 = vmatprep.subr.bf16.mxu0 %v2213_v0  ;;  %v1226_v19 = vld [vmem:[%s3476_s3 + $0xd8] sm:$0xff] }
 0x109   : > { %2072 = vmatprep.subr.bf16.mxu1 %v2213_v0  ;;  %v2055_v17 = vpack.c.bf16 %v1226_v19, %v1225_v4 }
 0x10a   : > { %v1136_v51 = vld [vmem:[#allocation2 + $0x8] sm:$0xff]  ;;  %v1137_v38 = vld [vmem:[#allocation2 + $0x10] sm:$0xff]  ;;  %v1139_v25 = vld [vmem:[#allocation2 + $0x20] sm:$0xff] }
 0x10b   : > { %2026 = vmatpush1.bf16.msra.mxu0 %v2025_v42  ;;  %1295 = vmatprep.mubr.f32.mxu0 %v1136_v51  ;;  %v1227_v42 = vld [vmem:[%s3476_s3 + $0xe0] sm:$0xff]  ;;  %v1140_v60 = vld [vmem:[#allocation2 + $0x28] sm:$0xff]  ;;  %v1142_v35 = vld [vmem:[#allocation2 + $0x38] sm:$0xff] }
 0x10c   : > { %2074 = vmatpush1.bf16.msra.mxu1 %v2073_v14  ;;  %2027 = vmatprep.subr.bf16.mxu0 %v2213_v0  ;;  %v1228_v14 = vld [vmem:[%s3476_s3 + $0xe8] sm:$0xff]  ;;  %v1145_v47 = vld [vmem:[#allocation2 + $0x50] sm:$0xff]  ;;  %v1147_v43 = vld [vmem:[#allocation2 + $0x60] sm:$0xff] }
 0x10d   : > { %2075 = vmatprep.subr.bf16.mxu1 %v2213_v0  ;;  %1552 = vmatprep.mubr.f32.mxu1 %v1136_v51  ;;  %v2058_v9 = vpack.c.bf16 %v1228_v14, %v1227_v42  ;;  %v1144_v51 = vld [vmem:[#allocation2 + $0x48] sm:$0xff]  ;;  %v1150_v27 = vld [vmem:[#allocation2 + $0x78] sm:$0xff]  ;;  %v1151_v63 = vld [vmem:[#allocation2 + $0x80] sm:$0xff] }
 0x10e   : > { %v1148_v56 = vld [vmem:[#allocation2 + $0x68] sm:$0xff]  ;;  %v1154_v59 = vld [vmem:[#allocation2 + $0x98] sm:$0xff]  ;;  %v1153_v48 = vld [vmem:[#allocation2 + $0x90] sm:$0xff] }
 0x10f   : > { %2029 = vmatpush1.bf16.msra.mxu0 %v2028_v57  ;;  %v1229_v57 = vld [vmem:[%s3476_s3 + $0xf0] sm:$0xff]  ;;  %v1156_v32 = vld [vmem:[#allocation2 + $0xa8] sm:$0xff]  ;;  %v1159_v52 = vld [vmem:[#allocation2 + $0xc0] sm:$0xff] }
 0x110   : > { %2077 = vmatpush1.bf16.msra.mxu1 %v2076_v7  ;;  %2030 = vmatprep.subr.bf16.mxu0 %v2213_v0  ;;  %v1230_v7 = vld [vmem:[%s3476_s3 + $0xf8] sm:$0xff]  ;;  %v1157_v12 = vld [vmem:[#allocation2 + $0xb0] sm:$0xff]  ;;  %v1160_v2 = vld [vmem:[#allocation2 + $0xc8] sm:$0xff] }
 0x111   : > { %2078 = vmatprep.subr.bf16.mxu1 %v2213_v0  ;;  %v2061_v36 = vpack.c.bf16 %v1230_v7, %v1229_v57  ;;  %v1162_v39 = vld [vmem:[#allocation2 + $0xd8] sm:$0xff]  ;;  %v1163_v41 = vld [vmem:[#allocation2 + $0xe0] sm:$0xff]  ;;  %v1165_v11 = vld [vmem:[#allocation2 + $0xf0] sm:$0xff] }
 0x112   : > { %v1166_v31 = vld [vmem:[#allocation2 + $0xf8] sm:$0xff]  ;;  %v1168_v1 = vld [vmem:[#allocation2 + $0x108] sm:$0xff]  ;;  %v1169_v23 = vld [vmem:[#allocation2 + $0x110] sm:$0xff] }
 0x113   : > { %2032 = vmatpush1.bf16.msra.mxu0 %v2031_v16  ;;  %v1135_v16 = vld [vmem:[#allocation2] sm:$0xff]  ;;  %v1172_v3 = vld [vmem:[#allocation2 + $0x128] sm:$0xff]  ;;  %v1174_v53 = vld [vmem:[#allocation2 + $0x138] sm:$0xff] }
 0x114   : > { %2080 = vmatpush1.bf16.msra.mxu1 %v2079_v46  ;;  %2033 = vmatprep.subr.bf16.mxu0 %v2213_v0  ;;  %v1138_v46 = vld [vmem:[#allocation2 + $0x18] sm:$0xff]  ;;  %v1171_v5 = vld [vmem:[#allocation2 + $0x120] sm:$0xff]  ;;  %v1177_v15 = vld [vmem:[#allocation2 + $0x150] sm:$0xff] }
 0x115   : > { %2081 = vmatprep.subr.bf16.mxu1 %v2213_v0  ;;  %v1175_v29 = vld [vmem:[#allocation2 + $0x140] sm:$0xff]  ;;  %v1178_v44 = vld [vmem:[#allocation2 + $0x158] sm:$0xff]  ;;  %v1180_v22 = vld [vmem:[#allocation2 + $0x168] sm:$0xff] }
 0x116   : > { %v1181_v4 = vld [vmem:[#allocation2 + $0x170] sm:$0xff]  ;;  %v1184_v19 = vld [vmem:[#allocation2 + $0x188] sm:$0xff]  ;;  %v1183_v18 = vld [vmem:[#allocation2 + $0x180] sm:$0xff] }
 0x117   : > { %2035 = vmatpush1.bf16.msra.mxu0 %v2034_v45  ;;  %v1143_v45 = vld [vmem:[#allocation2 + $0x40] sm:$0xff]  ;;  %v1186_v24 = vld [vmem:[#allocation2 + $0x198] sm:$0xff]  ;;  %v1189_v26 = vld [vmem:[#allocation2 + $0x1b0] sm:$0xff] }
 0x118   : > { %2083 = vmatpush1.bf16.msra.mxu1 %v2082_v40  ;;  %2036 = vmatprep.subr.bf16.mxu0 %v2213_v0  ;;  %v1146_v40 = vld [vmem:[#allocation2 + $0x58] sm:$0xff]  ;;  %v1187_v42 = vld [vmem:[#allocation2 + $0x1a0] sm:$0xff]  ;;  %v1192_v30 = vld [vmem:[#allocation2 + $0x1c8] sm:$0xff] }
 0x119   : > { %2084 = vmatprep.subr.bf16.mxu1 %v2213_v0  ;;  %v1190_v14 = vld [vmem:[#allocation2 + $0x1b8] sm:$0xff]  ;;  %v1193_v57 = vld [vmem:[#allocation2 + $0x1d0] sm:$0xff]  ;;  %v1196_v7 = vld [vmem:[#allocation2 + $0x1e8] sm:$0xff] }
 0x11a   : > { %v1195_v49 = vld [vmem:[#allocation2 + $0x1e0] sm:$0xff]  ;;  %v1198_v10 = vld [vmem:[#allocation2 + $0x1f8] sm:$0xff] }
 0x11b   : > { %2038 = vmatpush1.bf16.msra.mxu0 %v2037_v34  ;;  %v1149_v34 = vld [vmem:[#allocation2 + $0x70] sm:$0xff] }
 0x11c   : > { %2086 = vmatpush1.bf16.msra.mxu1 %v2085_v13  ;;  %2039 = vmatprep.subr.bf16.mxu0 %v2213_v0  ;;  %v1152_v13 = vld [vmem:[#allocation2 + $0x88] sm:$0xff] }
 0x11d   : > { %2087 = vmatprep.subr.bf16.mxu1 %v2213_v0 }
 0x11f   : > { %2041 = vmatpush1.bf16.msra.mxu0 %v2040_v37  ;;  %v1155_v37 = vld [vmem:[#allocation2 + $0xa0] sm:$0xff] }
 0x120   : > { %2089 = vmatpush1.bf16.msra.mxu1 %v2088_v58  ;;  %2042 = vmatprep.subr.bf16.mxu0 %v2213_v0  ;;  %v1158_v58 = vld [vmem:[#allocation2 + $0xb8] sm:$0xff] }
 0x121   : > { %2090 = vmatprep.subr.bf16.mxu1 %v2213_v0 }
 0x123   : > { %2044 = vmatpush1.bf16.msra.mxu0 %v2043_v28  ;;  %v1161_v28 = vld [vmem:[#allocation2 + $0xd0] sm:$0xff] }
 0x124   : > { %2092 = vmatpush1.bf16.msra.mxu1 %v2091_v61  ;;  %2045 = vmatprep.subr.bf16.mxu0 %v2213_v0  ;;  %v1164_v61 = vld [vmem:[#allocation2 + $0xe8] sm:$0xff] }
 0x125   : > { %2093 = vmatprep.subr.bf16.mxu1 %v2213_v0 }
 0x127   : > { %2047 = vmatpush1.bf16.msra.mxu0 %v2046_v54  ;;  %v1167_v54 = vld [vmem:[#allocation2 + $0x100] sm:$0xff] }
 0x128   : > { %2095 = vmatpush1.bf16.msra.mxu1 %v2094_v55  ;;  %2048 = vmatprep.subr.bf16.mxu0 %v2213_v0  ;;  %v1170_v55 = vld [vmem:[#allocation2 + $0x118] sm:$0xff] }
 0x129   : > { %2096 = vmatprep.subr.bf16.mxu1 %v2213_v0 }
 0x12b   : > { %2050 = vmatpush1.bf16.msra.mxu0 %v2049_v8  ;;  %v1173_v8 = vld [vmem:[#allocation2 + $0x130] sm:$0xff] }
 0x12c   : > { %2098 = vmatpush1.bf16.msra.mxu1 %v2097_v62  ;;  %2051 = vmatprep.subr.bf16.mxu0 %v2213_v0  ;;  %v1176_v62 = vld [vmem:[#allocation2 + $0x148] sm:$0xff] }
 0x12d   : > { %2099 = vmatprep.subr.bf16.mxu1 %v2213_v0 }
 0x12f   : > { %2053 = vmatpush1.bf16.msra.mxu0 %v2052_v20  ;;  %v1179_v20 = vld [vmem:[#allocation2 + $0x160] sm:$0xff] }
 0x130   : > { %2101 = vmatpush1.bf16.msra.mxu1 %v2100_v33  ;;  %2054 = vmatprep.subr.bf16.mxu0 %v2213_v0  ;;  %v1182_v33 = vld [vmem:[#allocation2 + $0x178] sm:$0xff] }
 0x131   : > { %2102 = vmatprep.subr.bf16.mxu1 %v2213_v0 }
 0x133   : > { %2056 = vmatpush1.bf16.msra.mxu0 %v2055_v17  ;;  %v1185_v17 = vld [vmem:[#allocation2 + $0x190] sm:$0xff] }
 0x134   : > { %2104 = vmatpush1.bf16.msra.mxu1 %v2103_v6  ;;  %2057 = vmatprep.subr.bf16.mxu0 %v2213_v0  ;;  %v1188_v6 = vld [vmem:[#allocation2 + $0x1a8] sm:$0xff] }
 0x135   : > { %2105 = vmatprep.subr.bf16.mxu1 %v2213_v0 }
 0x137   : > { %2059 = vmatpush1.bf16.msra.mxu0 %v2058_v9  ;;  %v1191_v9 = vld [vmem:[#allocation2 + $0x1c0] sm:$0xff] }
 0x138   : > { %2107 = vmatpush1.bf16.msra.mxu1 %v2106_v21  ;;  %2060 = vmatprep.subr.bf16.mxu0 %v2213_v0  ;;  %v1194_v21 = vld [vmem:[#allocation2 + $0x1d8] sm:$0xff] }
 0x139   : > { %2108 = vmatprep.subr.bf16.mxu1 %v2213_v0  ;;  %v1141_v0 = vld [vmem:[#allocation2 + $0x30] sm:$0xff] }
 0x13b   : > { %2062 = vmatpush1.bf16.msra.mxu0 %v2061_v36  ;;  %v1197_v36 = vld [vmem:[#allocation2 + $0x1f0] sm:$0xff] }
 0x13c   : > { %2110 = vmatpush1.bf16.msra.mxu1 %v2109_v50 }
 0x13e   : > { %1296 = vmatmul.mubr.f32.vlgmr.msra.gmra.mrb[0].mxu0 %v1135_v16 }
 0x13f   : > { %1553 = vmatmul.mubr.f32.vlgmr.msra.gmra.mrb[0].mxu1 %v1135_v16  ;;  %1300 = vmatprep.mubr.f32.mxu0 %v1138_v46 }
 0x140   : > { %1557 = vmatprep.mubr.f32.mxu1 %v1138_v46  ;;  %v3355_v46 = vld [vmem:[%s3478_s5] sm:$0xff] }
 0x142   : > { %1301 = vmatmul.mubr.f32.gmra.mrb[2].mxu0 %v1137_v38 }
 0x143   : > { %1558 = vmatmul.mubr.f32.gmra.mrb[2].mxu1 %v1137_v38  ;;  %1305 = vmatprep.mubr.f32.mxu0 %v1140_v60 }
 0x144   : > { %1562 = vmatprep.mubr.f32.mxu1 %v1140_v60 }
 0x146   : > { %1306 = vmatmul.mubr.f32.gmra.mrb[4].mxu0 %v1139_v25 }
 0x147   : > { %1563 = vmatmul.mubr.f32.gmra.mrb[4].mxu1 %v1139_v25  ;;  %1310 = vmatprep.mubr.f32.mxu0 %v1142_v35 }
 0x148   : > { %1567 = vmatprep.mubr.f32.mxu1 %v1142_v35  ;;  %v3360_v35 = vld [vmem:[%s3479_s6] sm:$0xff] }
 0x14a   : > { %1311 = vmatmul.mubr.f32.gmra.mrb[6].mxu0 %v1141_v0 }
 0x14b   : > { %1568 = vmatmul.mubr.f32.gmra.mrb[6].mxu1 %v1141_v0  ;;  %1315 = vmatprep.mubr.f32.mxu0 %v1144_v51 }
 0x14c   : > { %1572 = vmatprep.mubr.f32.mxu1 %v1144_v51 }
 0x14e   : > { %1316 = vmatmul.mubr.f32.gmra.mrb[8].mxu0 %v1143_v45 }
 0x14f   : > { %1573 = vmatmul.mubr.f32.gmra.mrb[8].mxu1 %v1143_v45  ;;  %1320 = vmatprep.mubr.f32.mxu0 %v1146_v40 }
 0x150   : > { %1577 = vmatprep.mubr.f32.mxu1 %v1146_v40 }
 0x152   : > { %1321 = vmatmul.mubr.f32.gmra.mrb[10].mxu0 %v1145_v47 }
 0x153   : > { %1578 = vmatmul.mubr.f32.gmra.mrb[10].mxu1 %v1145_v47  ;;  %1325 = vmatprep.mubr.f32.mxu0 %v1148_v56 }
 0x154   : > { %1582 = vmatprep.mubr.f32.mxu1 %v1148_v56 }
 0x156   : > { %1326 = vmatmul.mubr.f32.gmra.mrb[12].mxu0 %v1147_v43 }
 0x157   : > { %1583 = vmatmul.mubr.f32.gmra.mrb[12].mxu1 %v1147_v43  ;;  %1330 = vmatprep.mubr.f32.mxu0 %v1150_v27 }
 0x158   : > { %1587 = vmatprep.mubr.f32.mxu1 %v1150_v27 }
 0x15a   : > { %1331 = vmatmul.mubr.f32.gmra.mrb[14].mxu0 %v1149_v34 }
 0x15b   : > { %1588 = vmatmul.mubr.f32.gmra.mrb[14].mxu1 %v1149_v34  ;;  %1335 = vmatprep.mubr.f32.mxu0 %v1152_v13 }
 0x15c   : > { %1592 = vmatprep.mubr.f32.mxu1 %v1152_v13 }
 0x15e   : > { %1336 = vmatmul.mubr.f32.gmra.mrb[16].mxu0 %v1151_v63 }
 0x15f   : > { %1593 = vmatmul.mubr.f32.gmra.mrb[16].mxu1 %v1151_v63  ;;  %1340 = vmatprep.mubr.f32.mxu0 %v1154_v59 }
 0x160   : > { %1597 = vmatprep.mubr.f32.mxu1 %v1154_v59 }
 0x162   : > { %1341 = vmatmul.mubr.f32.gmra.mrb[18].mxu0 %v1153_v48 }
 0x163   : > { %1598 = vmatmul.mubr.f32.gmra.mrb[18].mxu1 %v1153_v48  ;;  %1345 = vmatprep.mubr.f32.mxu0 %v1156_v32 }
 0x164   : > { %1602 = vmatprep.mubr.f32.mxu1 %v1156_v32 }
 0x166   : > { %1346 = vmatmul.mubr.f32.gmra.mrb[20].mxu0 %v1155_v37 }
 0x167   : > { %1603 = vmatmul.mubr.f32.gmra.mrb[20].mxu1 %v1155_v37  ;;  %1350 = vmatprep.mubr.f32.mxu0 %v1158_v58 }
 0x168   : > { %1607 = vmatprep.mubr.f32.mxu1 %v1158_v58 }
 0x16a   : > { %1351 = vmatmul.mubr.f32.gmra.mrb[22].mxu0 %v1157_v12 }
 0x16b   : > { %1608 = vmatmul.mubr.f32.gmra.mrb[22].mxu1 %v1157_v12  ;;  %1355 = vmatprep.mubr.f32.mxu0 %v1160_v2 }
 0x16c   : > { %1612 = vmatprep.mubr.f32.mxu1 %v1160_v2 }
 0x16e   : > { %1356 = vmatmul.mubr.f32.gmra.mrb[24].mxu0 %v1159_v52 }
 0x16f   : > { %1613 = vmatmul.mubr.f32.gmra.mrb[24].mxu1 %v1159_v52  ;;  %1360 = vmatprep.mubr.f32.mxu0 %v1162_v39 }
 0x170   : > { %1617 = vmatprep.mubr.f32.mxu1 %v1162_v39 }
 0x172   : > { %1361 = vmatmul.mubr.f32.gmra.mrb[26].mxu0 %v1161_v28 }
 0x173   : > { %1618 = vmatmul.mubr.f32.gmra.mrb[26].mxu1 %v1161_v28  ;;  %1365 = vmatprep.mubr.f32.mxu0 %v1164_v61 }
 0x174   : > { %1622 = vmatprep.mubr.f32.mxu1 %v1164_v61 }
 0x176   : > { %1366 = vmatmul.mubr.f32.gmra.mrb[28].mxu0 %v1163_v41 }
 0x177   : > { %1623 = vmatmul.mubr.f32.gmra.mrb[28].mxu1 %v1163_v41  ;;  %1370 = vmatprep.mubr.f32.mxu0 %v1166_v31 }
 0x178   : > { %1627 = vmatprep.mubr.f32.mxu1 %v1166_v31 }
 0x17a   : > { %1371 = vmatmul.mubr.f32.gmra.mrb[30].mxu0 %v1165_v11 }
 0x17b   : > { %1628 = vmatmul.mubr.f32.gmra.mrb[30].mxu1 %v1165_v11  ;;  %1375 = vmatprep.mubr.f32.mxu0 %v1168_v1 }
 0x17c   : > { %1632 = vmatprep.mubr.f32.mxu1 %v1168_v1 }
 0x17e   : > { %1376 = vmatmul.mubr.f32.gmra.mrb[32].mxu0 %v1167_v54 }
 0x17f   : > { %1633 = vmatmul.mubr.f32.gmra.mrb[32].mxu1 %v1167_v54  ;;  %1380 = vmatprep.mubr.f32.mxu0 %v1170_v55 }
 0x180   : > { %1637 = vmatprep.mubr.f32.mxu1 %v1170_v55 }
 0x182   : > { %1381 = vmatmul.mubr.f32.gmra.mrb[34].mxu0 %v1169_v23 }
 0x183   : > { %1638 = vmatmul.mubr.f32.gmra.mrb[34].mxu1 %v1169_v23  ;;  %1385 = vmatprep.mubr.f32.mxu0 %v1172_v3 }
 0x184   : > { %1642 = vmatprep.mubr.f32.mxu1 %v1172_v3 }
 0x186   : > { %1386 = vmatmul.mubr.f32.gmra.mrb[36].mxu0 %v1171_v5 }
 0x187   : > { %1643 = vmatmul.mubr.f32.gmra.mrb[36].mxu1 %v1171_v5  ;;  %1390 = vmatprep.mubr.f32.mxu0 %v1174_v53 }
 0x188   : > { %1647 = vmatprep.mubr.f32.mxu1 %v1174_v53 }
 0x18a   : > { %1391 = vmatmul.mubr.f32.gmra.mrb[38].mxu0 %v1173_v8 }
 0x18b   : > { %1648 = vmatmul.mubr.f32.gmra.mrb[38].mxu1 %v1173_v8  ;;  %1395 = vmatprep.mubr.f32.mxu0 %v1176_v62 }
 0x18c   : > { %1652 = vmatprep.mubr.f32.mxu1 %v1176_v62 }
 0x18e   : > { %1396 = vmatmul.mubr.f32.gmra.mrb[40].mxu0 %v1175_v29 }
 0x18f   : > { %1653 = vmatmul.mubr.f32.gmra.mrb[40].mxu1 %v1175_v29  ;;  %1400 = vmatprep.mubr.f32.mxu0 %v1178_v44 }
 0x190   : > { %1657 = vmatprep.mubr.f32.mxu1 %v1178_v44 }
 0x192   : > { %1401 = vmatmul.mubr.f32.gmra.mrb[42].mxu0 %v1177_v15 }
 0x193   : > { %1658 = vmatmul.mubr.f32.gmra.mrb[42].mxu1 %v1177_v15  ;;  %1405 = vmatprep.mubr.f32.mxu0 %v1180_v22 }
 0x194   : > { %1662 = vmatprep.mubr.f32.mxu1 %v1180_v22 }
 0x196   : > { %1406 = vmatmul.mubr.f32.gmra.mrb[44].mxu0 %v1179_v20 }
 0x197   : > { %1663 = vmatmul.mubr.f32.gmra.mrb[44].mxu1 %v1179_v20  ;;  %1410 = vmatprep.mubr.f32.mxu0 %v1182_v33 }
 0x198   : > { %1667 = vmatprep.mubr.f32.mxu1 %v1182_v33 }
 0x19a   : > { %1411 = vmatmul.mubr.f32.gmra.mrb[46].mxu0 %v1181_v4 }
 0x19b   : > { %1668 = vmatmul.mubr.f32.gmra.mrb[46].mxu1 %v1181_v4  ;;  %1415 = vmatprep.mubr.f32.mxu0 %v1184_v19 }
 0x19c   : > { %1672 = vmatprep.mubr.f32.mxu1 %v1184_v19 }
 0x19e   : > { %1416 = vmatmul.mubr.f32.gmra.mrb[48].mxu0 %v1183_v18 }
 0x19f   : > { %1673 = vmatmul.mubr.f32.gmra.mrb[48].mxu1 %v1183_v18  ;;  %1420 = vmatprep.mubr.f32.mxu0 %v1186_v24 }
 0x1a0   : > { %1677 = vmatprep.mubr.f32.mxu1 %v1186_v24 }
 0x1a2   : > { %1421 = vmatmul.mubr.f32.gmra.mrb[50].mxu0 %v1185_v17 }
 0x1a3   : > { %1678 = vmatmul.mubr.f32.gmra.mrb[50].mxu1 %v1185_v17  ;;  %1425 = vmatprep.mubr.f32.mxu0 %v1188_v6 }
 0x1a4   : > { %1682 = vmatprep.mubr.f32.mxu1 %v1188_v6 }
 0x1a6   : > { %1426 = vmatmul.mubr.f32.gmra.mrb[52].mxu0 %v1187_v42 }
 0x1a7   : > { %1683 = vmatmul.mubr.f32.gmra.mrb[52].mxu1 %v1187_v42  ;;  %1430 = vmatprep.mubr.f32.mxu0 %v1190_v14 }
 0x1a8   : > { %1687 = vmatprep.mubr.f32.mxu1 %v1190_v14 }
 0x1aa   : > { %1431 = vmatmul.mubr.f32.gmra.mrb[54].mxu0 %v1189_v26 }
 0x1ab   : > { %1688 = vmatmul.mubr.f32.gmra.mrb[54].mxu1 %v1189_v26  ;;  %1435 = vmatprep.mubr.f32.mxu0 %v1192_v30 }
 0x1ac   : > { %1692 = vmatprep.mubr.f32.mxu1 %v1192_v30 }
 0x1ae   : > { %1436 = vmatmul.mubr.f32.gmra.mrb[56].mxu0 %v1191_v9 }
 0x1af   : > { %1693 = vmatmul.mubr.f32.gmra.mrb[56].mxu1 %v1191_v9  ;;  %1440 = vmatprep.mubr.f32.mxu0 %v1194_v21 }
 0x1b0   : > { %1697 = vmatprep.mubr.f32.mxu1 %v1194_v21 }
 0x1b2   : > { %1441 = vmatmul.mubr.f32.gmra.mrb[58].mxu0 %v1193_v57 }
 0x1b3   : > { %1698 = vmatmul.mubr.f32.gmra.mrb[58].mxu1 %v1193_v57  ;;  %1445 = vmatprep.mubr.f32.mxu0 %v1196_v7 }
 0x1b4   : > { %1702 = vmatprep.mubr.f32.mxu1 %v1196_v7 }
 0x1b6   : > { %1446 = vmatmul.mubr.f32.gmra.mrb[60].mxu0 %v1195_v49 }
 0x1b7   : > { %1703 = vmatmul.mubr.f32.gmra.mrb[60].mxu1 %v1195_v49  ;;  %1450 = vmatprep.mubr.f32.mxu0 %v1198_v10 }
 0x1b8   : > { %1707 = vmatprep.mubr.f32.mxu1 %v1198_v10 }
 0x1ba   : > { %1451 = vmatmul.mubr.f32.gmra.mrb[62].mxu0 %v1197_v36 }
 0x1bb   : > { %1708 = vmatmul.mubr.f32.gmra.mrb[62].mxu1 %v1197_v36 }
 0x211   : > { %v1297_v50 = vpop.f32.mrb[0].mxu0 }
 0x212   : > { %v1554_v16 = vpop.f32.mrb[0].mxu1  ;;  %v1299_v38 = vpop.f32.mrb[1].mxu0 }
 0x213   : > { %v1713_v60 = vmax.f32 %v1297_v50, %v1554_v16  ;;  %v1556_v25 = vpop.f32.mrb[1].mxu1 }
 0x215   : > { %v1746_v0 = vmul.f32 %v3355_v46, %v1713_v60  ;;  %v1302_v51 = vpop.f32.mrb[2].mxu0 }
 0x216   : > { %v1559_v45 = vpop.f32.mrb[2].mxu1  ;;  %v1304_v40 = vpop.f32.mrb[3].mxu0 }
 0x217   : > { %v1779_v47 = vadd.f32 %v3360_v35, %v1746_v0  ;;  %v1714_v56 = vmax.f32 %v1302_v51, %v1559_v45  ;;  %v1561_v43 = vpop.f32.mrb[3].mxu1 }
 0x219   : > { %1811 = vst [vmem:[%s2296_s19] sm:$0xff] %v1779_v47  ;;  %v1747_v27 = vmul.f32 %v3355_v46, %v1714_v56  ;;  %v1307_v34 = vpop.f32.mrb[4].mxu0 }
 0x21a   : > { %v1564_v13 = vpop.f32.mrb[4].mxu1  ;;  %v1309_v63 = vpop.f32.mrb[5].mxu0 }
 0x21b   : > { %v1780_v59 = vadd.f32 %v3360_v35, %v1747_v27  ;;  %v1715_v48 = vmax.f32 %v1307_v34, %v1564_v13  ;;  %v1566_v32 = vpop.f32.mrb[5].mxu1 }
 0x21d   : > { %1812 = vst [vmem:[%s2296_s19 + $0x8] sm:$0xff] %v1780_v59  ;;  %v1748_v37 = vmul.f32 %v3355_v46, %v1715_v48  ;;  %v1312_v58 = vpop.f32.mrb[6].mxu0 }
 0x21e   : > { %v1569_v12 = vpop.f32.mrb[6].mxu1  ;;  %v1314_v2 = vpop.f32.mrb[7].mxu0 }
 0x21f   : > { %v1781_v52 = vadd.f32 %v3360_v35, %v1748_v37  ;;  %v1716_v39 = vmax.f32 %v1312_v58, %v1569_v12  ;;  %v1571_v28 = vpop.f32.mrb[7].mxu1 }
 0x221   : > { %1813 = vst [vmem:[%s2296_s19 + $0x10] sm:$0xff] %v1781_v52  ;;  %v1749_v61 = vmul.f32 %v3355_v46, %v1716_v39  ;;  %v1317_v41 = vpop.f32.mrb[8].mxu0 }
 0x222   : > { %v1574_v31 = vpop.f32.mrb[8].mxu1  ;;  %v1319_v11 = vpop.f32.mrb[9].mxu0 }
 0x223   : > { %v1782_v1 = vadd.f32 %v3360_v35, %v1749_v61  ;;  %v1717_v54 = vmax.f32 %v1317_v41, %v1574_v31  ;;  %v1576_v55 = vpop.f32.mrb[9].mxu1 }
 0x225   : > { %1814 = vst [vmem:[%s2296_s19 + $0x18] sm:$0xff] %v1782_v1  ;;  %v1750_v23 = vmul.f32 %v3355_v46, %v1717_v54  ;;  %v1322_v3 = vpop.f32.mrb[10].mxu0 }
 0x226   : > { %v1579_v5 = vpop.f32.mrb[10].mxu1  ;;  %v1324_v53 = vpop.f32.mrb[11].mxu0 }
 0x227   : > { %v1783_v8 = vadd.f32 %v3360_v35, %v1750_v23  ;;  %v1718_v62 = vmax.f32 %v1322_v3, %v1579_v5  ;;  %v1581_v29 = vpop.f32.mrb[11].mxu1 }
 0x229   : > { %1815 = vst [vmem:[%s2296_s19 + $0x20] sm:$0xff] %v1783_v8  ;;  %v1751_v44 = vmul.f32 %v3355_v46, %v1718_v62  ;;  %v1327_v15 = vpop.f32.mrb[12].mxu0 }
 0x22a   : > { %v1584_v22 = vpop.f32.mrb[12].mxu1  ;;  %v1329_v20 = vpop.f32.mrb[13].mxu0 }
 0x22b   : > { %v1784_v33 = vadd.f32 %v3360_v35, %v1751_v44  ;;  %v1719_v4 = vmax.f32 %v1327_v15, %v1584_v22  ;;  %v1586_v19 = vpop.f32.mrb[13].mxu1 }
 0x22d   : > { %1816 = vst [vmem:[%s2296_s19 + $0x28] sm:$0xff] %v1784_v33  ;;  %v1752_v18 = vmul.f32 %v3355_v46, %v1719_v4  ;;  %v1332_v24 = vpop.f32.mrb[14].mxu0 }
 0x22e   : > { %v1589_v17 = vpop.f32.mrb[14].mxu1  ;;  %v1334_v6 = vpop.f32.mrb[15].mxu0 }
 0x22f   : > { %v1785_v42 = vadd.f32 %v3360_v35, %v1752_v18  ;;  %v1720_v14 = vmax.f32 %v1332_v24, %v1589_v17  ;;  %v1591_v26 = vpop.f32.mrb[15].mxu1 }
 0x231   : > { %1817 = vst [vmem:[%s2296_s19 + $0x30] sm:$0xff] %v1785_v42  ;;  %v1753_v30 = vmul.f32 %v3355_v46, %v1720_v14  ;;  %v1337_v9 = vpop.f32.mrb[16].mxu0 }
 0x232   : > { %v1594_v21 = vpop.f32.mrb[16].mxu1  ;;  %v1339_v57 = vpop.f32.mrb[17].mxu0 }
 0x233   : > { %v1786_v7 = vadd.f32 %v3360_v35, %v1753_v30  ;;  %v1721_v49 = vmax.f32 %v1337_v9, %v1594_v21  ;;  %v1596_v10 = vpop.f32.mrb[17].mxu1 }
 0x235   : > { %1818 = vst [vmem:[%s2296_s19 + $0x38] sm:$0xff] %v1786_v7  ;;  %v1754_v36 = vmul.f32 %v3355_v46, %v1721_v49  ;;  %v1342_v50 = vpop.f32.mrb[18].mxu0 }
 0x236   : > { %v1599_v16 = vpop.f32.mrb[18].mxu1  ;;  %v1344_v38 = vpop.f32.mrb[19].mxu0 }
 0x237   : > { %v1787_v60 = vadd.f32 %v3360_v35, %v1754_v36  ;;  %v1722_v25 = vmax.f32 %v1342_v50, %v1599_v16  ;;  %v1601_v0 = vpop.f32.mrb[19].mxu1 }
 0x239   : > { %1819 = vst [vmem:[%s2296_s19 + $0x40] sm:$0xff] %v1787_v60  ;;  %v1755_v51 = vmul.f32 %v3355_v46, %v1722_v25  ;;  %v1347_v45 = vpop.f32.mrb[20].mxu0 }
 0x23a   : > { %v1604_v40 = vpop.f32.mrb[20].mxu1  ;;  %v1349_v47 = vpop.f32.mrb[21].mxu0 }
 0x23b   : > { %v1788_v56 = vadd.f32 %v3360_v35, %v1755_v51  ;;  %v1723_v43 = vmax.f32 %v1347_v45, %v1604_v40  ;;  %v1606_v27 = vpop.f32.mrb[21].mxu1 }
 0x23d   : > { %1820 = vst [vmem:[%s2296_s19 + $0x48] sm:$0xff] %v1788_v56  ;;  %v1756_v34 = vmul.f32 %v3355_v46, %v1723_v43  ;;  %v1352_v13 = vpop.f32.mrb[22].mxu0 }
 0x23e   : > { %v1609_v63 = vpop.f32.mrb[22].mxu1  ;;  %v1354_v59 = vpop.f32.mrb[23].mxu0 }
 0x23f   : > { %v1789_v48 = vadd.f32 %v3360_v35, %v1756_v34  ;;  %v1724_v32 = vmax.f32 %v1352_v13, %v1609_v63  ;;  %v1611_v37 = vpop.f32.mrb[23].mxu1 }
 0x241   : > { %1821 = vst [vmem:[%s2296_s19 + $0x50] sm:$0xff] %v1789_v48  ;;  %v1757_v58 = vmul.f32 %v3355_v46, %v1724_v32  ;;  %v1357_v12 = vpop.f32.mrb[24].mxu0 }
 0x242   : > { %v1614_v2 = vpop.f32.mrb[24].mxu1  ;;  %v1359_v52 = vpop.f32.mrb[25].mxu0 }
 0x243   : > { %v1790_v39 = vadd.f32 %v3360_v35, %v1757_v58  ;;  %v1725_v28 = vmax.f32 %v1357_v12, %v1614_v2  ;;  %v1616_v61 = vpop.f32.mrb[25].mxu1 }
 0x245   : > { %1822 = vst [vmem:[%s2296_s19 + $0x58] sm:$0xff] %v1790_v39  ;;  %v1758_v41 = vmul.f32 %v3355_v46, %v1725_v28  ;;  %v1362_v31 = vpop.f32.mrb[26].mxu0 }
 0x246   : > { %v1619_v11 = vpop.f32.mrb[26].mxu1  ;;  %v1364_v1 = vpop.f32.mrb[27].mxu0 }
 0x247   : > { %v1791_v54 = vadd.f32 %v3360_v35, %v1758_v41  ;;  %v1726_v55 = vmax.f32 %v1362_v31, %v1619_v11  ;;  %v1621_v23 = vpop.f32.mrb[27].mxu1 }
 0x249   : > { %1823 = vst [vmem:[%s2296_s19 + $0x60] sm:$0xff] %v1791_v54  ;;  %v1759_v3 = vmul.f32 %v3355_v46, %v1726_v55  ;;  %v1367_v5 = vpop.f32.mrb[28].mxu0 }
 0x24a   : > { %v1624_v53 = vpop.f32.mrb[28].mxu1  ;;  %v1369_v8 = vpop.f32.mrb[29].mxu0 }
 0x24b   : > { %v1792_v62 = vadd.f32 %v3360_v35, %v1759_v3  ;;  %v1727_v29 = vmax.f32 %v1367_v5, %v1624_v53  ;;  %v1626_v44 = vpop.f32.mrb[29].mxu1 }
 0x24d   : > { %1824 = vst [vmem:[%s2296_s19 + $0x68] sm:$0xff] %v1792_v62  ;;  %v1760_v15 = vmul.f32 %v3355_v46, %v1727_v29  ;;  %v1372_v22 = vpop.f32.mrb[30].mxu0 }
 0x24e   : > { %v1629_v20 = vpop.f32.mrb[30].mxu1  ;;  %v1374_v33 = vpop.f32.mrb[31].mxu0 }
 0x24f   : > { %v1793_v4 = vadd.f32 %v3360_v35, %v1760_v15  ;;  %v1728_v19 = vmax.f32 %v1372_v22, %v1629_v20  ;;  %v1631_v18 = vpop.f32.mrb[31].mxu1 }
 0x251   : > { %1825 = vst [vmem:[%s2296_s19 + $0x70] sm:$0xff] %v1793_v4  ;;  %v1761_v24 = vmul.f32 %v3355_v46, %v1728_v19  ;;  %v1377_v17 = vpop.f32.mrb[32].mxu0 }
 0x252   : > { %v1634_v6 = vpop.f32.mrb[32].mxu1  ;;  %v1379_v42 = vpop.f32.mrb[33].mxu0 }
 0x253   : > { %v1794_v14 = vadd.f32 %v3360_v35, %v1761_v24  ;;  %v1729_v26 = vmax.f32 %v1377_v17, %v1634_v6  ;;  %v1636_v30 = vpop.f32.mrb[33].mxu1 }
 0x255   : > { %1826 = vst [vmem:[%s2296_s19 + $0x78] sm:$0xff] %v1794_v14  ;;  %v1762_v9 = vmul.f32 %v3355_v46, %v1729_v26  ;;  %v1382_v21 = vpop.f32.mrb[34].mxu0 }
 0x256   : > { %v1639_v57 = vpop.f32.mrb[34].mxu1  ;;  %v1384_v7 = vpop.f32.mrb[35].mxu0 }
 0x257   : > { %v1795_v49 = vadd.f32 %v3360_v35, %v1762_v9  ;;  %v1730_v10 = vmax.f32 %v1382_v21, %v1639_v57  ;;  %v1641_v36 = vpop.f32.mrb[35].mxu1 }
 0x259   : > { %1827 = vst [vmem:[%s2296_s19 + $0x80] sm:$0xff] %v1795_v49  ;;  %v1763_v50 = vmul.f32 %v3355_v46, %v1730_v10  ;;  %v1387_v16 = vpop.f32.mrb[36].mxu0 }
 0x25a   : > { %v1644_v38 = vpop.f32.mrb[36].mxu1  ;;  %v1389_v60 = vpop.f32.mrb[37].mxu0 }
 0x25b   : > { %v1796_v25 = vadd.f32 %v3360_v35, %v1763_v50  ;;  %v1731_v0 = vmax.f32 %v1387_v16, %v1644_v38  ;;  %v1646_v51 = vpop.f32.mrb[37].mxu1 }
 0x25d   : > { %1828 = vst [vmem:[%s2296_s19 + $0x88] sm:$0xff] %v1796_v25  ;;  %v1764_v45 = vmul.f32 %v3355_v46, %v1731_v0  ;;  %v1392_v40 = vpop.f32.mrb[38].mxu0 }
 0x25e   : > { %v1649_v47 = vpop.f32.mrb[38].mxu1  ;;  %v1394_v56 = vpop.f32.mrb[39].mxu0 }
 0x25f   : > { %v1797_v43 = vadd.f32 %v3360_v35, %v1764_v45  ;;  %v1732_v27 = vmax.f32 %v1392_v40, %v1649_v47  ;;  %v1651_v34 = vpop.f32.mrb[39].mxu1 }
 0x261   : > { %1829 = vst [vmem:[%s2296_s19 + $0x90] sm:$0xff] %v1797_v43  ;;  %v1765_v13 = vmul.f32 %v3355_v46, %v1732_v27  ;;  %v1397_v63 = vpop.f32.mrb[40].mxu0 }
 0x262   : > { %v1654_v59 = vpop.f32.mrb[40].mxu1  ;;  %v1399_v48 = vpop.f32.mrb[41].mxu0 }
 0x263   : > { %v1798_v32 = vadd.f32 %v3360_v35, %v1765_v13  ;;  %v1733_v37 = vmax.f32 %v1397_v63, %v1654_v59  ;;  %v1656_v58 = vpop.f32.mrb[41].mxu1 }
 0x265   : > { %1830 = vst [vmem:[%s2296_s19 + $0x98] sm:$0xff] %v1798_v32  ;;  %v1766_v12 = vmul.f32 %v3355_v46, %v1733_v37  ;;  %v1402_v2 = vpop.f32.mrb[42].mxu0 }
 0x266   : > { %v1659_v52 = vpop.f32.mrb[42].mxu1  ;;  %v1404_v39 = vpop.f32.mrb[43].mxu0 }
 0x267   : > { %v1799_v28 = vadd.f32 %v3360_v35, %v1766_v12  ;;  %v1734_v61 = vmax.f32 %v1402_v2, %v1659_v52  ;;  %v1661_v41 = vpop.f32.mrb[43].mxu1 }
 0x269   : > { %1831 = vst [vmem:[%s2296_s19 + $0xa0] sm:$0xff] %v1799_v28  ;;  %v1767_v31 = vmul.f32 %v3355_v46, %v1734_v61  ;;  %v1407_v11 = vpop.f32.mrb[44].mxu0 }
 0x26a   : > { %v1664_v1 = vpop.f32.mrb[44].mxu1  ;;  %v1409_v54 = vpop.f32.mrb[45].mxu0 }
 0x26b   : > { %v1800_v55 = vadd.f32 %v3360_v35, %v1767_v31  ;;  %v1735_v23 = vmax.f32 %v1407_v11, %v1664_v1  ;;  %v1666_v3 = vpop.f32.mrb[45].mxu1 }
 0x26d   : > { %1832 = vst [vmem:[%s2296_s19 + $0xa8] sm:$0xff] %v1800_v55  ;;  %v1768_v5 = vmul.f32 %v3355_v46, %v1735_v23  ;;  %v1412_v53 = vpop.f32.mrb[46].mxu0 }
 0x26e   : > { %v1669_v8 = vpop.f32.mrb[46].mxu1  ;;  %v1414_v62 = vpop.f32.mrb[47].mxu0 }
 0x26f   : > { %v1801_v29 = vadd.f32 %v3360_v35, %v1768_v5  ;;  %v1736_v44 = vmax.f32 %v1412_v53, %v1669_v8  ;;  %v1671_v15 = vpop.f32.mrb[47].mxu1 }
 0x271   : > { %1833 = vst [vmem:[%s2296_s19 + $0xb0] sm:$0xff] %v1801_v29  ;;  %v1769_v22 = vmul.f32 %v3355_v46, %v1736_v44  ;;  %v1417_v20 = vpop.f32.mrb[48].mxu0 }
 0x272   : > { %v1674_v33 = vpop.f32.mrb[48].mxu1  ;;  %v1419_v4 = vpop.f32.mrb[49].mxu0 }
 0x273   : > { %v1802_v19 = vadd.f32 %v3360_v35, %v1769_v22  ;;  %v1737_v18 = vmax.f32 %v1417_v20, %v1674_v33  ;;  %v1676_v24 = vpop.f32.mrb[49].mxu1 }
 0x275   : > { %1834 = vst [vmem:[%s2296_s19 + $0xb8] sm:$0xff] %v1802_v19  ;;  %v1770_v17 = vmul.f32 %v3355_v46, %v1737_v18  ;;  %v1422_v6 = vpop.f32.mrb[50].mxu0 }
 0x276   : > { %v1679_v42 = vpop.f32.mrb[50].mxu1  ;;  %v1424_v14 = vpop.f32.mrb[51].mxu0 }
 0x277   : > { %v1803_v26 = vadd.f32 %v3360_v35, %v1770_v17  ;;  %v1738_v30 = vmax.f32 %v1422_v6, %v1679_v42  ;;  %v1681_v9 = vpop.f32.mrb[51].mxu1 }
 0x279   : > { %1835 = vst [vmem:[%s2296_s19 + $0xc0] sm:$0xff] %v1803_v26  ;;  %v1771_v21 = vmul.f32 %v3355_v46, %v1738_v30  ;;  %v1427_v57 = vpop.f32.mrb[52].mxu0 }
 0x27a   : > { %v1684_v7 = vpop.f32.mrb[52].mxu1  ;;  %v1429_v49 = vpop.f32.mrb[53].mxu0 }
 0x27b   : > { %v1804_v10 = vadd.f32 %v3360_v35, %v1771_v21  ;;  %v1739_v36 = vmax.f32 %v1427_v57, %v1684_v7  ;;  %v1686_v50 = vpop.f32.mrb[53].mxu1 }
 0x27d   : > { %1836 = vst [vmem:[%s2296_s19 + $0xc8] sm:$0xff] %v1804_v10  ;;  %v1772_v16 = vmul.f32 %v3355_v46, %v1739_v36  ;;  %v1432_v38 = vpop.f32.mrb[54].mxu0 }
 0x27e   : > { %v1689_v60 = vpop.f32.mrb[54].mxu1  ;;  %v1434_v25 = vpop.f32.mrb[55].mxu0 }
 0x27f   : > { %v1805_v0 = vadd.f32 %v3360_v35, %v1772_v16  ;;  %v1740_v51 = vmax.f32 %v1432_v38, %v1689_v60  ;;  %v1691_v45 = vpop.f32.mrb[55].mxu1 }
 0x281   : > { %1837 = vst [vmem:[%s2296_s19 + $0xd0] sm:$0xff] %v1805_v0  ;;  %v1773_v40 = vmul.f32 %v3355_v46, %v1740_v51  ;;  %v1437_v47 = vpop.f32.mrb[56].mxu0 }
 0x282   : > { %v1694_v56 = vpop.f32.mrb[56].mxu1  ;;  %v1439_v43 = vpop.f32.mrb[57].mxu0 }
 0x283   : > { %v1806_v27 = vadd.f32 %v3360_v35, %v1773_v40  ;;  %v1741_v34 = vmax.f32 %v1437_v47, %v1694_v56  ;;  %v1696_v13 = vpop.f32.mrb[57].mxu1 }
 0x285   : > { %1838 = vst [vmem:[%s2296_s19 + $0xd8] sm:$0xff] %v1806_v27  ;;  %v1774_v63 = vmul.f32 %v3355_v46, %v1741_v34  ;;  %v1442_v59 = vpop.f32.mrb[58].mxu0 }
 0x286   : > { %v1699_v48 = vpop.f32.mrb[58].mxu1  ;;  %v1444_v32 = vpop.f32.mrb[59].mxu0 }
 0x287   : > { %v1807_v37 = vadd.f32 %v3360_v35, %v1774_v63  ;;  %v1742_v58 = vmax.f32 %v1442_v59, %v1699_v48  ;;  %v1701_v12 = vpop.f32.mrb[59].mxu1 }
 0x289   : > { %1839 = vst [vmem:[%s2296_s19 + $0xe0] sm:$0xff] %v1807_v37  ;;  %v1775_v2 = vmul.f32 %v3355_v46, %v1742_v58  ;;  %v1447_v52 = vpop.f32.mrb[60].mxu0 }
 0x28a   : > { %v1704_v39 = vpop.f32.mrb[60].mxu1  ;;  %v1449_v28 = vpop.f32.mrb[61].mxu0 }
 0x28b   : > { %v1808_v61 = vadd.f32 %v3360_v35, %v1775_v2  ;;  %v1743_v41 = vmax.f32 %v1447_v52, %v1704_v39  ;;  %v1706_v31 = vpop.f32.mrb[61].mxu1 }
 0x28d   : > { %1840 = vst [vmem:[%s2296_s19 + $0xe8] sm:$0xff] %v1808_v61  ;;  %v1776_v11 = vmul.f32 %v3355_v46, %v1743_v41  ;;  %v1452_v1 = vpop.f32.mrb[62].mxu0 }
 0x28e   : > { %v1709_v54 = vpop.f32.mrb[62].mxu1  ;;  %v1454_v55 = vpop.f32.mrb[63].mxu0 }
 0x28f   : > { %v1809_v23 = vadd.f32 %v3360_v35, %v1776_v11  ;;  %v1744_v3 = vmax.f32 %v1452_v1, %v1709_v54  ;;  %v1711_v5 = vpop.f32.mrb[63].mxu1 }
 0x291   : > { %1841 = vst [vmem:[%s2296_s19 + $0xf0] sm:$0xff] %v1809_v23  ;;  %v1777_v53 = vmul.f32 %v3355_v46, %v1744_v3 }
 0x293   : > { %v1810_v8 = vadd.f32 %v3360_v35, %v1777_v53 }
 0x295   : > { %1842 = vst [vmem:[%s2296_s19 + $0xf8] sm:$0xff] %v1810_v8 }
 0x296 PF: > { %s17_s28 = sadd.s32 1, %s2205_s28   ;;  %s3522_s24 = smov %s2197_s26 }
 0x297   : > { %p14_p12 = scmp.ge.s32.totalorder %s17_s28, 10   ;;  %s3523_s25 = smov %s2201_s27 }
 0x298   : > { %s3524_s26 = smov %s3527_s29  ;;  %s3525_s27 = smov %s3531_s30 }
 0x299   :  { %16 = sbr.rel (!%p14_p12) target bundleno = 3 (0x3), region = 109 }

// kernel: _lambda_.7
= control target key start
LH: loop header
LB: loop body
LE: loop exit
PB: predicated region body
PF: predicated region fallthrough
CT: control target
= control target key end

     0   :  { %s2678_s24 = smov 0   ;;  %s2680_s25 = smov 0   ;;  %s4057_s0 = inlined_call_operand.vmem [shape: f32[2,128,1024], index: 0, kind: input, shape index: {}]   ;;  %s4058_s1 = inlined_call_operand.vmem [shape: f32[9,8,1024], index: 1, kind: input, shape index: {}]   ;;  %s4059_s2 = inlined_call_operand.vmem [shape: f32[8,128], index: 2, kind: input, shape index: {}]   ;;  %s4060_s3 = inlined_call_operand.vmem [shape: f32[128,64], index: 3, kind: input, shape index: {}]   ;;  %s4061_s4 = inlined_call_operand.vmem [shape: f32[128,64], index: 4, kind: input, shape index: {}]   ;;  %s4062_s5 = inlined_call_operand.vmem [shape: f32[1,8,64], index: 5, kind: input, shape index: {}]   ;;  %s4063_s6 = inlined_call_operand.vmem [shape: f32[1,8,64], index: 6, kind: input, shape index: {}]   ;;  %s4064_s7 = inlined_call_operand.vmem [shape: f32[2,64,8,64], index: 7, kind: output, shape index: {}]  }
   0x1   :  { %s2682_s26 = smov 0   ;;  %s2684_s27 = smov 0  }
   0x2   :  { %s2686_s28 = smov 0  }
   0x3 LB: > { %s26_s29 = sadd.s32 1, %s2622_s26  ;;  %s29_s30 = sadd.s32 1, %s2626_s27  ;;  %s2630_s28 = sphi %s2686_s28, %s17_s28   ;;  %s2626_s27 = sphi %s2684_s27, %s4132_s27   ;;  %s2622_s26 = sphi %s2682_s26, %s4131_s26   ;;  %s2618_s25 = sphi %s2680_s25, %s4130_s25   ;;  %s2614_s24 = sphi %s2678_s24, %s4129_s24  }
   0x4   : > { %p27_p0 = scmp.ge.s32.totalorder %s26_s29, 2  ;;  %p2129_p1 = scmp.ge.s32.totalorder %s2630_s28, 1 }
   0x5   : > { %p251_p2 = scmp.lt.s32.totalorder %s2630_s28, 5 }
   0x6   : > { %s4134_s29 = smov (%p27_p0, %s26_s29), 0  ;;  %s4136_s30 = smov (!%p27_p0, %s29_s30), %s2626_s27 }
   0x7   : > { %p252_p3 = pnand %p2129_p1, %p251_p2  ;;  %p31_p4 = scmp.ge.s32.totalorder %s4136_s30, 2 }
   0x8   : > { %p287_p5 = scmp.lt.s32.totalorder (!%p252_p3), %s2618_s25, 1  ;;  %s2708_s8 = sshll.u32 (!%p252_p3), %s2614_s24, 5 }
   0x9   : > { %s4138_s30 = smov (%p31_p4, %s4136_s30), 0  ;;  %255 = sbr.rel (%p252_p3) target bundleno = 593 (0x251), region = 48 }
   0xa   : > { %p295_p6 = scmp.lt.s32.totalorder (!%p252_p3), %s2708_s8, 63  ;;  %s2722_s20 = smov (!%p252_p3), 0  }
  0x10   : > { %s4140_s25 = smov (!%p287_p5, %s2618_s25), 1 }
  0x11   : > { %s296_s9 = scalar_select %p295_p6, %s2708_s8, 63 }
  0x12   : > { %s2213_s10 = sshll.u32 %s4140_s25, 10  ;;  %s2133_s11 = sshll.u32 %s4140_s25, 6 }
  0x13   : > { %s2715_s14 = scalar_lea.vmem %s4057_s0, %s2213_s10  ;;  %s298_s15 = sadd.s32 %s2133_s11, %s296_s9 }
  0x14   : > { %s2134_s16 = sshll.u32 %s298_s15, 3 }
  0x15   : > { %s2720_s19 = scalar_lea.vmem %s4064_s7, %s2134_s16 }
  0x16 LB: >> { %v342_v0 = vlaneseq  ;;  %s309_s21 = sadd.s32 %s2634_s20, %s2708_s8  ;;  %s2636_s18 = smov 1   ;;  %v2143_v59 = vld [vmem:[%s4058_s1 + $0x48] sm:$0xff]  ;;  %s2634_s20 = sphi %s2722_s20, %s308_s20  }
  0x17   : >> { %s2729_s22 = sshll.u32 %s309_s21, 1  ;;  %v475_v62 = vld [vmem:[%s4058_s1 + $0x8] sm:$0xff] }
  0x18   : >> { %v343_v1 = vshrl.u32 %v342_v0, 7  ;;  %s330_s23 = sshra.s32 %s2729_s22, 3  ;;  %s333_s24 = sand.u32 7, %s2729_s22  ;;  %v2966_v58 = vand.u32 127, %v342_v0  ;;  %v2144_v0 = vld [vmem:[%s4058_s1 + $0x50] sm:$0xff] }
  0x19   : >> { %s2215_s25 = sshll.u32 %s330_s23, 6  ;;  %s2137_s9 = sadd.s32 4294967295, %s2729_s22 }
  0x1a   : >> { %s336_s10 = sadd.s32 %s2215_s25, %s333_s24  ;;  %p312_p7 = scmp.gt.s32.totalorder %s2137_s9, 0  ;;  %v2736_v2 = vsub.s32 0, %v343_v1  ;;  %v2738_v3 = vsub.s32 1, %v343_v1  ;;  %v2742_v7 = vsub.s32 3, %v343_v1  ;;  %v2744_v8 = vsub.s32 2, %v343_v1 }
  0x1b   : >> { %s337_s11 = scalar_lea.vmem %s2715_s14, %s336_s10  ;;  %p325_p8 = scmp.ge.s32.totalorder %s2137_s9, 0  ;;  %v2788_v22 = vsub.s32 5, %v343_v1  ;;  %v2790_v23 = vsub.s32 4, %v343_v1  ;;  %v372_v24 = vsub.s32 7, %v343_v1  ;;  %v2792_v25 = vsub.s32 6, %v343_v1 }
  0x1c   : >> { %v338_v4 = vld [vmem:[%s337_s11] ss:$8 sm:$0xf]  ;;  %s4142_s9 = smov (!%p312_p7, %s2137_s9), 0  ;;  %s1061_s24 = sadd.s32 2, %s2729_s22  ;;  %vm400_vm0 = vcmp.lt.s32.totalorder %v2966_v58, 1 }
  0x1d   : >> { %v339_v5 = vld [vmem:[%s337_s11] ss:$8 sm:$0xf0]  ;;  %s326_s12 = scalar_select %p325_p8, 1, 0  ;;  %vm635_vm1 = vcmp.lt.s32.totalorder %v2966_v58, 127 }
  0x1e   : >> { %v2740_v6 = vor.u32 %v339_v5, %v338_v4  ;;  %s314_s13 = sshra.s32 %s4142_s9, 3  ;;  %s317_s15 = sand.u32 7, %s4142_s9  ;;  %v2145_v4 = vld [vmem:[%s4058_s1 + $0x58] sm:$0xff] }
  0x1f   : >> { %s2214_s16 = sshll.u32 %s314_s13, 6  ;;  %s327_s17 = scvt.s32.f32 %s326_s12 }
  0x20   : >> { %v2748_v9 = vrot.slane %v2740_v6, %v2738_v3  ;;  %v2752_v10 = vrot.slane %v2740_v6, %v2736_v2  ;;  %v2760_v11 = vrot.slane %v2740_v6, %v2742_v7  ;;  %v2764_v12 = vrot.slane %v2740_v6, %v2744_v8  ;;  %s320_s21 = sadd.s32 %s2214_s16, %s317_s15  ;;  %p1062_p9 = scmp.lt.s32.totalorder %s1061_s24, 127 }
  0x21   : >> { %s321_s23 = scalar_lea.vmem %s2715_s14, %s320_s21  ;;  %v328_v15 = vstv %s327_s17  ;;  %p1075_p10 = scmp.le.s32.totalorder %s1061_s24, 127  ;;  %v2816_v35 = vrot.slane %v2740_v6, %v2788_v22  ;;  %v2824_v36 = vrot.slane %v2740_v6, %v2790_v23  ;;  %v2852_v44 = vrot.slane %v2740_v6, %v372_v24 }
  0x22   : >> { %452 = vrot.lane.b32.xlu1 %v2748_v9, %s2636_s18  ;;  %450 = vrot.lane.b32.xlu0 %v2752_v10, %s2636_s18  ;;  %v322_v13 = vld [vmem:[%s321_s23] ss:$8 sm:$0xf]  ;;  %s1063_s25 = scalar_select %p1062_p9, %s1061_s24, 127  ;;  %v2856_v45 = vrot.slane %v2740_v6, %v2792_v25  ;;  %v604_v1 = vmul.f32 %v2143_v59, %v2748_v9 }
  0x23   : >> { %v323_v14 = vld [vmem:[%s321_s23] ss:$8 sm:$0xf0]  ;;  %s1076_s15 = scalar_select %p1075_p10, 1, 0 }
  0x24   : >> { %v324_v16 = vor.u32 %v323_v14, %v322_v13  ;;  %s1064_s9 = sshra.s32 %s1063_s25, 3  ;;  %s1067_s10 = sand.u32 7, %s1063_s25  ;;  %v477_v13 = vld [vmem:[%s4058_s1 + $0x18] sm:$0xff]  ;;  %v605_v14 = vmul.f32 %v2144_v0, %v2764_v12 }
  0x25   : >> { %s2217_s11 = sshll.u32 %s1064_s9, 6  ;;  %s1077_s16 = scvt.s32.f32 %s1076_s15 }
  0x26   : >> { %456 = vrot.lane.b32.xlu1 %v2760_v11, %s2636_s18  ;;  %454 = vrot.lane.b32.xlu0 %v2764_v12, %s2636_s18  ;;  %v329_v17 = vmul.f32 %v328_v15, %v324_v16  ;;  %s1070_s12 = sadd.s32 %s2217_s11, %s1067_s10  ;;  %s773_s17 = sadd.s32 1, %s2729_s22 }
  0x27   : >> { %s1071_s13 = scalar_lea.vmem %s2715_s14, %s1070_s12  ;;  %v1078_v33 = vstv %s1077_s16  ;;  %s774_s21 = sshra.s32 %s773_s17, 3 }
  0x28   : >> { %v2773_v18 = vrot.slane %v329_v17, %v2744_v8  ;;  %v2776_v19 = vrot.slane %v329_v17, %v2736_v2  ;;  %v2783_v20 = vrot.slane %v329_v17, %v2742_v7  ;;  %v2786_v21 = vrot.slane %v329_v17, %v2738_v3  ;;  %v1072_v28 = vld [vmem:[%s1071_s13] ss:$8 sm:$0xf]  ;;  %s777_s22 = sand.u32 7, %s773_s17  ;;  %s2216_s23 = sshll.u32 %s774_s21, 6 }
  0x29   : >> { %v2800_v26 = vrot.slane %v329_v17, %v2788_v22  ;;  %v2803_v27 = vrot.slane %v329_v17, %v2790_v23  ;;  %v1073_v29 = vld [vmem:[%s1071_s13] ss:$8 sm:$0xf0]  ;;  %v2809_v31 = vrot.slane %v329_v17, %v372_v24  ;;  %v2812_v32 = vrot.slane %v329_v17, %v2792_v25  ;;  %s780_s24 = sadd.s32 %s2216_s23, %s777_s22  ;;  %s2637_s25 = smov 127  }
  0x2a   : >> { %386 = vrot.lane.b32.xlu1 %v2773_v18, %s2636_s18  ;;  %382 = vrot.lane.b32.xlu0 %v2776_v19, %s2636_s18  ;;  %v1074_v30 = vor.u32 %v1073_v29, %v1072_v28  ;;  %s781_s9 = scalar_lea.vmem %s2715_s14, %s780_s24  ;;  %s2210_s17 = sshll.u32 %s2634_s20, 3 }
  0x2b   : >> { %v782_v46 = vld [vmem:[%s781_s9] ss:$8 sm:$0xf]  ;;  %s1375_s21 = scalar_lea.vmem [#allocation2], %s2210_s17  ;;  %s308_s20 = sadd.s32 1, %s2634_s20  }
  0x2c   : >> { %v1079_v34 = vmul.f32 %v1078_v33, %v1074_v30  ;;  %v783_v47 = vld [vmem:[%s781_s9] ss:$8 sm:$0xf0]  ;;  %p305_p11 = scmp.ge.s32.totalorder %s308_s20, 32  }
  0x2d   : >> { %v784_v48 = vor.u32 %v783_v47, %v782_v46  ;;  %v589_v46 = vmul.f32 %v2144_v0, %v2773_v18  ;;  %vm1989_vm2 = vcmask (%p305_p11), 523264  }
  0x2e   : >> { %388 = vrot.lane.b32.xlu1 %v2783_v20, %s2636_s18  ;;  %384 = vrot.lane.b32.xlu0 %v2786_v21, %s2636_s18  ;;  %v2827_v37 = vrot.slane %v1079_v34, %v2738_v3  ;;  %v2829_v38 = vrot.slane %v1079_v34, %v372_v24  ;;  %v2832_v39 = vrot.slane %v1079_v34, %v2744_v8 }
  0x2f   : >> { %v2835_v40 = vrot.slane %v1079_v34, %v2742_v7  ;;  %v2838_v41 = vrot.slane %v1079_v34, %v2790_v23  ;;  %v2841_v42 = vrot.slane %v1079_v34, %v2788_v22  ;;  %v2845_v43 = vrot.slane %v1079_v34, %v2792_v25 }
  0x30   : >> { %4087 = vst [vmem:[#allocation3_spill] sm:$0xff] %v2827_v37  ;;  %4088 = vst [vmem:[#allocation4_spill] sm:$0xff] %v2829_v38  ;;  %v2880_v49 = vrot.slane %v784_v48, %v2738_v3  ;;  %v2883_v50 = vrot.slane %v784_v48, %v2736_v2  ;;  %v2889_v51 = vrot.slane %v784_v48, %v372_v24 }
  0x31   : >> { %4089 = vst [vmem:[#allocation5_spill] sm:$0xff] %v2832_v39  ;;  %4090 = vst [vmem:[#allocation6_spill] sm:$0xff] %v2835_v40  ;;  %v2896_v52 = vrot.slane %v784_v48, %v2744_v8  ;;  %v2907_v53 = vrot.slane %v784_v48, %v2742_v7  ;;  %v2922_v54 = vrot.slane %v784_v48, %v2790_v23  ;;  %v476_v8 = vld [vmem:[%s4058_s1 + $0x10] sm:$0xff] }
  0x32   : >> { %392 = vrot.lane.b32.xlu1 %v2800_v26, %s2636_s18  ;;  %390 = vrot.lane.b32.xlu0 %v2803_v27, %s2636_s18  ;;  %4091 = vst [vmem:[#allocation7_spill] sm:$0xff] %v2838_v41  ;;  %4092 = vst [vmem:[#allocation8_spill] sm:$0xff] %v2841_v42  ;;  %v2929_v55 = vrot.slane %v1079_v34, %v2736_v2  ;;  %v2940_v56 = vrot.slane %v784_v48, %v2788_v22 }
  0x33   : >> { %4093 = vst [vmem:[#allocation9_spill] sm:$0xff] %v2845_v43  ;;  %4094 = vst [vmem:[#allocation10_spill] sm:$0xff] %v2889_v51  ;;  %v2951_v57 = vrot.slane %v784_v48, %v2792_v25  ;;  %v606_v22 = vmul.f32 %v2145_v4, %v2760_v11 }
  0x34   : >> { %4095 = vst [vmem:[#allocation11_spill] sm:$0xff] %v2929_v55  ;;  %4096 = vst [vmem:[#allocation12_spill] sm:$0xff] %v2940_v56 }
  0x35   : >> { %4097 = vst [vmem:[#allocation13_spill] sm:$0xff] %v2951_v57 }
  0x36   : >> { %396 = vrot.lane.b32.xlu1 %v2809_v31, %s2636_s18  ;;  %394 = vrot.lane.b32.xlu0 %v2812_v32, %s2636_s18 }
  0x3a   : >> { %460 = vrot.lane.b32.xlu1 %v2816_v35, %s2636_s18  ;;  %458 = vrot.lane.b32.xlu0 %v2824_v36, %s2636_s18 }
  0x3e   : >> { %464 = vrot.lane.b32.xlu1 %v2852_v44, %s2636_s18  ;;  %462 = vrot.lane.b32.xlu0 %v2856_v45, %s2636_s18 }
  0x42   : >> { %621 = vrot.lane.b32.xlu1 %v2786_v21, %s2637_s25  ;;  %619 = vrot.lane.b32.xlu0 %v2776_v19, %s2637_s25 }
  0x46   : >> { %644 = vrot.lane.b32.xlu1 %v2752_v10, %s2637_s25  ;;  %623 = vrot.lane.b32.xlu0 %v2773_v18, %s2637_s25 }
  0x4a   : >> { %648 = vrot.lane.b32.xlu1 %v2764_v12, %s2637_s25  ;;  %646 = vrot.lane.b32.xlu0 %v2748_v9, %s2637_s25 }
  0x4e   : >> { %650 = vrot.lane.b32.xlu1 %v2760_v11, %s2637_s25  ;;  %625 = vrot.lane.b32.xlu0 %v2783_v20, %s2637_s25 }
  0x52   : >> { %828 = vrot.lane.b32.xlu1 %v2880_v49, %s2636_s18  ;;  %826 = vrot.lane.b32.xlu0 %v2883_v50, %s2636_s18 }
  0x56   : >> { %627 = vrot.lane.b32.xlu1 %v2803_v27, %s2637_s25  ;;  %840 = vrot.lane.b32.xlu0 %v2889_v51, %s2636_s18 }
  0x5a   : >> { %830 = vrot.lane.b32.xlu1 %v2896_v52, %s2636_s18  ;;  %652 = vrot.lane.b32.xlu0 %v2824_v36, %s2637_s25 }
  0x5e   : >> { %654 = vrot.lane.b32.xlu1 %v2816_v35, %s2637_s25  ;;  %629 = vrot.lane.b32.xlu0 %v2800_v26, %s2637_s25 }
  0x62   : >> { %964 = vrot.lane.b32.xlu1 %v2883_v50, %s2637_s25  ;;  %832 = vrot.lane.b32.xlu0 %v2907_v53, %s2636_s18 }
  0x66   : >> { %968 = vrot.lane.b32.xlu1 %v2896_v52, %s2637_s25  ;;  %966 = vrot.lane.b32.xlu0 %v2880_v49, %s2637_s25 }
  0x6a   : >> { %656 = vrot.lane.b32.xlu1 %v2856_v45, %s2637_s25  ;;  %631 = vrot.lane.b32.xlu0 %v2812_v32, %s2637_s25 }
  0x6e   : >> { %970 = vrot.lane.b32.xlu1 %v2907_v53, %s2637_s25  ;;  %834 = vrot.lane.b32.xlu0 %v2922_v54, %s2636_s18 }
  0x72   : >> { %1123 = vrot.lane.b32.xlu1 %v2827_v37, %s2636_s18  ;;  %1121 = vrot.lane.b32.xlu0 %v2929_v55, %s2636_s18 }
  0x76   : >> { %633 = vrot.lane.b32.xlu1 %v2809_v31, %s2637_s25  ;;  %1135 = vrot.lane.b32.xlu0 %v2829_v38, %s2636_s18 }
  0x7a   : >> { %836 = vrot.lane.b32.xlu1 %v2940_v56, %s2636_s18  ;;  %658 = vrot.lane.b32.xlu0 %v2852_v44, %s2637_s25 }
  0x7e   : >> { %1125 = vrot.lane.b32.xlu1 %v2832_v39, %s2636_s18  ;;  %972 = vrot.lane.b32.xlu0 %v2922_v54, %s2637_s25 }
  0x82   : >> { %974 = vrot.lane.b32.xlu1 %v2940_v56, %s2637_s25  ;;  %838 = vrot.lane.b32.xlu0 %v2951_v57, %s2636_s18 }
  0x86   : >> { %1259 = vrot.lane.b32.xlu1 %v2929_v55, %s2637_s25  ;;  %1127 = vrot.lane.b32.xlu0 %v2835_v40, %s2636_s18 }
  0x8a   : >> { %1263 = vrot.lane.b32.xlu1 %v2832_v39, %s2637_s25  ;;  %1261 = vrot.lane.b32.xlu0 %v2827_v37, %s2637_s25 }
  0x8e   : >> { %1129 = vrot.lane.b32.xlu1 %v2838_v41, %s2636_s18  ;;  %976 = vrot.lane.b32.xlu0 %v2951_v57, %s2637_s25 }
  0x92   : >> { %978 = vrot.lane.b32.xlu1 %v2889_v51, %s2637_s25  ;;  %1265 = vrot.lane.b32.xlu0 %v2835_v40, %s2637_s25 }
  0x94   : >> { %v453_v60 = vpop.permute.xlu1 %452  ;;  %v2980_v61 = vpop.permute.xlu0 %450 }
  0x95   : >> { %v472_v63 = vsel %vm400_vm0, %v2980_v61, %v453_v60 }
  0x96   : >> { %v2993_v3 = vrot.slane %v472_v63, %v2736_v2  ;;  %1267 = vrot.lane.b32.xlu1 %v2838_v41, %s2637_s25  ;;  %1131 = vrot.lane.b32.xlu0 %v2841_v42, %s2636_s18 }
  0x98   : >> { %v563_v5 = vmul.f32 %v2993_v3, %v475_v62  ;;  %v3003_v6 = vpop.permute.xlu1 %456  ;;  %v455_v7 = vpop.permute.xlu0 %454 }
  0x99   : >> { %v470_v15 = vsel %vm400_vm0, %v455_v7, %v3003_v6  ;;  %v471_v16 = vsel %vm400_vm0, %v453_v60, %v455_v7  ;;  %v590_v60 = vmul.f32 %v2145_v4, %v2783_v20  ;;  %v588_v7 = vmul.f32 %v2143_v59, %v2786_v21  ;;  %v2147_v4 = vld [vmem:[%s4058_s1 + $0x68] sm:$0xff]  ;;  %v2142_v21 = vld [vmem:[%s4058_s1 + $0x40] sm:$0xff] }
  0x9a   : >> { %v3017_v17 = vadd.f32 %v604_v1, %v563_v5  ;;  %v3021_v23 = vrot.slane %v471_v16, %v2736_v2  ;;  %v3024_v24 = vrot.slane %v470_v15, %v2736_v2  ;;  %1269 = vrot.lane.b32.xlu1 %v2841_v42, %s2637_s25  ;;  %1133 = vrot.lane.b32.xlu0 %v2845_v43, %s2636_s18 }
  0x9c   : >> { %v564_v25 = vmul.f32 %v3021_v23, %v476_v8  ;;  %v565_v28 = vmul.f32 %v3024_v24, %v477_v13  ;;  %v387_v29 = vpop.permute.xlu1 %386  ;;  %v383_v30 = vpop.permute.xlu0 %382 }
  0x9e   : >> { %v3032_v33 = vadd.f32 %v605_v14, %v564_v25  ;;  %v3034_v34 = vadd.f32 %v606_v22, %v565_v28  ;;  %1273 = vrot.lane.b32.xlu1 %v2829_v38, %s2637_s25  ;;  %1271 = vrot.lane.b32.xlu0 %v2845_v43, %s2637_s25  ;;  %v2146_v14 = vld [vmem:[%s4058_s1 + $0x60] sm:$0xff] }
  0x9f   : >> { %v591_v59 = vmul.f32 %v2146_v14, %v2803_v27  ;;  %v479_v27 = vld [vmem:[%s4058_s1 + $0x28] sm:$0xff] }
  0xa0   : >> { %v389_v47 = vpop.permute.xlu1 %388  ;;  %v385_v48 = vpop.permute.xlu0 %384 }
  0xa1   : >> { %v405_v63 = vsel %vm400_vm0, %v387_v29, %v389_v47  ;;  %v406_v1 = vsel %vm400_vm0, %v385_v48, %v387_v29  ;;  %v407_v5 = vsel %vm400_vm0, %v383_v30, %v385_v48  ;;  %v478_v29 = vld [vmem:[%s4058_s1 + $0x20] sm:$0xff] }
  0xa2   : >> { %v497_v18 = vrot.slane %v405_v63, %v2736_v2  ;;  %v489_v0 = vrot.slane %v407_v5, %v2736_v2  ;;  %v493_v20 = vrot.slane %v406_v1, %v2736_v2  ;;  %v592_v5 = vmul.f32 %v2147_v4, %v2800_v26  ;;  %v480_v26 = vld [vmem:[%s4058_s1 + $0x30] sm:$0xff] }
  0xa4   : >> { %v517_v15 = vmul.f32 %v497_v18, %v477_v13  ;;  %v515_v16 = vmul.f32 %v489_v0, %v475_v62  ;;  %v516_v22 = vmul.f32 %v493_v20, %v476_v8  ;;  %v393_v25 = vpop.permute.xlu1 %392  ;;  %v391_v28 = vpop.permute.xlu0 %390  ;;  %v2148_v18 = vld [vmem:[%s4058_s1 + $0x70] sm:$0xff] }
  0xa5   : >> { %v403_v48 = vsel %vm400_vm0, %v391_v28, %v393_v25  ;;  %v404_v13 = vsel %vm400_vm0, %v389_v47, %v391_v28  ;;  %v593_v28 = vmul.f32 %v2148_v18, %v2812_v32 }
  0xa6   : >> { %v3069_v62 = vadd.f32 %v590_v60, %v517_v15  ;;  %v3071_v8 = vadd.f32 %v588_v7, %v515_v16  ;;  %v3073_v63 = vadd.f32 %v589_v46, %v516_v22  ;;  %v501_v1 = vrot.slane %v404_v13, %v2736_v2  ;;  %v474_v15 = vld [vmem:[%s4058_s1] sm:$0xff] }
  0xa7   : >> { %v505_v47 = vrot.slane %v403_v48, %v2736_v2  ;;  %v587_v60 = vmul.f32 %v2142_v21, %v2776_v19 }
  0xa8   : >> { %v518_v7 = vmul.f32 %v501_v1, %v478_v29  ;;  %v397_v0 = vpop.permute.xlu1 %396  ;;  %v395_v46 = vpop.permute.xlu0 %394 }
  0xa9   : >> { %v519_v20 = vmul.f32 %v505_v47, %v479_v27  ;;  %v408_v16 = vsel %vm400_vm0, %v397_v0, %v383_v30  ;;  %v3095_v22 = vsel %vm400_vm0, %v395_v46, %v397_v0  ;;  %v402_v19 = vsel %vm400_vm0, %v393_v25, %v395_v46 }
  0xaa   : >> { %v3100_v48 = vadd.f32 %v591_v59, %v518_v7  ;;  %v485_v13 = vrot.slane %v408_v16, %v2736_v2  ;;  %v509_v1 = vrot.slane %v402_v19, %v2736_v2  ;;  %v607_v7 = vmul.f32 %v2146_v14, %v2824_v36 }
  0xab   : >> { %v3104_v30 = vadd.f32 %v592_v5, %v519_v20  ;;  %v608_v5 = vmul.f32 %v2147_v4, %v2816_v35  ;;  %v603_v4 = vmul.f32 %v2142_v21, %v2752_v10  ;;  %v2150_v21 = vld [vmem:[%s4058_s1 + $0x80] sm:$0xff] }
  0xac   : >> { %v514_v47 = vmul.f32 %v485_v13, %v474_v15  ;;  %v520_v43 = vmul.f32 %v509_v1, %v480_v26  ;;  %v461_v42 = vpop.permute.xlu1 %460  ;;  %v459_v38 = vpop.permute.xlu0 %458 }
  0xad   : >> { %v468_v0 = vsel %vm400_vm0, %v459_v38, %v461_v42  ;;  %v469_v25 = vsel %vm400_vm0, %v3003_v6, %v459_v38 }
  0xae   : >> { %v595_v32 = vadd.f32 %v587_v60, %v514_v47  ;;  %v3111_v59 = vadd.f32 %v593_v28, %v520_v43  ;;  %v3115_v46 = vrot.slane %v469_v25, %v2736_v2  ;;  %v3119_v20 = vrot.slane %v468_v0, %v2736_v2 }
  0xb0   : >> { %4098 = vst [vmem:[#allocation14_spill] sm:$0xff] %v3111_v59  ;;  %v566_v16 = vmul.f32 %v3115_v46, %v478_v29  ;;  %v465_v19 = vpop.permute.xlu1 %464  ;;  %v463_v13 = vpop.permute.xlu0 %462  ;;  %v567_v38 = vmul.f32 %v3119_v20, %v479_v27  ;;  %v609_v27 = vmul.f32 %v2148_v18, %v2856_v45 }
  0xb1   : >> { %v473_v43 = vsel %vm400_vm0, %v465_v19, %v2980_v61  ;;  %v3129_v6 = vsel %vm400_vm0, %v463_v13, %v465_v19  ;;  %v467_v60 = vsel %vm400_vm0, %v461_v42, %v463_v13 }
  0xb2   : >> { %v3131_v14 = vadd.f32 %v607_v7, %v566_v16  ;;  %v533_v29 = vrot.slane %v473_v43, %v2736_v2  ;;  %v3137_v28 = vadd.f32 %v608_v5, %v567_v38  ;;  %v3141_v1 = vrot.slane %v467_v60, %v2736_v2  ;;  %v2151_v38 = vld [vmem:[%s4058_s1 + $0x88] sm:$0xff] }
  0xb4   : >> { %4099 = vst [vmem:[#allocation15_spill] sm:$0xff] %v3141_v1  ;;  %v562_v61 = vmul.f32 %v533_v29, %v474_v15  ;;  %v622_v47 = vpop.permute.xlu1 %621  ;;  %v3143_v0 = vpop.permute.xlu0 %619  ;;  %v568_v25 = vmul.f32 %v3141_v1, %v480_v26  ;;  %v3156_v15 = vld [vmem:[%s4058_s1 + $0xc0] sm:$0xff] }
  0xb5   : >> { %v642_v42 = vsel %vm635_vm1, %v3143_v0, %v622_v47  ;;  %v3163_v26 = vld [vmem:[%s4058_s1 + $0x100] sm:$0xff]  ;;  %v859_v60 = vmul.f32 %v3156_v15, %v533_v29 }
  0xb6   : >> { %v611_v7 = vadd.f32 %v603_v4, %v562_v61  ;;  %v680_v18 = vrot.slane %v642_v42, %v2736_v2  ;;  %v3158_v5 = vadd.f32 %v609_v27, %v568_v25  ;;  %v2161_v4 = vld [vmem:[%s4058_s1 + $0xc8] sm:$0xff]  ;;  %v932_v42 = vmul.f32 %v3163_v26, %v2752_v10 }
  0xb7   : >> { %v2169_v25 = vld [vmem:[%s4058_s1 + $0x108] sm:$0xff]  ;;  %v860_v57 = vmul.f32 %v2161_v4, %v2993_v3 }
  0xb8   : >> { %4100 = vst [vmem:[#allocation16_spill] sm:$0xff] %v3158_v5  ;;  %v709_v16 = vmul.f32 %v2150_v21, %v680_v18  ;;  %v3165_v19 = vpop.permute.xlu1 %644  ;;  %v624_v13 = vpop.permute.xlu0 %623  ;;  %v933_v39 = vmul.f32 %v2169_v25, %v2748_v9  ;;  %v3198_v3 = vld [vmem:[%s4058_s1 + $0x148] sm:$0xff] }
  0xb9   : >> { %4101 = vst [vmem:[#allocation17_spill] sm:$0xff] %v3165_v19  ;;  %v641_v43 = vsel %vm635_vm1, %v622_v47, %v624_v13 }
  0xba   : >> { %v717_v27 = vadd.f32 %v709_v16, %v595_v32  ;;  %v684_v61 = vrot.slane %v641_v43, %v2736_v2  ;;  %v3187_v32 = vld [vmem:[%s4058_s1 + $0x140] sm:$0xff] }
  0xbc   : >> { %v867_v18 = vadd.f32 %v859_v60, %v717_v27  ;;  %v710_v41 = vmul.f32 %v2151_v38, %v684_v61  ;;  %v649_v40 = vpop.permute.xlu1 %648  ;;  %v647_v47 = vpop.permute.xlu0 %646 }
  0xbd   : >> { %v665_v29 = vsel %vm635_vm1, %v647_v47, %v649_v40  ;;  %v666_v10 = vsel %vm635_vm1, %v3165_v19, %v647_v47 }
  0xbe   : >> { %v718_v16 = vadd.f32 %v710_v41, %v3071_v8  ;;  %v728_v9 = vrot.slane %v666_v10, %v2736_v2  ;;  %v732_v43 = vrot.slane %v665_v29, %v2736_v2  ;;  %v940_v60 = vadd.f32 %v932_v42, %v867_v18 }
  0xc0   : >> { %v868_v27 = vadd.f32 %v860_v57, %v718_v16  ;;  %v757_v61 = vmul.f32 %v2150_v21, %v728_v9  ;;  %v758_v56 = vmul.f32 %v2151_v38, %v732_v43  ;;  %v997_v51 = vmul.f32 %v3187_v32, %v728_v9  ;;  %v651_v55 = vpop.permute.xlu1 %650  ;;  %v626_v37 = vpop.permute.xlu0 %625  ;;  %v2152_v57 = vld [vmem:[%s4058_s1 + $0x90] sm:$0xff] }
  0xc1   : >> { %v998_v47 = vmul.f32 %v3198_v3, %v732_v43  ;;  %v664_v41 = vsel %vm635_vm1, %v649_v40, %v651_v55  ;;  %v640_v8 = vsel %vm635_vm1, %v624_v13, %v626_v37  ;;  %v2162_v40 = vld [vmem:[%s4058_s1 + $0xd0] sm:$0xff] }
  0xc2   : >> { %v941_v5 = vadd.f32 %v933_v39, %v868_v27  ;;  %v765_v10 = vadd.f32 %v757_v61, %v611_v7  ;;  %v766_v29 = vadd.f32 %v758_v56, %v3017_v17  ;;  %v1005_v42 = vadd.f32 %v997_v51, %v940_v60  ;;  %v2170_v39 = vld [vmem:[%s4058_s1 + $0x110] sm:$0xff]  ;;  %v3223_v51 = vld [vmem:[%s4058_s1 + $0x1c8] sm:$0xff] }
  0xc3   : >> { %v736_v21 = vrot.slane %v664_v41, %v2736_v2  ;;  %v688_v38 = vrot.slane %v640_v8, %v2736_v2  ;;  %4102 = vst [vmem:[#allocation18_spill] sm:$0xff] %v3223_v51  ;;  %v3228_v7 = vld [vmem:[%s4058_s1 + $0x188] sm:$0xff]  ;;  %v861_v43 = vmul.f32 %v2162_v40, %v3021_v23  ;;  %v934_v61 = vmul.f32 %v2170_v39, %v2764_v12  ;;  %v3242_v41 = vld [vmem:[%s4058_s1 + $0xd8] sm:$0xff]  ;;  %v3247_v8 = vld [vmem:[%s4058_s1 + $0x150] sm:$0xff] }
  0xc4   : >> { %v1006_v18 = vadd.f32 %v998_v47, %v941_v5  ;;  %v829_v16 = vpop.permute.xlu1 %828  ;;  %v827_v13 = vpop.permute.xlu0 %826  ;;  %v1228_v47 = vmul.f32 %v3223_v51, %v2880_v49  ;;  %v3255_v12 = vld [vmem:[%s4058_s1 + $0x118] sm:$0xff] }
  0xc5   : >> { %v759_v56 = vmul.f32 %v2152_v57, %v736_v21  ;;  %v711_v17 = vmul.f32 %v2152_v57, %v688_v38  ;;  %v848_v5 = vsel %vm400_vm0, %v827_v13, %v829_v16  ;;  %v949_v38 = vmul.f32 %v2169_v25, %v2880_v49 }
  0xc6   : >> { %v882_v9 = vrot.slane %v848_v5, %v2736_v2  ;;  %v3266_v5 = vld [vmem:[%s4058_s1 + $0x180] sm:$0xff]  ;;  %v948_v49 = vmul.f32 %v3163_v26, %v2883_v50  ;;  %v999_v59 = vmul.f32 %v3247_v8, %v736_v21  ;;  %v935_v1 = vmul.f32 %v3255_v12, %v2760_v11  ;;  %v3288_v26 = vld [vmem:[%s4058_s1 + $0x1d0] sm:$0xff] }
  0xc7   : >> { %v767_v60 = vadd.f32 %v759_v56, %v3032_v33  ;;  %v719_v27 = vadd.f32 %v711_v17, %v3073_v63  ;;  %v2153_v17 = vld [vmem:[%s4058_s1 + $0x98] sm:$0xff]  ;;  %v3297_v11 = vld [vmem:[%s4058_s1 + $0x190] sm:$0xff] }
  0xc8   : >> { %v908_v23 = vmul.f32 %v2161_v4, %v882_v9  ;;  %v1155_v33 = vmul.f32 %v3228_v7, %v882_v9  ;;  %v628_v57 = vpop.permute.xlu1 %627  ;;  %v3250_v63 = vpop.permute.xlu0 %840 }
  0xc9   : >> { %v869_v56 = vadd.f32 %v861_v43, %v719_v27  ;;  %v639_v4 = vsel %vm635_vm1, %v626_v37, %v628_v57  ;;  %v849_v9 = vsel %vm400_vm0, %v3250_v63, %v827_v13  ;;  %v862_v37 = vmul.f32 %v3242_v41, %v3024_v24  ;;  %v3283_v13 = vld [vmem:[%s4058_s1 + $0x1c0] sm:$0xff] }
  0xca   : >> { %v916_v25 = vadd.f32 %v908_v23, %v766_v29  ;;  %v1163_v43 = vadd.f32 %v1155_v33, %v1006_v18  ;;  %v692_v27 = vrot.slane %v639_v4, %v2736_v2  ;;  %v878_v51 = vrot.slane %v849_v9, %v2736_v2 }
  0xcb   : >> { %v942_v19 = vadd.f32 %v934_v61, %v869_v56 }
  0xcc   : >> { %v712_v29 = vmul.f32 %v2153_v17, %v692_v27  ;;  %v907_v18 = vmul.f32 %v3156_v15, %v878_v51  ;;  %v1154_v24 = vmul.f32 %v3266_v5, %v878_v51  ;;  %v831_v21 = vpop.permute.xlu1 %830  ;;  %v653_v61 = vpop.permute.xlu0 %652  ;;  %v3292_v23 = vadd.f32 %v949_v38, %v916_v25  ;;  %v3310_v25 = vld [vmem:[%s4058_s1 + $0x158] sm:$0xff] }
  0xcd   : >> { %v847_v33 = vsel %vm400_vm0, %v829_v16, %v831_v21  ;;  %v1007_v56 = vadd.f32 %v999_v59, %v942_v19  ;;  %v663_v4 = vsel %vm635_vm1, %v651_v55, %v653_v61  ;;  %v3303_v9 = vadd.f32 %v1228_v47, %v1163_v43 }
  0xce   : >> { %v720_v15 = vadd.f32 %v712_v29, %v3069_v62  ;;  %v915_v51 = vadd.f32 %v907_v18, %v765_v10  ;;  %v1162_v27 = vadd.f32 %v1154_v24, %v1005_v42  ;;  %v886_v38 = vrot.slane %v847_v33, %v2736_v2 }
  0xcf   : >> { %v1227_v16 = vmul.f32 %v3283_v13, %v2883_v50  ;;  %v1229_v59 = vmul.f32 %v3288_v26, %v2896_v52  ;;  %v740_v55 = vrot.slane %v663_v4, %v2736_v2  ;;  %v950_v19 = vmul.f32 %v2170_v39, %v2896_v52  ;;  %v2154_v50 = vld [vmem:[%s4058_s1 + $0xa0] sm:$0xff] }
  0xd0   : >> { %v870_v62 = vadd.f32 %v862_v37, %v720_v15  ;;  %v909_v10 = vmul.f32 %v2162_v40, %v886_v38  ;;  %v1156_v42 = vmul.f32 %v3297_v11, %v886_v38  ;;  %v655_v47 = vpop.permute.xlu1 %654  ;;  %v630_v43 = vpop.permute.xlu0 %629  ;;  %v956_v29 = vadd.f32 %v948_v49, %v915_v51  ;;  %v3333_v51 = vld [vmem:[%s4058_s1 + $0xe0] sm:$0xff] }
  0xd1   : >> { %v760_v18 = vmul.f32 %v2153_v17, %v740_v55  ;;  %v1000_v24 = vmul.f32 %v3310_v25, %v740_v55  ;;  %v662_v33 = vsel %vm635_vm1, %v653_v61, %v655_v47  ;;  %v638_v52 = vsel %vm635_vm1, %v628_v57, %v630_v43 }
  0xd2   : >> { %v917_v39 = vadd.f32 %v909_v10, %v767_v60  ;;  %v1164_v40 = vadd.f32 %v1156_v42, %v1007_v56  ;;  %v943_v37 = vadd.f32 %v935_v1, %v870_v62  ;;  %v744_v4 = vrot.slane %v662_v33, %v2736_v2  ;;  %v3349_v56 = vld [vmem:[%s4058_s1 + $0x198] sm:$0xff]  ;;  %v3385_v33 = vld [vmem:[%s4058_s1 + $0x208] sm:$0xff] }
  0xd3   : >> { %v768_v49 = vadd.f32 %v760_v18, %v3034_v34  ;;  %v696_v17 = vrot.slane %v638_v52, %v2736_v2  ;;  %v1235_v15 = vadd.f32 %v1227_v16, %v1162_v27  ;;  %v3344_v34 = vld [vmem:[%s4058_s1 + $0x120] sm:$0xff]  ;;  %v863_v10 = vmul.f32 %v3333_v51, %v3115_v46 }
  0xd4   : >> { %v1008_v38 = vadd.f32 %v1000_v24, %v943_v37  ;;  %v761_v61 = vmul.f32 %v2154_v50, %v744_v4  ;;  %v3335_v55 = vpop.permute.xlu1 %964  ;;  %v3337_v57 = vpop.permute.xlu0 %832  ;;  %v3339_v60 = vadd.f32 %v950_v19, %v917_v39  ;;  %v3354_v16 = vadd.f32 %v1229_v59, %v1164_v40  ;;  %v3368_v24 = vld [vmem:[%s4058_s1 + $0x1d8] sm:$0xff] }
  0xd5   : >> { %4103 = vst [vmem:[#allocation19_spill] sm:$0xff] %v3335_v55  ;;  %v713_v1 = vmul.f32 %v2154_v50, %v696_v17  ;;  %v846_v27 = vsel %vm400_vm0, %v831_v21, %v3337_v57  ;;  %v936_v18 = vmul.f32 %v3344_v34, %v2824_v36  ;;  %v3380_v36 = vld [vmem:[%s4058_s1 + $0x200] sm:$0xff]  ;;  %v951_v39 = vmul.f32 %v3255_v12, %v2907_v53 }
  0xd6   : >> { %v3357_v19 = vadd.f32 %v761_v61, %v3131_v14  ;;  %v890_v62 = vrot.slane %v846_v27, %v2736_v2  ;;  %v3373_v14 = vld [vmem:[%s4058_s1 + $0x160] sm:$0xff] }
  0xd7   : >> { %v721_v42 = vadd.f32 %v713_v1, %v3100_v48  ;;  %v1230_v1 = vmul.f32 %v3368_v24, %v2907_v53  ;;  %v1001_v27 = vmul.f32 %v3373_v14, %v744_v4 }
  0xd8   : >> { %v910_v21 = vmul.f32 %v3242_v41, %v890_v62  ;;  %v1157_v59 = vmul.f32 %v3349_v56, %v890_v62  ;;  %v969_v46 = vpop.permute.xlu1 %968  ;;  %v967_v50 = vpop.permute.xlu0 %966 }
  0xd9   : >> { %v871_v48 = vadd.f32 %v863_v10, %v721_v42  ;;  %v985_v52 = vsel %vm635_vm1, %v967_v50, %v969_v46  ;;  %v986_v41 = vsel %vm635_vm1, %v3335_v55, %v967_v50 }
  0xda   : >> { %v918_v40 = vadd.f32 %v910_v21, %v768_v49  ;;  %v1165_v37 = vadd.f32 %v1157_v59, %v1008_v38  ;;  %v1016_v17 = vrot.slane %v986_v41, %v2736_v2  ;;  %v1020_v61 = vrot.slane %v985_v52, %v2736_v2  ;;  %v2155_v52 = vld [vmem:[%s4058_s1 + $0xa8] sm:$0xff] }
  0xdb   : >> { %v944_v62 = vadd.f32 %v936_v18, %v871_v48 }
  0xdc   : >> { %v1045_v10 = vmul.f32 %v3187_v32, %v1016_v17  ;;  %v1046_v42 = vmul.f32 %v3198_v3, %v1020_v61  ;;  %v1292_v50 = vmul.f32 %v3380_v36, %v1016_v17  ;;  %v1293_v12 = vmul.f32 %v3385_v33, %v1020_v61  ;;  %v3403_v49 = vpop.permute.xlu1 %656  ;;  %v3405_v38 = vpop.permute.xlu0 %631  ;;  %v2149_v17 = vld [vmem:[%s4058_s1 + $0x78] sm:$0xff] }
  0xdd   : >> { %v661_v21 = vsel %vm635_vm1, %v655_v47, %v3403_v49  ;;  %v637_v53 = vsel %vm635_vm1, %v630_v43, %v3405_v38  ;;  %v1009_v4 = vadd.f32 %v1001_v27, %v944_v62  ;;  %v3413_v32 = vadd.f32 %v951_v39, %v918_v40  ;;  %v3429_v43 = vld [vmem:[%s4058_s1 + $0x128] sm:$0xff] }
  0xde   : >> { %v3415_v3 = vadd.f32 %v1045_v10, %v956_v29  ;;  %v3418_v18 = vadd.f32 %v1046_v42, %v3292_v23  ;;  %v1300_v59 = vadd.f32 %v1292_v50, %v1235_v15  ;;  %v1301_v48 = vadd.f32 %v1293_v12, %v3303_v9  ;;  %v3438_v9 = vld [vmem:[%s4058_s1 + $0xe8] sm:$0xff]  ;;  %v3462_v10 = vld [vmem:[%s4058_s1 + $0x1a0] sm:$0xff] }
  0xdf   : >> { %v748_v47 = vrot.slane %v661_v21, %v2736_v2  ;;  %v700_v41 = vrot.slane %v637_v53, %v2736_v2  ;;  %v3431_v29 = vadd.f32 %v1230_v1, %v1165_v37  ;;  %v513_v23 = vrot.slane %v3095_v22, %v2736_v2  ;;  %v481_v37 = vld [vmem:[%s4058_s1 + $0x38] sm:$0xff]  ;;  %v3453_v1 = vld [vmem:[%s4058_s1 + $0x210] sm:$0xff] }
  0xe0   : >> { %v1356_v15 = vadd.f32 %v1301_v48, %v1300_v59  ;;  %v3440_v39 = vpop.permute.xlu1 %970  ;;  %v3442_v40 = vpop.permute.xlu0 %834  ;;  %4104 = vst [vmem:[#allocation20_spill] sm:$0xff] %v3453_v1  ;;  %v937_v50 = vmul.f32 %v3429_v43, %v2816_v35  ;;  %v864_v12 = vmul.f32 %v3438_v9, %v3119_v20  ;;  %v594_v59 = vmul.f32 %v2149_v17, %v2809_v31 }
  0xe1   : >> { %v762_v61 = vmul.f32 %v2155_v52, %v748_v47  ;;  %v714_v22 = vmul.f32 %v2155_v52, %v700_v41  ;;  %v984_v27 = vsel %vm635_vm1, %v969_v46, %v3440_v39  ;;  %v845_v42 = vsel %vm400_vm0, %v3337_v57, %v3442_v40  ;;  %v3481_v57 = vld [vmem:[%s4058_s1 + $0x168] sm:$0xff] }
  0xe2   : >> { %v1024_v62 = vrot.slane %v984_v27, %v2736_v2  ;;  %v894_v53 = vrot.slane %v845_v42, %v2736_v2  ;;  %v521_v48 = vmul.f32 %v513_v23, %v481_v37  ;;  %4105 = vst [vmem:[#allocation21_spill] sm:$0xff] %v3481_v57  ;;  %v1002_v42 = vmul.f32 %v3481_v57, %v748_v47  ;;  %v3533_v47 = vld [vmem:[%s4058_s1 + $0xf8] sm:$0xff] }
  0xe3   : >> { %v3473_v46 = vadd.f32 %v762_v61, %v3137_v28  ;;  %v722_v21 = vadd.f32 %v714_v22, %v3104_v30  ;;  %v3490_v30 = vld [vmem:[%s4058_s1 + $0x1e0] sm:$0xff] }
  0xe4   : >> { %v1047_v35 = vmul.f32 %v3247_v8, %v1024_v62  ;;  %v1294_v52 = vmul.f32 %v3453_v1, %v1024_v62  ;;  %v3485_v20 = vpop.permute.xlu1 %1123  ;;  %v1122_v28 = vpop.permute.xlu0 %1121  ;;  %4106 = vst [vmem:[#allocation22_spill] sm:$0xff] %v3490_v30  ;;  %v911_v31 = vmul.f32 %v3333_v51, %v894_v53  ;;  %v1158_v23 = vmul.f32 %v3462_v10, %v894_v53  ;;  %v4108_v1 = vld [vmem:[#allocation15_spill] sm:$0xff] }
  0xe5   : >> { %v872_v41 = vadd.f32 %v864_v12, %v722_v21  ;;  %v1143_v61 = vsel %vm400_vm0, %v1122_v28, %v3485_v20  ;;  %v561_v8 = vrot.slane %v3129_v6, %v2736_v2  ;;  %v3512_v53 = vmul.f32 %v3490_v30, %v2922_v54 }
  0xe6   : >> { %v3500_v22 = vadd.f32 %v1047_v35, %v3339_v60  ;;  %v1302_v27 = vadd.f32 %v1294_v52, %v3354_v16  ;;  %v1177_v62 = vrot.slane %v1143_v61, %v2736_v2  ;;  %v3506_v51 = vadd.f32 %v911_v31, %v3357_v19  ;;  %v3523_v19 = vld [vmem:[%s4058_s1 + $0x130] sm:$0xff] }
  0xe7   : >> { %v3508_v12 = vadd.f32 %v1158_v23, %v1009_v4  ;;  %v945_v21 = vadd.f32 %v937_v50, %v872_v41  ;;  %v610_v6 = vmul.f32 %v2149_v17, %v2852_v44  ;;  %v3528_v4 = vld [vmem:[%s4058_s1 + $0x138] sm:$0xff]  ;;  %v3553_v23 = vld [vmem:[%s4058_s1 + $0xf0] sm:$0xff] }
  0xe8   : >> { %v3515_v60 = vadd.f32 %v1356_v15, %v1302_v27  ;;  %v1203_v16 = vmul.f32 %v3228_v7, %v1177_v62  ;;  %v634_v35 = vpop.permute.xlu1 %633  ;;  %v3518_v52 = vpop.permute.xlu0 %1135  ;;  %v2156_v7 = vld [vmem:[%s4058_s1 + $0xb0] sm:$0xff]  ;;  %v2157_v15 = vld [vmem:[%s4058_s1 + $0xb8] sm:$0xff] }
  0xe9   : >> { %4107 = vst [vmem:[#allocation23_spill] sm:$0xff] %v3518_v52  ;;  %v636_v17 = vsel %vm635_vm1, %v3405_v38, %v634_v35  ;;  %v643_v50 = vsel %vm635_vm1, %v634_v35, %v3143_v0  ;;  %v1144_v41 = vsel %vm400_vm0, %v3518_v52, %v1122_v28  ;;  %v1010_v31 = vadd.f32 %v1002_v42, %v945_v21 }
  0xea   : >> { %v3556_v61 = vadd.f32 %v1203_v16, %v3418_v18  ;;  %v704_v27 = vrot.slane %v636_v17, %v2736_v2  ;;  %v708_v38 = vrot.slane %v643_v50, %v2736_v2  ;;  %v1173_v62 = vrot.slane %v1144_v41, %v2736_v2 }
  0xeb   : >> { %v602_v0 = vadd.f32 %v594_v59, %v521_v48  ;;  %v569_v35 = vmul.f32 %v561_v8, %v481_v37  ;;  %v938_v28 = vmul.f32 %v3523_v19, %v2856_v45  ;;  %v939_v42 = vmul.f32 %v3528_v4, %v2852_v44  ;;  %v3572_v37 = vld [vmem:[%s4058_s1 + $0x1a8] sm:$0xff]  ;;  %v4109_v59 = vld [vmem:[#allocation17_spill] sm:$0xff]  ;;  %v4110_v48 = vld [vmem:[#allocation14_spill] sm:$0xff] }
  0xec   : >> { %v866_v21 = vmul.f32 %v3533_v47, %v561_v8  ;;  %v715_v52 = vmul.f32 %v2156_v7, %v704_v27  ;;  %v716_v30 = vmul.f32 %v2157_v15, %v708_v38  ;;  %v1202_v18 = vmul.f32 %v3266_v5, %v1173_v62  ;;  %v837_v16 = vpop.permute.xlu1 %836  ;;  %v659_v17 = vpop.permute.xlu0 %658 }
  0xed   : >> { %v865_v50 = vmul.f32 %v3553_v23, %v4108_v1  ;;  %v844_v44 = vsel %vm400_vm0, %v3442_v40, %v837_v16  ;;  %v660_v45 = vsel %vm635_vm1, %v3403_v49, %v659_v17  ;;  %v667_v5 = vsel %vm635_vm1, %v659_v17, %v4109_v59  ;;  %v3591_v40 = vld [vmem:[%s4058_s1 + $0x170] sm:$0xff]  ;;  %v3596_v49 = vld [vmem:[%s4058_s1 + $0x178] sm:$0xff] }
  0xee   : >> { %v723_v8 = vadd.f32 %v715_v52, %v4110_v48  ;;  %v724_v1 = vadd.f32 %v716_v30, %v602_v0  ;;  %v3585_v41 = vadd.f32 %v1202_v18, %v3415_v3  ;;  %v898_v27 = vrot.slane %v844_v44, %v2736_v2 }
  0xef   : >> { %v618_v38 = vadd.f32 %v610_v6, %v569_v35  ;;  %v752_v62 = vrot.slane %v660_v45, %v2736_v2  ;;  %v756_v30 = vrot.slane %v667_v5, %v2736_v2  ;;  %v952_v3 = vmul.f32 %v3344_v34, %v2922_v54 }
  0xf0   : >> { %v873_v52 = vadd.f32 %v865_v50, %v723_v8  ;;  %v874_v0 = vadd.f32 %v866_v21, %v724_v1  ;;  %v912_v18 = vmul.f32 %v3438_v9, %v898_v27  ;;  %v1159_v17 = vmul.f32 %v3572_v37, %v898_v27  ;;  %v1126_v44 = vpop.permute.xlu1 %1125  ;;  %v973_v59 = vpop.permute.xlu0 %972  ;;  %v4111_v21 = vld [vmem:[#allocation16_spill] sm:$0xff]  ;;  %v4112_v1 = vld [vmem:[#allocation3_spill] sm:$0xff] }
  0xf1   : >> { %v763_v48 = vmul.f32 %v2156_v7, %v752_v62  ;;  %v764_v55 = vmul.f32 %v2157_v15, %v756_v30  ;;  %v1003_v57 = vmul.f32 %v3591_v40, %v752_v62  ;;  %v1004_v6 = vmul.f32 %v3596_v49, %v756_v30  ;;  %v3618_v7 = vld [vmem:[%s4058_s1 + $0x218] sm:$0xff] }
  0xf2   : >> { %v3607_v35 = vadd.f32 %v912_v18, %v3473_v46  ;;  %v3609_v45 = vadd.f32 %v1159_v17, %v1010_v31  ;;  %v946_v54 = vadd.f32 %v938_v28, %v873_v52  ;;  %v947_v34 = vadd.f32 %v939_v42, %v874_v0  ;;  %v3643_v0 = vld [vmem:[%s4058_s1 + $0x220] sm:$0xff] }
  0xf3   : >> { %v771_v50 = vadd.f32 %v763_v48, %v4111_v21  ;;  %v772_v9 = vadd.f32 %v764_v55, %v618_v38  ;;  %v1142_v5 = vsel %vm400_vm0, %v3485_v20, %v1126_v44  ;;  %v983_v46 = vsel %vm635_vm1, %v3440_v39, %v973_v59  ;;  %v4113_v20 = vld [vmem:[#allocation18_spill] sm:$0xff] }
  0xf4   : >> { %v1011_v15 = vadd.f32 %v1003_v57, %v946_v54  ;;  %v1012_v31 = vadd.f32 %v1004_v6, %v947_v34  ;;  %v1181_v28 = vrot.slane %v1142_v5, %v2736_v2  ;;  %v1028_v42 = vrot.slane %v983_v46, %v2736_v2  ;;  %v3625_v55 = vpop.permute.xlu1 %974  ;;  %v839_v8 = vpop.permute.xlu0 %838 }
  0xf5   : >> { %v1244_v27 = vmul.f32 %v4113_v20, %v4112_v1  ;;  %v982_v38 = vsel %vm635_vm1, %v973_v59, %v3625_v55  ;;  %v842_v39 = vsel %vm400_vm0, %v839_v8, %v3250_v63  ;;  %v843_v57 = vsel %vm400_vm0, %v837_v16, %v839_v8  ;;  %v3649_v63 = vld [vmem:[%s4058_s1 + $0x1b0] sm:$0xff]  ;;  %v4114_v1 = vld [vmem:[#allocation11_spill] sm:$0xff] }
  0xf6   : >> { %v1204_v62 = vmul.f32 %v3297_v11, %v1181_v28  ;;  %v1048_v30 = vmul.f32 %v3310_v25, %v1028_v42  ;;  %v1295_v52 = vmul.f32 %v3618_v7, %v1028_v42  ;;  %v1032_v18 = vrot.slane %v982_v38, %v2736_v2  ;;  %v3657_v25 = vld [vmem:[%s4058_s1 + $0x1b8] sm:$0xff] }
  0xf7   : >> { %v960_v16 = vadd.f32 %v952_v3, %v3506_v51  ;;  %v1239_v11 = vadd.f32 %v3512_v53, %v3508_v12  ;;  %v902_v17 = vrot.slane %v843_v57, %v2736_v2  ;;  %v906_v59 = vrot.slane %v842_v39, %v2736_v2 }
  0xf8   : >> { %v1212_v48 = vadd.f32 %v1204_v62, %v3500_v22  ;;  %v1056_v6 = vadd.f32 %v1048_v30, %v3413_v32  ;;  %v1303_v54 = vadd.f32 %v1295_v52, %v3431_v29  ;;  %v1049_v51 = vmul.f32 %v3373_v14, %v1032_v18  ;;  %v3665_v3 = vpop.permute.xlu1 %1259  ;;  %v1128_v12 = vpop.permute.xlu0 %1127  ;;  %v3674_v22 = vld [vmem:[%s4058_s1 + $0x1f8] sm:$0xff] }
  0xf9   : >> { %v1296_v53 = vmul.f32 %v3643_v0, %v1032_v18  ;;  %v913_v34 = vmul.f32 %v3553_v23, %v902_v17  ;;  %v914_v21 = vmul.f32 %v3533_v47, %v906_v59  ;;  %v1160_v5 = vmul.f32 %v3649_v63, %v902_v17  ;;  %v3683_v23 = vld [vmem:[%s4058_s1 + $0x1e8] sm:$0xff]  ;;  %v4115_v62 = vld [vmem:[#allocation10_spill] sm:$0xff] }
  0xfa   : >> { %v1358_v32 = vadd.f32 %v3515_v60, %v1303_v54  ;;  %v1057_v29 = vadd.f32 %v1049_v51, %v960_v16  ;;  %v1161_v14 = vmul.f32 %v3657_v25, %v906_v59  ;;  %v1141_v46 = vsel %vm400_vm0, %v1126_v44, %v1128_v12  ;;  %v3690_v60 = vld [vmem:[%s4058_s1 + $0x1f0] sm:$0xff] }
  0xfb   : >> { %v1304_v47 = vadd.f32 %v1296_v53, %v1239_v11  ;;  %v921_v28 = vadd.f32 %v913_v34, %v771_v50  ;;  %v922_v42 = vadd.f32 %v914_v21, %v772_v9  ;;  %v1168_v8 = vadd.f32 %v1160_v5, %v1011_v15  ;;  %v4116_v9 = vld [vmem:[#allocation12_spill] sm:$0xff]  ;;  %v4117_v11 = vld [vmem:[#allocation5_spill] sm:$0xff] }
  0xfc   : >> { %v1243_v20 = vmul.f32 %v3283_v13, %v4114_v1  ;;  %v1169_v38 = vadd.f32 %v1161_v14, %v1012_v31  ;;  %v1185_v44 = vrot.slane %v1141_v46, %v2736_v2  ;;  %v1264_v39 = vpop.permute.xlu1 %1263  ;;  %v1262_v57 = vpop.permute.xlu0 %1261  ;;  %v1234_v30 = vmul.f32 %v3674_v22, %v4115_v62  ;;  %v4118_v59 = vld [vmem:[#allocation13_spill] sm:$0xff]  ;;  %v4119_v46 = vld [vmem:[#allocation6_spill] sm:$0xff] }
  0xfd   : >> { %v1359_v52 = vadd.f32 %v1358_v32, %v1304_v47  ;;  %v1280_v50 = vsel %vm635_vm1, %v1262_v57, %v1264_v39  ;;  %v1281_v13 = vsel %vm635_vm1, %v3665_v3, %v1262_v57  ;;  %v1232_v15 = vmul.f32 %v3683_v23, %v4116_v9  ;;  %v4120_v57 = vld [vmem:[#allocation21_spill] sm:$0xff] }
  0xfe   : >> { %v1205_v31 = vmul.f32 %v3349_v56, %v1185_v44  ;;  %v1311_v18 = vrot.slane %v1281_v13, %v2736_v2  ;;  %v1315_v16 = vrot.slane %v1280_v50, %v2736_v2  ;;  %v1245_v17 = vmul.f32 %v3288_v26, %v4117_v11 }
  0xff   : >> { %v1233_v54 = vmul.f32 %v3690_v60, %v4118_v59  ;;  %v1252_v51 = vadd.f32 %v1244_v27, %v3556_v61  ;;  %v953_v53 = vmul.f32 %v3429_v43, %v4116_v9  ;;  %v1251_v21 = vadd.f32 %v1243_v20, %v3585_v41  ;;  %v3722_v61 = vld [vmem:[%s4058_s1 + $0x228] sm:$0xff] }
 0x100   : >> { %v1213_v34 = vadd.f32 %v1205_v31, %v1056_v6  ;;  %v1340_v56 = vmul.f32 %v3380_v36, %v1311_v18  ;;  %v1341_v5 = vmul.f32 %v3385_v33, %v1315_v16  ;;  %v1130_v32 = vpop.permute.xlu1 %1129  ;;  %v977_v14 = vpop.permute.xlu0 %976  ;;  %v1246_v26 = vmul.f32 %v3368_v24, %v4119_v46  ;;  %v3741_v31 = vld [vmem:[%s4058_s1 + $0x230] sm:$0xff]  ;;  %v2209_v16 = vld [vmem:[%s4058_s1 + $0x238] sm:$0xff] }
 0x101   : >> { %v1140_v47 = vsel %vm400_vm0, %v1128_v12, %v1130_v32  ;;  %v981_v43 = vsel %vm635_vm1, %v3625_v55, %v977_v14  ;;  %v954_v36 = vmul.f32 %v3523_v19, %v4118_v59  ;;  %v961_v6 = vadd.f32 %v953_v53, %v3607_v35 }
 0x102   : >> { %v1348_v33 = vadd.f32 %v1340_v56, %v1251_v21  ;;  %v1349_v41 = vadd.f32 %v1341_v5, %v1252_v51  ;;  %v1189_v27 = vrot.slane %v1140_v47, %v2736_v2  ;;  %v1036_v24 = vrot.slane %v981_v43, %v2736_v2  ;;  %v4122_v47 = vld [vmem:[#allocation20_spill] sm:$0xff] }
 0x103   : >> { %v1240_v12 = vadd.f32 %v1232_v15, %v3609_v45  ;;  %v955_v1 = vmul.f32 %v3528_v4, %v4115_v62  ;;  %v1253_v20 = vadd.f32 %v1245_v17, %v1212_v48  ;;  %v962_v35 = vadd.f32 %v954_v36, %v921_v28  ;;  %v4121_v4 = vld [vmem:[#allocation19_spill] sm:$0xff] }
 0x104   : >> { %v1363_v44 = vadd.f32 %v1349_v41, %v1348_v33  ;;  %v1206_v55 = vmul.f32 %v3462_v10, %v1189_v27  ;;  %v1050_v50 = vmul.f32 %v4120_v57, %v1036_v24  ;;  %v1297_v19 = vmul.f32 %v3722_v61, %v1036_v24  ;;  %v979_v13 = vpop.permute.xlu1 %978  ;;  %v1266_v9 = vpop.permute.xlu0 %1265  ;;  %v4123_v41 = vld [vmem:[#allocation7_spill] sm:$0xff] }
 0x105   : >> { %v980_v45 = vsel %vm635_vm1, %v977_v14, %v979_v13  ;;  %v987_v48 = vsel %vm635_vm1, %v979_v13, %v4121_v4  ;;  %v1279_v10 = vsel %vm635_vm1, %v1264_v39, %v1266_v9  ;;  %v963_v28 = vadd.f32 %v955_v1, %v922_v42  ;;  %v4127_v4 = vld [vmem:[#allocation8_spill] sm:$0xff] }
 0x106   : >> { %v1214_v62 = vadd.f32 %v1206_v55, %v1057_v29  ;;  %v1058_v15 = vadd.f32 %v1050_v50, %v961_v6  ;;  %v1305_v18 = vadd.f32 %v1297_v19, %v1240_v12  ;;  %v1040_v11 = vrot.slane %v980_v45, %v2736_v2  ;;  %v4125_v19 = vld [vmem:[#allocation23_spill] sm:$0xff] }
 0x107   : >> { %v1044_v17 = vrot.slane %v987_v48, %v2736_v2  ;;  %v1241_v59 = vadd.f32 %v1233_v54, %v1168_v8  ;;  %v1319_v51 = vrot.slane %v1279_v10, %v2736_v2  ;;  %v1242_v56 = vadd.f32 %v1234_v30, %v1169_v38 }
 0x108   : >> { %v1360_v53 = vadd.f32 %v1359_v52, %v1305_v18  ;;  %v1051_v21 = vmul.f32 %v3591_v40, %v1040_v11  ;;  %v1298_v29 = vmul.f32 %v3741_v31, %v1040_v11  ;;  %v1268_v39 = vpop.permute.xlu1 %1267  ;;  %v1132_v5 = vpop.permute.xlu0 %1131  ;;  %v1254_v6 = vadd.f32 %v1246_v26, %v1213_v34 }
 0x109   : >> { %v1052_v14 = vmul.f32 %v3596_v49, %v1044_v17  ;;  %v1299_v46 = vmul.f32 %v2209_v16, %v1044_v17  ;;  %v1342_v43 = vmul.f32 %v4122_v47, %v1319_v51  ;;  %v1278_v42 = vsel %vm635_vm1, %v1266_v9, %v1268_v39  ;;  %v4124_v49 = vld [vmem:[#allocation22_spill] sm:$0xff] }
 0x10a   : >> { %v1059_v36 = vadd.f32 %v1051_v21, %v962_v35  ;;  %v1306_v8 = vadd.f32 %v1298_v29, %v1241_v59  ;;  %v1323_v54 = vrot.slane %v1278_v42, %v2736_v2  ;;  %v1139_v40 = vsel %vm400_vm0, %v1130_v32, %v1132_v5  ;;  %v4128_v59 = vld [vmem:[#allocation9_spill] sm:$0xff] }
 0x10b   : >> { %v1060_v38 = vadd.f32 %v1052_v14, %v963_v28  ;;  %v1307_v30 = vadd.f32 %v1299_v46, %v1242_v56  ;;  %v1350_v52 = vadd.f32 %v1342_v43, %v1253_v20  ;;  %v1193_v33 = vrot.slane %v1139_v40, %v2736_v2  ;;  %v1371_v40 = vld [vmem:[%s4059_s2] sm:$0xff] }
 0x10c   : >> { %v1247_v27 = vmul.f32 %v4124_v49, %v4123_v41  ;;  %v1361_v24 = vadd.f32 %v1360_v53, %v1306_v8  ;;  %v1343_v12 = vmul.f32 %v3618_v7, %v1323_v54  ;;  %v1270_v1 = vpop.permute.xlu1 %1269  ;;  %v1134_v55 = vpop.permute.xlu0 %1133  ;;  %v4126_v7 = vld [vmem:[#allocation4_spill] sm:$0xff]  ;;  %v1248_v48 = vmul.f32 %v3683_v23, %v4127_v4  ;;  %v1411_v41 = vld [vmem:[%s4060_s3 + $0x10] sm:$0xff] (%p305_p11)  ;;  %v1412_v49 = vld [vmem:[%s4060_s3 + $0x18] sm:$0xff] (%p305_p11) }
 0x10d   : >> { %v1364_v57 = vadd.f32 %v1363_v44, %v1350_v52  ;;  %v1207_v50 = vmul.f32 %v3572_v37, %v1193_v33  ;;  %v1277_v32 = vsel %vm635_vm1, %v1268_v39, %v1270_v1  ;;  %v1137_v20 = vsel %vm400_vm0, %v1134_v55, %v4125_v19  ;;  %v1651_v33 = vld [vmem:[%s4061_s4 + $0x8] sm:$0xff] (%p305_p11)  ;;  %v1658_v4 = vld [vmem:[%s4061_s4 + $0x40] sm:$0xff] (%p305_p11) }
 0x10e   : >> { %v1362_v13 = vadd.f32 %v1361_v24, %v1307_v30  ;;  %v1351_v9 = vadd.f32 %v1343_v12, %v1254_v6  ;;  %v1327_v35 = vrot.slane %v1277_v32, %v2736_v2  ;;  %v1138_v34 = vsel %vm400_vm0, %v1132_v5, %v1134_v55  ;;  %v1650_v30 = vld [vmem:[%s4061_s4] sm:$0xff] (%p305_p11)  ;;  %v1652_v6 = vld [vmem:[%s4061_s4 + $0x10] sm:$0xff] (%p305_p11)  ;;  %v1653_v12 = vld [vmem:[%s4061_s4 + $0x18] sm:$0xff] (%p305_p11) }
 0x10f   : >> { %v1250_v26 = vmul.f32 %v3674_v22, %v4126_v7  ;;  %v1215_v44 = vadd.f32 %v1207_v50, %v1058_v15  ;;  %v1197_v37 = vrot.slane %v1138_v34, %v2736_v2  ;;  %v1201_v45 = vrot.slane %v1137_v20, %v2736_v2  ;;  %v1654_v50 = vld [vmem:[%s4061_s4 + $0x20] sm:$0xff] (%p305_p11)  ;;  %v1655_v32 = vld [vmem:[%s4061_s4 + $0x28] sm:$0xff] (%p305_p11)  ;;  %v1657_v34 = vld [vmem:[%s4061_s4 + $0x38] sm:$0xff] (%p305_p11) }
 0x110   : >> { %v1365_v10 = vadd.f32 %v1364_v57, %v1351_v9  ;;  %v1255_v18 = vadd.f32 %v1247_v27, %v1214_v62  ;;  %v1344_v11 = vmul.f32 %v3643_v0, %v1327_v35  ;;  %v1274_v28 = vpop.permute.xlu1 %1273  ;;  %v1272_v17 = vpop.permute.xlu0 %1271  ;;  %v1249_v51 = vmul.f32 %v3690_v60, %v4128_v59  ;;  %v1414_v57 = vld [vmem:[%s4060_s3 + $0x28] sm:$0xff] (%p305_p11)  ;;  %v1416_v9 = vld [vmem:[%s4060_s3 + $0x38] sm:$0xff] (%p305_p11)  ;;  %v1656_v35 = vld [vmem:[%s4061_s4 + $0x30] sm:$0xff] (%p305_p11) }
 0x111   : >> { %v1208_v53 = vmul.f32 %v3649_v63, %v1197_v37  ;;  %v1209_v22 = vmul.f32 %v3657_v25, %v1201_v45  ;;  %v1282_v15 = vsel %vm635_vm1, %v1274_v28, %v3665_v3  ;;  %v1275_v62 = vsel %vm635_vm1, %v1272_v17, %v1274_v28  ;;  %v1418_v37 = vld [vmem:[%s4060_s3 + $0x48] sm:$0xff] (%p305_p11)  ;;  %v1420_v28 = vld [vmem:[%s4060_s3 + $0x58] sm:$0xff] (%p305_p11) }
 0x112   : >> { %v1352_v21 = vadd.f32 %v1344_v11, %v1255_v18  ;;  %v1339_v23 = vrot.slane %v1282_v15, %v2736_v2  ;;  %v1276_v0 = vsel %vm635_vm1, %v1270_v1, %v1272_v17  ;;  %v1335_v63 = vrot.slane %v1275_v62, %v2736_v2  ;;  %v1413_v1 = vld [vmem:[%s4060_s3 + $0x20] sm:$0xff] (%p305_p11)  ;;  %v1419_v11 = vld [vmem:[%s4060_s3 + $0x50] sm:$0xff] (%p305_p11)  ;;  %v1661_v59 = vld [vmem:[%s4061_s4 + $0x58] sm:$0xff] (%p305_p11) }
 0x113   : >> { %v1216_v56 = vadd.f32 %v1208_v53, %v1059_v36  ;;  %v1217_v29 = vadd.f32 %v1209_v22, %v1060_v38  ;;  %v1331_v60 = vrot.slane %v1276_v0, %v2736_v2  ;;  %v1256_v5 = vadd.f32 %v1248_v48, %v1215_v44  ;;  %v1417_v44 = vld [vmem:[%s4060_s3 + $0x40] sm:$0xff] (%p305_p11)  ;;  %v1659_v48 = vld [vmem:[%s4061_s4 + $0x48] sm:$0xff] (%p305_p11)  ;;  %v1660_v17 = vld [vmem:[%s4061_s4 + $0x50] sm:$0xff] (%p305_p11) }
 0x114   : >> { %v1366_v25 = vadd.f32 %v1365_v10, %v1352_v21  ;;  %v1347_v39 = vmul.f32 %v2209_v16, %v1339_v23  ;;  %v1346_v47 = vmul.f32 %v3741_v31, %v1335_v63  ;;  %v1410_v31 = vld [vmem:[%s4060_s3 + $0x8] sm:$0xff] (%p305_p11)  ;;  %v2506_v27 = vpack.c.bf16 (%p305_p11), %v1651_v33, %v1650_v30  ;;  %v1421_v22 = vld [vmem:[%s4060_s3 + $0x60] sm:$0xff] (%p305_p11)  ;;  %v1665_v63 = vld [vmem:[%s4061_s4 + $0x78] sm:$0xff] (%p305_p11) }
 0x115   : >> { %v1258_v3 = vadd.f32 %v1250_v26, %v1217_v29  ;;  %v1257_v14 = vadd.f32 %v1249_v51, %v1216_v56  ;;  %v1345_v46 = vmul.f32 %v3722_v61, %v1331_v60  ;;  %v1409_v61 = vld [vmem:[%s4060_s3] sm:$0xff] (%p305_p11)  ;;  %v2478_v24 = vpack.c.bf16 (%p305_p11), %v1412_v49, %v1411_v41  ;;  %v1422_v15 = vld [vmem:[%s4060_s3 + $0x68] sm:$0xff] (%p305_p11)  ;;  %v1423_v56 = vld [vmem:[%s4060_s3 + $0x70] sm:$0xff] (%p305_p11) }
 0x116   : > { %v2474_v52 = vpack.c.bf16 (%p305_p11), %v1410_v31, %v1409_v61  ;;  %v2510_v55 = vpack.c.bf16 (%p305_p11), %v1653_v12, %v1652_v6  ;;  %2507 = vmatprep.subr.bf16.mxu1 (%p305_p11), %v2506_v27  ;;  %v2482_v19 = vpack.c.bf16 (%p305_p11), %v1414_v57, %v1413_v1  ;;  %v2514_v20 = vpack.c.bf16 (%p305_p11), %v1655_v32, %v1654_v50  ;;  %v1662_v21 = vld [vmem:[%s4061_s4 + $0x60] sm:$0xff] (%p305_p11)  ;;  %v1663_v23 = vld [vmem:[%s4061_s4 + $0x68] sm:$0xff] (%p305_p11)  ;;  %v1424_v29 = vld [vmem:[%s4060_s3 + $0x78] sm:$0xff] (%p305_p11) }
 0x117   : >> { %v1355_v43 = vadd.f32 %v1347_v39, %v1258_v3  ;;  %v1353_v42 = vadd.f32 %v1345_v46, %v1256_v5  ;;  %v1354_v58 = vadd.f32 %v1346_v47, %v1257_v14  ;;  %2509 = vmatpush3.bf16.msra.mxu1 (%p305_p11), %v2506_v27  ;;  %v2518_v26 = vpack.c.bf16 (%p305_p11), %v1657_v34, %v1656_v35  ;;  %v1664_v60 = vld [vmem:[%s4061_s4 + $0x70] sm:$0xff] (%p305_p11) }
 0x118   : > { %2475 = vmatprep.subr.bf16.mxu0 (%p305_p11), %v2474_v52  ;;  %2511 = vmatprep.subr.bf16.mxu1 (%p305_p11), %v2510_v55  ;;  %v2490_v10 = vpack.c.bf16 (%p305_p11), %v1418_v37, %v1417_v44  ;;  %v2522_v18 = vpack.c.bf16 (%p305_p11), %v1659_v48, %v1658_v4  ;;  %v2494_v51 = vpack.c.bf16 (%p305_p11), %v1420_v28, %v1419_v11 }
 0x119   : >> { %v1367_v8 = vadd.f32 %v1366_v25, %v1353_v42  ;;  %2477 = vmatpush3.bf16.msra.mxu0 (%p305_p11), %v2474_v52  ;;  %v2526_v53 = vpack.c.bf16 (%p305_p11), %v1661_v59, %v1660_v17  ;;  %v2498_v62 = vpack.c.bf16 (%p305_p11), %v1422_v15, %v1421_v22  ;;  %v2530_v0 = vpack.c.bf16 (%p305_p11), %v1663_v23, %v1662_v21 }
 0x11a   : > { %2479 = vmatprep.subr.bf16.mxu0 (%p305_p11), %v2478_v24  ;;  %v2502_v25 = vpack.c.bf16 (%p305_p11), %v1424_v29, %v1423_v56  ;;  %v2534_v39 = vpack.c.bf16 (%p305_p11), %v1665_v63, %v1664_v60 }
 0x11b   : >> { %v1368_v36 = vadd.f32 %v1367_v8, %v1354_v58  ;;  %2513 = vmatpush3.bf16.msra.mxu1 (%p305_p11), %v2510_v55 }
 0x11c   : > { %2515 = vmatprep.subr.bf16.mxu1 (%p305_p11), %v2514_v20 }
 0x11d   : >> { %v1369_v54 = vadd.f32 %v1368_v36, %v1355_v43  ;;  %2481 = vmatpush3.bf16.msra.mxu0 (%p305_p11), %v2478_v24 }
 0x11e   : > { %2483 = vmatprep.subr.bf16.mxu0 (%p305_p11), %v2482_v19 }
 0x11f   : >> { %v1370_v2 = vmax.f32 %v1362_v13, %v1369_v54  ;;  %307 = sbr.rel (!%p305_p11) target bundleno = 22 (0x16), region = 98  ;;  %v1415_v13 = vld [vmem:[%s4060_s3 + $0x30] sm:$0xff] (%p305_p11)  ;;  %2517 = vmatpush3.bf16.msra.mxu1 (%p305_p11), %v2514_v20 }
 0x120   : > { %v2486_v7 = vpack.c.bf16 (%p305_p11), %v1416_v9, %v1415_v13  ;;  %2519 = vmatprep.subr.bf16.mxu1 (%p305_p11), %v2518_v26  ;;  %v3907_v13 = vld [vmem:[%s4062_s5] sm:$0xff] (%p305_p11) }
 0x121   : >> { %v1372_v16 = vadd.f32 %v1371_v40, %v1370_v2  ;;  %2485 = vmatpush3.bf16.msra.mxu0 (%p305_p11), %v2482_v19 }
 0x122   : > { %2487 = vmatprep.subr.bf16.mxu0 (%p305_p11), %v2486_v7 }
 0x123   : >> { %v1373_v38 = vmax.f32 %v1372_v16, 0.0  ;;  %2521 = vmatpush3.bf16.msra.mxu1 (%p305_p11), %v2518_v26 }
 0x124   : > { %2523 = vmatprep.subr.bf16.mxu1 (%p305_p11), %v2522_v18 }
 0x125   : >> { %1376 = vst [vmem:[%s1375_s21] sm:$0xff] %v1373_v38  ;;  %2489 = vmatpush3.bf16.msra.mxu0 (%p305_p11), %v2486_v7  ;;  %v3912_v7 = vld [vmem:[%s4063_s6] sm:$0xff] (%p305_p11) }
 0x126   : > { %2491 = vmatprep.subr.bf16.mxu0 %v2490_v10 }
 0x127   : > { %2525 = vmatpush3.bf16.msra.mxu1 %v2522_v18 }
 0x128   : > { %2527 = vmatprep.subr.bf16.mxu1 %v2526_v53 }
 0x129   : > { %2493 = vmatpush3.bf16.msra.mxu0 %v2490_v10 }
 0x12a   : > { %2495 = vmatprep.subr.bf16.mxu0 %v2494_v51 }
 0x12b   : > { %2529 = vmatpush3.bf16.msra.mxu1 %v2526_v53 }
 0x12c   : > { %v1377_v45 = vld [vmem:[#allocation2] sm:$0xff]  ;;  %2531 = vmatprep.subr.bf16.mxu1 %v2530_v0  ;;  %v1378_v5 = vld [vmem:[#allocation2 + $0x8] sm:$0xff]  ;;  %v1379_v3 = vld [vmem:[#allocation2 + $0x10] sm:$0xff] }
 0x12d   : > { %2346 = vmatprep.mubr.f32.mxu0 %v1377_v45  ;;  %2426 = vmatprep.mubr.f32.mxu1 %v1377_v45  ;;  %v1380_v14 = vld [vmem:[#allocation2 + $0x18] sm:$0xff]  ;;  %v1381_v46 = vld [vmem:[#allocation2 + $0x20] sm:$0xff]  ;;  %v1382_v47 = vld [vmem:[#allocation2 + $0x28] sm:$0xff] }
 0x12e   : > { %2497 = vmatpush3.bf16.msra.mxu0 %v2494_v51  ;;  %v1383_v43 = vld [vmem:[#allocation2 + $0x30] sm:$0xff]  ;;  %v1384_v42 = vld [vmem:[#allocation2 + $0x38] sm:$0xff]  ;;  %v1385_v58 = vld [vmem:[#allocation2 + $0x40] sm:$0xff] }
 0x12f   : > { %2499 = vmatprep.subr.bf16.mxu0 %v2498_v62  ;;  %2533 = vmatpush3.bf16.msra.mxu1 %v2530_v0  ;;  %v1386_v8 = vld [vmem:[#allocation2 + $0x48] sm:$0xff]  ;;  %v1387_v36 = vld [vmem:[#allocation2 + $0x50] sm:$0xff]  ;;  %v1388_v54 = vld [vmem:[#allocation2 + $0x58] sm:$0xff] }
 0x130   : > { %2535 = vmatprep.subr.bf16.mxu1 %v2534_v39  ;;  %v1389_v40 = vld [vmem:[#allocation2 + $0x60] sm:$0xff]  ;;  %v1390_v2 = vld [vmem:[#allocation2 + $0x68] sm:$0xff]  ;;  %v1391_v16 = vld [vmem:[#allocation2 + $0x70] sm:$0xff] }
 0x131   : > { %v1392_v38 = vld [vmem:[#allocation2 + $0x78] sm:$0xff]  ;;  %v1393_v61 = vld [vmem:[#allocation2 + $0x80] sm:$0xff]  ;;  %v1394_v31 = vld [vmem:[#allocation2 + $0x88] sm:$0xff] }
 0x132   : > { %2501 = vmatpush3.bf16.msra.mxu0 %v2498_v62  ;;  %v1395_v30 = vld [vmem:[#allocation2 + $0x90] sm:$0xff]  ;;  %v1396_v52 = vld [vmem:[#allocation2 + $0x98] sm:$0xff]  ;;  %v1397_v33 = vld [vmem:[#allocation2 + $0xa0] sm:$0xff] }
 0x133   : > { %2503 = vmatprep.subr.bf16.mxu0 %v2502_v25  ;;  %2537 = vmatpush3.bf16.msra.mxu1 %v2534_v39  ;;  %v1398_v41 = vld [vmem:[#allocation2 + $0xa8] sm:$0xff]  ;;  %v1399_v49 = vld [vmem:[#allocation2 + $0xb0] sm:$0xff]  ;;  %v1400_v27 = vld [vmem:[#allocation2 + $0xb8] sm:$0xff] }
 0x134   : > { %v1401_v24 = vld [vmem:[#allocation2 + $0xc0] sm:$0xff]  ;;  %v1402_v6 = vld [vmem:[#allocation2 + $0xc8] sm:$0xff]  ;;  %v1403_v12 = vld [vmem:[#allocation2 + $0xd0] sm:$0xff] }
 0x135   : > { %v1404_v1 = vld [vmem:[#allocation2 + $0xd8] sm:$0xff]  ;;  %v1405_v55 = vld [vmem:[#allocation2 + $0xe0] sm:$0xff]  ;;  %v1406_v57 = vld [vmem:[#allocation2 + $0xe8] sm:$0xff] }
 0x136   : > { %2505 = vmatpush3.bf16.msra.mxu0 %v2502_v25  ;;  %2427 = vmatmul.mubr.f32.vlgmr.msra.gmra.mrb[0].mxu1 %v1378_v5  ;;  %v1407_v50 = vld [vmem:[#allocation2 + $0xf0] sm:$0xff]  ;;  %v1408_v32 = vld [vmem:[#allocation2 + $0xf8] sm:$0xff] }
 0x137   : > { %2429 = vmatprep.mubr.f32.mxu1 %v1379_v3 }
 0x139   : > { %2347 = vmatmul.mubr.f32.vlgmr.msra.gmra.mrb[0].mxu0 %v1378_v5 }
 0x13a   : > { %2349 = vmatprep.mubr.f32.mxu0 %v1379_v3  ;;  %2430 = vmatmul.mubr.f32.gmra.mrb[2].mxu1 %v1380_v14 }
 0x13b   : > { %2432 = vmatprep.mubr.f32.mxu1 %v1381_v46 }
 0x13d   : > { %2350 = vmatmul.mubr.f32.gmra.mrb[2].mxu0 %v1380_v14 }
 0x13e   : > { %2352 = vmatprep.mubr.f32.mxu0 %v1381_v46  ;;  %2433 = vmatmul.mubr.f32.gmra.mrb[4].mxu1 %v1382_v47 }
 0x13f   : > { %2435 = vmatprep.mubr.f32.mxu1 %v1383_v43 }
 0x141   : > { %2353 = vmatmul.mubr.f32.gmra.mrb[4].mxu0 %v1382_v47 }
 0x142   : > { %2355 = vmatprep.mubr.f32.mxu0 %v1383_v43  ;;  %2436 = vmatmul.mubr.f32.gmra.mrb[6].mxu1 %v1384_v42 }
 0x143   : > { %2438 = vmatprep.mubr.f32.mxu1 %v1385_v58 }
 0x145   : > { %2356 = vmatmul.mubr.f32.gmra.mrb[6].mxu0 %v1384_v42 }
 0x146   : > { %2358 = vmatprep.mubr.f32.mxu0 %v1385_v58  ;;  %2439 = vmatmul.mubr.f32.gmra.mrb[8].mxu1 %v1386_v8 }
 0x147   : > { %2441 = vmatprep.mubr.f32.mxu1 %v1387_v36 }
 0x149   : > { %2359 = vmatmul.mubr.f32.gmra.mrb[8].mxu0 %v1386_v8 }
 0x14a   : > { %2361 = vmatprep.mubr.f32.mxu0 %v1387_v36  ;;  %2442 = vmatmul.mubr.f32.gmra.mrb[10].mxu1 %v1388_v54 }
 0x14b   : > { %2444 = vmatprep.mubr.f32.mxu1 %v1389_v40 }
 0x14d   : > { %2362 = vmatmul.mubr.f32.gmra.mrb[10].mxu0 %v1388_v54 }
 0x14e   : > { %2364 = vmatprep.mubr.f32.mxu0 %v1389_v40  ;;  %2445 = vmatmul.mubr.f32.gmra.mrb[12].mxu1 %v1390_v2 }
 0x14f   : > { %2447 = vmatprep.mubr.f32.mxu1 %v1391_v16 }
 0x151   : > { %2365 = vmatmul.mubr.f32.gmra.mrb[12].mxu0 %v1390_v2 }
 0x152   : > { %2367 = vmatprep.mubr.f32.mxu0 %v1391_v16  ;;  %2448 = vmatmul.mubr.f32.gmra.mrb[14].mxu1 %v1392_v38 }
 0x153   : > { %2450 = vmatprep.mubr.f32.mxu1 %v1393_v61 }
 0x155   : > { %2368 = vmatmul.mubr.f32.gmra.mrb[14].mxu0 %v1392_v38 }
 0x156   : > { %2370 = vmatprep.mubr.f32.mxu0 %v1393_v61  ;;  %2451 = vmatmul.mubr.f32.gmra.mrb[16].mxu1 %v1394_v31 }
 0x157   : > { %2453 = vmatprep.mubr.f32.mxu1 %v1395_v30 }
 0x159   : > { %2371 = vmatmul.mubr.f32.gmra.mrb[16].mxu0 %v1394_v31 }
 0x15a   : > { %2373 = vmatprep.mubr.f32.mxu0 %v1395_v30  ;;  %2454 = vmatmul.mubr.f32.gmra.mrb[18].mxu1 %v1396_v52 }
 0x15b   : > { %2456 = vmatprep.mubr.f32.mxu1 %v1397_v33 }
 0x15d   : > { %2374 = vmatmul.mubr.f32.gmra.mrb[18].mxu0 %v1396_v52 }
 0x15e   : > { %2376 = vmatprep.mubr.f32.mxu0 %v1397_v33  ;;  %2457 = vmatmul.mubr.f32.gmra.mrb[20].mxu1 %v1398_v41 }
 0x15f   : > { %2459 = vmatprep.mubr.f32.mxu1 %v1399_v49 }
 0x161   : > { %2377 = vmatmul.mubr.f32.gmra.mrb[20].mxu0 %v1398_v41 }
 0x162   : > { %2379 = vmatprep.mubr.f32.mxu0 %v1399_v49  ;;  %2460 = vmatmul.mubr.f32.gmra.mrb[22].mxu1 %v1400_v27 }
 0x163   : > { %2462 = vmatprep.mubr.f32.mxu1 %v1401_v24 }
 0x165   : > { %2380 = vmatmul.mubr.f32.gmra.mrb[22].mxu0 %v1400_v27 }
 0x166   : > { %2382 = vmatprep.mubr.f32.mxu0 %v1401_v24  ;;  %2463 = vmatmul.mubr.f32.gmra.mrb[24].mxu1 %v1402_v6 }
 0x167   : > { %2465 = vmatprep.mubr.f32.mxu1 %v1403_v12 }
 0x169   : > { %2383 = vmatmul.mubr.f32.gmra.mrb[24].mxu0 %v1402_v6 }
 0x16a   : > { %2385 = vmatprep.mubr.f32.mxu0 %v1403_v12  ;;  %2466 = vmatmul.mubr.f32.gmra.mrb[26].mxu1 %v1404_v1 }
 0x16b   : > { %2468 = vmatprep.mubr.f32.mxu1 %v1405_v55 }
 0x16d   : > { %2386 = vmatmul.mubr.f32.gmra.mrb[26].mxu0 %v1404_v1 }
 0x16e   : > { %2388 = vmatprep.mubr.f32.mxu0 %v1405_v55  ;;  %2469 = vmatmul.mubr.f32.gmra.mrb[28].mxu1 %v1406_v57 }
 0x16f   : > { %2471 = vmatprep.mubr.f32.mxu1 %v1407_v50 }
 0x171   : > { %2389 = vmatmul.mubr.f32.gmra.mrb[28].mxu0 %v1406_v57 }
 0x172   : > { %2391 = vmatprep.mubr.f32.mxu0 %v1407_v50  ;;  %2472 = vmatmul.mubr.f32.gmra.mrb[30].mxu1 %v1408_v32 }
 0x175   : > { %2392 = vmatmul.mubr.f32.gmra.mrb[30].mxu0 %v1408_v32 }
 0x209   : > { %v2428_v20 = vpop.f32.mrb[0].mxu1 }
 0x20a   : > { %v1732_v34 = vpop.f32.mrb[1].mxu1 }
 0x20c   : > { %v2348_v19 = vpop.f32.mrb[0].mxu0 }
 0x20d   : > { %v1491_v9 = vpop.f32.mrb[1].mxu0  ;;  %v1892_v35 = vmax.f32 %v2348_v19, %v2428_v20  ;;  %v2431_v4 = vpop.f32.mrb[2].mxu1 }
 0x20e   : > { %v1891_v26 = vmax.f32 %v1491_v9, %v1732_v34  ;;  %v1742_v11 = vpop.f32.mrb[3].mxu1 }
 0x20f   : > { %v1925_v44 = vmul.f32 %v3907_v13, %v1892_v35 }
 0x210   : > { %v2351_v37 = vpop.f32.mrb[2].mxu0  ;;  %v1924_v45 = vmul.f32 %v3907_v13, %v1891_v26 }
 0x211   : > { %v1501_v48 = vpop.f32.mrb[3].mxu0  ;;  %v1958_v10 = vadd.f32 %v3912_v7, %v1925_v44  ;;  %v1894_v18 = vmax.f32 %v2351_v37, %v2431_v4  ;;  %v2434_v22 = vpop.f32.mrb[4].mxu1 }
 0x212   : > { %v1957_v28 = vadd.f32 %v3912_v7, %v1924_v45  ;;  %v1893_v17 = vmax.f32 %v1501_v48, %v1742_v11  ;;  %v1752_v62 = vpop.f32.mrb[5].mxu1 }
 0x213   : > { %1991 = vst.msk [vmem:[%s2720_s19 + $0x8] sm:$0xff] %vm1989_vm2, %v1958_v10  ;;  %v1927_v59 = vmul.f32 %v3907_v13, %v1894_v18 }
 0x214   : > { %v2354_v51 = vpop.f32.mrb[4].mxu0  ;;  %1990 = vst.msk [vmem:[%s2720_s19] sm:$0xff] %vm1989_vm2, %v1957_v28  ;;  %v1926_v53 = vmul.f32 %v3907_v13, %v1893_v17 }
 0x215   : > { %v1511_v15 = vpop.f32.mrb[5].mxu0  ;;  %v1960_v21 = vadd.f32 %v3912_v7, %v1927_v59  ;;  %v1896_v23 = vmax.f32 %v2354_v51, %v2434_v22  ;;  %v2437_v25 = vpop.f32.mrb[6].mxu1 }
 0x216   : > { %v1959_v0 = vadd.f32 %v3912_v7, %v1926_v53  ;;  %v1895_v56 = vmax.f32 %v1511_v15, %v1752_v62  ;;  %v1762_v14 = vpop.f32.mrb[7].mxu1 }
 0x217   : > { %1993 = vst.msk [vmem:[%s2720_s19 + $0x18] sm:$0xff] %vm1989_vm2, %v1960_v21  ;;  %v1929_v29 = vmul.f32 %v3907_v13, %v1896_v23 }
 0x218   : > { %v2357_v60 = vpop.f32.mrb[6].mxu0  ;;  %1992 = vst.msk [vmem:[%s2720_s19 + $0x10] sm:$0xff] %vm1989_vm2, %v1959_v0  ;;  %v1928_v63 = vmul.f32 %v3907_v13, %v1895_v56 }
 0x219   : > { %v1521_v39 = vpop.f32.mrb[7].mxu0  ;;  %v1962_v5 = vadd.f32 %v3912_v7, %v1929_v29  ;;  %v1898_v3 = vmax.f32 %v2357_v60, %v2437_v25  ;;  %v2440_v8 = vpop.f32.mrb[8].mxu1 }
 0x21a   : > { %v1961_v46 = vadd.f32 %v3912_v7, %v1928_v63  ;;  %v1897_v47 = vmax.f32 %v1521_v39, %v1762_v14  ;;  %v1772_v2 = vpop.f32.mrb[9].mxu1 }
 0x21b   : > { %1995 = vst.msk [vmem:[%s2720_s19 + $0x28] sm:$0xff] %vm1989_vm2, %v1962_v5  ;;  %v1931_v43 = vmul.f32 %v3907_v13, %v1898_v3 }
 0x21c   : > { %v2360_v42 = vpop.f32.mrb[8].mxu0  ;;  %1994 = vst.msk [vmem:[%s2720_s19 + $0x20] sm:$0xff] %vm1989_vm2, %v1961_v46  ;;  %v1930_v58 = vmul.f32 %v3907_v13, %v1897_v47 }
 0x21d   : > { %v1531_v36 = vpop.f32.mrb[9].mxu0  ;;  %v1964_v54 = vadd.f32 %v3912_v7, %v1931_v43  ;;  %v1900_v40 = vmax.f32 %v2360_v42, %v2440_v8  ;;  %v2443_v52 = vpop.f32.mrb[10].mxu1 }
 0x21e   : > { %v1963_v16 = vadd.f32 %v3912_v7, %v1930_v58  ;;  %v1899_v38 = vmax.f32 %v1531_v36, %v1772_v2  ;;  %v1782_v27 = vpop.f32.mrb[11].mxu1 }
 0x21f   : > { %1997 = vst.msk [vmem:[%s2720_s19 + $0x38] sm:$0xff] %vm1989_vm2, %v1964_v54  ;;  %v1933_v61 = vmul.f32 %v3907_v13, %v1900_v40 }
 0x220   : > { %v2363_v31 = vpop.f32.mrb[10].mxu0  ;;  %1996 = vst.msk [vmem:[%s2720_s19 + $0x30] sm:$0xff] %vm1989_vm2, %v1963_v16  ;;  %v1932_v30 = vmul.f32 %v3907_v13, %v1899_v38 }
 0x221   : > { %v1541_v33 = vpop.f32.mrb[11].mxu0  ;;  %v1966_v41 = vadd.f32 %v3912_v7, %v1933_v61  ;;  %v1902_v49 = vmax.f32 %v2363_v31, %v2443_v52  ;;  %v2446_v57 = vpop.f32.mrb[12].mxu1 }
 0x222   : > { %v1965_v24 = vadd.f32 %v3912_v7, %v1932_v30  ;;  %v1901_v6 = vmax.f32 %v1541_v33, %v1782_v27  ;;  %v1792_v20 = vpop.f32.mrb[13].mxu1 }
 0x223   : > { %1999 = vst.msk [vmem:[%s2720_s19 + $0x48] sm:$0xff] %vm1989_vm2, %v1966_v41  ;;  %v1935_v12 = vmul.f32 %v3907_v13, %v1902_v49 }
 0x224   : > { %v2366_v1 = vpop.f32.mrb[12].mxu0  ;;  %1998 = vst.msk [vmem:[%s2720_s19 + $0x40] sm:$0xff] %vm1989_vm2, %v1965_v24  ;;  %v1934_v55 = vmul.f32 %v3907_v13, %v1901_v6 }
 0x225   : > { %v1551_v50 = vpop.f32.mrb[13].mxu0  ;;  %v1968_v32 = vadd.f32 %v3912_v7, %v1935_v12  ;;  %v1904_v19 = vmax.f32 %v2366_v1, %v2446_v57  ;;  %v2449_v37 = vpop.f32.mrb[14].mxu1 }
 0x226   : > { %v1967_v9 = vadd.f32 %v3912_v7, %v1934_v55  ;;  %v1903_v35 = vmax.f32 %v1551_v50, %v1792_v20  ;;  %v1802_v10 = vpop.f32.mrb[15].mxu1 }
 0x227   : > { %2001 = vst.msk [vmem:[%s2720_s19 + $0x58] sm:$0xff] %vm1989_vm2, %v1968_v32  ;;  %v1937_v34 = vmul.f32 %v3907_v13, %v1904_v19 }
 0x228   : > { %v2369_v26 = vpop.f32.mrb[14].mxu0  ;;  %2000 = vst.msk [vmem:[%s2720_s19 + $0x50] sm:$0xff] %vm1989_vm2, %v1967_v9  ;;  %v1936_v44 = vmul.f32 %v3907_v13, %v1903_v35 }
 0x229   : > { %v1561_v45 = vpop.f32.mrb[15].mxu0  ;;  %v1970_v4 = vadd.f32 %v3912_v7, %v1937_v34  ;;  %v1906_v48 = vmax.f32 %v2369_v26, %v2449_v37  ;;  %v2452_v51 = vpop.f32.mrb[16].mxu1 }
 0x22a   : > { %v1969_v18 = vadd.f32 %v3912_v7, %v1936_v44  ;;  %v1905_v11 = vmax.f32 %v1561_v45, %v1802_v10  ;;  %v1812_v21 = vpop.f32.mrb[17].mxu1 }
 0x22b   : > { %2003 = vst.msk [vmem:[%s2720_s19 + $0x68] sm:$0xff] %vm1989_vm2, %v1970_v4  ;;  %v1939_v28 = vmul.f32 %v3907_v13, %v1906_v48 }
 0x22c   : > { %v2372_v17 = vpop.f32.mrb[16].mxu0  ;;  %2002 = vst.msk [vmem:[%s2720_s19 + $0x60] sm:$0xff] %vm1989_vm2, %v1969_v18  ;;  %v1938_v59 = vmul.f32 %v3907_v13, %v1905_v11 }
 0x22d   : > { %v1571_v53 = vpop.f32.mrb[17].mxu0  ;;  %v1972_v22 = vadd.f32 %v3912_v7, %v1939_v28  ;;  %v1908_v15 = vmax.f32 %v2372_v17, %v2452_v51  ;;  %v2455_v60 = vpop.f32.mrb[18].mxu1 }
 0x22e   : > { %v1971_v23 = vadd.f32 %v3912_v7, %v1938_v59  ;;  %v1907_v62 = vmax.f32 %v1571_v53, %v1812_v21  ;;  %v1822_v5 = vpop.f32.mrb[19].mxu1 }
 0x22f   : > { %2005 = vst.msk [vmem:[%s2720_s19 + $0x78] sm:$0xff] %vm1989_vm2, %v1972_v22  ;;  %v1941_v0 = vmul.f32 %v3907_v13, %v1908_v15 }
 0x230   : > { %v2375_v56 = vpop.f32.mrb[18].mxu0  ;;  %2004 = vst.msk [vmem:[%s2720_s19 + $0x70] sm:$0xff] %vm1989_vm2, %v1971_v23  ;;  %v1940_v29 = vmul.f32 %v3907_v13, %v1907_v62 }
 0x231   : > { %v1581_v63 = vpop.f32.mrb[19].mxu0  ;;  %v1974_v25 = vadd.f32 %v3912_v7, %v1941_v0  ;;  %v1910_v39 = vmax.f32 %v2375_v56, %v2455_v60  ;;  %v2458_v42 = vpop.f32.mrb[20].mxu1 }
 0x232   : > { %v1973_v3 = vadd.f32 %v3912_v7, %v1940_v29  ;;  %v1909_v14 = vmax.f32 %v1581_v63, %v1822_v5  ;;  %v1832_v54 = vpop.f32.mrb[21].mxu1 }
 0x233   : > { %2007 = vst.msk [vmem:[%s2720_s19 + $0x88] sm:$0xff] %vm1989_vm2, %v1974_v25  ;;  %v1943_v46 = vmul.f32 %v3907_v13, %v1910_v39 }
 0x234   : > { %v2378_v47 = vpop.f32.mrb[20].mxu0  ;;  %2006 = vst.msk [vmem:[%s2720_s19 + $0x80] sm:$0xff] %vm1989_vm2, %v1973_v3  ;;  %v1942_v43 = vmul.f32 %v3907_v13, %v1909_v14 }
 0x235   : > { %v1591_v58 = vpop.f32.mrb[21].mxu0  ;;  %v1976_v8 = vadd.f32 %v3912_v7, %v1943_v46  ;;  %v1912_v36 = vmax.f32 %v2378_v47, %v2458_v42  ;;  %v2461_v31 = vpop.f32.mrb[22].mxu1 }
 0x236   : > { %v1975_v40 = vadd.f32 %v3912_v7, %v1942_v43  ;;  %v1911_v2 = vmax.f32 %v1591_v58, %v1832_v54  ;;  %v1842_v41 = vpop.f32.mrb[23].mxu1 }
 0x237   : > { %2009 = vst.msk [vmem:[%s2720_s19 + $0x98] sm:$0xff] %vm1989_vm2, %v1976_v8  ;;  %v1945_v16 = vmul.f32 %v3907_v13, %v1912_v36 }
 0x238   : > { %v2381_v38 = vpop.f32.mrb[22].mxu0  ;;  %2008 = vst.msk [vmem:[%s2720_s19 + $0x90] sm:$0xff] %vm1989_vm2, %v1975_v40  ;;  %v1944_v61 = vmul.f32 %v3907_v13, %v1911_v2 }
 0x239   : > { %v1601_v30 = vpop.f32.mrb[23].mxu0  ;;  %v1978_v52 = vadd.f32 %v3912_v7, %v1945_v16  ;;  %v1914_v33 = vmax.f32 %v2381_v38, %v2461_v31  ;;  %v2464_v1 = vpop.f32.mrb[24].mxu1 }
 0x23a   : > { %v1977_v49 = vadd.f32 %v3912_v7, %v1944_v61  ;;  %v1913_v27 = vmax.f32 %v1601_v30, %v1842_v41  ;;  %v1852_v32 = vpop.f32.mrb[25].mxu1 }
 0x23b   : > { %2011 = vst.msk [vmem:[%s2720_s19 + $0xa8] sm:$0xff] %vm1989_vm2, %v1978_v52  ;;  %v1947_v24 = vmul.f32 %v3907_v13, %v1914_v33 }
 0x23c   : > { %v2384_v6 = vpop.f32.mrb[24].mxu0  ;;  %2010 = vst.msk [vmem:[%s2720_s19 + $0xa0] sm:$0xff] %vm1989_vm2, %v1977_v49  ;;  %v1946_v12 = vmul.f32 %v3907_v13, %v1913_v27 }
 0x23d   : > { %v1611_v55 = vpop.f32.mrb[25].mxu0  ;;  %v1980_v57 = vadd.f32 %v3912_v7, %v1947_v24  ;;  %v1916_v50 = vmax.f32 %v2384_v6, %v2464_v1  ;;  %v2467_v26 = vpop.f32.mrb[26].mxu1 }
 0x23e   : > { %v1979_v19 = vadd.f32 %v3912_v7, %v1946_v12  ;;  %v1915_v20 = vmax.f32 %v1611_v55, %v1852_v32  ;;  %v1862_v4 = vpop.f32.mrb[27].mxu1 }
 0x23f   : > { %2013 = vst.msk [vmem:[%s2720_s19 + $0xb8] sm:$0xff] %vm1989_vm2, %v1980_v57  ;;  %v1949_v9 = vmul.f32 %v3907_v13, %v1916_v50 }
 0x240   : > { %v2387_v35 = vpop.f32.mrb[26].mxu0  ;;  %2012 = vst.msk [vmem:[%s2720_s19 + $0xb0] sm:$0xff] %vm1989_vm2, %v1979_v19  ;;  %v1948_v34 = vmul.f32 %v3907_v13, %v1915_v20 }
 0x241   : > { %v1621_v44 = vpop.f32.mrb[27].mxu0  ;;  %v1982_v37 = vadd.f32 %v3912_v7, %v1949_v9  ;;  %v1918_v45 = vmax.f32 %v2387_v35, %v2467_v26  ;;  %v2470_v17 = vpop.f32.mrb[28].mxu1 }
 0x242   : > { %v1981_v48 = vadd.f32 %v3912_v7, %v1948_v34  ;;  %v1917_v10 = vmax.f32 %v1621_v44, %v1862_v4  ;;  %v1872_v22 = vpop.f32.mrb[29].mxu1 }
 0x243   : > { %2015 = vst.msk [vmem:[%s2720_s19 + $0xc8] sm:$0xff] %vm1989_vm2, %v1982_v37  ;;  %v1951_v18 = vmul.f32 %v3907_v13, %v1918_v45 }
 0x244   : > { %v2390_v11 = vpop.f32.mrb[28].mxu0  ;;  %2014 = vst.msk [vmem:[%s2720_s19 + $0xc0] sm:$0xff] %vm1989_vm2, %v1981_v48  ;;  %v1950_v28 = vmul.f32 %v3907_v13, %v1917_v10 }
 0x245   : > { %v1631_v59 = vpop.f32.mrb[29].mxu0  ;;  %v1984_v51 = vadd.f32 %v3912_v7, %v1951_v18  ;;  %v1920_v53 = vmax.f32 %v2390_v11, %v2470_v17  ;;  %v2473_v56 = vpop.f32.mrb[30].mxu1 }
 0x246   : > { %v1983_v15 = vadd.f32 %v3912_v7, %v1950_v28  ;;  %v1919_v21 = vmax.f32 %v1631_v59, %v1872_v22  ;;  %v1882_v25 = vpop.f32.mrb[31].mxu1 }
 0x247   : > { %2017 = vst.msk [vmem:[%s2720_s19 + $0xd8] sm:$0xff] %vm1989_vm2, %v1984_v51  ;;  %v1953_v23 = vmul.f32 %v3907_v13, %v1920_v53 }
 0x248   : > { %v2393_v62 = vpop.f32.mrb[30].mxu0  ;;  %2016 = vst.msk [vmem:[%s2720_s19 + $0xd0] sm:$0xff] %vm1989_vm2, %v1983_v15  ;;  %v1952_v0 = vmul.f32 %v3907_v13, %v1919_v21 }
 0x249   : > { %v1641_v29 = vpop.f32.mrb[31].mxu0  ;;  %v1986_v60 = vadd.f32 %v3912_v7, %v1953_v23  ;;  %v1922_v63 = vmax.f32 %v2393_v62, %v2473_v56 }
 0x24a   : > { %v1985_v39 = vadd.f32 %v3912_v7, %v1952_v0  ;;  %v1921_v5 = vmax.f32 %v1641_v29, %v1882_v25 }
 0x24b   : > { %2019 = vst.msk [vmem:[%s2720_s19 + $0xe8] sm:$0xff] %vm1989_vm2, %v1986_v60  ;;  %v1955_v3 = vmul.f32 %v3907_v13, %v1922_v63 }
 0x24c   : > { %2018 = vst.msk [vmem:[%s2720_s19 + $0xe0] sm:$0xff] %vm1989_vm2, %v1985_v39  ;;  %v1954_v14 = vmul.f32 %v3907_v13, %v1921_v5 }
 0x24d   : > { %v1988_v46 = vadd.f32 %v3912_v7, %v1955_v3 }
 0x24e   : > { %v1987_v47 = vadd.f32 %v3912_v7, %v1954_v14 }
 0x24f   : > { %2021 = vst.msk [vmem:[%s2720_s19 + $0xf8] sm:$0xff] %vm1989_vm2, %v1988_v46 }
 0x250   : > { %2020 = vst.msk [vmem:[%s2720_s19 + $0xf0] sm:$0xff] %vm1989_vm2, %v1987_v47 }
 0x251 PF: > { %s17_s28 = sadd.s32 1, %s2630_s28   ;;  %s4129_s24 = smov %s2622_s26 }
 0x252   : > { %p14_p12 = scmp.ge.s32.totalorder %s17_s28, 6   ;;  %s4130_s25 = smov %s2626_s27 }
 0x253   : > { %s4131_s26 = smov %s4134_s29  ;;  %s4132_s27 = smov %s4138_s30 }
 0x254   :  { %16 = sbr.rel (!%p14_p12) target bundleno = 3 (0x3), region = 109 }

// kernel: _lambda_.8
= control target key start
LH: loop header
LB: loop body
LE: loop exit
PB: predicated region body
PF: predicated region fallthrough
CT: control target
= control target key end

     0   :  { %s2184_s24 = smov 0   ;;  %s2186_s25 = smov 0   ;;  %s2962_s0 = inlined_call_operand.vmem [shape: f32[2,64,512], index: 0, kind: input, shape index: {}]   ;;  %s2963_s1 = inlined_call_operand.vmem [shape: f32[9,8,512], index: 1, kind: input, shape index: {}]   ;;  %s2964_s2 = inlined_call_operand.vmem [shape: f32[8,64], index: 2, kind: input, shape index: {}]   ;;  %s2965_s3 = inlined_call_operand.vmem [shape: f32[64,32], index: 3, kind: input, shape index: {}]   ;;  %s2966_s4 = inlined_call_operand.vmem [shape: f32[64,32], index: 4, kind: input, shape index: {}]   ;;  %s2967_s5 = inlined_call_operand.vmem [shape: f32[1,8,32], index: 5, kind: input, shape index: {}]   ;;  %s2968_s6 = inlined_call_operand.vmem [shape: f32[1,8,32], index: 6, kind: input, shape index: {}]   ;;  %s2969_s7 = inlined_call_operand.vmem [shape: f32[2,32,8,32], index: 7, kind: output, shape index: {}]  }
   0x1   :  { %s2188_s26 = smov 0  }
   0x2 LB: > { %s29_s27 = sadd.s32 1, %s2131_s25  ;;  %p1714_p0 = scmp.ge.s32.totalorder %s2135_s26, 1  ;;  %s2135_s26 = sphi %s2188_s26, %s17_s26   ;;  %s2131_s25 = sphi %s2186_s25, %s2971_s25   ;;  %s2127_s24 = sphi %s2184_s24, %s2970_s24  }
   0x3   : > { %p31_p1 = scmp.ge.s32.totalorder %s29_s27, 2  ;;  %p251_p2 = scmp.lt.s32.totalorder %s2135_s26, 3 }
   0x5   : > { %s2973_s27 = smov (%p31_p1, %s29_s27), 0  ;;  %p252_p3 = pnand %p1714_p0, %p251_p2 }
   0x6   : > { %p287_p4 = scmp.lt.s32.totalorder (!%p252_p3), %s2127_s24, 1  ;;  %s2212_s12 = smov (!%p252_p3), 0  }
   0x7   : > { %255 = sbr.rel (%p252_p3) target bundleno = 624 (0x270), region = 48 }
   0xe   : > { %s2975_s24 = smov (!%p287_p4, %s2127_s24), 1 }
   0xf   : > { %s1828_s28 = sshll.u32 %s2975_s24, 8 }
  0x10   : > { %s2205_s8 = scalar_lea.vmem %s2962_s0, %s1828_s28  ;;  %s2210_s11 = scalar_lea.vmem %s2969_s7, %s1828_s28 }
  0x11 LB: >> { %v338_v0 = vlaneseq  ;;  %s2218_s13 = sshll.u32 %s2139_s12, 1  ;;  %s2141_s23 = smov 1   ;;  %v1726_v31 = vld [vmem:[%s2963_s1 + $0x28] sm:$0xff]  ;;  %v1727_v34 = vld [vmem:[%s2963_s1 + $0x30] sm:$0xff]  ;;  %v1725_v35 = vld [vmem:[%s2963_s1 + $0x20] sm:$0xff]  ;;  %vm882_vm2 = vcmask 523264   ;;  %s2139_s12 = sphi %s2212_s12, %s308_s12  }
  0x12   : >> { %s328_s14 = sshra.s32 %s2218_s13, 3  ;;  %s331_s15 = sand.u32 7, %s2218_s13  ;;  %v407_v36 = vld [vmem:[%s2963_s1 + $0x8] sm:$0xff]  ;;  %v1728_v38 = vld [vmem:[%s2963_s1 + $0x38] sm:$0xff]  ;;  %v406_v46 = vld [vmem:[%s2963_s1] sm:$0xff] }
  0x13   : >> { %v339_v1 = vshrl.u32 %v338_v0, 7  ;;  %s1831_s16 = sshll.u32 %s328_s14, 5  ;;  %s1720_s17 = sadd.s32 4294967295, %s2218_s13  ;;  %v2351_v30 = vand.u32 127, %v338_v0  ;;  %v408_v48 = vld [vmem:[%s2963_s1 + $0x10] sm:$0xff]  ;;  %v409_v49 = vld [vmem:[%s2963_s1 + $0x18] sm:$0xff] }
  0x14   : >> { %s334_s18 = sadd.s32 %s1831_s16, %s331_s15  ;;  %p312_p5 = scmp.gt.s32.totalorder %s1720_s17, 0 }
  0x15   : >> { %v2223_v2 = vsub.s32 0, %v339_v1  ;;  %v2225_v3 = vsub.s32 1, %v339_v1  ;;  %s335_s19 = scalar_lea.vmem %s2205_s8, %s334_s18  ;;  %v2229_v4 = vsub.s32 3, %v339_v1  ;;  %v2231_v5 = vsub.s32 2, %v339_v1  ;;  %p323_p6 = scmp.ge.s32.totalorder %s1720_s17, 0 }
  0x16   : >> { %v336_v6 = vld [vmem:[%s335_s19] ss:$8 sm:$0xf]  ;;  %s2977_s17 = smov (!%p312_p5, %s1720_s17), 0  ;;  %s557_s9 = sadd.s32 1, %s2218_s13  ;;  %vm368_vm0 = vcmp.lt.s32.totalorder %v2351_v30, 1 }
  0x17   : >> { %v2234_v7 = vrot.slane %v336_v6, %v2225_v3  ;;  %v2237_v8 = vrot.slane %v336_v6, %v2223_v2  ;;  %s324_s20 = scalar_select %p323_p6, 1, 0  ;;  %v2244_v9 = vrot.slane %v336_v6, %v2229_v4  ;;  %v2247_v10 = vrot.slane %v336_v6, %v2231_v5 }
  0x18   : >> { %s314_s21 = sshra.s32 %s2977_s17, 3  ;;  %s317_s22 = sand.u32 7, %s2977_s17  ;;  %vm487_vm1 = vcmp.lt.s32.totalorder %v2351_v30, 127 }
  0x19   : >> { %396 = vrot.lane.b32.xlu1 %v2234_v7, %s2141_s23  ;;  %394 = vrot.lane.b32.xlu0 %v2237_v8, %s2141_s23  ;;  %s1830_s24 = sshll.u32 %s314_s21, 5  ;;  %s325_s28 = scvt.s32.f32 %s324_s20  ;;  %v472_v39 = vmul.f32 %v1726_v31, %v2234_v7  ;;  %v471_v43 = vmul.f32 %v1725_v35, %v2237_v8  ;;  %v473_v44 = vmul.f32 %v1727_v34, %v2247_v10 }
  0x1a   : >> { %s320_s29 = sadd.s32 %s1830_s24, %s317_s22  ;;  %s558_s10 = sshra.s32 %s557_s9, 3  ;;  %v474_v50 = vmul.f32 %v1728_v38, %v2244_v9 }
  0x1b   : >> { %s321_s30 = scalar_lea.vmem %s2205_s8, %s320_s29  ;;  %v326_v11 = vstv %s325_s28  ;;  %s707_s14 = sadd.s32 2, %s2218_s13 }
  0x1c   : >> { %v322_v12 = vld [vmem:[%s321_s30] ss:$8 sm:$0xf]  ;;  %s2142_s15 = smov 127   ;;  %s561_s16 = sand.u32 7, %s557_s9 }
  0x1d   : >> { %400 = vrot.lane.b32.xlu1 %v2244_v9, %s2141_s23  ;;  %398 = vrot.lane.b32.xlu0 %v2247_v10, %s2141_s23  ;;  %v327_v13 = vmul.f32 %v326_v11, %v322_v12  ;;  %s1832_s17 = sshll.u32 %s558_s10, 5  ;;  %p708_p7 = scmp.lt.s32.totalorder %s707_s14, 63 }
  0x1e   : >> { %s564_s18 = sadd.s32 %s1832_s17, %s561_s16  ;;  %p719_p8 = scmp.le.s32.totalorder %s707_s14, 63 }
  0x1f   : >> { %v2255_v14 = vrot.slane %v327_v13, %v2231_v5  ;;  %v2258_v15 = vrot.slane %v327_v13, %v2223_v2  ;;  %v2265_v16 = vrot.slane %v327_v13, %v2229_v4  ;;  %v2268_v17 = vrot.slane %v327_v13, %v2225_v3  ;;  %s709_s19 = scalar_select %p708_p7, %s707_s14, 63 }
  0x20   : >> { %s565_s20 = scalar_lea.vmem %s2205_s8, %s564_s18  ;;  %s2143_s16 = smov 64  }
  0x21   : >> { %362 = vrot.lane.b32.xlu1 %v2255_v14, %s2141_s23  ;;  %358 = vrot.lane.b32.xlu0 %v2258_v15, %s2141_s23  ;;  %v566_v18 = vld [vmem:[%s565_s20] ss:$8 sm:$0xf]  ;;  %s710_s13 = sshra.s32 %s709_s19, 3  ;;  %s713_s21 = sand.u32 7, %s709_s19  ;;  %v465_v1 = vmul.f32 %v1727_v34, %v2255_v14 }
  0x22   : >> { %v2294_v19 = vrot.slane %v566_v18, %v2225_v3  ;;  %v2297_v20 = vrot.slane %v566_v18, %v2223_v2  ;;  %s1833_s22 = sshll.u32 %s710_s13, 5  ;;  %v2304_v21 = vrot.slane %v566_v18, %v2229_v4  ;;  %v2307_v22 = vrot.slane %v566_v18, %v2231_v5  ;;  %s1761_s18 = sshll.u32 %s2139_s12, 3 }
  0x23   : >> { %s720_s24 = scalar_select %p719_p8, 1, 0 }
  0x24   : >> { %s716_s28 = sadd.s32 %s1833_s22, %s713_s21  ;;  %s881_s19 = scalar_lea.vmem [#allocation2], %s1761_s18 }
  0x25   : >> { %364 = vrot.lane.b32.xlu1 %v2265_v16, %s2141_s23  ;;  %360 = vrot.lane.b32.xlu0 %v2268_v17, %s2141_s23  ;;  %s721_s29 = scvt.s32.f32 %s720_s24  ;;  %s717_s30 = scalar_lea.vmem %s2205_s8, %s716_s28 }
  0x26   : >> { %v718_v23 = vld [vmem:[%s717_s30] ss:$8 sm:$0xf]  ;;  %s308_s12 = sadd.s32 1, %s2139_s12  }
  0x27   : >> { %v722_v24 = vstv %s721_s29  ;;  %p305_p9 = scmp.ge.s32.totalorder %s308_s12, 32  }
  0x28   : >> { %v723_v25 = vmul.f32 %v722_v24, %v718_v23  ;;  %vm1577_vm3 = vcmask (%p305_p9), 261120  }
  0x29   : >> { %481 = vrot.lane.b32.xlu1 %v2268_v17, %s2142_s15  ;;  %479 = vrot.lane.b32.xlu0 %v2258_v15, %s2142_s15 }
  0x2a   : >> { %v2323_v26 = vrot.slane %v723_v25, %v2225_v3  ;;  %v2326_v27 = vrot.slane %v723_v25, %v2223_v2  ;;  %v2333_v28 = vrot.slane %v723_v25, %v2229_v4  ;;  %v2336_v29 = vrot.slane %v723_v25, %v2231_v5 }
  0x2b   : >> { %v463_v3 = vmul.f32 %v1725_v35, %v2258_v15  ;;  %v466_v4 = vmul.f32 %v1728_v38, %v2265_v16  ;;  %v464_v5 = vmul.f32 %v1726_v31, %v2268_v17 }
  0x2d   : >> { %485 = vrot.lane.b32.xlu1 %v2265_v16, %s2142_s15  ;;  %483 = vrot.lane.b32.xlu0 %v2255_v14, %s2142_s15 }
  0x31   : >> { %494 = vrot.lane.b32.xlu1 %v2234_v7, %s2142_s15  ;;  %492 = vrot.lane.b32.xlu0 %v2237_v8, %s2142_s15 }
  0x35   : >> { %498 = vrot.lane.b32.xlu1 %v2244_v9, %s2142_s15  ;;  %496 = vrot.lane.b32.xlu0 %v2247_v10, %s2142_s15 }
  0x39   : >> { %590 = vrot.lane.b32.xlu1 %v2294_v19, %s2141_s23  ;;  %588 = vrot.lane.b32.xlu0 %v2297_v20, %s2141_s23 }
  0x3d   : >> { %594 = vrot.lane.b32.xlu1 %v2304_v21, %s2141_s23  ;;  %592 = vrot.lane.b32.xlu0 %v2307_v22, %s2141_s23 }
  0x41   : >> { %660 = vrot.lane.b32.xlu1 %v2294_v19, %s2142_s15  ;;  %658 = vrot.lane.b32.xlu0 %v2297_v20, %s2142_s15 }
  0x45   : >> { %664 = vrot.lane.b32.xlu1 %v2304_v21, %s2142_s15  ;;  %662 = vrot.lane.b32.xlu0 %v2307_v22, %s2142_s15 }
  0x49   : >> { %747 = vrot.lane.b32.xlu1 %v2323_v26, %s2141_s23  ;;  %745 = vrot.lane.b32.xlu0 %v2326_v27, %s2141_s23 }
  0x4d   : >> { %751 = vrot.lane.b32.xlu1 %v2333_v28, %s2141_s23  ;;  %749 = vrot.lane.b32.xlu0 %v2336_v29, %s2141_s23 }
  0x51   : >> { %817 = vrot.lane.b32.xlu1 %v2323_v26, %s2142_s15  ;;  %815 = vrot.lane.b32.xlu0 %v2326_v27, %s2142_s15 }
  0x55   : >> { %821 = vrot.lane.b32.xlu1 %v2333_v28, %s2142_s15  ;;  %819 = vrot.lane.b32.xlu0 %v2336_v29, %s2142_s15 }
  0x8b   : >> { %v397_v32 = vpop.permute.xlu1 %396  ;;  %v395_v33 = vpop.permute.xlu0 %394 }
  0x8c   : >> { %v404_v37 = vsel %vm368_vm0, %v395_v33, %v397_v32 }
  0x8d   : >> { %v2373_v40 = vrot.slane %v404_v37, %v2223_v2 }
  0x8f   : >> { %v451_v41 = vmul.f32 %v2373_v40, %v407_v36  ;;  %v401_v42 = vpop.permute.xlu1 %400  ;;  %v399_v45 = vpop.permute.xlu0 %398 }
  0x90   : >> { %v405_v47 = vsel %vm368_vm0, %v401_v42, %v395_v33  ;;  %v402_v51 = vsel %vm368_vm0, %v399_v45, %v401_v42  ;;  %v403_v52 = vsel %vm368_vm0, %v397_v32, %v399_v45  ;;  %v1729_v42 = vld [vmem:[%s2963_s1 + $0x40] sm:$0xff] }
  0x91   : >> { %v2394_v53 = vadd.f32 %v472_v39, %v451_v41  ;;  %v437_v54 = vrot.slane %v405_v47, %v2223_v2  ;;  %v2398_v55 = vrot.slane %v403_v52, %v2223_v2  ;;  %v2401_v56 = vrot.slane %v402_v51, %v2223_v2  ;;  %v2447_v45 = vld [vmem:[%s2963_s1 + $0x60] sm:$0xff]  ;;  %v1732_v51 = vld [vmem:[%s2963_s1 + $0x58] sm:$0xff] }
  0x93   : >> { %v450_v57 = vmul.f32 %v437_v54, %v406_v46  ;;  %v452_v58 = vmul.f32 %v2398_v55, %v408_v48  ;;  %v453_v59 = vmul.f32 %v2401_v56, %v409_v49  ;;  %v363_v60 = vpop.permute.xlu1 %362  ;;  %v359_v61 = vpop.permute.xlu0 %358 }
  0x95   : >> { %v2405_v62 = vadd.f32 %v471_v43, %v450_v57  ;;  %v2407_v63 = vadd.f32 %v473_v44, %v452_v58  ;;  %v2409_v0 = vadd.f32 %v474_v50, %v453_v59  ;;  %v2436_v43 = vld [vmem:[%s2963_s1 + $0x68] sm:$0xff]  ;;  %v2442_v44 = vld [vmem:[%s2963_s1 + $0x80] sm:$0xff]  ;;  %v1731_v58 = vld [vmem:[%s2963_s1 + $0x50] sm:$0xff] }
  0x96   : >> { %v1730_v57 = vld [vmem:[%s2963_s1 + $0x48] sm:$0xff] }
  0x97   : >> { %v365_v6 = vpop.permute.xlu1 %364  ;;  %v361_v11 = vpop.permute.xlu0 %360 }
  0x98   : >> { %v369_v12 = vsel %vm368_vm0, %v363_v60, %v365_v6  ;;  %v372_v13 = vsel %vm368_vm0, %v365_v6, %v359_v61  ;;  %v370_v18 = vsel %vm368_vm0, %v361_v11, %v363_v60  ;;  %v371_v14 = vsel %vm368_vm0, %v359_v61, %v361_v11  ;;  %v2477_v61 = vld [vmem:[%s2963_s1 + $0x70] sm:$0xff] }
  0x99   : >> { %v413_v15 = vrot.slane %v372_v13, %v2223_v2  ;;  %v425_v16 = vrot.slane %v369_v12, %v2223_v2  ;;  %v417_v17 = vrot.slane %v371_v14, %v2223_v2  ;;  %v421_v23 = vrot.slane %v370_v18, %v2223_v2 }
  0x9a   : >> { %v642_v6 = vmul.f32 %v2442_v44, %v2237_v8  ;;  %v605_v11 = vmul.f32 %v2447_v45, %v437_v54  ;;  %v606_v14 = vmul.f32 %v2436_v43, %v2373_v40  ;;  %v2499_v8 = vld [vmem:[%s2963_s1 + $0x90] sm:$0xff]  ;;  %v607_v54 = vmul.f32 %v2477_v61, %v2398_v55 }
  0x9b   : >> { %v426_v24 = vmul.f32 %v413_v15, %v406_v46  ;;  %v429_v25 = vmul.f32 %v425_v16, %v409_v49  ;;  %v427_v31 = vmul.f32 %v417_v17, %v407_v36  ;;  %v428_v32 = vmul.f32 %v421_v23, %v408_v48  ;;  %v482_v33 = vpop.permute.xlu1 %481  ;;  %v480_v34 = vpop.permute.xlu0 %479  ;;  %v2452_v48 = vld [vmem:[%s2963_s1 + $0x98] sm:$0xff]  ;;  %v2457_v49 = vld [vmem:[%s2963_s1 + $0x88] sm:$0xff] }
  0x9c   : >> { %v490_v35 = vsel %vm487_vm1, %v480_v34, %v482_v33  ;;  %v645_v13 = vmul.f32 %v2452_v48, %v2244_v9  ;;  %v643_v18 = vmul.f32 %v2457_v49, %v2234_v7  ;;  %v644_v55 = vmul.f32 %v2499_v8, %v2247_v10 }
  0x9d   : >> { %v467_v37 = vadd.f32 %v463_v3, %v426_v24  ;;  %v470_v38 = vadd.f32 %v466_v4, %v429_v25  ;;  %v468_v39 = vadd.f32 %v464_v5, %v427_v31  ;;  %v469_v41 = vadd.f32 %v465_v1, %v428_v32  ;;  %v2482_v1 = vld [vmem:[%s2963_s1 + $0x78] sm:$0xff] }
  0x9e   : >> { %v512_v36 = vrot.slane %v490_v35, %v2223_v2  ;;  %v608_v9 = vmul.f32 %v2482_v1, %v2401_v56 }
  0x9f   : >> { %v486_v46 = vpop.permute.xlu1 %485  ;;  %v484_v47 = vpop.permute.xlu0 %483 }
  0xa0   : >> { %v525_v50 = vmul.f32 %v1729_v42, %v512_v36  ;;  %v491_v52 = vsel %vm487_vm1, %v486_v46, %v480_v34  ;;  %v488_v59 = vsel %vm487_vm1, %v484_v47, %v486_v46  ;;  %v489_v60 = vsel %vm487_vm1, %v482_v33, %v484_v47  ;;  %v2510_v33 = vld [vmem:[%s2963_s1 + $0xa0] sm:$0xff] }
  0xa1   : >> { %v524_v3 = vrot.slane %v491_v52, %v2223_v2  ;;  %v516_v4 = vrot.slane %v489_v60, %v2223_v2  ;;  %v520_v5 = vrot.slane %v488_v59, %v2223_v2 }
  0xa2   : >> { %v529_v12 = vadd.f32 %v525_v50, %v467_v37 }
  0xa3   : >> { %v528_v15 = vmul.f32 %v1732_v51, %v524_v3  ;;  %v526_v16 = vmul.f32 %v1730_v57, %v516_v4  ;;  %v527_v17 = vmul.f32 %v1731_v58, %v520_v5  ;;  %v495_v23 = vpop.permute.xlu1 %494  ;;  %v493_v24 = vpop.permute.xlu0 %492  ;;  %v2532_v4 = vld [vmem:[%s2963_s1 + $0xa8] sm:$0xff]  ;;  %v2537_v5 = vld [vmem:[%s2963_s1 + $0xb0] sm:$0xff] }
  0xa4   : >> { %v609_v7 = vadd.f32 %v605_v11, %v529_v12  ;;  %v502_v40 = vsel %vm487_vm1, %v493_v24, %v495_v23 }
  0xa5   : >> { %v532_v25 = vadd.f32 %v528_v15, %v470_v38  ;;  %v530_v31 = vadd.f32 %v526_v16, %v468_v39  ;;  %v531_v32 = vadd.f32 %v527_v17, %v469_v41  ;;  %v536_v34 = vrot.slane %v502_v40, %v2223_v2  ;;  %v2519_v39 = vld [vmem:[%s2963_s1 + $0xb8] sm:$0xff]  ;;  %v2550_v17 = vld [vmem:[%s2963_s1 + $0xe0] sm:$0xff] }
  0xa6   : >> { %v646_v35 = vadd.f32 %v642_v6, %v609_v7  ;;  %v2542_v6 = vld [vmem:[%s2963_s1 + $0xe8] sm:$0xff] }
  0xa7   : >> { %v612_v37 = vadd.f32 %v608_v9, %v532_v25  ;;  %v610_v56 = vadd.f32 %v606_v14, %v530_v31  ;;  %v611_v36 = vadd.f32 %v607_v54, %v531_v32  ;;  %v549_v46 = vmul.f32 %v1729_v42, %v536_v34  ;;  %v499_v47 = vpop.permute.xlu1 %498  ;;  %v497_v50 = vpop.permute.xlu0 %496 }
  0xa8   : >> { %v675_v38 = vmul.f32 %v2510_v33, %v536_v34  ;;  %v503_v41 = vsel %vm487_vm1, %v499_v47, %v493_v24  ;;  %v500_v52 = vsel %vm487_vm1, %v497_v50, %v499_v47  ;;  %v501_v10 = vsel %vm487_vm1, %v495_v23, %v497_v50  ;;  %v2555_v23 = vld [vmem:[%s2963_s1 + $0xf8] sm:$0xff]  ;;  %v2560_v24 = vld [vmem:[%s2963_s1 + $0xf0] sm:$0xff] }
  0xa9   : >> { %v553_v42 = vadd.f32 %v549_v46, %v2405_v62  ;;  %v548_v59 = vrot.slane %v503_v41, %v2223_v2  ;;  %v649_v60 = vadd.f32 %v645_v13, %v612_v37  ;;  %v647_v3 = vadd.f32 %v643_v18, %v610_v56  ;;  %v2586_v46 = vld [vmem:[%s2963_s1 + $0xc0] sm:$0xff] }
  0xaa   : >> { %v679_v62 = vadd.f32 %v675_v38, %v646_v35  ;;  %v648_v11 = vadd.f32 %v644_v55, %v611_v36  ;;  %v540_v12 = vrot.slane %v501_v10, %v2223_v2  ;;  %v544_v13 = vrot.slane %v500_v52, %v2223_v2 }
  0xab   : >> { %v552_v18 = vmul.f32 %v1732_v51, %v548_v59  ;;  %v678_v14 = vmul.f32 %v2519_v39, %v548_v59  ;;  %v591_v15 = vpop.permute.xlu1 %590  ;;  %v589_v16 = vpop.permute.xlu0 %588  ;;  %v800_v40 = vmul.f32 %v2542_v6, %v2294_v19  ;;  %v799_v37 = vmul.f32 %v2550_v17, %v2297_v20 }
  0xac   : >> { %v550_v51 = vmul.f32 %v1730_v57, %v540_v12  ;;  %v551_v54 = vmul.f32 %v1731_v58, %v544_v13  ;;  %v676_v9 = vmul.f32 %v2532_v4, %v540_v12  ;;  %v677_v7 = vmul.f32 %v2537_v5, %v544_v13  ;;  %v2574_v58 = vld [vmem:[%s2963_s1 + $0xc8] sm:$0xff] }
  0xad   : >> { %v556_v25 = vadd.f32 %v552_v18, %v2409_v0  ;;  %v682_v31 = vadd.f32 %v678_v14, %v649_v60  ;;  %v598_v32 = vsel %vm368_vm0, %v589_v16, %v591_v15  ;;  %v802_v0 = vmul.f32 %v2555_v23, %v2304_v21  ;;  %v2602_v60 = vld [vmem:[%s2963_s1 + $0xd0] sm:$0xff] }
  0xae   : >> { %v554_v34 = vadd.f32 %v550_v51, %v2394_v53  ;;  %v555_v35 = vadd.f32 %v551_v54, %v2407_v63  ;;  %v680_v55 = vadd.f32 %v676_v9, %v647_v3  ;;  %v681_v57 = vadd.f32 %v677_v7, %v648_v11  ;;  %v2607_v3 = vld [vmem:[%s2963_s1 + $0xd8] sm:$0xff] }
  0xaf   : >> { %v801_v56 = vmul.f32 %v2560_v24, %v2307_v22  ;;  %v620_v53 = vrot.slane %v598_v32, %v2223_v2  ;;  %v595_v36 = vpop.permute.xlu1 %594  ;;  %v593_v63 = vpop.permute.xlu0 %592  ;;  %v651_v41 = vmul.f32 %v2457_v49, %v2294_v19  ;;  %v653_v49 = vmul.f32 %v2452_v48, %v2304_v21 }
  0xb0   : >> { %v599_v47 = vsel %vm368_vm0, %v595_v36, %v589_v16  ;;  %v596_v50 = vsel %vm368_vm0, %v593_v63, %v595_v36  ;;  %v597_v38 = vsel %vm368_vm0, %v591_v15, %v593_v63  ;;  %v652_v12 = vmul.f32 %v2499_v8, %v2307_v22  ;;  %v2634_v63 = vld [vmem:[%s2963_s1 + $0x118] sm:$0xff] }
  0xb1   : >> { %v630_v52 = vmul.f32 %v2436_v43, %v620_v53  ;;  %v763_v10 = vmul.f32 %v2574_v58, %v620_v53  ;;  %v616_v59 = vrot.slane %v599_v47, %v2223_v2  ;;  %v624_v11 = vrot.slane %v597_v38, %v2223_v2 }
  0xb2   : >> { %v628_v19 = vrot.slane %v596_v50, %v2223_v2  ;;  %v650_v43 = vmul.f32 %v2442_v44, %v2297_v20 }
  0xb3   : >> { %v634_v13 = vadd.f32 %v630_v52, %v554_v34  ;;  %v767_v18 = vadd.f32 %v763_v10, %v680_v55  ;;  %v629_v14 = vmul.f32 %v2447_v45, %v616_v59  ;;  %v762_v15 = vmul.f32 %v2586_v46, %v616_v59  ;;  %v661_v16 = vpop.permute.xlu1 %660  ;;  %v659_v51 = vpop.permute.xlu0 %658 }
  0xb4   : >> { %v631_v54 = vmul.f32 %v2477_v61, %v624_v11  ;;  %v632_v9 = vmul.f32 %v2482_v1, %v628_v19  ;;  %v764_v20 = vmul.f32 %v2602_v60, %v624_v11  ;;  %v765_v44 = vmul.f32 %v2607_v3, %v628_v19  ;;  %v2628_v61 = vld [vmem:[%s2963_s1 + $0x100] sm:$0xff] }
  0xb5   : >> { %v633_v21 = vadd.f32 %v629_v14, %v553_v42  ;;  %v766_v48 = vadd.f32 %v762_v15, %v679_v62  ;;  %v668_v22 = vsel %vm487_vm1, %v659_v51, %v661_v16  ;;  %v655_v8 = vadd.f32 %v651_v41, %v634_v13 }
  0xb6   : >> { %v635_v7 = vadd.f32 %v631_v54, %v555_v35  ;;  %v636_v45 = vadd.f32 %v632_v9, %v556_v25  ;;  %v768_v32 = vadd.f32 %v764_v20, %v681_v57  ;;  %v769_v34 = vadd.f32 %v765_v44, %v682_v31 }
  0xb7   : >> { %v654_v1 = vadd.f32 %v650_v43, %v633_v21  ;;  %v686_v55 = vrot.slane %v668_v22, %v2223_v2  ;;  %v803_v53 = vadd.f32 %v799_v37, %v766_v48  ;;  %v665_v36 = vpop.permute.xlu1 %664  ;;  %v804_v42 = vadd.f32 %v800_v40, %v767_v18  ;;  %v663_v62 = vpop.permute.xlu0 %662 }
  0xb8   : >> { %v657_v25 = vadd.f32 %v653_v49, %v636_v45  ;;  %v669_v31 = vsel %vm487_vm1, %v665_v36, %v659_v51  ;;  %v806_v35 = vadd.f32 %v802_v0, %v769_v34  ;;  %v656_v57 = vadd.f32 %v652_v12, %v635_v7 }
  0xb9   : >> { %v699_v47 = vmul.f32 %v2510_v33, %v686_v55  ;;  %v832_v50 = vmul.f32 %v2628_v61, %v686_v55  ;;  %v698_v37 = vrot.slane %v669_v31, %v2223_v2  ;;  %v805_v38 = vadd.f32 %v801_v56, %v768_v32  ;;  %v1758_v33 = vld [vmem:[%s2963_s1 + $0x108] sm:$0xff]  ;;  %v1759_v56 = vld [vmem:[%s2963_s1 + $0x110] sm:$0xff] }
  0xba   : >> { %v666_v40 = vsel %vm487_vm1, %v663_v62, %v665_v36  ;;  %v667_v41 = vsel %vm487_vm1, %v661_v16, %v663_v62  ;;  %v808_v54 = vmul.f32 %v2542_v6, %v2323_v26  ;;  %v807_v45 = vmul.f32 %v2550_v17, %v2326_v27 }
  0xbb   : >> { %v703_v52 = vadd.f32 %v699_v47, %v654_v1  ;;  %v836_v10 = vadd.f32 %v832_v50, %v803_v53  ;;  %v702_v59 = vmul.f32 %v2519_v39, %v698_v37  ;;  %v835_v0 = vmul.f32 %v2634_v63, %v698_v37  ;;  %v748_v11 = vpop.permute.xlu1 %747  ;;  %v746_v19 = vpop.permute.xlu0 %745 }
  0xbc   : >> { %v690_v43 = vrot.slane %v667_v41, %v2223_v2  ;;  %v694_v49 = vrot.slane %v666_v40, %v2223_v2  ;;  %v755_v12 = vsel %vm368_vm0, %v746_v19, %v748_v11  ;;  %v810_v34 = vmul.f32 %v2555_v23, %v2333_v28 }
  0xbd   : >> { %v706_v39 = vadd.f32 %v702_v59, %v657_v25  ;;  %v839_v13 = vadd.f32 %v835_v0, %v806_v35  ;;  %v777_v18 = vrot.slane %v755_v12, %v2223_v2  ;;  %v809_v27 = vmul.f32 %v2560_v24, %v2336_v29 }
  0xbe   : >> { %v700_v14 = vmul.f32 %v2532_v4, %v690_v43  ;;  %v701_v15 = vmul.f32 %v2537_v5, %v694_v49  ;;  %v833_v16 = vmul.f32 %v1758_v33, %v690_v43  ;;  %v834_v51 = vmul.f32 %v1759_v56, %v694_v49 }
  0xbf   : >> { %v787_v9 = vmul.f32 %v2574_v58, %v777_v18  ;;  %v752_v20 = vpop.permute.xlu1 %751  ;;  %v750_v44 = vpop.permute.xlu0 %749 }
  0xc0   : >> { %v704_v21 = vadd.f32 %v700_v14, %v655_v8  ;;  %v705_v48 = vadd.f32 %v701_v15, %v656_v57  ;;  %v837_v22 = vadd.f32 %v833_v16, %v804_v42  ;;  %v838_v7 = vadd.f32 %v834_v51, %v805_v38  ;;  %v917_v51 = vld [vmem:[%s2965_s3 + $0x8] sm:$0xff] (%p305_p9) }
  0xc1   : >> { %v756_v4 = vsel %vm368_vm0, %v752_v20, %v746_v19  ;;  %v753_v5 = vsel %vm368_vm0, %v750_v44, %v752_v20  ;;  %v754_v26 = vsel %vm368_vm0, %v748_v11, %v750_v44  ;;  %v1247_v20 = vld [vmem:[%s2966_s4 + $0x8] sm:$0xff] (%p305_p9)  ;;  %v918_v44 = vld [vmem:[%s2965_s3 + $0x10] sm:$0xff] (%p305_p9) }
  0xc2   : >> { %v791_v6 = vadd.f32 %v787_v9, %v704_v21  ;;  %v773_v58 = vrot.slane %v756_v4, %v2223_v2  ;;  %v781_v8 = vrot.slane %v754_v26, %v2223_v2  ;;  %v785_v32 = vrot.slane %v753_v5, %v2223_v2  ;;  %v919_v21 = vld [vmem:[%s2965_s3 + $0x18] sm:$0xff] (%p305_p9)  ;;  %v920_v4 = vld [vmem:[%s2965_s3 + $0x20] sm:$0xff] (%p305_p9)  ;;  %v921_v26 = vld [vmem:[%s2965_s3 + $0x28] sm:$0xff] (%p305_p9) }
  0xc3   : >> { %v818_v17 = vpop.permute.xlu1 %817  ;;  %v816_v1 = vpop.permute.xlu0 %815  ;;  %v864_v55 = vadd.f32 %v838_v7, %v836_v10  ;;  %v865_v53 = vadd.f32 %v839_v13, %v837_v22  ;;  %v2046_v22 = vpack.c.bf16 (%p305_p9), %v919_v21, %v918_v44  ;;  %v1248_v7 = vld [vmem:[%s2966_s4 + $0x10] sm:$0xff] (%p305_p9) }
  0xc4   : >> { %v786_v36 = vmul.f32 %v2586_v46, %v773_v58  ;;  %v788_v42 = vmul.f32 %v2602_v60, %v781_v8  ;;  %v789_v62 = vmul.f32 %v2607_v3, %v785_v32  ;;  %v825_v25 = vsel %vm487_vm1, %v816_v1, %v818_v17  ;;  %v1251_v58 = vld [vmem:[%s2966_s4 + $0x28] sm:$0xff] (%p305_p9) }
  0xc5   : >> { %v843_v31 = vrot.slane %v825_v25, %v2223_v2  ;;  %v866_v35 = vadd.f32 %v865_v53, %v864_v55  ;;  %v812_v28 = vadd.f32 %v808_v54, %v791_v6  ;;  %v1246_v54 = vld [vmem:[%s2966_s4] sm:$0xff] (%p305_p9)  ;;  %v2050_v8 = vpack.c.bf16 (%p305_p9), %v921_v26, %v920_v4  ;;  %v1253_v55 = vld [vmem:[%s2966_s4 + $0x38] sm:$0xff] (%p305_p9) }
  0xc6   : >> { %v790_v23 = vadd.f32 %v786_v36, %v703_v52  ;;  %v792_v57 = vadd.f32 %v788_v42, %v705_v48  ;;  %v793_v29 = vadd.f32 %v789_v62, %v706_v39  ;;  %v2058_v48 = vpack.c.bf16 (%p305_p9), %v1247_v20, %v1246_v54  ;;  %v1250_v6 = vld [vmem:[%s2966_s4 + $0x20] sm:$0xff] (%p305_p9) }
  0xc7   : >> { %v856_v24 = vmul.f32 %v2628_v61, %v843_v31  ;;  %867 = vrot.lane.b32.xlu0 %v866_v35, %s2143_s16  ;;  %v822_v47 = vpop.permute.xlu1 %821  ;;  %v820_v46 = vpop.permute.xlu0 %819 }
  0xc8   : >> { %v811_v50 = vadd.f32 %v807_v45, %v790_v23  ;;  %v814_v60 = vadd.f32 %v810_v34, %v793_v29  ;;  %v826_v3 = vsel %vm487_vm1, %v822_v47, %v816_v1  ;;  %v813_v37 = vadd.f32 %v809_v27, %v792_v57  ;;  %v1249_v45 = vld [vmem:[%s2966_s4 + $0x18] sm:$0xff] (%p305_p9)  ;;  %2059 = vmatprep.subr.bf16.mxu1 (%p305_p9), %v2058_v48  ;;  %v922_v27 = vld [vmem:[%s2965_s3 + $0x30] sm:$0xff] (%p305_p9) }
  0xc9   : >> { %v855_v38 = vrot.slane %v826_v3, %v2223_v2  ;;  %v823_v40 = vsel %vm487_vm1, %v820_v46, %v822_v47  ;;  %v824_v41 = vsel %vm487_vm1, %v818_v17, %v820_v46  ;;  %v2062_v5 = vpack.c.bf16 (%p305_p9), %v1249_v45, %v1248_v7  ;;  %2061 = vmatpush3.bf16.msra.mxu1 (%p305_p9), %v2058_v48  ;;  %v923_v17 = vld [vmem:[%s2965_s3 + $0x38] sm:$0xff] (%p305_p9)  ;;  %v1252_v1 = vld [vmem:[%s2966_s4 + $0x30] sm:$0xff] (%p305_p9) }
  0xca   : >> { %v860_v52 = vadd.f32 %v856_v24, %v811_v50  ;;  %v847_v61 = vrot.slane %v824_v41, %v2223_v2  ;;  %v851_v10 = vrot.slane %v823_v40, %v2223_v2  ;;  %v877_v2 = vld [vmem:[%s2964_s2] sm:$0xff]  ;;  %v2066_v34 = vpack.c.bf16 (%p305_p9), %v1251_v58, %v1250_v6 }
  0xcb   : >> { %v859_v59 = vmul.f32 %v2634_v63, %v855_v38  ;;  %2063 = vmatprep.subr.bf16.mxu1 (%p305_p9), %v2062_v5  ;;  %v2054_v53 = vpack.c.bf16 (%p305_p9), %v923_v17, %v922_v27  ;;  %v2070_v36 = vpack.c.bf16 (%p305_p9), %v1253_v55, %v1252_v1 }
  0xcc   : >> { %v857_v0 = vmul.f32 %v1758_v33, %v847_v61  ;;  %v858_v11 = vmul.f32 %v1759_v56, %v851_v10  ;;  %v916_v56 = vld [vmem:[%s2965_s3] sm:$0xff] (%p305_p9) }
  0xcd   : >> { %v863_v19 = vadd.f32 %v859_v59, %v814_v60  ;;  %v2042_v9 = vpack.c.bf16 (%p305_p9), %v917_v51, %v916_v56  ;;  %2065 = vmatpush3.bf16.msra.mxu1 (%p305_p9), %v2062_v5 }
  0xce   : >> { %v861_v43 = vadd.f32 %v857_v0, %v812_v28  ;;  %v862_v49 = vadd.f32 %v858_v11, %v813_v37  ;;  %2067 = vmatprep.subr.bf16.mxu1 (%p305_p9), %v2066_v34 }
  0xcf   : > { %2043 = vmatprep.subr.bf16.mxu0 (%p305_p9), %v2042_v9 }
  0xd0   : >> { %v870_v12 = vadd.f32 %v862_v49, %v860_v52  ;;  %v871_v39 = vadd.f32 %v863_v19, %v861_v43  ;;  %2045 = vmatpush3.bf16.msra.mxu0 (%p305_p9), %v2042_v9 }
  0xd1   : > { %2047 = vmatprep.subr.bf16.mxu0 (%p305_p9), %v2046_v22  ;;  %2069 = vmatpush3.bf16.msra.mxu1 (%p305_p9), %v2066_v34 }
  0xd2   : >> { %v872_v13 = vadd.f32 %v871_v39, %v870_v12  ;;  %2071 = vmatprep.subr.bf16.mxu1 (%p305_p9), %v2070_v36 }
  0xd4   : >> { %873 = vrot.lane.b32.xlu1 %v872_v13, %s2143_s16  ;;  %2049 = vmatpush3.bf16.msra.mxu0 (%p305_p9), %v2046_v22 }
  0xd5   : > { %2051 = vmatprep.subr.bf16.mxu0 (%p305_p9), %v2050_v8  ;;  %2073 = vmatpush3.bf16.msra.mxu1 (%p305_p9), %v2070_v36 }
  0xd8   : > { %2053 = vmatpush3.bf16.msra.mxu0 (%p305_p9), %v2050_v8 }
  0xd9   : > { %2055 = vmatprep.subr.bf16.mxu0 (%p305_p9), %v2054_v53 }
  0xdc   : > { %2057 = vmatpush3.bf16.msra.mxu0 (%p305_p9), %v2054_v53 }
 0x139   : >> { %v868_v18 = vpop.permute.xlu0 %867 }
 0x13a   : >> { %v869_v14 = vadd.f32 %v868_v18, %v866_v35 }
 0x146   : >> { %v874_v30 = vpop.permute.xlu1 %873 }
 0x147   : >> { %v875_v15 = vadd.f32 %v874_v30, %v872_v13 }
 0x149   : >> { %v876_v16 = vmax.f32 %v869_v14, %v875_v15  ;;  %307 = sbr.rel (!%p305_p9) target bundleno = 17 (0x11), region = 98  ;;  %v2818_v14 = vld [vmem:[%s2967_s5] sm:$0xff] (%p305_p9) }
 0x14b   : >> { %v878_v63 = vadd.f32 %v877_v2, %v876_v16 }
 0x14d   : >> { %v879_v33 = vmax.f32 %v878_v63, 0.0  ;;  %v2823_v63 = vld [vmem:[%s2968_s6] sm:$0xff] (%p305_p9) }
 0x14f   : >> { %883 = vst.msk [vmem:[%s881_s19] sm:$0xff] %vm882_vm2, %v879_v33 }
 0x156   : > { %v884_v32 = vld [vmem:[#allocation2] sm:$0xff]  ;;  %v885_v42 = vld [vmem:[#allocation2 + $0x8] sm:$0xff]  ;;  %v886_v62 = vld [vmem:[#allocation2 + $0x10] sm:$0xff] }
 0x157   : > { %1930 = vmatprep.mubr.msk.f32.mxu0 %vm882_vm2, %v884_v32  ;;  %1994 = vmatprep.mubr.msk.f32.mxu1 %vm882_vm2, %v884_v32  ;;  %v887_v25 = vld [vmem:[#allocation2 + $0x18] sm:$0xff]  ;;  %v888_v31 = vld [vmem:[#allocation2 + $0x20] sm:$0xff]  ;;  %v889_v35 = vld [vmem:[#allocation2 + $0x28] sm:$0xff] }
 0x158   : > { %1931 = vmatmul.mubr.msk.f32.vlgmr.msra.gmra.mrb[0].mxu0 %vm882_vm2, %v885_v42  ;;  %1995 = vmatmul.mubr.msk.f32.vlgmr.msra.gmra.mrb[0].mxu1 %vm882_vm2, %v885_v42  ;;  %v890_v28 = vld [vmem:[#allocation2 + $0x30] sm:$0xff]  ;;  %v891_v23 = vld [vmem:[#allocation2 + $0x38] sm:$0xff]  ;;  %v892_v57 = vld [vmem:[#allocation2 + $0x40] sm:$0xff] }
 0x159   : > { %1933 = vmatprep.mubr.msk.f32.mxu0 %vm882_vm2, %v886_v62  ;;  %1997 = vmatprep.mubr.msk.f32.mxu1 %vm882_vm2, %v886_v62  ;;  %v893_v29 = vld [vmem:[#allocation2 + $0x48] sm:$0xff]  ;;  %v894_v24 = vld [vmem:[#allocation2 + $0x50] sm:$0xff]  ;;  %v895_v47 = vld [vmem:[#allocation2 + $0x58] sm:$0xff] }
 0x15a   : > { %v896_v46 = vld [vmem:[#allocation2 + $0x60] sm:$0xff]  ;;  %v897_v50 = vld [vmem:[#allocation2 + $0x68] sm:$0xff]  ;;  %v898_v60 = vld [vmem:[#allocation2 + $0x70] sm:$0xff] }
 0x15b   : > { %v899_v3 = vld [vmem:[#allocation2 + $0x78] sm:$0xff]  ;;  %v900_v37 = vld [vmem:[#allocation2 + $0x80] sm:$0xff]  ;;  %v901_v38 = vld [vmem:[#allocation2 + $0x88] sm:$0xff] }
 0x15c   : > { %1934 = vmatmul.mubr.msk.f32.gmra.mrb[2].mxu0 %vm882_vm2, %v887_v25  ;;  %1998 = vmatmul.mubr.msk.f32.gmra.mrb[2].mxu1 %vm882_vm2, %v887_v25  ;;  %v902_v40 = vld [vmem:[#allocation2 + $0x90] sm:$0xff]  ;;  %v903_v41 = vld [vmem:[#allocation2 + $0x98] sm:$0xff]  ;;  %v904_v52 = vld [vmem:[#allocation2 + $0xa0] sm:$0xff] }
 0x15d   : > { %1936 = vmatprep.mubr.msk.f32.mxu0 %vm882_vm2, %v888_v31  ;;  %2000 = vmatprep.mubr.msk.f32.mxu1 %vm882_vm2, %v888_v31  ;;  %v905_v61 = vld [vmem:[#allocation2 + $0xa8] sm:$0xff]  ;;  %v906_v10 = vld [vmem:[#allocation2 + $0xb0] sm:$0xff]  ;;  %v907_v59 = vld [vmem:[#allocation2 + $0xb8] sm:$0xff] }
 0x15e   : > { %v908_v0 = vld [vmem:[#allocation2 + $0xc0] sm:$0xff]  ;;  %v909_v11 = vld [vmem:[#allocation2 + $0xc8] sm:$0xff]  ;;  %v910_v19 = vld [vmem:[#allocation2 + $0xd0] sm:$0xff] }
 0x15f   : > { %v911_v43 = vld [vmem:[#allocation2 + $0xd8] sm:$0xff]  ;;  %v912_v49 = vld [vmem:[#allocation2 + $0xe0] sm:$0xff]  ;;  %v913_v12 = vld [vmem:[#allocation2 + $0xe8] sm:$0xff] }
 0x160   : > { %1937 = vmatmul.mubr.msk.f32.gmra.mrb[4].mxu0 %vm882_vm2, %v889_v35  ;;  %2001 = vmatmul.mubr.msk.f32.gmra.mrb[4].mxu1 %vm882_vm2, %v889_v35  ;;  %v914_v39 = vld [vmem:[#allocation2 + $0xf0] sm:$0xff]  ;;  %v915_v13 = vld [vmem:[#allocation2 + $0xf8] sm:$0xff] }
 0x161   : > { %1939 = vmatprep.mubr.msk.f32.mxu0 %vm882_vm2, %v890_v28  ;;  %2003 = vmatprep.mubr.msk.f32.mxu1 %vm882_vm2, %v890_v28 }
 0x164   : > { %1940 = vmatmul.mubr.msk.f32.gmra.mrb[6].mxu0 %vm882_vm2, %v891_v23  ;;  %2004 = vmatmul.mubr.msk.f32.gmra.mrb[6].mxu1 %vm882_vm2, %v891_v23 }
 0x165   : > { %1942 = vmatprep.mubr.msk.f32.mxu0 %vm882_vm2, %v892_v57  ;;  %2006 = vmatprep.mubr.msk.f32.mxu1 %vm882_vm2, %v892_v57 }
 0x168   : > { %1943 = vmatmul.mubr.msk.f32.gmra.mrb[8].mxu0 %vm882_vm2, %v893_v29  ;;  %2007 = vmatmul.mubr.msk.f32.gmra.mrb[8].mxu1 %vm882_vm2, %v893_v29 }
 0x169   : > { %1945 = vmatprep.mubr.msk.f32.mxu0 %vm882_vm2, %v894_v24  ;;  %2009 = vmatprep.mubr.msk.f32.mxu1 %vm882_vm2, %v894_v24 }
 0x16c   : > { %1946 = vmatmul.mubr.msk.f32.gmra.mrb[10].mxu0 %vm882_vm2, %v895_v47  ;;  %2010 = vmatmul.mubr.msk.f32.gmra.mrb[10].mxu1 %vm882_vm2, %v895_v47 }
 0x16d   : > { %1948 = vmatprep.mubr.msk.f32.mxu0 %vm882_vm2, %v896_v46  ;;  %2012 = vmatprep.mubr.msk.f32.mxu1 %vm882_vm2, %v896_v46 }
 0x170   : > { %1949 = vmatmul.mubr.msk.f32.gmra.mrb[12].mxu0 %vm882_vm2, %v897_v50  ;;  %2013 = vmatmul.mubr.msk.f32.gmra.mrb[12].mxu1 %vm882_vm2, %v897_v50 }
 0x171   : > { %1951 = vmatprep.mubr.msk.f32.mxu0 %vm882_vm2, %v898_v60  ;;  %2015 = vmatprep.mubr.msk.f32.mxu1 %vm882_vm2, %v898_v60 }
 0x174   : > { %1952 = vmatmul.mubr.msk.f32.gmra.mrb[14].mxu0 %vm882_vm2, %v899_v3  ;;  %2016 = vmatmul.mubr.msk.f32.gmra.mrb[14].mxu1 %vm882_vm2, %v899_v3 }
 0x175   : > { %1954 = vmatprep.mubr.msk.f32.mxu0 %vm882_vm2, %v900_v37  ;;  %2018 = vmatprep.mubr.msk.f32.mxu1 %vm882_vm2, %v900_v37 }
 0x178   : > { %1955 = vmatmul.mubr.msk.f32.gmra.mrb[16].mxu0 %vm882_vm2, %v901_v38  ;;  %2019 = vmatmul.mubr.msk.f32.gmra.mrb[16].mxu1 %vm882_vm2, %v901_v38 }
 0x179   : > { %1957 = vmatprep.mubr.msk.f32.mxu0 %vm882_vm2, %v902_v40  ;;  %2021 = vmatprep.mubr.msk.f32.mxu1 %vm882_vm2, %v902_v40 }
 0x17c   : > { %1958 = vmatmul.mubr.msk.f32.gmra.mrb[18].mxu0 %vm882_vm2, %v903_v41  ;;  %2022 = vmatmul.mubr.msk.f32.gmra.mrb[18].mxu1 %vm882_vm2, %v903_v41 }
 0x17d   : > { %1960 = vmatprep.mubr.msk.f32.mxu0 %vm882_vm2, %v904_v52  ;;  %2024 = vmatprep.mubr.msk.f32.mxu1 %vm882_vm2, %v904_v52 }
 0x180   : > { %1961 = vmatmul.mubr.msk.f32.gmra.mrb[20].mxu0 %vm882_vm2, %v905_v61  ;;  %2025 = vmatmul.mubr.msk.f32.gmra.mrb[20].mxu1 %vm882_vm2, %v905_v61 }
 0x181   : > { %1963 = vmatprep.mubr.msk.f32.mxu0 %vm882_vm2, %v906_v10  ;;  %2027 = vmatprep.mubr.msk.f32.mxu1 %vm882_vm2, %v906_v10 }
 0x184   : > { %1964 = vmatmul.mubr.msk.f32.gmra.mrb[22].mxu0 %vm882_vm2, %v907_v59  ;;  %2028 = vmatmul.mubr.msk.f32.gmra.mrb[22].mxu1 %vm882_vm2, %v907_v59 }
 0x185   : > { %1966 = vmatprep.mubr.msk.f32.mxu0 %vm882_vm2, %v908_v0  ;;  %2030 = vmatprep.mubr.msk.f32.mxu1 %vm882_vm2, %v908_v0 }
 0x188   : > { %1967 = vmatmul.mubr.msk.f32.gmra.mrb[24].mxu0 %vm882_vm2, %v909_v11  ;;  %2031 = vmatmul.mubr.msk.f32.gmra.mrb[24].mxu1 %vm882_vm2, %v909_v11 }
 0x189   : > { %1969 = vmatprep.mubr.msk.f32.mxu0 %vm882_vm2, %v910_v19  ;;  %2033 = vmatprep.mubr.msk.f32.mxu1 %vm882_vm2, %v910_v19 }
 0x18c   : > { %1970 = vmatmul.mubr.msk.f32.gmra.mrb[26].mxu0 %vm882_vm2, %v911_v43  ;;  %2034 = vmatmul.mubr.msk.f32.gmra.mrb[26].mxu1 %vm882_vm2, %v911_v43 }
 0x18d   : > { %1972 = vmatprep.mubr.msk.f32.mxu0 %vm882_vm2, %v912_v49  ;;  %2036 = vmatprep.mubr.msk.f32.mxu1 %vm882_vm2, %v912_v49 }
 0x190   : > { %1973 = vmatmul.mubr.msk.f32.gmra.mrb[28].mxu0 %vm882_vm2, %v913_v12  ;;  %2037 = vmatmul.mubr.msk.f32.gmra.mrb[28].mxu1 %vm882_vm2, %v913_v12 }
 0x191   : > { %1975 = vmatprep.mubr.msk.f32.mxu0 %vm882_vm2, %v914_v39  ;;  %2039 = vmatprep.mubr.msk.f32.mxu1 %vm882_vm2, %v914_v39 }
 0x194   : > { %1976 = vmatmul.mubr.msk.f32.gmra.mrb[30].mxu0 %vm882_vm2, %v915_v13  ;;  %2040 = vmatmul.mubr.msk.f32.gmra.mrb[30].mxu1 %vm882_vm2, %v915_v13 }
 0x22b   : > { %v1932_v18 = vpop.f32.mrb[0].mxu0  ;;  %v1996_v30 = vpop.f32.mrb[0].mxu1 }
 0x22c   : > { %v1087_v15 = vpop.f32.mrb[1].mxu0  ;;  %v1480_v2 = vmax.f32 %v1932_v18, %v1996_v30  ;;  %v1320_v16 = vpop.f32.mrb[1].mxu1 }
 0x22d   : > { %v1479_v33 = vmax.f32 %v1087_v15, %v1320_v16 }
 0x22e   : > { %v1513_v56 = vmul.f32 %v2818_v14, %v1480_v2 }
 0x22f   : > { %v1935_v51 = vpop.f32.mrb[2].mxu0  ;;  %v1512_v54 = vmul.f32 %v2818_v14, %v1479_v33  ;;  %v1999_v9 = vpop.f32.mrb[2].mxu1 }
 0x230   : > { %v1097_v20 = vpop.f32.mrb[3].mxu0  ;;  %v1546_v44 = vadd.f32 %v2823_v63, %v1513_v56  ;;  %v1482_v21 = vmax.f32 %v1935_v51, %v1999_v9  ;;  %v1330_v48 = vpop.f32.mrb[3].mxu1 }
 0x231   : > { %v1545_v22 = vadd.f32 %v2823_v63, %v1512_v54  ;;  %v1481_v7 = vmax.f32 %v1097_v20, %v1330_v48 }
 0x232   : > { %1579 = vst.msk [vmem:[%s2210_s11 + $0x8] sm:$0xff] %vm1577_vm3, %v1546_v44  ;;  %v1515_v45 = vmul.f32 %v2818_v14, %v1482_v21 }
 0x233   : > { %v1938_v4 = vpop.f32.mrb[4].mxu0  ;;  %1578 = vst.msk [vmem:[%s2210_s11] sm:$0xff] %vm1577_vm3, %v1545_v22  ;;  %v1514_v5 = vmul.f32 %v2818_v14, %v1481_v7  ;;  %v2002_v26 = vpop.f32.mrb[4].mxu1 }
 0x234   : > { %v1107_v6 = vpop.f32.mrb[5].mxu0  ;;  %v1548_v58 = vadd.f32 %v2823_v63, %v1515_v45  ;;  %v1484_v8 = vmax.f32 %v1938_v4, %v2002_v26  ;;  %v1340_v32 = vpop.f32.mrb[5].mxu1 }
 0x235   : > { %v1547_v34 = vadd.f32 %v2823_v63, %v1514_v5  ;;  %v1483_v27 = vmax.f32 %v1107_v6, %v1340_v32 }
 0x236   : > { %1581 = vst.msk [vmem:[%s2210_s11 + $0x18] sm:$0xff] %vm1577_vm3, %v1548_v58  ;;  %v1517_v17 = vmul.f32 %v2818_v14, %v1484_v8 }
 0x237   : > { %v1941_v1 = vpop.f32.mrb[6].mxu0  ;;  %1580 = vst.msk [vmem:[%s2210_s11 + $0x10] sm:$0xff] %vm1577_vm3, %v1547_v34  ;;  %v1516_v55 = vmul.f32 %v2818_v14, %v1483_v27  ;;  %v2005_v53 = vpop.f32.mrb[6].mxu1 }
 0x238   : > { %v1117_v36 = vpop.f32.mrb[7].mxu0  ;;  %v1550_v42 = vadd.f32 %v2823_v63, %v1517_v17  ;;  %v1486_v62 = vmax.f32 %v1941_v1, %v2005_v53  ;;  %v1350_v25 = vpop.f32.mrb[7].mxu1 }
 0x239   : > { %v1549_v31 = vadd.f32 %v2823_v63, %v1516_v55  ;;  %v1485_v35 = vmax.f32 %v1117_v36, %v1350_v25 }
 0x23a   : > { %1583 = vst.msk [vmem:[%s2210_s11 + $0x28] sm:$0xff] %vm1577_vm3, %v1550_v42  ;;  %v1519_v28 = vmul.f32 %v2818_v14, %v1486_v62 }
 0x23b   : > { %v1944_v23 = vpop.f32.mrb[8].mxu0  ;;  %1582 = vst.msk [vmem:[%s2210_s11 + $0x20] sm:$0xff] %vm1577_vm3, %v1549_v31  ;;  %v1518_v57 = vmul.f32 %v2818_v14, %v1485_v35  ;;  %v2008_v29 = vpop.f32.mrb[8].mxu1 }
 0x23c   : > { %v1127_v24 = vpop.f32.mrb[9].mxu0  ;;  %v1552_v47 = vadd.f32 %v2823_v63, %v1519_v28  ;;  %v1488_v46 = vmax.f32 %v1944_v23, %v2008_v29  ;;  %v1360_v50 = vpop.f32.mrb[9].mxu1 }
 0x23d   : > { %v1551_v60 = vadd.f32 %v2823_v63, %v1518_v57  ;;  %v1487_v3 = vmax.f32 %v1127_v24, %v1360_v50 }
 0x23e   : > { %1585 = vst.msk [vmem:[%s2210_s11 + $0x38] sm:$0xff] %vm1577_vm3, %v1552_v47  ;;  %v1521_v37 = vmul.f32 %v2818_v14, %v1488_v46 }
 0x23f   : > { %v1947_v38 = vpop.f32.mrb[10].mxu0  ;;  %1584 = vst.msk [vmem:[%s2210_s11 + $0x30] sm:$0xff] %vm1577_vm3, %v1551_v60  ;;  %v1520_v40 = vmul.f32 %v2818_v14, %v1487_v3  ;;  %v2011_v41 = vpop.f32.mrb[10].mxu1 }
 0x240   : > { %v1137_v52 = vpop.f32.mrb[11].mxu0  ;;  %v1554_v61 = vadd.f32 %v2823_v63, %v1521_v37  ;;  %v1490_v10 = vmax.f32 %v1947_v38, %v2011_v41  ;;  %v1370_v59 = vpop.f32.mrb[11].mxu1 }
 0x241   : > { %v1553_v0 = vadd.f32 %v2823_v63, %v1520_v40  ;;  %v1489_v11 = vmax.f32 %v1137_v52, %v1370_v59 }
 0x242   : > { %1587 = vst.msk [vmem:[%s2210_s11 + $0x48] sm:$0xff] %vm1577_vm3, %v1554_v61  ;;  %v1523_v19 = vmul.f32 %v2818_v14, %v1490_v10 }
 0x243   : > { %v1950_v43 = vpop.f32.mrb[12].mxu0  ;;  %1586 = vst.msk [vmem:[%s2210_s11 + $0x40] sm:$0xff] %vm1577_vm3, %v1553_v0  ;;  %v1522_v49 = vmul.f32 %v2818_v14, %v1489_v11  ;;  %v2014_v12 = vpop.f32.mrb[12].mxu1 }
 0x244   : > { %v1147_v39 = vpop.f32.mrb[13].mxu0  ;;  %v1556_v13 = vadd.f32 %v2823_v63, %v1523_v19  ;;  %v1492_v18 = vmax.f32 %v1950_v43, %v2014_v12  ;;  %v1380_v30 = vpop.f32.mrb[13].mxu1 }
 0x245   : > { %v1555_v15 = vadd.f32 %v2823_v63, %v1522_v49  ;;  %v1491_v2 = vmax.f32 %v1147_v39, %v1380_v30 }
 0x246   : > { %1589 = vst.msk [vmem:[%s2210_s11 + $0x58] sm:$0xff] %vm1577_vm3, %v1556_v13  ;;  %v1525_v16 = vmul.f32 %v2818_v14, %v1492_v18 }
 0x247   : > { %v1953_v33 = vpop.f32.mrb[14].mxu0  ;;  %1588 = vst.msk [vmem:[%s2210_s11 + $0x50] sm:$0xff] %vm1577_vm3, %v1555_v15  ;;  %v1524_v56 = vmul.f32 %v2818_v14, %v1491_v2  ;;  %v2017_v51 = vpop.f32.mrb[14].mxu1 }
 0x248   : > { %v1157_v54 = vpop.f32.mrb[15].mxu0  ;;  %v1558_v9 = vadd.f32 %v2823_v63, %v1525_v16  ;;  %v1494_v20 = vmax.f32 %v1953_v33, %v2017_v51  ;;  %v1390_v44 = vpop.f32.mrb[15].mxu1 }
 0x249   : > { %v1557_v21 = vadd.f32 %v2823_v63, %v1524_v56  ;;  %v1493_v48 = vmax.f32 %v1157_v54, %v1390_v44 }
 0x24a   : > { %1591 = vst.msk [vmem:[%s2210_s11 + $0x68] sm:$0xff] %vm1577_vm3, %v1558_v9  ;;  %v1527_v22 = vmul.f32 %v2818_v14, %v1494_v20 }
 0x24b   : > { %v1956_v7 = vpop.f32.mrb[16].mxu0  ;;  %1590 = vst.msk [vmem:[%s2210_s11 + $0x60] sm:$0xff] %vm1577_vm3, %v1557_v21  ;;  %v1526_v45 = vmul.f32 %v2818_v14, %v1493_v48  ;;  %v2020_v4 = vpop.f32.mrb[16].mxu1 }
 0x24c   : > { %v1167_v5 = vpop.f32.mrb[17].mxu0  ;;  %v1560_v26 = vadd.f32 %v2823_v63, %v1527_v22  ;;  %v1496_v6 = vmax.f32 %v1956_v7, %v2020_v4  ;;  %v1400_v58 = vpop.f32.mrb[17].mxu1 }
 0x24d   : > { %v1559_v8 = vadd.f32 %v2823_v63, %v1526_v45  ;;  %v1495_v32 = vmax.f32 %v1167_v5, %v1400_v58 }
 0x24e   : > { %1593 = vst.msk [vmem:[%s2210_s11 + $0x78] sm:$0xff] %vm1577_vm3, %v1560_v26  ;;  %v1529_v34 = vmul.f32 %v2818_v14, %v1496_v6 }
 0x24f   : > { %v1959_v27 = vpop.f32.mrb[18].mxu0  ;;  %1592 = vst.msk [vmem:[%s2210_s11 + $0x70] sm:$0xff] %vm1577_vm3, %v1559_v8  ;;  %v1528_v17 = vmul.f32 %v2818_v14, %v1495_v32  ;;  %v2023_v1 = vpop.f32.mrb[18].mxu1 }
 0x250   : > { %v1177_v55 = vpop.f32.mrb[19].mxu0  ;;  %v1562_v53 = vadd.f32 %v2823_v63, %v1529_v34  ;;  %v1498_v36 = vmax.f32 %v1959_v27, %v2023_v1  ;;  %v1410_v42 = vpop.f32.mrb[19].mxu1 }
 0x251   : > { %v1561_v62 = vadd.f32 %v2823_v63, %v1528_v17  ;;  %v1497_v25 = vmax.f32 %v1177_v55, %v1410_v42 }
 0x252   : > { %1595 = vst.msk [vmem:[%s2210_s11 + $0x88] sm:$0xff] %vm1577_vm3, %v1562_v53  ;;  %v1531_v31 = vmul.f32 %v2818_v14, %v1498_v36 }
 0x253   : > { %v1962_v35 = vpop.f32.mrb[20].mxu0  ;;  %1594 = vst.msk [vmem:[%s2210_s11 + $0x80] sm:$0xff] %vm1577_vm3, %v1561_v62  ;;  %v1530_v28 = vmul.f32 %v2818_v14, %v1497_v25  ;;  %v2026_v23 = vpop.f32.mrb[20].mxu1 }
 0x254   : > { %v1187_v57 = vpop.f32.mrb[21].mxu0  ;;  %v1564_v29 = vadd.f32 %v2823_v63, %v1531_v31  ;;  %v1500_v24 = vmax.f32 %v1962_v35, %v2026_v23  ;;  %v1420_v47 = vpop.f32.mrb[21].mxu1 }
 0x255   : > { %v1563_v46 = vadd.f32 %v2823_v63, %v1530_v28  ;;  %v1499_v50 = vmax.f32 %v1187_v57, %v1420_v47 }
 0x256   : > { %1597 = vst.msk [vmem:[%s2210_s11 + $0x98] sm:$0xff] %vm1577_vm3, %v1564_v29  ;;  %v1533_v60 = vmul.f32 %v2818_v14, %v1500_v24 }
 0x257   : > { %v1965_v3 = vpop.f32.mrb[22].mxu0  ;;  %1596 = vst.msk [vmem:[%s2210_s11 + $0x90] sm:$0xff] %vm1577_vm3, %v1563_v46  ;;  %v1532_v37 = vmul.f32 %v2818_v14, %v1499_v50  ;;  %v2029_v38 = vpop.f32.mrb[22].mxu1 }
 0x258   : > { %v1197_v40 = vpop.f32.mrb[23].mxu0  ;;  %v1566_v41 = vadd.f32 %v2823_v63, %v1533_v60  ;;  %v1502_v52 = vmax.f32 %v1965_v3, %v2029_v38  ;;  %v1430_v61 = vpop.f32.mrb[23].mxu1 }
 0x259   : > { %v1565_v10 = vadd.f32 %v2823_v63, %v1532_v37  ;;  %v1501_v59 = vmax.f32 %v1197_v40, %v1430_v61 }
 0x25a   : > { %1599 = vst.msk [vmem:[%s2210_s11 + $0xa8] sm:$0xff] %vm1577_vm3, %v1566_v41  ;;  %v1535_v0 = vmul.f32 %v2818_v14, %v1502_v52 }
 0x25b   : > { %v1968_v11 = vpop.f32.mrb[24].mxu0  ;;  %1598 = vst.msk [vmem:[%s2210_s11 + $0xa0] sm:$0xff] %vm1577_vm3, %v1565_v10  ;;  %v1534_v19 = vmul.f32 %v2818_v14, %v1501_v59  ;;  %v2032_v43 = vpop.f32.mrb[24].mxu1 }
 0x25c   : > { %v1207_v49 = vpop.f32.mrb[25].mxu0  ;;  %v1568_v12 = vadd.f32 %v2823_v63, %v1535_v0  ;;  %v1504_v39 = vmax.f32 %v1968_v11, %v2032_v43  ;;  %v1440_v13 = vpop.f32.mrb[25].mxu1 }
 0x25d   : > { %v1567_v18 = vadd.f32 %v2823_v63, %v1534_v19  ;;  %v1503_v30 = vmax.f32 %v1207_v49, %v1440_v13 }
 0x25e   : > { %1601 = vst.msk [vmem:[%s2210_s11 + $0xb8] sm:$0xff] %vm1577_vm3, %v1568_v12  ;;  %v1537_v15 = vmul.f32 %v2818_v14, %v1504_v39 }
 0x25f   : > { %v1971_v2 = vpop.f32.mrb[26].mxu0  ;;  %1600 = vst.msk [vmem:[%s2210_s11 + $0xb0] sm:$0xff] %vm1577_vm3, %v1567_v18  ;;  %v1536_v16 = vmul.f32 %v2818_v14, %v1503_v30  ;;  %v2035_v33 = vpop.f32.mrb[26].mxu1 }
 0x260   : > { %v1217_v56 = vpop.f32.mrb[27].mxu0  ;;  %v1570_v51 = vadd.f32 %v2823_v63, %v1537_v15  ;;  %v1506_v54 = vmax.f32 %v1971_v2, %v2035_v33  ;;  %v1450_v9 = vpop.f32.mrb[27].mxu1 }
 0x261   : > { %v1569_v20 = vadd.f32 %v2823_v63, %v1536_v16  ;;  %v1505_v44 = vmax.f32 %v1217_v56, %v1450_v9 }
 0x262   : > { %1603 = vst.msk [vmem:[%s2210_s11 + $0xc8] sm:$0xff] %vm1577_vm3, %v1570_v51  ;;  %v1539_v21 = vmul.f32 %v2818_v14, %v1506_v54 }
 0x263   : > { %v1974_v48 = vpop.f32.mrb[28].mxu0  ;;  %1602 = vst.msk [vmem:[%s2210_s11 + $0xc0] sm:$0xff] %vm1577_vm3, %v1569_v20  ;;  %v1538_v22 = vmul.f32 %v2818_v14, %v1505_v44  ;;  %v2038_v7 = vpop.f32.mrb[28].mxu1 }
 0x264   : > { %v1227_v45 = vpop.f32.mrb[29].mxu0  ;;  %v1572_v4 = vadd.f32 %v2823_v63, %v1539_v21  ;;  %v1508_v5 = vmax.f32 %v1974_v48, %v2038_v7  ;;  %v1460_v26 = vpop.f32.mrb[29].mxu1 }
 0x265   : > { %v1571_v6 = vadd.f32 %v2823_v63, %v1538_v22  ;;  %v1507_v58 = vmax.f32 %v1227_v45, %v1460_v26 }
 0x266   : > { %1605 = vst.msk [vmem:[%s2210_s11 + $0xd8] sm:$0xff] %vm1577_vm3, %v1572_v4  ;;  %v1541_v8 = vmul.f32 %v2818_v14, %v1508_v5 }
 0x267   : > { %v1977_v32 = vpop.f32.mrb[30].mxu0  ;;  %1604 = vst.msk [vmem:[%s2210_s11 + $0xd0] sm:$0xff] %vm1577_vm3, %v1571_v6  ;;  %v1540_v34 = vmul.f32 %v2818_v14, %v1507_v58  ;;  %v2041_v27 = vpop.f32.mrb[30].mxu1 }
 0x268   : > { %v1237_v17 = vpop.f32.mrb[31].mxu0  ;;  %v1574_v1 = vadd.f32 %v2823_v63, %v1541_v8  ;;  %v1510_v55 = vmax.f32 %v1977_v32, %v2041_v27  ;;  %v1470_v53 = vpop.f32.mrb[31].mxu1 }
 0x269   : > { %v1573_v36 = vadd.f32 %v2823_v63, %v1540_v34  ;;  %v1509_v42 = vmax.f32 %v1237_v17, %v1470_v53 }
 0x26a   : > { %1607 = vst.msk [vmem:[%s2210_s11 + $0xe8] sm:$0xff] %vm1577_vm3, %v1574_v1  ;;  %v1543_v62 = vmul.f32 %v2818_v14, %v1510_v55 }
 0x26b   : > { %1606 = vst.msk [vmem:[%s2210_s11 + $0xe0] sm:$0xff] %vm1577_vm3, %v1573_v36  ;;  %v1542_v25 = vmul.f32 %v2818_v14, %v1509_v42 }
 0x26c   : > { %v1576_v31 = vadd.f32 %v2823_v63, %v1543_v62 }
 0x26d   : > { %v1575_v35 = vadd.f32 %v2823_v63, %v1542_v25 }
 0x26e   : > { %1609 = vst.msk [vmem:[%s2210_s11 + $0xf8] sm:$0xff] %vm1577_vm3, %v1576_v31 }
 0x26f   : > { %1608 = vst.msk [vmem:[%s2210_s11 + $0xf0] sm:$0xff] %vm1577_vm3, %v1575_v35 }
 0x270 PF: > { %s17_s26 = sadd.s32 1, %s2135_s26   ;;  %s2970_s24 = smov %s2131_s25 }
 0x271   : > { %p14_p10 = scmp.ge.s32.totalorder %s17_s26, 4   ;;  %s2971_s25 = smov %s2973_s27 }
 0x273   :  { %16 = sbr.rel (!%p14_p10) target bundleno = 2 (0x2), region = 109 }

// kernel: _lambda_.9
= control target key start
LH: loop header
LB: loop body
LE: loop exit
PB: predicated region body
PF: predicated region fallthrough
CT: control target
= control target key end

     0   :  { %s1482_s24 = smov 0   ;;  %s1484_s25 = smov 0   ;;  %s1864_s0 = inlined_call_operand.vmem [shape: f32[2,32,256], index: 0, kind: input, shape index: {}]   ;;  %s1865_s1 = inlined_call_operand.vmem [shape: f32[9,8,256], index: 1, kind: input, shape index: {}]   ;;  %s1866_s2 = inlined_call_operand.vmem [shape: f32[8,32], index: 2, kind: input, shape index: {}]   ;;  %s1867_s3 = inlined_call_operand.vmem [shape: f32[32,16], index: 3, kind: input, shape index: {}]   ;;  %s1868_s4 = inlined_call_operand.vmem [shape: f32[32,16], index: 4, kind: input, shape index: {}]   ;;  %s1869_s5 = inlined_call_operand.vmem [shape: f32[1,8,16], index: 5, kind: input, shape index: {}]   ;;  %s1870_s6 = inlined_call_operand.vmem [shape: f32[1,8,16], index: 6, kind: input, shape index: {}]   ;;  %s1871_s7 = inlined_call_operand.vmem [shape: f32[2,16,8,16], index: 7, kind: output, shape index: {}]  }
   0x1   :  { %s1486_s26 = smov 0  }
   0x2 LB: > { %s29_s27 = sadd.s32 1, %s1428_s25  ;;  %p1178_p0 = scmp.ge.s32.totalorder %s1432_s26, 1  ;;  %s1432_s26 = sphi %s1486_s26, %s17_s26   ;;  %s1428_s25 = sphi %s1484_s25, %s1873_s25   ;;  %s1424_s24 = sphi %s1482_s24, %s1872_s24  }
   0x3   : > { %p31_p1 = scmp.ge.s32.totalorder %s29_s27, 2  ;;  %p251_p2 = scmp.lt.s32.totalorder %s1432_s26, 3 }
   0x5   : > { %s1875_s27 = smov (%p31_p1, %s29_s27), 0  ;;  %p252_p3 = pnand %p1178_p0, %p251_p2 }
   0x6   : > { %p287_p4 = scmp.lt.s32.totalorder (!%p252_p3), %s1424_s24, 1  ;;  %s1510_s13 = smov (!%p252_p3), 0  }
   0x7   : > { %255 = sbr.rel (%p252_p3) target bundleno = 678 (0x2a6), region = 48 }
   0xe   : > { %s1877_s24 = smov (!%p287_p4, %s1424_s24), 1 }
   0xf   : > { %s1244_s28 = sshll.u32 %s1877_s24, 6  ;;  %s1245_s29 = sshll.u32 %s1877_s24, 7 }
  0x10   : > { %s1503_s9 = scalar_lea.vmem %s1864_s0, %s1244_s28  ;;  %s1508_s12 = scalar_lea.vmem %s1871_s7, %s1245_s29 }
  0x11 LB: >> { %v338_v0 = vlaneseq  ;;  %s1516_s14 = sshll.u32 %s1436_s13, 1  ;;  %s1438_s30 = smov 127   ;;  %v1189_v23 = vld [vmem:[%s1865_s1 + $0x10] sm:$0xff]  ;;  %v1190_v24 = vld [vmem:[%s1865_s1 + $0x18] sm:$0xff]  ;;  %v374_v27 = vld [vmem:[%s1865_s1] sm:$0xff]  ;;  %vm642_vm2 = vcmask 261120   ;;  %s1436_s13 = sphi %s1510_s13, %s308_s13  }
  0x12   : >> { %s328_s15 = sshra.s32 %s1516_s14, 3  ;;  %s331_s16 = sand.u32 7, %s1516_s14  ;;  %v375_v28 = vld [vmem:[%s1865_s1 + $0x8] sm:$0xff]  ;;  %v1191_v38 = vld [vmem:[%s1865_s1 + $0x20] sm:$0xff]  ;;  %v1195_v58 = vld [vmem:[%s1865_s1 + $0x30] sm:$0xff] }
  0x13   : >> { %v339_v1 = vshrl.u32 %v338_v0, 7  ;;  %s1247_s17 = sshll.u32 %s328_s15, 4  ;;  %s451_s18 = sadd.s32 1, %s1516_s14  ;;  %v1583_v20 = vand.u32 127, %v338_v0  ;;  %v1192_v39 = vld [vmem:[%s1865_s1 + $0x28] sm:$0xff]  ;;  %v1197_v52 = vld [vmem:[%s1865_s1 + $0x40] sm:$0xff] }
  0x14   : >> { %s334_s19 = sadd.s32 %s1247_s17, %s331_s16  ;;  %s452_s20 = sshra.s32 %s451_s18, 3  ;;  %v1198_v53 = vld [vmem:[%s1865_s1 + $0x48] sm:$0xff]  ;;  %v1196_v59 = vld [vmem:[%s1865_s1 + $0x38] sm:$0xff] }
  0x15   : >> { %v1521_v2 = vsub.s32 0, %v339_v1  ;;  %s335_s21 = scalar_lea.vmem %s1503_s9, %s334_s19  ;;  %s455_s22 = sand.u32 7, %s451_s18  ;;  %v344_v3 = vsub.s32 1, %v339_v1  ;;  %vm354_vm0 = vcmp.lt.s32.totalorder %v1583_v20, 1  ;;  %vm415_vm1 = vcmp.lt.s32.totalorder %v1583_v20, 127 }
  0x16   : >> { %v336_v4 = vld [vmem:[%s335_s21] ss:$8 sm:$0x3]  ;;  %s1248_s23 = sshll.u32 %s452_s20, 4  ;;  %s1184_s24 = sadd.s32 4294967295, %s1516_s14 }
  0x17   : >> { %v1527_v5 = vrot.slane %v336_v4, %v1521_v2  ;;  %s458_s28 = sadd.s32 %s1248_s23, %s455_s22  ;;  %p312_p5 = scmp.gt.s32.totalorder %s1184_s24, 0  ;;  %v1534_v7 = vrot.slane %v336_v4, %v344_v3 }
  0x18   : >> { %s459_s29 = scalar_lea.vmem %s1503_s9, %s458_s28  ;;  %p323_p6 = scmp.ge.s32.totalorder %s1184_s24, 0 }
  0x19   : >> { %418 = vrot.lane.b32.xlu0 %v1527_v5, %s1438_s30  ;;  %s1439_s8 = smov 1   ;;  %v460_v6 = vld [vmem:[%s459_s29] ss:$8 sm:$0x3]  ;;  %s1879_s24 = smov (!%p312_p5, %s1184_s24), 0  ;;  %v408_v31 = vmul.f32 %v1190_v24, %v1534_v7  ;;  %v407_v34 = vmul.f32 %v1189_v23, %v1527_v5 }
  0x1a   : >> { %368 = vrot.lane.b32.xlu1 %v1527_v5, %s1439_s8  ;;  %v1537_v8 = vrot.slane %v460_v6, %v1521_v2  ;;  %s324_s10 = scalar_select %p323_p6, 1, 0  ;;  %v1547_v12 = vrot.slane %v460_v6, %v344_v3 }
  0x1b   : >> { %s314_s11 = sshra.s32 %s1879_s24, 3  ;;  %s317_s15 = sand.u32 7, %s1879_s24 }
  0x1c   : >> { %s1246_s16 = sshll.u32 %s314_s11, 4  ;;  %s325_s17 = scvt.s32.f32 %s324_s10  ;;  %v504_v0 = vmul.f32 %v1197_v52, %v1537_v8  ;;  %v505_v1 = vmul.f32 %v1198_v53, %v1547_v12 }
  0x1d   : >> { %472 = vrot.lane.b32.xlu0 %v1537_v8, %s1439_s8  ;;  %s320_s18 = sadd.s32 %s1246_s16, %s317_s15  ;;  %s533_s19 = sadd.s32 2, %s1516_s14 }
  0x1e   : >> { %370 = vrot.lane.b32.xlu1 %v1534_v7, %s1439_s8  ;;  %s321_s20 = scalar_lea.vmem %s1503_s9, %s320_s18  ;;  %v326_v9 = vstv %s325_s17  ;;  %p534_p7 = scmp.lt.s32.totalorder %s533_s19, 31 }
  0x1f   : >> { %v322_v10 = vld [vmem:[%s321_s20] ss:$8 sm:$0x3]  ;;  %p545_p8 = scmp.le.s32.totalorder %s533_s19, 31  ;;  %s1440_s15 = smov 64  }
  0x20   : >> { %v327_v11 = vmul.f32 %v326_v9, %v322_v10  ;;  %s1881_s19 = smov (!%p534_p7, %s533_s19), 31  ;;  %s1441_s16 = smov 96  }
  0x21   : >> { %s546_s21 = scalar_select %p545_p8, 1, 0 }
  0x22   : >> { %420 = vrot.lane.b32.xlu1 %v1534_v7, %s1438_s30  ;;  %v1550_v13 = vrot.slane %v327_v11, %v1521_v2  ;;  %s536_s22 = sshra.s32 %s1881_s19, 3  ;;  %s539_s23 = sand.u32 7, %s1881_s19  ;;  %v1554_v14 = vrot.slane %v327_v11, %v344_v3 }
  0x23   : >> { %s1249_s14 = sshll.u32 %s536_s22, 4  ;;  %s547_s24 = scvt.s32.f32 %s546_s21 }
  0x24   : >> { %348 = vrot.lane.b32.xlu0 %v1550_v13, %s1439_s8  ;;  %s542_s28 = sadd.s32 %s1249_s14, %s539_s23  ;;  %v404_v4 = vmul.f32 %v1190_v24, %v1554_v14 }
  0x25   : >> { %s543_s29 = scalar_lea.vmem %s1503_s9, %s542_s28  ;;  %v548_v16 = vstv %s547_s24 }
  0x26   : >> { %474 = vrot.lane.b32.xlu1 %v1547_v12, %s1439_s8  ;;  %v544_v15 = vld [vmem:[%s543_s29] ss:$8 sm:$0x3] }
  0x27   : >> { %v549_v17 = vmul.f32 %v548_v16, %v544_v15 }
  0x28   : >> { %350 = vrot.lane.b32.xlu0 %v1554_v14, %s1439_s8 }
  0x29   : >> { %v1567_v18 = vrot.slane %v549_v17, %v344_v3  ;;  %v1572_v19 = vrot.slane %v549_v17, %v1521_v2  ;;  %v403_v3 = vmul.f32 %v1189_v23, %v1550_v13 }
  0x2a   : >> { %413 = vrot.lane.b32.xlu1 %v1554_v14, %s1438_s30 }
  0x2c   : >> { %411 = vrot.lane.b32.xlu0 %v1550_v13, %s1438_s30 }
  0x2e   : >> { %510 = vrot.lane.b32.xlu1 %v1547_v12, %s1438_s30 }
  0x30   : >> { %508 = vrot.lane.b32.xlu0 %v1537_v8, %s1438_s30 }
  0x32   : >> { %563 = vrot.lane.b32.xlu1 %v1567_v18, %s1439_s8 }
  0x34   : >> { %561 = vrot.lane.b32.xlu0 %v1572_v19, %s1439_s8 }
  0x36   : >> { %599 = vrot.lane.b32.xlu1 %v1567_v18, %s1438_s30 }
  0x38   : >> { %597 = vrot.lane.b32.xlu0 %v1572_v19, %s1438_s30  ;;  %s1209_s30 = sshll.u32 %s1436_s13, 3  ;;  %s308_s13 = sadd.s32 1, %s1436_s13  }
  0x39   : >> { %s641_s18 = scalar_lea.vmem [#allocation2], %s1209_s30  ;;  %p305_p9 = scmp.ge.s32.totalorder %s308_s13, 16  }
  0x3a   : > { %vm1057_vm3 = vcmask (%p305_p9), 130048  }
  0x8b   : >> { %v419_v21 = vpop.permute.xlu0 %418 }
  0x8c   : >> { %v369_v22 = vpop.permute.xlu1 %368 }
  0x8f   : >> { %v473_v26 = vpop.permute.xlu0 %472 }
  0x90   : >> { %v371_v25 = vpop.permute.xlu1 %370 }
  0x91   : >> { %v372_v29 = vsel %vm354_vm0, %v369_v22, %v371_v25  ;;  %v373_v30 = vsel %vm354_vm0, %v371_v25, %v369_v22 }
  0x92   : >> { %v391_v32 = vrot.slane %v373_v30, %v1521_v2  ;;  %v395_v33 = vrot.slane %v372_v29, %v1521_v2 }
  0x94   : >> { %v396_v35 = vmul.f32 %v391_v32, %v374_v27  ;;  %v397_v36 = vmul.f32 %v395_v33, %v375_v28  ;;  %v421_v37 = vpop.permute.xlu1 %420 }
  0x95   : >> { %v422_v40 = vsel %vm415_vm1, %v419_v21, %v421_v37  ;;  %v423_v41 = vsel %vm415_vm1, %v421_v37, %v419_v21 }
  0x96   : >> { %v409_v42 = vadd.f32 %v407_v34, %v396_v35  ;;  %v410_v43 = vadd.f32 %v408_v31, %v397_v36  ;;  %v1618_v44 = vrot.slane %v422_v40, %v1521_v2  ;;  %v1621_v45 = vrot.slane %v423_v41, %v1521_v2  ;;  %v349_v46 = vpop.permute.xlu0 %348 }
  0x97   : >> { %v500_v34 = vmul.f32 %v1197_v52, %v1527_v5  ;;  %v501_v35 = vmul.f32 %v1198_v53, %v1534_v7  ;;  %v481_v41 = vmul.f32 %v1195_v58, %v391_v32  ;;  %v1200_v5 = vld [vmem:[%s1865_s1 + $0x58] sm:$0xff] }
  0x98   : >> { %v447_v47 = vmul.f32 %v1191_v38, %v1618_v44  ;;  %v448_v48 = vmul.f32 %v1192_v39, %v1621_v45  ;;  %v475_v49 = vpop.permute.xlu1 %474 }
  0x99   : >> { %v476_v50 = vsel %vm354_vm0, %v473_v26, %v475_v49  ;;  %v477_v51 = vsel %vm354_vm0, %v475_v49, %v473_v26 }
  0x9a   : >> { %v449_v54 = vadd.f32 %v447_v47, %v409_v42  ;;  %v450_v55 = vadd.f32 %v448_v48, %v410_v43  ;;  %v1636_v56 = vrot.slane %v477_v51, %v1521_v2  ;;  %v1639_v57 = vrot.slane %v476_v50, %v1521_v2  ;;  %v351_v60 = vpop.permute.xlu0 %350  ;;  %v1199_v48 = vld [vmem:[%s1865_s1 + $0x50] sm:$0xff] }
  0x9b   : >> { %v355_v6 = vsel %vm354_vm0, %v349_v46, %v351_v60  ;;  %v356_v9 = vsel %vm354_vm0, %v351_v60, %v349_v46  ;;  %v482_v42 = vmul.f32 %v1196_v59, %v395_v33  ;;  %v1204_v60 = vld [vmem:[%s1865_s1 + $0x68] sm:$0xff] }
  0x9c   : >> { %v493_v61 = vmul.f32 %v1195_v58, %v1636_v56  ;;  %v494_v62 = vmul.f32 %v1196_v59, %v1639_v57  ;;  %v414_v63 = vpop.permute.xlu1 %413  ;;  %v379_v15 = vrot.slane %v356_v9, %v1521_v2  ;;  %v383_v16 = vrot.slane %v355_v6, %v1521_v2  ;;  %v1203_v59 = vld [vmem:[%s1865_s1 + $0x60] sm:$0xff] }
  0x9d   : >> { %v518_v58 = vmul.f32 %v1200_v5, %v1621_v45  ;;  %v570_v6 = vmul.f32 %v1203_v59, %v1636_v56  ;;  %v571_v9 = vmul.f32 %v1204_v60, %v1639_v57 }
  0x9e   : >> { %v495_v10 = vadd.f32 %v493_v61, %v449_v54  ;;  %v496_v11 = vadd.f32 %v494_v62, %v450_v55  ;;  %v412_v17 = vpop.permute.xlu0 %411  ;;  %v384_v21 = vmul.f32 %v379_v15, %v374_v27  ;;  %v385_v22 = vmul.f32 %v383_v16, %v375_v28  ;;  %v1206_v27 = vld [vmem:[%s1865_s1 + $0x78] sm:$0xff]  ;;  %v1205_v28 = vld [vmem:[%s1865_s1 + $0x70] sm:$0xff] }
  0x9f   : >> { %v416_v13 = vsel %vm415_vm1, %v412_v17, %v414_v63  ;;  %v417_v14 = vsel %vm415_vm1, %v414_v63, %v412_v17  ;;  %v593_v49 = vmul.f32 %v1205_v28, %v1572_v19  ;;  %v517_v55 = vmul.f32 %v1199_v48, %v1618_v44 }
  0xa0   : >> { %v511_v23 = vpop.permute.xlu1 %510  ;;  %v430_v24 = vrot.slane %v416_v13, %v1521_v2  ;;  %v434_v25 = vrot.slane %v417_v14, %v1521_v2  ;;  %v506_v26 = vadd.f32 %v504_v0, %v495_v10  ;;  %v507_v29 = vadd.f32 %v505_v1, %v496_v11  ;;  %v1207_v10 = vld [vmem:[%s1865_s1 + $0x80] sm:$0xff]  ;;  %v1208_v11 = vld [vmem:[%s1865_s1 + $0x88] sm:$0xff] }
  0xa1   : >> { %v405_v30 = vadd.f32 %v403_v3, %v384_v21  ;;  %v406_v31 = vadd.f32 %v404_v4, %v385_v22  ;;  %v589_v3 = vmul.f32 %v1205_v28, %v1537_v8  ;;  %v590_v4 = vmul.f32 %v1206_v27, %v1547_v12 }
  0xa2   : >> { %v435_v36 = vmul.f32 %v1191_v38, %v430_v24  ;;  %v436_v37 = vmul.f32 %v1192_v39, %v434_v25  ;;  %v509_v40 = vpop.permute.xlu0 %508  ;;  %v594_v39 = vmul.f32 %v1206_v27, %v1567_v18 }
  0xa3   : >> { %v512_v43 = vsel %vm415_vm1, %v509_v40, %v511_v23  ;;  %v513_v46 = vsel %vm415_vm1, %v511_v23, %v509_v40 }
  0xa4   : >> { %v564_v47 = vpop.permute.xlu1 %563  ;;  %v437_v7 = vadd.f32 %v435_v36, %v405_v30  ;;  %v438_v38 = vadd.f32 %v436_v37, %v406_v31  ;;  %v524_v32 = vrot.slane %v512_v43, %v1521_v2  ;;  %v528_v33 = vrot.slane %v513_v46, %v1521_v2 }
  0xa6   : >> { %v483_v50 = vadd.f32 %v481_v41, %v437_v7  ;;  %v484_v51 = vadd.f32 %v482_v42, %v438_v38  ;;  %v529_v52 = vmul.f32 %v1199_v48, %v524_v32  ;;  %v530_v53 = vmul.f32 %v1200_v5, %v528_v33  ;;  %v562_v54 = vpop.permute.xlu0 %561  ;;  %v637_v38 = vld [vmem:[%s1866_s2] sm:$0xff] }
  0xa7   : >> { %v565_v18 = vsel %vm354_vm0, %v562_v54, %v564_v47  ;;  %v566_v19 = vsel %vm354_vm0, %v564_v47, %v562_v54  ;;  %v606_v23 = vmul.f32 %v1207_v10, %v524_v32  ;;  %v607_v24 = vmul.f32 %v1208_v11, %v528_v33  ;;  %v662_v54 = vld [vmem:[%s1867_s3 + $0x10] sm:$0xff] (%p305_p9) }
  0xa8   : >> { %v502_v61 = vadd.f32 %v500_v34, %v483_v50  ;;  %v503_v62 = vadd.f32 %v501_v35, %v484_v51  ;;  %v531_v63 = vadd.f32 %v529_v52, %v506_v26  ;;  %v532_v44 = vadd.f32 %v530_v53, %v507_v29  ;;  %v600_v0 = vpop.permute.xlu1 %599  ;;  %v661_v50 = vld [vmem:[%s1867_s3 + $0x8] sm:$0xff] (%p305_p9)  ;;  %v858_v51 = vld [vmem:[%s1868_s4] sm:$0xff] (%p305_p9) }
  0xa9   : >> { %v577_v45 = vrot.slane %v566_v19, %v1521_v2  ;;  %v581_v1 = vrot.slane %v565_v18, %v1521_v2  ;;  %v859_v53 = vld [vmem:[%s1868_s4 + $0x8] sm:$0xff] (%p305_p9)  ;;  %v861_v18 = vld [vmem:[%s1868_s4 + $0x18] sm:$0xff] (%p305_p9) }
  0xaa   : >> { %v598_v15 = vpop.permute.xlu0 %597  ;;  %v519_v16 = vadd.f32 %v517_v55, %v502_v61  ;;  %v520_v17 = vadd.f32 %v518_v58, %v503_v62  ;;  %v663_v55 = vld [vmem:[%s1867_s3 + $0x18] sm:$0xff] (%p305_p9)  ;;  %v1362_v58 = vpack.c.bf16 (%p305_p9), %v859_v53, %v858_v51 }
  0xab   : >> { %v582_v21 = vmul.f32 %v1203_v59, %v577_v45  ;;  %v583_v22 = vmul.f32 %v1204_v60, %v581_v1  ;;  %v601_v8 = vsel %vm415_vm1, %v598_v15, %v600_v0  ;;  %v602_v12 = vsel %vm415_vm1, %v600_v0, %v598_v15  ;;  %v860_v60 = vld [vmem:[%s1868_s4 + $0x10] sm:$0xff] (%p305_p9) }
  0xac   : >> { %v613_v56 = vrot.slane %v601_v8, %v1521_v2  ;;  %v617_v57 = vrot.slane %v602_v12, %v1521_v2  ;;  %v572_v13 = vadd.f32 %v570_v6, %v519_v16  ;;  %v573_v14 = vadd.f32 %v571_v9, %v520_v17  ;;  %1363 = vmatprep.subr.bf16.mxu1 (%p305_p9), %v1362_v58  ;;  %v1784_v8 = vld [vmem:[%s1869_s5] sm:$0xff] (%p305_p9) }
  0xad   : >> { %v584_v25 = vadd.f32 %v582_v21, %v531_v63  ;;  %v585_v26 = vadd.f32 %v583_v22, %v532_v44  ;;  %v1358_v59 = vpack.c.bf16 (%p305_p9), %v663_v55, %v662_v54  ;;  %v1366_v61 = vpack.c.bf16 (%p305_p9), %v861_v18, %v860_v60  ;;  %1365 = vmatpush3.bf16.msra.mxu1 (%p305_p9), %v1362_v58 }
  0xae   : >> { %v618_v29 = vmul.f32 %v1207_v10, %v613_v56  ;;  %v619_v30 = vmul.f32 %v1208_v11, %v617_v57  ;;  %v591_v31 = vadd.f32 %v589_v3, %v572_v13  ;;  %v592_v27 = vadd.f32 %v590_v4, %v573_v14  ;;  %v1789_v13 = vld [vmem:[%s1870_s6] sm:$0xff] (%p305_p9) }
  0xaf   : >> { %v595_v28 = vadd.f32 %v593_v49, %v584_v25  ;;  %v596_v34 = vadd.f32 %v594_v39, %v585_v26  ;;  %v660_v49 = vld [vmem:[%s1867_s3] sm:$0xff] (%p305_p9)  ;;  %1367 = vmatprep.subr.bf16.mxu1 (%p305_p9), %v1366_v61 }
  0xb0   : >> { %v608_v35 = vadd.f32 %v606_v23, %v591_v31  ;;  %v609_v36 = vadd.f32 %v607_v24, %v592_v27  ;;  %v1354_v52 = vpack.c.bf16 (%p305_p9), %v661_v50, %v660_v49 }
  0xb1   : >> { %v620_v20 = vadd.f32 %v618_v29, %v595_v28  ;;  %v621_v37 = vadd.f32 %v619_v30, %v596_v34  ;;  %1369 = vmatpush3.bf16.msra.mxu1 (%p305_p9), %v1366_v61 }
  0xb2   : >> { %v622_v40 = vadd.f32 %v609_v36, %v608_v35  ;;  %1355 = vmatprep.subr.bf16.mxu0 (%p305_p9), %v1354_v52 }
  0xb3   : >> { %v629_v41 = vadd.f32 %v621_v37, %v620_v20  ;;  %1357 = vmatpush3.bf16.msra.mxu0 (%p305_p9), %v1354_v52 }
  0xb4   : >> { %623 = vrot.lane.b32.xlu0 %v622_v40, %s1440_s15  ;;  %1359 = vmatprep.subr.bf16.mxu0 (%p305_p9), %v1358_v59 }
  0xb5   : >> { %630 = vrot.lane.b32.xlu1 %v629_v41, %s1440_s15 }
  0xb7   : > { %1361 = vmatpush3.bf16.msra.mxu0 (%p305_p9), %v1358_v59 }
 0x126   : >> { %v624_v2 = vpop.permute.xlu0 %623 }
 0x127   : >> { %v631_v42 = vpop.permute.xlu1 %630  ;;  %v625_v43 = vadd.f32 %v624_v2, %v622_v40 }
 0x128   : >> { %v632_v46 = vadd.f32 %v631_v42, %v629_v41 }
 0x129   : >> { %626 = vrot.lane.b32.xlu0 %v625_v43, %s1441_s16 }
 0x12a   : >> { %633 = vrot.lane.b32.xlu1 %v632_v46, %s1441_s16 }
 0x19b   : >> { %v627_v47 = vpop.permute.xlu0 %626 }
 0x19c   : >> { %v634_v48 = vpop.permute.xlu1 %633  ;;  %v628_v5 = vadd.f32 %v627_v47, %v625_v43 }
 0x19d   : >> { %v635_v7 = vadd.f32 %v634_v48, %v632_v46 }
 0x19f   : >> { %v636_v32 = vmax.f32 %v628_v5, %v635_v7  ;;  %307 = sbr.rel (!%p305_p9) target bundleno = 17 (0x11), region = 98 }
 0x1a1   : >> { %v638_v33 = vadd.f32 %v637_v38, %v636_v32 }
 0x1a3   : >> { %v639_v39 = vmax.f32 %v638_v33, 0.0 }
 0x1a5   : >> { %643 = vst.msk [vmem:[%s641_s18] sm:$0xff] %vm642_vm2, %v639_v39 }
 0x1ac   : > { %v644_v19 = vld [vmem:[#allocation2] sm:$0xff]  ;;  %v645_v62 = vld [vmem:[#allocation2 + $0x8] sm:$0xff]  ;;  %v646_v63 = vld [vmem:[#allocation2 + $0x10] sm:$0xff] }
 0x1ad   : > { %1298 = vmatprep.mubr.msk.f32.mxu0 %vm642_vm2, %v644_v19  ;;  %1330 = vmatprep.mubr.msk.f32.mxu1 %vm642_vm2, %v644_v19  ;;  %v647_v44 = vld [vmem:[#allocation2 + $0x18] sm:$0xff]  ;;  %v648_v0 = vld [vmem:[#allocation2 + $0x20] sm:$0xff]  ;;  %v649_v45 = vld [vmem:[#allocation2 + $0x28] sm:$0xff] }
 0x1ae   : > { %1299 = vmatmul.mubr.msk.f32.vlgmr.msra.gmra.mrb[0].mxu0 %vm642_vm2, %v645_v62  ;;  %1331 = vmatmul.mubr.msk.f32.vlgmr.msra.gmra.mrb[0].mxu1 %vm642_vm2, %v645_v62  ;;  %v650_v1 = vld [vmem:[#allocation2 + $0x30] sm:$0xff]  ;;  %v651_v3 = vld [vmem:[#allocation2 + $0x38] sm:$0xff]  ;;  %v652_v4 = vld [vmem:[#allocation2 + $0x40] sm:$0xff] }
 0x1af   : > { %1301 = vmatprep.mubr.msk.f32.mxu0 %vm642_vm2, %v646_v63  ;;  %1333 = vmatprep.mubr.msk.f32.mxu1 %vm642_vm2, %v646_v63  ;;  %v653_v6 = vld [vmem:[#allocation2 + $0x48] sm:$0xff]  ;;  %v654_v9 = vld [vmem:[#allocation2 + $0x50] sm:$0xff]  ;;  %v655_v10 = vld [vmem:[#allocation2 + $0x58] sm:$0xff] }
 0x1b0   : > { %v656_v11 = vld [vmem:[#allocation2 + $0x60] sm:$0xff]  ;;  %v657_v15 = vld [vmem:[#allocation2 + $0x68] sm:$0xff]  ;;  %v658_v16 = vld [vmem:[#allocation2 + $0x70] sm:$0xff] }
 0x1b1   : > { %v659_v17 = vld [vmem:[#allocation2 + $0x78] sm:$0xff] }
 0x1b2   : > { %1302 = vmatmul.mubr.msk.f32.gmra.mrb[2].mxu0 %vm642_vm2, %v647_v44  ;;  %1334 = vmatmul.mubr.msk.f32.gmra.mrb[2].mxu1 %vm642_vm2, %v647_v44 }
 0x1b3   : > { %1304 = vmatprep.mubr.msk.f32.mxu0 %vm642_vm2, %v648_v0  ;;  %1336 = vmatprep.mubr.msk.f32.mxu1 %vm642_vm2, %v648_v0 }
 0x1b6   : > { %1305 = vmatmul.mubr.msk.f32.gmra.mrb[4].mxu0 %vm642_vm2, %v649_v45  ;;  %1337 = vmatmul.mubr.msk.f32.gmra.mrb[4].mxu1 %vm642_vm2, %v649_v45 }
 0x1b7   : > { %1307 = vmatprep.mubr.msk.f32.mxu0 %vm642_vm2, %v650_v1  ;;  %1339 = vmatprep.mubr.msk.f32.mxu1 %vm642_vm2, %v650_v1 }
 0x1ba   : > { %1308 = vmatmul.mubr.msk.f32.gmra.mrb[6].mxu0 %vm642_vm2, %v651_v3  ;;  %1340 = vmatmul.mubr.msk.f32.gmra.mrb[6].mxu1 %vm642_vm2, %v651_v3 }
 0x1bb   : > { %1310 = vmatprep.mubr.msk.f32.mxu0 %vm642_vm2, %v652_v4  ;;  %1342 = vmatprep.mubr.msk.f32.mxu1 %vm642_vm2, %v652_v4 }
 0x1be   : > { %1311 = vmatmul.mubr.msk.f32.gmra.mrb[8].mxu0 %vm642_vm2, %v653_v6  ;;  %1343 = vmatmul.mubr.msk.f32.gmra.mrb[8].mxu1 %vm642_vm2, %v653_v6 }
 0x1bf   : > { %1313 = vmatprep.mubr.msk.f32.mxu0 %vm642_vm2, %v654_v9  ;;  %1345 = vmatprep.mubr.msk.f32.mxu1 %vm642_vm2, %v654_v9 }
 0x1c2   : > { %1314 = vmatmul.mubr.msk.f32.gmra.mrb[10].mxu0 %vm642_vm2, %v655_v10  ;;  %1346 = vmatmul.mubr.msk.f32.gmra.mrb[10].mxu1 %vm642_vm2, %v655_v10 }
 0x1c3   : > { %1316 = vmatprep.mubr.msk.f32.mxu0 %vm642_vm2, %v656_v11  ;;  %1348 = vmatprep.mubr.msk.f32.mxu1 %vm642_vm2, %v656_v11 }
 0x1c6   : > { %1317 = vmatmul.mubr.msk.f32.gmra.mrb[12].mxu0 %vm642_vm2, %v657_v15  ;;  %1349 = vmatmul.mubr.msk.f32.gmra.mrb[12].mxu1 %vm642_vm2, %v657_v15 }
 0x1c7   : > { %1319 = vmatprep.mubr.msk.f32.mxu0 %vm642_vm2, %v658_v16  ;;  %1351 = vmatprep.mubr.msk.f32.mxu1 %vm642_vm2, %v658_v16 }
 0x1ca   : > { %1320 = vmatmul.mubr.msk.f32.gmra.mrb[14].mxu0 %vm642_vm2, %v659_v17  ;;  %1352 = vmatmul.mubr.msk.f32.gmra.mrb[14].mxu1 %vm642_vm2, %v659_v17 }
 0x281   : > { %v1300_v21 = vpop.f32.mrb[0].mxu0  ;;  %v1332_v22 = vpop.f32.mrb[0].mxu1 }
 0x282   : > { %v779_v12 = vpop.f32.mrb[1].mxu0  ;;  %v1008_v56 = vmax.f32 %v1300_v21, %v1332_v22  ;;  %v928_v57 = vpop.f32.mrb[1].mxu1 }
 0x283   : > { %v1007_v14 = vmax.f32 %v779_v12, %v928_v57 }
 0x284   : > { %v1025_v23 = vmul.f32 %v1784_v8, %v1008_v56 }
 0x285   : > { %v1303_v24 = vpop.f32.mrb[2].mxu0  ;;  %v1024_v25 = vmul.f32 %v1784_v8, %v1007_v14  ;;  %v1335_v26 = vpop.f32.mrb[2].mxu1 }
 0x286   : > { %v789_v29 = vpop.f32.mrb[3].mxu0  ;;  %v1042_v30 = vadd.f32 %v1789_v13, %v1025_v23  ;;  %v1010_v31 = vmax.f32 %v1303_v24, %v1335_v26  ;;  %v938_v27 = vpop.f32.mrb[3].mxu1 }
 0x287   : > { %v1041_v28 = vadd.f32 %v1789_v13, %v1024_v25  ;;  %v1009_v34 = vmax.f32 %v789_v29, %v938_v27 }
 0x288   : > { %1059 = vst.msk [vmem:[%s1508_s12 + $0x8] sm:$0xff] %vm1057_vm3, %v1042_v30  ;;  %v1027_v35 = vmul.f32 %v1784_v8, %v1010_v31 }
 0x289   : > { %v1306_v36 = vpop.f32.mrb[4].mxu0  ;;  %1058 = vst.msk [vmem:[%s1508_s12] sm:$0xff] %vm1057_vm3, %v1041_v28  ;;  %v1026_v20 = vmul.f32 %v1784_v8, %v1009_v34  ;;  %v1338_v37 = vpop.f32.mrb[4].mxu1 }
 0x28a   : > { %v799_v40 = vpop.f32.mrb[5].mxu0  ;;  %v1044_v41 = vadd.f32 %v1789_v13, %v1027_v35  ;;  %v1012_v2 = vmax.f32 %v1306_v36, %v1338_v37  ;;  %v948_v42 = vpop.f32.mrb[5].mxu1 }
 0x28b   : > { %v1043_v43 = vadd.f32 %v1789_v13, %v1026_v20  ;;  %v1011_v46 = vmax.f32 %v799_v40, %v948_v42 }
 0x28c   : > { %1061 = vst.msk [vmem:[%s1508_s12 + $0x18] sm:$0xff] %vm1057_vm3, %v1044_v41  ;;  %v1029_v47 = vmul.f32 %v1784_v8, %v1012_v2 }
 0x28d   : > { %v1309_v48 = vpop.f32.mrb[6].mxu0  ;;  %1060 = vst.msk [vmem:[%s1508_s12 + $0x10] sm:$0xff] %vm1057_vm3, %v1043_v43  ;;  %v1028_v5 = vmul.f32 %v1784_v8, %v1011_v46  ;;  %v1341_v7 = vpop.f32.mrb[6].mxu1 }
 0x28e   : > { %v809_v38 = vpop.f32.mrb[7].mxu0  ;;  %v1046_v32 = vadd.f32 %v1789_v13, %v1029_v47  ;;  %v1014_v33 = vmax.f32 %v1309_v48, %v1341_v7  ;;  %v958_v39 = vpop.f32.mrb[7].mxu1 }
 0x28f   : > { %v1045_v49 = vadd.f32 %v1789_v13, %v1028_v5  ;;  %v1013_v50 = vmax.f32 %v809_v38, %v958_v39 }
 0x290   : > { %1063 = vst.msk [vmem:[%s1508_s12 + $0x28] sm:$0xff] %vm1057_vm3, %v1046_v32  ;;  %v1031_v51 = vmul.f32 %v1784_v8, %v1014_v33 }
 0x291   : > { %v1312_v52 = vpop.f32.mrb[8].mxu0  ;;  %1062 = vst.msk [vmem:[%s1508_s12 + $0x20] sm:$0xff] %vm1057_vm3, %v1045_v49  ;;  %v1030_v53 = vmul.f32 %v1784_v8, %v1013_v50  ;;  %v1344_v54 = vpop.f32.mrb[8].mxu1 }
 0x292   : > { %v819_v55 = vpop.f32.mrb[9].mxu0  ;;  %v1048_v58 = vadd.f32 %v1789_v13, %v1031_v51  ;;  %v1016_v59 = vmax.f32 %v1312_v52, %v1344_v54  ;;  %v968_v60 = vpop.f32.mrb[9].mxu1 }
 0x293   : > { %v1047_v18 = vadd.f32 %v1789_v13, %v1030_v53  ;;  %v1015_v19 = vmax.f32 %v819_v55, %v968_v60 }
 0x294   : > { %1065 = vst.msk [vmem:[%s1508_s12 + $0x38] sm:$0xff] %vm1057_vm3, %v1048_v58  ;;  %v1033_v61 = vmul.f32 %v1784_v8, %v1016_v59 }
 0x295   : > { %v1315_v62 = vpop.f32.mrb[10].mxu0  ;;  %1064 = vst.msk [vmem:[%s1508_s12 + $0x30] sm:$0xff] %vm1057_vm3, %v1047_v18  ;;  %v1032_v63 = vmul.f32 %v1784_v8, %v1015_v19  ;;  %v1347_v44 = vpop.f32.mrb[10].mxu1 }
 0x296   : > { %v829_v0 = vpop.f32.mrb[11].mxu0  ;;  %v1050_v45 = vadd.f32 %v1789_v13, %v1033_v61  ;;  %v1018_v1 = vmax.f32 %v1315_v62, %v1347_v44  ;;  %v978_v3 = vpop.f32.mrb[11].mxu1 }
 0x297   : > { %v1049_v4 = vadd.f32 %v1789_v13, %v1032_v63  ;;  %v1017_v6 = vmax.f32 %v829_v0, %v978_v3 }
 0x298   : > { %1067 = vst.msk [vmem:[%s1508_s12 + $0x48] sm:$0xff] %vm1057_vm3, %v1050_v45  ;;  %v1035_v9 = vmul.f32 %v1784_v8, %v1018_v1 }
 0x299   : > { %v1318_v10 = vpop.f32.mrb[12].mxu0  ;;  %1066 = vst.msk [vmem:[%s1508_s12 + $0x40] sm:$0xff] %vm1057_vm3, %v1049_v4  ;;  %v1034_v11 = vmul.f32 %v1784_v8, %v1017_v6  ;;  %v1350_v15 = vpop.f32.mrb[12].mxu1 }
 0x29a   : > { %v839_v16 = vpop.f32.mrb[13].mxu0  ;;  %v1052_v17 = vadd.f32 %v1789_v13, %v1035_v9  ;;  %v1020_v21 = vmax.f32 %v1318_v10, %v1350_v15  ;;  %v988_v22 = vpop.f32.mrb[13].mxu1 }
 0x29b   : > { %v1051_v12 = vadd.f32 %v1789_v13, %v1034_v11  ;;  %v1019_v56 = vmax.f32 %v839_v16, %v988_v22 }
 0x29c   : > { %1069 = vst.msk [vmem:[%s1508_s12 + $0x58] sm:$0xff] %vm1057_vm3, %v1052_v17  ;;  %v1037_v57 = vmul.f32 %v1784_v8, %v1020_v21 }
 0x29d   : > { %v1321_v14 = vpop.f32.mrb[14].mxu0  ;;  %1068 = vst.msk [vmem:[%s1508_s12 + $0x50] sm:$0xff] %vm1057_vm3, %v1051_v12  ;;  %v1036_v23 = vmul.f32 %v1784_v8, %v1019_v56  ;;  %v1353_v24 = vpop.f32.mrb[14].mxu1 }
 0x29e   : > { %v849_v25 = vpop.f32.mrb[15].mxu0  ;;  %v1054_v26 = vadd.f32 %v1789_v13, %v1037_v57  ;;  %v1022_v29 = vmax.f32 %v1321_v14, %v1353_v24  ;;  %v998_v30 = vpop.f32.mrb[15].mxu1 }
 0x29f   : > { %v1053_v31 = vadd.f32 %v1789_v13, %v1036_v23  ;;  %v1021_v27 = vmax.f32 %v849_v25, %v998_v30 }
 0x2a0   : > { %1071 = vst.msk [vmem:[%s1508_s12 + $0x68] sm:$0xff] %vm1057_vm3, %v1054_v26  ;;  %v1039_v28 = vmul.f32 %v1784_v8, %v1022_v29 }
 0x2a1   : > { %1070 = vst.msk [vmem:[%s1508_s12 + $0x60] sm:$0xff] %vm1057_vm3, %v1053_v31  ;;  %v1038_v34 = vmul.f32 %v1784_v8, %v1021_v27 }
 0x2a2   : > { %v1056_v35 = vadd.f32 %v1789_v13, %v1039_v28 }
 0x2a3   : > { %v1055_v36 = vadd.f32 %v1789_v13, %v1038_v34 }
 0x2a4   : > { %1073 = vst.msk [vmem:[%s1508_s12 + $0x78] sm:$0xff] %vm1057_vm3, %v1056_v35 }
 0x2a5   : > { %1072 = vst.msk [vmem:[%s1508_s12 + $0x70] sm:$0xff] %vm1057_vm3, %v1055_v36 }
 0x2a6 PF: > { %s17_s26 = sadd.s32 1, %s1432_s26   ;;  %s1872_s24 = smov %s1428_s25 }
 0x2a7   : > { %p14_p10 = scmp.ge.s32.totalorder %s17_s26, 4   ;;  %s1873_s25 = smov %s1875_s27 }
 0x2a9   :  { %16 = sbr.rel (!%p14_p10) target bundleno = 2 (0x2), region = 109 }

// kernel: _lambda_.11
= control target key start
LH: loop header
LB: loop body
LE: loop exit
PB: predicated region body
PF: predicated region fallthrough
CT: control target
= control target key end

     0   :  { %v568_v47 = vmov 1983009808   ;;  %v98_v49 = vlaneseq  ;;  %s840_s0 = inlined_call_operand.vmem [shape: f32[2,512], index: 0, kind: input, shape index: {}]   ;;  %s841_s1 = inlined_call_operand.vmem [shape: f32[512,64], index: 1, kind: input, shape index: {}]   ;;  %s842_s2 = inlined_call_operand.vmem [shape: f32[1,64], index: 2, kind: input, shape index: {}]   ;;  %s843_s3 = inlined_call_operand.vmem [shape: f32[64,10], index: 3, kind: input, shape index: {}]   ;;  %s844_s4 = inlined_call_operand.vmem [shape: f32[1,10], index: 4, kind: input, shape index: {}]   ;;  %s845_s5 = inlined_call_operand.hbm [shape: f32[2,10], index: 5, kind: output, shape index: {}]  }
   0x1   :  { %v38_v0 = vld [vmem:[%s841_s1 + $0x80] sm:$0xff]  ;;  %v39_v1 = vld [vmem:[%s841_s1 + $0x88] sm:$0xff]  ;;  %v40_v11 = vld [vmem:[%s841_s1 + $0x90] sm:$0xff]  ;;  %v96_v48 = vunpack.c.l.s4 %v568_v47 }
   0x2   :  { %v22_v2 = vld [vmem:[%s841_s1] sm:$0xff]  ;;  %v462_v3 = vpack.c.bf16 %v39_v1, %v38_v0  ;;  %v23_v4 = vld [vmem:[%s841_s1 + $0x8] sm:$0xff]  ;;  %v41_v13 = vld [vmem:[%s841_s1 + $0x98] sm:$0xff]  ;;  %v99_v0 = vshrl.u32 %v98_v49, 7 }
   0x3   :  { %v70_v5 = vld [vmem:[%s841_s1 + $0x180] sm:$0xff]  ;;  %v71_v6 = vld [vmem:[%s841_s1 + $0x188] sm:$0xff]  ;;  %v464_v7 = vpack.c.bf16 %v23_v4, %v22_v2  ;;  %v24_v14 = vld [vmem:[%s841_s1 + $0x10] sm:$0xff]  ;;  %v466_v16 = vpack.c.bf16 %v41_v13, %v40_v11  ;;  %v97_v63 = vunpack.c.0.s8 %v96_v48 }
   0x4   :  { %v494_v8 = vpack.c.bf16 %v71_v6, %v70_v5  ;;  %v54_v9 = vld [vmem:[%s841_s1 + $0x100] sm:$0xff]  ;;  %v55_v10 = vld [vmem:[%s841_s1 + $0x108] sm:$0xff]  ;;  %463 = vmatprep.subr.bf16.mxu0 %v462_v3  ;;  %v25_v15 = vld [vmem:[%s841_s1 + $0x18] sm:$0xff] }
   0x5   :  { %v496_v12 = vpack.c.bf16 %v55_v10, %v54_v9  ;;  %465 = vmatpush3.bf16.msra.mxu0 %v464_v7  ;;  %v468_v17 = vpack.c.bf16 %v25_v15, %v24_v14  ;;  %v72_v18 = vld [vmem:[%s841_s1 + $0x190] sm:$0xff]  ;;  %v73_v19 = vld [vmem:[%s841_s1 + $0x198] sm:$0xff]  ;;  %v42_v23 = vld [vmem:[%s841_s1 + $0xa0] sm:$0xff]  ;;  %v100_v13 = vsub.s32 %v97_v63, %v99_v0 }
   0x6   :  { %495 = vmatprep.subr.bf16.mxu1 %v494_v8  ;;  %v56_v20 = vld [vmem:[%s841_s1 + $0x110] sm:$0xff]  ;;  %v498_v21 = vpack.c.bf16 %v73_v19, %v72_v18  ;;  %v57_v22 = vld [vmem:[%s841_s1 + $0x118] sm:$0xff]  ;;  %v43_v24 = vld [vmem:[%s841_s1 + $0xa8] sm:$0xff]  ;;  %467 = vmatprep.subr.bf16.mxu0 %v466_v16 }
   0x7   :  { %497 = vmatpush3.bf16.msra.mxu1 %v496_v12  ;;  %v500_v25 = vpack.c.bf16 %v57_v22, %v56_v20  ;;  %v470_v26 = vpack.c.bf16 %v43_v24, %v42_v23  ;;  %v26_v27 = vld [vmem:[%s841_s1 + $0x20] sm:$0xff]  ;;  %v27_v28 = vld [vmem:[%s841_s1 + $0x28] sm:$0xff]  ;;  %v44_v35 = vld [vmem:[%s841_s1 + $0xb0] sm:$0xff] }
   0x8   :  { %v74_v29 = vld [vmem:[%s841_s1 + $0x1a0] sm:$0xff]  ;;  %499 = vmatprep.subr.bf16.mxu1 %v498_v21  ;;  %v75_v30 = vld [vmem:[%s841_s1 + $0x1a8] sm:$0xff]  ;;  %v472_v33 = vpack.c.bf16 %v27_v28, %v26_v27  ;;  %v45_v36 = vld [vmem:[%s841_s1 + $0xb8] sm:$0xff] }
   0x9   :  { %v58_v31 = vld [vmem:[%s841_s1 + $0x120] sm:$0xff]  ;;  %v59_v32 = vld [vmem:[%s841_s1 + $0x128] sm:$0xff]  ;;  %469 = vmatpush3.bf16.msra.mxu0 %v468_v17  ;;  %v502_v34 = vpack.c.bf16 %v75_v30, %v74_v29  ;;  %v28_v37 = vld [vmem:[%s841_s1 + $0x30] sm:$0xff]  ;;  %v474_v39 = vpack.c.bf16 %v45_v36, %v44_v35 }
   0xa   :  { %471 = vmatprep.subr.bf16.mxu0 %v470_v26  ;;  %v504_v38 = vpack.c.bf16 %v59_v32, %v58_v31  ;;  %v29_v40 = vld [vmem:[%s841_s1 + $0x38] sm:$0xff]  ;;  %v76_v41 = vld [vmem:[%s841_s1 + $0x1b0] sm:$0xff]  ;;  %v46_v46 = vld [vmem:[%s841_s1 + $0xc0] sm:$0xff] }
   0xb   :  { %501 = vmatpush3.bf16.msra.mxu1 %v500_v25  ;;  %v77_v42 = vld [vmem:[%s841_s1 + $0x1b8] sm:$0xff]  ;;  %v60_v44 = vld [vmem:[%s841_s1 + $0x130] sm:$0xff]  ;;  %v47_v50 = vld [vmem:[%s841_s1 + $0xc8] sm:$0xff]  ;;  %v476_v51 = vpack.c.bf16 %v29_v40, %v28_v37 }
   0xc   :  { %503 = vmatprep.subr.bf16.mxu1 %v502_v34  ;;  %v506_v43 = vpack.c.bf16 %v77_v42, %v76_v41  ;;  %v61_v45 = vld [vmem:[%s841_s1 + $0x138] sm:$0xff]  ;;  %v78_v52 = vld [vmem:[%s841_s1 + $0x1c0] sm:$0xff]  ;;  %v79_v53 = vld [vmem:[%s841_s1 + $0x1c8] sm:$0xff]  ;;  %v478_v55 = vpack.c.bf16 %v47_v50, %v46_v46 }
   0xd   :  { %473 = vmatpush3.bf16.msra.mxu0 %v472_v33  ;;  %v508_v54 = vpack.c.bf16 %v61_v45, %v60_v44  ;;  %v30_v56 = vld [vmem:[%s841_s1 + $0x40] sm:$0xff]  ;;  %v31_v57 = vld [vmem:[%s841_s1 + $0x48] sm:$0xff]  ;;  %v510_v59 = vpack.c.bf16 %v79_v53, %v78_v52  ;;  %v48_v61 = vld [vmem:[%s841_s1 + $0xd0] sm:$0xff] }
   0xe   :  { %475 = vmatprep.subr.bf16.mxu0 %v474_v39  ;;  %v62_v58 = vld [vmem:[%s841_s1 + $0x140] sm:$0xff]  ;;  %v63_v60 = vld [vmem:[%s841_s1 + $0x148] sm:$0xff]  ;;  %v49_v62 = vld [vmem:[%s841_s1 + $0xd8] sm:$0xff]  ;;  %v480_v3 = vpack.c.bf16 %v31_v57, %v30_v56 }
   0xf   :  { %505 = vmatpush3.bf16.msra.mxu1 %v504_v38  ;;  %v80_v1 = vld [vmem:[%s841_s1 + $0x1d0] sm:$0xff]  ;;  %v81_v2 = vld [vmem:[%s841_s1 + $0x1d8] sm:$0xff]  ;;  %v512_v4 = vpack.c.bf16 %v63_v60, %v62_v58  ;;  %v482_v5 = vpack.c.bf16 %v49_v62, %v48_v61  ;;  %v50_v11 = vld [vmem:[%s841_s1 + $0xe0] sm:$0xff] }
  0x10   :  { %507 = vmatprep.subr.bf16.mxu1 %v506_v43  ;;  %v32_v6 = vld [vmem:[%s841_s1 + $0x50] sm:$0xff]  ;;  %v33_v7 = vld [vmem:[%s841_s1 + $0x58] sm:$0xff]  ;;  %v514_v9 = vpack.c.bf16 %v81_v2, %v80_v1  ;;  %v51_v12 = vld [vmem:[%s841_s1 + $0xe8] sm:$0xff] }
  0x11   :  { %477 = vmatpush3.bf16.msra.mxu0 %v476_v51  ;;  %v64_v8 = vld [vmem:[%s841_s1 + $0x150] sm:$0xff]  ;;  %v65_v10 = vld [vmem:[%s841_s1 + $0x158] sm:$0xff]  ;;  %v82_v14 = vld [vmem:[%s841_s1 + $0x1e0] sm:$0xff]  ;;  %v484_v16 = vpack.c.bf16 %v33_v7, %v32_v6  ;;  %v486_v19 = vpack.c.bf16 %v51_v12, %v50_v11 }
  0x12   :  { %479 = vmatprep.subr.bf16.mxu0 %v478_v55  ;;  %v83_v15 = vld [vmem:[%s841_s1 + $0x1e8] sm:$0xff]  ;;  %v34_v17 = vld [vmem:[%s841_s1 + $0x60] sm:$0xff]  ;;  %v516_v18 = vpack.c.bf16 %v65_v10, %v64_v8  ;;  %v52_v25 = vld [vmem:[%s841_s1 + $0xf0] sm:$0xff] }
  0x13   :  { %509 = vmatpush3.bf16.msra.mxu1 %v508_v54  ;;  %v35_v20 = vld [vmem:[%s841_s1 + $0x68] sm:$0xff]  ;;  %v66_v21 = vld [vmem:[%s841_s1 + $0x160] sm:$0xff]  ;;  %v518_v23 = vpack.c.bf16 %v83_v15, %v82_v14  ;;  %v53_v26 = vld [vmem:[%s841_s1 + $0xf8] sm:$0xff] }
  0x14   :  { %511 = vmatprep.subr.bf16.mxu1 %v510_v59  ;;  %v21_v22 = vld [vmem:[%s840_s0] sm:$0xff]  ;;  %v67_v24 = vld [vmem:[%s841_s1 + $0x168] sm:$0xff]  ;;  %v84_v29 = vld [vmem:[%s841_s1 + $0x1f0] sm:$0xff] }
  0x15   :  { %481 = vmatpush3.bf16.msra.mxu0 %v480_v3  ;;  %v101_v27 = vrot.slane %v21_v22, %v100_v13  ;;  %v94_v28 = vcombine.high %v21_v22, %v21_v22  ;;  %v85_v30 = vld [vmem:[%s841_s1 + $0x1f8] sm:$0xff] }
  0x16   :  { %483 = vmatprep.subr.bf16.mxu0 %v482_v5 }
  0x17   :  { %513 = vmatpush3.bf16.msra.mxu1 %v512_v4 }
  0x18   :  { %515 = vmatprep.subr.bf16.mxu1 %v514_v9 }
  0x19   :  { %10 = vsyncpa [#allocation3], 0  ;;  %485 = vmatpush3.bf16.msra.mxu0 %v484_v16  ;;  %v488_v31 = vpack.c.bf16 %v35_v20, %v34_v17  ;;  %v109_v32 = vcombine.high %v101_v27, %v101_v27  ;;  %v108_v33 = vrot.slane %v94_v28, %v100_v13  ;;  %v520_v34 = vpack.c.bf16 %v67_v24, %v66_v21  ;;  %v36_v36 = vld [vmem:[%s841_s1 + $0x70] sm:$0xff]  ;;  %v37_v37 = vld [vmem:[%s841_s1 + $0x78] sm:$0xff]  ;;  %s572_s14 = smov [#allocation2]  }
  0x1a   :  { %487 = vmatprep.subr.bf16.mxu0 %v486_v19  ;;  %v490_v35 = vpack.c.bf16 %v53_v26, %v52_v25  ;;  %v522_v38 = vpack.c.bf16 %v85_v30, %v84_v29  ;;  %v68_v39 = vld [vmem:[%s841_s1 + $0x170] sm:$0xff]  ;;  %v69_v40 = vld [vmem:[%s841_s1 + $0x178] sm:$0xff]  ;;  %v492_v42 = vpack.c.bf16 %v37_v37, %v36_v36  ;;  %v256_v44 = vld [vmem:[%s843_s3] sm:$0xff]  ;;  %v569_v47 = vmov 0.0|0.0   ;;  %s353_s15 = sshll.u32 %s572_s14, 4  ;;  %s354_s15 = int_to_ptr.vmem [resolvable:$true] %s353_s15 }
  0x1b   :  { %517 = vmatpush3.bf16.msra.mxu1 %v516_v18  ;;  %179 = vmatprep.mubr.f32.mxu0 %v109_v32  ;;  %v110_v41 = vcombine.high %v108_v33, %v108_v33  ;;  %v524_v43 = vpack.c.bf16 %v69_v40, %v68_v39  ;;  %v257_v45 = vld [vmem:[%s843_s3 + $0x8] sm:$0xff]  ;;  %v258_v48 = vld [vmem:[%s843_s3 + $0x10] sm:$0xff]  ;;  %v259_v49 = vld [vmem:[%s843_s3 + $0x18] sm:$0xff]  ;;  %vm570_vm0 = vmmov 0   ;;  %v571_v57 = vmov 0.0   ;;  %p549_p1 = scmp.lt.s32.totalorder %s354_s15, %s354_s15 }
  0x1c   :  { %519 = vmatprep.subr.bf16.mxu1 %v518_v23  ;;  %v527_v46 = vpack.c.bf16 %v257_v45, %v256_v44  ;;  %v530_v50 = vpack.c.bf16 %v259_v49, %v258_v48  ;;  %v260_v51 = vld [vmem:[%s843_s3 + $0x20] sm:$0xff]  ;;  %v261_v52 = vld [vmem:[%s843_s3 + $0x28] sm:$0xff]  ;;  %v262_v54 = vld [vmem:[%s843_s3 + $0x30] sm:$0xff]  ;;  %vm271_vm1 = vcmask 523264   ;;  %vm345_vm2 = vcmask 74752  }
  0x1d   :  { %489 = vmatpush3.bf16.msra.mxu0 %v488_v31  ;;  %249 = vmatprep.mubr.f32.mxu1 %v110_v41  ;;  %v533_v53 = vpack.c.bf16 %v261_v52, %v260_v51  ;;  %v263_v55 = vld [vmem:[%s843_s3 + $0x38] sm:$0xff]  ;;  %v361_v59 = vld [vmem:[%s842_s2] ss:$0 sm:$0xff]  ;;  %s544_s2 = scalar_lea.vmem %s354_s15, 32 }
  0x1e   :  { %491 = vmatprep.subr.bf16.mxu0 %v490_v35  ;;  %v536_v56 = vpack.c.bf16 %v263_v55, %v262_v54  ;;  %v362_v4 = vld [vmem:[%s844_s4] ss:$0 sm:$0xff]  ;;  %p545_p0 = scmp.ne.s32.totalorder %s354_s15, %s544_s2  ;;  %p550_p2 = scmp.lt.s32.totalorder %s544_s2, %s544_s2 }
  0x1f   :  { %521 = vmatpush3.bf16.msra.mxu1 %v520_v34 }
  0x20   :  { %523 = vmatprep.subr.bf16.mxu1 %v522_v38  ;;  %p551_p3 = por %p550_p2, %p549_p1 }
  0x21   :  { %493 = vmatpush3.bf16.msra.mxu0 %v492_v42 }
  0x22   :  { %526 = vmatprep.subr.bf16.mxu0 %v569_v47  ;;  %p552_p4 = pnand %p551_p3, %p545_p0 }
  0x23   :  { %525 = vmatpush3.bf16.msra.mxu1 %v524_v43 }
  0x24   :  { %180 = vmatmul.mubr.f32.vlgmr.msra.gmra.mrb[0].mxu0 %v101_v27 }
  0x25   :  { %528 = vmatpush3.bf16.msra.mxu0 %v527_v46  ;;  %459 = vmatprep.mubr.msk.f32.mxu0 %vm570_vm0, %v571_v57 }
  0x26   :  { %250 = vmatmul.mubr.f32.vlgmr.msra.gmra.mrb[0].mxu1 %v108_v33  ;;  %529 = vmatprep.subr.bf16.mxu0 %v569_v47 }
  0x29   :  { %531 = vmatpush3.bf16.msra.mxu0 %v530_v50 }
  0x2a   :  { %532 = vmatprep.subr.bf16.mxu0 %v569_v47 }
  0x2d   :  { %534 = vmatpush3.bf16.msra.mxu0 %v533_v53 }
  0x2e   :  { %535 = vmatprep.subr.bf16.mxu0 %v569_v47 }
  0x31   :  { %537 = vmatpush3.bf16.msra.mxu0 %v536_v56 }
  0xf7   :  { %v396_v58 = vpop.f32.mrb[0].mxu0 }
  0xf8   :  { %v397_v60 = vpop.f32.mrb[1].mxu0 }
  0xf9   :  { %v431_v61 = vpop.f32.mrb[0].mxu1  ;;  %v398_v62 = vadd.f32 %v397_v60, %v396_v58 }
  0xfa   :  { %v432_v63 = vpop.f32.mrb[1].mxu1 }
  0xfb   :  { %v433_v0 = vadd.f32 %v432_v63, %v431_v61  ;;  %v182_v1 = vadd.f32 %v398_v62, %v361_v59 }
  0xfd   :  { %v252_v2 = vadd.f32 %v433_v0, %v182_v1 }
  0xff   :  { %v255_v3 = vmax.f32 %v252_v2, 0.0 }
 0x101   :  { %460 = vmatmul.mubr.msk.f32.vlgmr.msra.gmra.mrb[2].mxu0 %vm271_vm1, %v255_v3 }
 0x1d4   :  { %v341_v5 = vpop.f32.mrb[2].mxu0 }
 0x1d5   :  { %v342_v6 = vadd.f32 %v362_v4, %v341_v5  ;;  %v461_v7 = vpop.f32.mrb[3].mxu0 }
 0x1d7   :  { %346 = vst.msk [vmem:[#allocation2] sm:$0x3] %vm345_vm2, %v342_v6 }
 0x1d8   :  { %555 = shalt.err (!%p552_p4)
}
 0x1d9   :  { %s556_s18 = scalar_lea.hbm %s845_s5, 32 }
 0x1da   :  { %p557_p5 = scmp.ne.s32.totalorder %s845_s5, %s556_s18  ;;  %p560_p6 = scmp.lt.u32.totalorder %s556_s18, %s845_s5 }
 0x1dc   :  { %p562_p7 = pnand %p560_p6, %p557_p5 }
 0x1de   :  { %565 = shalt.err (!%p562_p7)
}
 0x1df   :  { %356 = dma.vmem_to_hbm [thread:$0]  %s354_s15, 32, %s845_s5, [#allocation3]  }
 0x1e0   :  { %566 = dma.done.wait [#allocation3], 32  }
 0x1e1   :  { %567 = vsyncadd [#allocation3], 4294967264 }
 0x1e2   :  { %360 = vsyncpa [#allocation3], 1 }

// kernel: _lambda_.10
= control target key start
LH: loop header
LB: loop body
LE: loop exit
PB: predicated region body
PF: predicated region fallthrough
CT: control target
= control target key end

     0   :  { %s1076_s24 = smov 0   ;;  %s1078_s25 = smov 0   ;;  %s1212_s0 = inlined_call_operand.vmem [shape: f32[2,16,128], index: 0, kind: input, shape index: {}]   ;;  %s1213_s1 = inlined_call_operand.vmem [shape: f32[9,8,128], index: 1, kind: input, shape index: {}]   ;;  %s1214_s2 = inlined_call_operand.vmem [shape: f32[8,16], index: 2, kind: input, shape index: {}]   ;;  %s1215_s3 = inlined_call_operand.vmem [shape: f32[16,8], index: 3, kind: input, shape index: {}]   ;;  %s1216_s4 = inlined_call_operand.vmem [shape: f32[16,8], index: 4, kind: input, shape index: {}]   ;;  %s1217_s5 = inlined_call_operand.vmem [shape: f32[1,8,8], index: 5, kind: input, shape index: {}]   ;;  %s1218_s6 = inlined_call_operand.vmem [shape: f32[1,8,8], index: 6, kind: input, shape index: {}]   ;;  %s1219_s7 = inlined_call_operand.vmem [shape: f32[2,8,8,8], index: 7, kind: output, shape index: {}]  }
   0x1   :  { %s1080_s26 = smov 0  }
   0x2 LB: > { %s29_s27 = sadd.s32 1, %s1021_s25  ;;  %p864_p0 = scmp.ge.s32.totalorder %s1025_s26, 1  ;;  %s1025_s26 = sphi %s1080_s26, %s17_s26   ;;  %s1021_s25 = sphi %s1078_s25, %s1221_s25   ;;  %s1017_s24 = sphi %s1076_s24, %s1220_s24  }
   0x3   : > { %p31_p1 = scmp.ge.s32.totalorder %s29_s27, 2  ;;  %p251_p2 = scmp.lt.s32.totalorder %s1025_s26, 3 }
   0x5   : > { %s1223_s27 = smov (%p31_p1, %s29_s27), 0  ;;  %p252_p3 = pnand %p864_p0, %p251_p2 }
   0x6   : > { %p287_p4 = scmp.lt.s32.totalorder (!%p252_p3), %s1017_s24, 1  ;;  %s1104_s13 = smov (!%p252_p3), 0  }
   0x7   : > { %255 = sbr.rel (%p252_p3) target bundleno = 765 (0x2fd), region = 48 }
   0xe   : > { %s1225_s24 = smov (!%p287_p4, %s1017_s24), 1 }
   0xf   : > { %s900_s28 = sshll.u32 %s1225_s24, 4  ;;  %s901_s29 = sshll.u32 %s1225_s24, 6 }
  0x10   : > { %s1097_s9 = scalar_lea.vmem %s1212_s0, %s900_s28  ;;  %s1102_s12 = scalar_lea.vmem %s1219_s7, %s901_s29 }
  0x11 LB: >> { %s869_s14 = sshll.u32 %s1029_s13, 1  ;;  %s1031_s18 = smov 1   ;;  %v328_v8 = vlaneseq  ;;  %v871_v15 = vld [vmem:[%s1213_s1 + $0x8] sm:$0xff]  ;;  %v327_v16 = vld [vmem:[%s1213_s1] sm:$0xff]  ;;  %v872_v22 = vld [vmem:[%s1213_s1 + $0x10] sm:$0xff]  ;;  %vm477_vm0 = vcmask 130048   ;;  %s1029_s13 = sphi %s1104_s13, %s308_s13  }
  0x12   : >> { %s321_s15 = scalar_lea.vmem %s1097_s9, %s869_s14  ;;  %s409_s16 = sadd.s32 2, %s869_s14  ;;  %v876_v23 = vld [vmem:[%s1213_s1 + $0x20] sm:$0xff]  ;;  %v875_v25 = vld [vmem:[%s1213_s1 + $0x18] sm:$0xff]  ;;  %v877_v42 = vld [vmem:[%s1213_s1 + $0x28] sm:$0xff] }
  0x13   : >> { %v322_v0 = vld [vmem:[%s321_s15] sm:$0x1]  ;;  %s870_s17 = sadd.s32 4294967295, %s869_s14  ;;  %p410_p7 = scmp.lt.s32.totalorder %s409_s16, 15  ;;  %v874_v4 = vld [vmem:[%s321_s15 + $0x1] sm:$0x1] }
  0x14   : >> { %325 = vrot.lane.b32.xlu0 %v322_v0, %s1031_s18  ;;  %p312_p5 = scmp.gt.s32.totalorder %s870_s17, 0  ;;  %p316_p6 = scmp.ge.s32.totalorder %s870_s17, 0  ;;  %v329_v9 = vshrl.u32 %v328_v8, 7  ;;  %v879_v45 = vld [vmem:[%s1213_s1 + $0x38] sm:$0xff]  ;;  %v878_v48 = vld [vmem:[%s1213_s1 + $0x30] sm:$0xff]  ;;  %v880_v63 = vld [vmem:[%s1213_s1 + $0x40] sm:$0xff] }
  0x15   : >> { %p414_p8 = scmp.le.s32.totalorder %s409_s16, 15  ;;  %s1229_s16 = smov (!%p410_p7, %s409_s16), 15 }
  0x16   : >> { %s1227_s17 = smov (!%p312_p5, %s870_s17), 0  ;;  %s412_s23 = scalar_lea.vmem %s1097_s9, %s1229_s16  ;;  %v330_v11 = vsub.s32 0, %v329_v9 }
  0x17   : >> { %s317_s19 = scalar_select %p316_p6, 1, 0  ;;  %v413_v5 = vld [vmem:[%s412_s23] sm:$0x1] }
  0x18   : >> { %s314_s20 = scalar_lea.vmem %s1097_s9, %s1227_s17  ;;  %s1032_s28 = smov 127   ;;  %v351_v13 = vrot.slane %v322_v0, %v330_v11  ;;  %v394_v28 = vrot.slane %v874_v4, %v330_v11 }
  0x19   : >> { %v315_v1 = vld [vmem:[%s314_s20] sm:$0x1]  ;;  %s318_s21 = scvt.s32.f32 %s317_s19  ;;  %s1033_s30 = smov 64  }
  0x1a   : >> { %s415_s22 = scalar_select %p414_p8, 1, 0  ;;  %v352_v24 = vmul.f32 %v871_v15, %v351_v13  ;;  %v389_v35 = vmul.f32 %v876_v23, %v351_v13  ;;  %v395_v41 = vmul.f32 %v876_v23, %v394_v28  ;;  %v433_v56 = vmul.f32 %v879_v45, %v394_v28 }
  0x1b   : >> { %v319_v2 = vstv %s318_s21  ;;  %s1034_s8 = smov 96   ;;  %s1035_s10 = smov 112  }
  0x1c   : >> { %v320_v3 = vmul.f32 %v319_v2, %v315_v1  ;;  %s416_s24 = scvt.s32.f32 %s415_s22  ;;  %s881_s15 = sshll.u32 %s1029_s13, 3 }
  0x1d   : >> { %s476_s16 = scalar_lea.vmem [#allocation2], %s881_s15  ;;  %s308_s13 = sadd.s32 1, %s1029_s13  }
  0x1e   : >> { %354 = vrot.lane.b32.xlu1 %v320_v3, %s1032_s28  ;;  %323 = vrot.lane.b32.xlu0 %v320_v3, %s1031_s18  ;;  %v417_v6 = vstv %s416_s24  ;;  %v345_v12 = vrot.slane %v320_v3, %v330_v11  ;;  %p305_p9 = scmp.ge.s32.totalorder %s308_s13, 8  }
  0x1f   : >> { %v1113_v7 = vmul.f32 %v417_v6, %v413_v5  ;;  %v619_v28 = vld [vmem:[%s1216_s4] sm:$0xff] (%p305_p9)  ;;  %vm752_vm1 = vcmask (%p305_p9), 64512  }
  0x20   : >> { %v346_v21 = vmul.f32 %v871_v15, %v345_v12 }
  0x21   : >> { %v438_v51 = vrot.slane %v1113_v7, %v330_v11 }
  0x22   : >> { %356 = vrot.lane.b32.xlu1 %v322_v0, %s1032_s28  ;;  %375 = vrot.lane.b32.xlu0 %v874_v4, %s1031_s18 }
  0x23   : >> { %v439_v2 = vmul.f32 %v879_v45, %v438_v51 }
  0x26   : >> { %397 = vrot.lane.b32.xlu1 %v874_v4, %s1032_s28  ;;  %419 = vrot.lane.b32.xlu0 %v1113_v7, %s1031_s18 }
  0x2a   : >> { %441 = vrot.lane.b32.xlu1 %v1113_v7, %s1032_s28 }
  0x86   : >> { %v326_v10 = vpop.permute.xlu0 %325 }
  0x87   : >> { %v337_v14 = vrot.slane %v326_v10, %v330_v11 }
  0x89   : >> { %v338_v26 = vmul.f32 %v337_v14, %v327_v16  ;;  %v379_v36 = vmul.f32 %v875_v25, %v337_v14 }
  0x8b   : >> { %v353_v37 = vadd.f32 %v352_v24, %v338_v26  ;;  %v487_v26 = vld [vmem:[%s1215_s3] sm:$0xff] (%p305_p9) }
  0x90   : >> { %v355_v17 = vpop.permute.xlu1 %354  ;;  %v324_v18 = vpop.permute.xlu0 %323 }
  0x91   : >> { %v363_v19 = vrot.slane %v355_v17, %v330_v11  ;;  %v331_v20 = vrot.slane %v324_v18, %v330_v11 }
  0x93   : >> { %v332_v27 = vmul.f32 %v331_v20, %v327_v16  ;;  %v364_v31 = vmul.f32 %v872_v22, %v363_v19 }
  0x94   : >> { %v357_v29 = vpop.permute.xlu1 %356  ;;  %v376_v30 = vpop.permute.xlu0 %375 }
  0x95   : >> { %v347_v32 = vadd.f32 %v346_v21, %v332_v27  ;;  %v369_v33 = vrot.slane %v357_v29, %v330_v11  ;;  %v384_v34 = vrot.slane %v376_v30, %v330_v11  ;;  %v488_v27 = vld [vmem:[%s1215_s3 + $0x8] sm:$0xff] (%p305_p9) }
  0x96   : > { %v954_v29 = vpack.c.bf16 (%p305_p9), %v488_v27, %v487_v26  ;;  %v620_v30 = vld [vmem:[%s1216_s4 + $0x8] sm:$0xff] (%p305_p9) }
  0x97   : >> { %v365_v38 = vadd.f32 %v364_v31, %v347_v32  ;;  %v370_v39 = vmul.f32 %v872_v22, %v369_v33  ;;  %v385_v40 = vmul.f32 %v875_v25, %v384_v34  ;;  %v401_v53 = vmul.f32 %v877_v42, %v369_v33  ;;  %v472_v22 = vld [vmem:[%s1214_s2] sm:$0xff] }
  0x98   : >> { %v398_v43 = vpop.permute.xlu1 %397  ;;  %v420_v44 = vpop.permute.xlu0 %419  ;;  %v423_v57 = vmul.f32 %v878_v48, %v384_v34  ;;  %v958_v32 = vpack.c.bf16 (%p305_p9), %v620_v30, %v619_v28  ;;  %955 = vmatprep.subr.bf16.mxu0 (%p305_p9), %v954_v29 }
  0x99   : >> { %v371_v46 = vadd.f32 %v370_v39, %v353_v37  ;;  %v380_v47 = vadd.f32 %v379_v36, %v365_v38  ;;  %v406_v49 = vrot.slane %v398_v43, %v330_v11  ;;  %v428_v50 = vrot.slane %v420_v44, %v330_v11  ;;  %957 = vmatpush3.bf16.msra.mxu0 (%p305_p9), %v954_v29 }
  0x9a   : > { %959 = vmatprep.subr.bf16.mxu1 (%p305_p9), %v958_v32 }
  0x9b   : >> { %v390_v52 = vadd.f32 %v389_v35, %v380_v47  ;;  %v386_v54 = vadd.f32 %v385_v40, %v371_v46  ;;  %v407_v55 = vmul.f32 %v877_v42, %v406_v49  ;;  %v429_v61 = vmul.f32 %v878_v48, %v428_v50  ;;  %961 = vmatpush3.bf16.msra.mxu1 (%p305_p9), %v958_v32  ;;  %v734_v42 = vld [vmem:[%s1217_s5] sm:$0xff] (%p305_p9) }
  0x9c   : >> { %v442_v58 = vpop.permute.xlu1 %441  ;;  %v445_v3 = vmul.f32 %v880_v63, %v406_v49  ;;  %v743_v46 = vld [vmem:[%s1218_s6] sm:$0xff] (%p305_p9) }
  0x9d   : >> { %v402_v59 = vadd.f32 %v401_v53, %v390_v52  ;;  %v396_v60 = vadd.f32 %v395_v41, %v386_v54  ;;  %v450_v62 = vrot.slane %v442_v58, %v330_v11 }
  0x9f   : >> { %v424_v0 = vadd.f32 %v423_v57, %v402_v59  ;;  %v408_v1 = vadd.f32 %v407_v55, %v396_v60  ;;  %v451_v5 = vmul.f32 %v880_v63, %v450_v62 }
  0xa1   : >> { %v430_v4 = vadd.f32 %v429_v61, %v408_v1  ;;  %v434_v6 = vadd.f32 %v433_v56, %v424_v0 }
  0xa3   : >> { %v446_v7 = vadd.f32 %v445_v3, %v434_v6  ;;  %v440_v8 = vadd.f32 %v439_v2, %v430_v4 }
  0xa5   : >> { %453 = vrot.lane.b32.xlu0 %v446_v7, %s1033_s30  ;;  %v452_v9 = vadd.f32 %v451_v5, %v440_v8 }
  0xa7   : >> { %462 = vrot.lane.b32.xlu1 %v452_v9, %s1033_s30 }
 0x117   : >> { %v454_v10 = vpop.permute.xlu0 %453 }
 0x118   : >> { %v455_v12 = vadd.f32 %v454_v10, %v446_v7 }
 0x119   : >> { %v463_v11 = vpop.permute.xlu1 %462 }
 0x11a   : >> { %v464_v13 = vadd.f32 %v463_v11, %v452_v9  ;;  %456 = vrot.lane.b32.xlu0 %v455_v12, %s1034_s8 }
 0x11c   : >> { %465 = vrot.lane.b32.xlu1 %v464_v13, %s1034_s8 }
 0x18c   : >> { %v457_v14 = vpop.permute.xlu0 %456 }
 0x18d   : >> { %v458_v15 = vadd.f32 %v457_v14, %v455_v12 }
 0x18e   : >> { %v466_v16 = vpop.permute.xlu1 %465 }
 0x18f   : >> { %v467_v17 = vadd.f32 %v466_v16, %v464_v13  ;;  %459 = vrot.lane.b32.xlu0 %v458_v15, %s1035_s10 }
 0x191   : >> { %468 = vrot.lane.b32.xlu1 %v467_v17, %s1035_s10 }
 0x201   : >> { %v460_v18 = vpop.permute.xlu0 %459 }
 0x202   : >> { %v461_v20 = vadd.f32 %v460_v18, %v458_v15 }
 0x203   : >> { %v469_v19 = vpop.permute.xlu1 %468 }
 0x204   : >> { %v470_v21 = vadd.f32 %v469_v19, %v467_v17 }
 0x206   : >> { %v471_v23 = vmax.f32 %v461_v20, %v470_v21  ;;  %307 = sbr.rel (!%p305_p9) target bundleno = 17 (0x11), region = 98 }
 0x208   : >> { %v473_v24 = vadd.f32 %v472_v22, %v471_v23 }
 0x20a   : >> { %v474_v25 = vmax.f32 %v473_v24, 0.0 }
 0x20c   : >> { %478 = vst.msk [vmem:[%s476_s16] sm:$0xff] %vm477_vm0, %v474_v25 }
 0x213   : > { %v479_v31 = vld [vmem:[#allocation2] sm:$0xff]  ;;  %v480_v33 = vld [vmem:[#allocation2 + $0x8] sm:$0xff]  ;;  %v481_v34 = vld [vmem:[#allocation2 + $0x10] sm:$0xff] }
 0x214   : > { %926 = vmatprep.mubr.msk.f32.mxu0 %vm477_vm0, %v479_v31  ;;  %942 = vmatprep.mubr.msk.f32.mxu1 %vm477_vm0, %v479_v31  ;;  %v482_v35 = vld [vmem:[#allocation2 + $0x18] sm:$0xff]  ;;  %v483_v36 = vld [vmem:[#allocation2 + $0x20] sm:$0xff]  ;;  %v484_v37 = vld [vmem:[#allocation2 + $0x28] sm:$0xff] }
 0x215   : > { %927 = vmatmul.mubr.msk.f32.vlgmr.msra.gmra.mrb[0].mxu0 %vm477_vm0, %v480_v33  ;;  %943 = vmatmul.mubr.msk.f32.vlgmr.msra.gmra.mrb[0].mxu1 %vm477_vm0, %v480_v33  ;;  %v485_v38 = vld [vmem:[#allocation2 + $0x30] sm:$0xff]  ;;  %v486_v39 = vld [vmem:[#allocation2 + $0x38] sm:$0xff] }
 0x216   : > { %929 = vmatprep.mubr.msk.f32.mxu0 %vm477_vm0, %v481_v34  ;;  %945 = vmatprep.mubr.msk.f32.mxu1 %vm477_vm0, %v481_v34 }
 0x219   : > { %930 = vmatmul.mubr.msk.f32.gmra.mrb[2].mxu0 %vm477_vm0, %v482_v35  ;;  %946 = vmatmul.mubr.msk.f32.gmra.mrb[2].mxu1 %vm477_vm0, %v482_v35 }
 0x21a   : > { %932 = vmatprep.mubr.msk.f32.mxu0 %vm477_vm0, %v483_v36  ;;  %948 = vmatprep.mubr.msk.f32.mxu1 %vm477_vm0, %v483_v36 }
 0x21d   : > { %933 = vmatmul.mubr.msk.f32.gmra.mrb[4].mxu0 %vm477_vm0, %v484_v37  ;;  %949 = vmatmul.mubr.msk.f32.gmra.mrb[4].mxu1 %vm477_vm0, %v484_v37 }
 0x21e   : > { %935 = vmatprep.mubr.msk.f32.mxu0 %vm477_vm0, %v485_v38  ;;  %951 = vmatprep.mubr.msk.f32.mxu1 %vm477_vm0, %v485_v38 }
 0x221   : > { %936 = vmatmul.mubr.msk.f32.gmra.mrb[6].mxu0 %vm477_vm0, %v486_v39  ;;  %952 = vmatmul.mubr.msk.f32.gmra.mrb[6].mxu1 %vm477_vm0, %v486_v39 }
 0x2e8   : > { %v928_v40 = vpop.f32.mrb[0].mxu0  ;;  %v944_v41 = vpop.f32.mrb[0].mxu1 }
 0x2e9   : > { %v580_v43 = vpop.f32.mrb[1].mxu0  ;;  %v727_v44 = vmax.f32 %v928_v40, %v944_v41  ;;  %v687_v45 = vpop.f32.mrb[1].mxu1 }
 0x2ea   : > { %v726_v47 = vmax.f32 %v580_v43, %v687_v45 }
 0x2eb   : > { %v736_v48 = vmul.f32 %v734_v42, %v727_v44 }
 0x2ec   : > { %v931_v49 = vpop.f32.mrb[2].mxu0  ;;  %v735_v50 = vmul.f32 %v734_v42, %v726_v47  ;;  %v947_v51 = vpop.f32.mrb[2].mxu1 }
 0x2ed   : > { %v590_v52 = vpop.f32.mrb[3].mxu0  ;;  %v745_v53 = vadd.f32 %v743_v46, %v736_v48  ;;  %v729_v54 = vmax.f32 %v931_v49, %v947_v51  ;;  %v697_v55 = vpop.f32.mrb[3].mxu1 }
 0x2ee   : > { %v744_v56 = vadd.f32 %v743_v46, %v735_v50  ;;  %v728_v57 = vmax.f32 %v590_v52, %v697_v55 }
 0x2ef   : > { %754 = vst.msk [vmem:[%s1102_s12 + $0x8] sm:$0xff] %vm752_vm1, %v745_v53  ;;  %v738_v58 = vmul.f32 %v734_v42, %v729_v54 }
 0x2f0   : > { %v934_v59 = vpop.f32.mrb[4].mxu0  ;;  %753 = vst.msk [vmem:[%s1102_s12] sm:$0xff] %vm752_vm1, %v744_v56  ;;  %v737_v60 = vmul.f32 %v734_v42, %v728_v57  ;;  %v950_v61 = vpop.f32.mrb[4].mxu1 }
 0x2f1   : > { %v600_v62 = vpop.f32.mrb[5].mxu0  ;;  %v747_v63 = vadd.f32 %v743_v46, %v738_v58  ;;  %v731_v0 = vmax.f32 %v934_v59, %v950_v61  ;;  %v707_v1 = vpop.f32.mrb[5].mxu1 }
 0x2f2   : > { %v746_v2 = vadd.f32 %v743_v46, %v737_v60  ;;  %v730_v3 = vmax.f32 %v600_v62, %v707_v1 }
 0x2f3   : > { %756 = vst.msk [vmem:[%s1102_s12 + $0x18] sm:$0xff] %vm752_vm1, %v747_v63  ;;  %v740_v4 = vmul.f32 %v734_v42, %v731_v0 }
 0x2f4   : > { %v937_v5 = vpop.f32.mrb[6].mxu0  ;;  %755 = vst.msk [vmem:[%s1102_s12 + $0x10] sm:$0xff] %vm752_vm1, %v746_v2  ;;  %v739_v6 = vmul.f32 %v734_v42, %v730_v3  ;;  %v953_v7 = vpop.f32.mrb[6].mxu1 }
 0x2f5   : > { %v610_v8 = vpop.f32.mrb[7].mxu0  ;;  %v749_v9 = vadd.f32 %v743_v46, %v740_v4  ;;  %v733_v10 = vmax.f32 %v937_v5, %v953_v7  ;;  %v717_v12 = vpop.f32.mrb[7].mxu1 }
 0x2f6   : > { %v748_v11 = vadd.f32 %v743_v46, %v739_v6  ;;  %v732_v13 = vmax.f32 %v610_v8, %v717_v12 }
 0x2f7   : > { %758 = vst.msk [vmem:[%s1102_s12 + $0x28] sm:$0xff] %vm752_vm1, %v749_v9  ;;  %v742_v14 = vmul.f32 %v734_v42, %v733_v10 }
 0x2f8   : > { %757 = vst.msk [vmem:[%s1102_s12 + $0x20] sm:$0xff] %vm752_vm1, %v748_v11  ;;  %v741_v15 = vmul.f32 %v734_v42, %v732_v13 }
 0x2f9   : > { %v751_v16 = vadd.f32 %v743_v46, %v742_v14 }
 0x2fa   : > { %v750_v17 = vadd.f32 %v743_v46, %v741_v15 }
 0x2fb   : > { %760 = vst.msk [vmem:[%s1102_s12 + $0x38] sm:$0xff] %vm752_vm1, %v751_v16 }
 0x2fc   : > { %759 = vst.msk [vmem:[%s1102_s12 + $0x30] sm:$0xff] %vm752_vm1, %v750_v17 }
 0x2fd PF: > { %s17_s26 = sadd.s32 1, %s1025_s26   ;;  %s1220_s24 = smov %s1021_s25 }
 0x2fe   : > { %p14_p10 = scmp.ge.s32.totalorder %s17_s26, 4   ;;  %s1221_s25 = smov %s1223_s27 }
 0x300   :  { %16 = sbr.rel (!%p14_p10) target bundleno = 2 (0x2), region = 109 }

</bundles_post_ra>
